<compile_context>
chip_gen: v7x
topology: tpu7x:2x2x1
jax: 0.10.0
libtpu: 0.0.40
codegen_flags: <defaults>
</compile_context>

<pallas_src>
import functools

import jax
import jax.numpy as jnp
from jax import lax
from jax.experimental import pallas as pl
from jax.experimental.pallas import tpu as pltpu


# ----------------------------- Pallas kernels ------------------------------

def _matmul_bias_act_kernel(a_ref, w_ref, b_ref, o_ref, *, relu):
    """o = relu?(a @ w + b) for one (TM, K) row tile; w/b fully resident."""
    acc = jnp.dot(a_ref[...], w_ref[...], preferred_element_type=jnp.float32)
    acc = acc + b_ref[...]
    if relu:
        acc = jnp.maximum(acc, 0.0)
    o_ref[...] = acc.astype(o_ref.dtype)


def _conv_im2col_kernel(x_ref, w_ref, b_ref, o_ref, p_ref, *, H, W, Cin, Cout, TB):
    """3x3 'same' conv + bias + ReLU with in-VMEM im2col.

    x_ref: (TB, (H+4)*W, Cin)  per-image H-padded (2 rows top/bottom), flattened
    w_ref: (9*Cin, Cout)       tap-major weight matrix
    b_ref: (1, Cout)
    o_ref: (TB, H*W, Cout)
    p_ref: (H*W, 9*Cin)        VMEM scratch holding one image's patch slab
    """
    HW = H * W
    # W-boundary masks (out-of-image column reads wrap to the neighbouring
    # flattened row; their contribution must be zero, matching padding=1).
    col = lax.broadcasted_iota(jnp.int32, (HW, 1), 0) % W
    left_ok = col > 0            # used for taps with dj == 0 (reads column j-1)
    right_ok = col < (W - 1)     # used for taps with dj == 2 (reads column j+1)

    for t in range(TB):
        # Build the (HW, 9*Cin) patch slab for image t from 9 shifted slices.
        for di in range(3):
            for dj in range(3):
                tap = di * 3 + dj
                off = (di + 1) * W + (dj - 1)       # row shift inside padded image
                xt = x_ref[t, pl.ds(off, HW), :]    # (HW, Cin)
                if dj == 0:
                    xt = jnp.where(left_ok, xt, 0.0)
                elif dj == 2:
                    xt = jnp.where(right_ok, xt, 0.0)
                p_ref[:, tap * Cin:(tap + 1) * Cin] = xt
        y = jnp.dot(p_ref[...], w_ref[...], preferred_element_type=jnp.float32)
        y = jnp.maximum(y + b_ref[...], 0.0)
        o_ref[t] = y.astype(o_ref.dtype)


def _pool_pairs_kernel(x_ref, o_ref, *, half):
    """Elementwise max of the two contiguous lane halves of each row."""
    o_ref[...] = jnp.maximum(x_ref[:, 0:half], x_ref[:, half:2 * half])


def _fc_head_kernel(x_ref, w1_ref, b1_ref, w2_ref, b2_ref, o_ref):
    """Fused fc1 + bias + ReLU + fc2 + bias.  bf16 matmuls, f32 accumulation."""
    h = jnp.dot(x_ref[...].astype(jnp.bfloat16), w1_ref[...],
                preferred_element_type=jnp.float32)
    h = jnp.maximum(h + b1_ref[...], 0.0)
    o = jnp.dot(h.astype(jnp.bfloat16), w2_ref[...],
                preferred_element_type=jnp.float32) + b2_ref[...]
    # N=10 output stays masked-lane; fusing fc1+fc2 already removed the extra
    # launch + (B,128) HBM round trip flagged in the review.
    o_ref[...] = o.astype(o_ref.dtype)


# ------------------------------ Pallas wrappers -----------------------------

_PARALLEL = pltpu.CompilerParams(dimension_semantics=("parallel",))


def matmul_bias_act(a, w, b, *, relu, tm=8192):
    """Row-tiled (grid over M) matmul + bias + optional ReLU."""
    M, K = a.shape
    N = w.shape[1]
    TM = min(tm, M)
    cost = pl.CostEstimate(flops=2 * M * K * N, transcendentals=0,
                           bytes_accessed=(a.size + w.size + b.size + M * N) * 4)
    return pl.pallas_call(
        functools.partial(_matmul_bias_act_kernel, relu=relu),
        out_shape=jax.ShapeDtypeStruct((M, N), jnp.float32),
        grid=(pl.cdiv(M, TM),),
        in_specs=[
            pl.BlockSpec((TM, K), lambda i: (i, 0)),
            pl.BlockSpec((K, N), lambda i: (0, 0)),
            pl.BlockSpec((1, N), lambda i: (0, 0)),
        ],
        out_specs=pl.BlockSpec((TM, N), lambda i: (i, 0)),
        compiler_params=_PARALLEL,
        cost_estimate=cost,
    )(a, w, b)


def conv3x3_relu_fused(x_nhwc, w_mat, bias, *, tb=8):
    """3x3 conv (stride 1, padding 1) + bias + ReLU with in-kernel im2col.

    Returns the conv output flattened as (B*H*W, Cout), rows ordered (b, i, j).
    """
    B, H, W, Cin = x_nhwc.shape
    Cout = w_mat.shape[1]
    # Pad H by 2 rows top/bottom so every 3x3 halo read stays inside the image's
    # own flattened extent; W wrap-around reads are masked inside the kernel.
    xpad = jnp.pad(x_nhwc, ((0, 0), (2, 2), (0, 0), (0, 0)))
    x3d = xpad.reshape(B, (H + 4) * W, Cin)
    TB = min(tb, B)
    cost = pl.CostEstimate(
        flops=2 * B * H * W * 9 * Cin * Cout, transcendentals=0,
        bytes_accessed=(x3d.size + w_mat.size + bias.size + B * H * W * Cout) * 4)
    out = pl.pallas_call(
        functools.partial(_conv_im2col_kernel, H=H, W=W, Cin=Cin, Cout=Cout, TB=TB),
        out_shape=jax.ShapeDtypeStruct((B, H * W, Cout), jnp.float32),
        grid=(pl.cdiv(B, TB),),
        in_specs=[
            pl.BlockSpec((TB, (H + 4) * W, Cin), lambda b: (b, 0, 0)),
            pl.BlockSpec((9 * Cin, Cout), lambda b: (0, 0)),
            pl.BlockSpec((1, Cout), lambda b: (0, 0)),
        ],
        out_specs=pl.BlockSpec((TB, H * W, Cout), lambda b: (b, 0, 0)),
        scratch_shapes=[pltpu.VMEM((H * W, 9 * Cin), jnp.float32)],
        compiler_params=_PARALLEL,
        cost_estimate=cost,
    )(x3d, w_mat, bias)
    return out.reshape(B * H * W, Cout)


def pool_pairs(x, *, half, tr=4096):
    """Max over the two contiguous lane halves of each row (tiled over rows)."""
    R, L = x.shape
    assert L == 2 * half
    TR = min(tr, R)
    return pl.pallas_call(
        functools.partial(_pool_pairs_kernel, half=half),
        out_shape=jax.ShapeDtypeStruct((R, half), jnp.float32),
        grid=(pl.cdiv(R, TR),),
        in_specs=[pl.BlockSpec((TR, L), lambda i: (i, 0))],
        out_specs=pl.BlockSpec((TR, half), lambda i: (i, 0)),
        compiler_params=_PARALLEL,
    )(x)


def fc_head(x, w1, b1, w2, b2, *, tb=512):
    """Fused fc1 + ReLU + fc2 (weights pre-transposed/permuted, bf16)."""
    B, K = x.shape
    N1 = w1.shape[1]
    N2 = w2.shape[1]
    TB = min(tb, B)
    cost = pl.CostEstimate(
        flops=2 * B * (K * N1 + N1 * N2), transcendentals=0,
        bytes_accessed=x.size * 4 + (w1.size + w2.size) * 2
                       + (b1.size + b2.size) * 4 + B * N2 * 4)
    return pl.pallas_call(
        _fc_head_kernel,
        out_shape=jax.ShapeDtypeStruct((B, N2), jnp.float32),
        grid=(pl.cdiv(B, TB),),
        in_specs=[
            pl.BlockSpec((TB, K), lambda i: (i, 0)),
            pl.BlockSpec((K, N1), lambda i: (0, 0)),
            pl.BlockSpec((1, N1), lambda i: (0, 0)),
            pl.BlockSpec((N1, N2), lambda i: (0, 0)),
            pl.BlockSpec((1, N2), lambda i: (0, 0)),
        ],
        out_specs=pl.BlockSpec((TB, N2), lambda i: (i, 0)),
        compiler_params=_PARALLEL,
        cost_estimate=cost,
    )(x, w1, b1, w2, b2)


# ------------------------------ JAX glue ops --------------------------------

def im2col(x_nhwc, k=3, pad=1):
    """(B,H,W,C) -> (B*H*W, k*k*C) patches, feature order (ki, kj, cin).

    Only used for conv1 (C=1): its patch tensor is tiny, so HBM im2col is
    cheaper than lane-sparse in-kernel patch building.
    """
    B, H, W, C = x_nhwc.shape
    xp = jnp.pad(x_nhwc, ((0, 0), (pad, pad), (pad, pad), (0, 0)))
    cols = []
    for di in range(k):
        for dj in range(k):
            cols.append(xp[:, di:di + H, dj:dj + W, :])
    patches = jnp.concatenate(cols, axis=-1)          # (B, H, W, k*k*C)
    return patches.reshape(B * H * W, k * k * C)


# ------------------------------- CNN module ---------------------------------

def init_params(key):
    """PyTorch-style uniform(-1/sqrt(fan_in), 1/sqrt(fan_in)) init (torch layout)."""
    keys = jax.random.split(key, 8)

    def u(k, shape, fan_in):
        bound = 1.0 / jnp.sqrt(jnp.float32(fan_in))
        return jax.random.uniform(k, shape, jnp.float32, -bound, bound)

    return {
        "conv1_w": u(keys[0], (16, 1, 3, 3), 1 * 3 * 3),
        "conv1_b": u(keys[1], (16,), 1 * 3 * 3),
        "conv2_w": u(keys[2], (32, 16, 3, 3), 16 * 3 * 3),
        "conv2_b": u(keys[3], (32,), 16 * 3 * 3),
        "fc1_w": u(keys[4], (128, 32 * 7 * 7), 32 * 7 * 7),
        "fc1_b": u(keys[5], (128,), 32 * 7 * 7),
        "fc2_w": u(keys[6], (10, 128), 128),
        "fc2_b": u(keys[7], (10,), 128),
    }


def prepare_params(params):
    """One-time weight layout prep (done once at load, not per forward).

    * conv weights -> (9*Cin, Cout) tap-major matmul form.
    * fc1 weight transposed AND row-permuted so the NHWC-flattened activation
      (feature order io*224 + jo*32 + c) matches PyTorch's NCHW view(-1, 1568).
    * fc2 weight transposed.  FC weights cast to bf16 (f32 accumulation in-kernel).
    """
    c1w = jnp.transpose(params["conv1_w"], (2, 3, 1, 0)).reshape(9 * 1, 16)
    c2w = jnp.transpose(params["conv2_w"], (2, 3, 1, 0)).reshape(9 * 16, 32)
    w1 = params["fc1_w"].reshape(128, 32, 7, 7)            # (n, c, io, jo)
    w1 = jnp.transpose(w1, (2, 3, 1, 0)).reshape(7 * 7 * 32, 128)
    return {
        "c1w": c1w, "c1b": params["conv1_b"].reshape(1, 16),
        "c2w": c2w, "c2b": params["conv2_b"].reshape(1, 32),
        "fc1w": w1.astype(jnp.bfloat16),
        "fc1b": params["fc1_b"].reshape(1, 128),
        "fc2w": params["fc2_w"].T.astype(jnp.bfloat16),
        "fc2b": params["fc2_b"].reshape(1, 10),
    }


def cnn_forward(prep, x_nchw):
    B = x_nchw.shape[0]

    # ---- conv1 + ReLU (Cin=1: NCHW->NHWC is a pure reshape, no transpose) ----
    x = x_nchw.reshape(B, 28, 28, 1)
    patches = im2col(x, k=3, pad=1)                              # (B*784, 9)
    y = matmul_bias_act(patches, prep["c1w"], prep["c1b"], relu=True)  # (B*784, 16)
    # 2x2 max-pool, transpose-free: metadata reshapes + lane-pair max kernels.
    y = pool_pairs(y.reshape(B * 28 * 14, 2 * 16), half=16)      # pool over W
    y = pool_pairs(y.reshape(B * 14, 2 * 14 * 16), half=14 * 16)  # pool over H
    # y: (B*14, 14*16)  == NHWC (B,14,14,16) flattened

    # ---- conv2 + ReLU (in-kernel im2col: no 9x HBM patch blow-up) ----
    x = y.reshape(B, 14, 14, 16)
    y = conv3x3_relu_fused(x, prep["c2w"], prep["c2b"])          # (B*196, 32)
    y = pool_pairs(y.reshape(B * 14 * 7, 2 * 32), half=32)       # pool over W
    y = pool_pairs(y.reshape(B * 7, 2 * 7 * 32), half=7 * 32)    # pool over H
    # y: (B*7, 7*32) == NHWC (B,7,7,32) flattened

    # ---- fused FC head (flatten permutation folded into fc1 weights) ----
    x = y.reshape(B, 7 * 7 * 32)
    return fc_head(x, prep["fc1w"], prep["fc1b"], prep["fc2w"], prep["fc2b"])


if __name__ == "__main__":
    key = jax.random.PRNGKey(0)
    pkey, xkey = jax.random.split(key)
    params = init_params(pkey)
    prep = prepare_params(params)          # one-time weight layout prep
    # MNIST-shaped input (fc1 forces 28x28, single channel); batch=2.
    x = jax.random.normal(xkey, (2, 1, 28, 28), jnp.float32)

    logits = jax.jit(cnn_forward)(prep, x)
    logits = jax.block_until_ready(logits)

    assert logits.shape == (2, 10), logits.shape
    assert bool(jnp.all(jnp.isfinite(logits)))
    print("KERNEL_OK")
</pallas_src>

<mosaic_0001>
module attributes {stable_mosaic.version = 11 : i64} {
  func.func @_matmul_bias_act_kernel(%arg0: i32, %arg1: memref<1568x9xf32, #tpu.memory_space<vmem>>, %arg2: memref<9x16xf32, #tpu.memory_space<vmem>>, %arg3: memref<1x16xf32, #tpu.memory_space<vmem>>, %arg4: memref<1568x16xf32, #tpu.memory_space<vmem>>) attributes {dimension_semantics = [#tpu.dimension_semantics<parallel>], iteration_bounds = array<i64: 1>, scalar_prefetch = 0 : i64, scratch_operands = 0 : i64, tpu.core_type = #tpu.core_type<tc>, window_params = [{transform_indices = @transform_0, window_bounds = array<i64: 1568, 9>}, {pipeline_mode = #tpu.pipeline_mode<synchronous>, transform_indices = @transform_1, window_bounds = array<i64: 9, 16>}, {pipeline_mode = #tpu.pipeline_mode<synchronous>, transform_indices = @transform_2, window_bounds = array<i64: 1, 16>}, {transform_indices = @transform_3, window_bounds = array<i64: 1568, 16>}]} {
    %c0 = arith.constant 0 : index
    %c0_0 = arith.constant 0 : index
    %0 = vector.load %arg1[%c0, %c0_0] : memref<1568x9xf32, #tpu.memory_space<vmem>>, vector<1568x9xf32>
    %c0_1 = arith.constant 0 : index
    %c0_2 = arith.constant 0 : index
    %1 = vector.load %arg2[%c0_1, %c0_2] : memref<9x16xf32, #tpu.memory_space<vmem>>, vector<9x16xf32>
    %cst = arith.constant dense<0.000000e+00> : vector<1568x16xf32>
    %2 = tpu.matmul %0, %1, %cst {dimension_numbers = #tpu.dot_dimension_numbers<[1], [0], [0], [1], [0, 0, 1, 1], [], []>} : vector<1568x9xf32>, vector<9x16xf32>, vector<1568x16xf32> -> vector<1568x16xf32>
    %c0_3 = arith.constant 0 : index
    %c0_4 = arith.constant 0 : index
    %3 = vector.load %arg3[%c0_3, %c0_4] : memref<1x16xf32, #tpu.memory_space<vmem>>, vector<1x16xf32>
    %4 = vector.broadcast %3 : vector<1x16xf32> to vector<1568x16xf32>
    %5 = arith.addf %2, %4 : vector<1568x16xf32>
    %cst_5 = arith.constant 0.000000e+00 : f32
    %6 = vector.broadcast %cst_5 : f32 to vector<1568x16xf32>
    %7 = arith.maximumf %5, %6 : vector<1568x16xf32>
    %c0_6 = arith.constant 0 : index
    %c0_7 = arith.constant 0 : index
    %8 = vector.load %arg4[%c0_6, %c0_7] : memref<1568x16xf32, #tpu.memory_space<vmem>>, vector<1568x16xf32>
    tpu.vector_store %arg4[%c0_6, %c0_7], %7 {strides = array<i32>} : memref<1568x16xf32, #tpu.memory_space<vmem>>, vector<1568x16xf32>,
    return
  }
  func.func @transform_0(%arg0: i32) -> (i32, i32) {
    %c0_i32 = arith.constant 0 : i32
    %c0_i32_0 = arith.constant 0 : i32
    return %arg0, %c0_i32 : i32, i32
  }
  func.func @transform_1(%arg0: i32) -> (i32, i32) {
    %c0_i32 = arith.constant 0 : i32
    %c0_i32_0 = arith.constant 0 : i32
    %c0_i32_1 = arith.constant 0 : i32
    return %c0_i32, %c0_i32_0 : i32, i32
  }
  func.func @transform_2(%arg0: i32) -> (i32, i32) {
    %c0_i32 = arith.constant 0 : i32
    %c0_i32_0 = arith.constant 0 : i32
    %c0_i32_1 = arith.constant 0 : i32
    return %c0_i32, %c0_i32_0 : i32, i32
  }
  func.func @transform_3(%arg0: i32) -> (i32, i32) {
    %c0_i32 = arith.constant 0 : i32
    %c0_i32_0 = arith.constant 0 : i32
    return %arg0, %c0_i32 : i32, i32
  }
}

module attributes {stable_mosaic.version = 11 : i64} {
  func.func @_pool_pairs_kernel(%arg0: i32, %arg1: memref<784x32xf32, #tpu.memory_space<vmem>>, %arg2: memref<784x16xf32, #tpu.memory_space<vmem>>) attributes {dimension_semantics = [#tpu.dimension_semantics<parallel>], iteration_bounds = array<i64: 1>, scalar_prefetch = 0 : i64, scratch_operands = 0 : i64, tpu.core_type = #tpu.core_type<tc>, window_params = [{transform_indices = @transform_0, window_bounds = array<i64: 784, 32>}, {transform_indices = @transform_1, window_bounds = array<i64: 784, 16>}]} {
    %c0 = arith.constant 0 : index
    %c0_0 = arith.constant 0 : index
    %0 = vector.load %arg1[%c0, %c0_0] : memref<784x32xf32, #tpu.memory_space<vmem>>, vector<784x16xf32>
    %c0_1 = arith.constant 0 : index
    %c16 = arith.constant 16 : index
    %1 = vector.load %arg1[%c0_1, %c16] : memref<784x32xf32, #tpu.memory_space<vmem>>, vector<784x16xf32>
    %2 = arith.maximumf %0, %1 : vector<784x16xf32>
    %c0_2 = arith.constant 0 : index
    %c0_3 = arith.constant 0 : index
    %3 = vector.load %arg2[%c0_2, %c0_3] : memref<784x16xf32, #tpu.memory_space<vmem>>, vector<784x16xf32>
    tpu.vector_store %arg2[%c0_2, %c0_3], %2 {strides = array<i32>} : memref<784x16xf32, #tpu.memory_space<vmem>>, vector<784x16xf32>,
    return
  }
  func.func @transform_0(%arg0: i32) -> (i32, i32) {
    %c0_i32 = arith.constant 0 : i32
    %c0_i32_0 = arith.constant 0 : i32
    return %arg0, %c0_i32 : i32, i32
  }
  func.func @transform_1(%arg0: i32) -> (i32, i32) {
    %c0_i32 = arith.constant 0 : i32
    %c0_i32_0 = arith.constant 0 : i32
    return %arg0, %c0_i32 : i32, i32
  }
}

module attributes {stable_mosaic.version = 11 : i64} {
  func.func @_pool_pairs_kernel(%arg0: i32, %arg1: memref<28x448xf32, #tpu.memory_space<vmem>>, %arg2: memref<28x224xf32, #tpu.memory_space<vmem>>) attributes {dimension_semantics = [#tpu.dimension_semantics<parallel>], iteration_bounds = array<i64: 1>, scalar_prefetch = 0 : i64, scratch_operands = 0 : i64, tpu.core_type = #tpu.core_type<tc>, window_params = [{transform_indices = @transform_0, window_bounds = array<i64: 28, 448>}, {transform_indices = @transform_1, window_bounds = array<i64: 28, 224>}]} {
    %c0 = arith.constant 0 : index
    %c0_0 = arith.constant 0 : index
    %0 = vector.load %arg1[%c0, %c0_0] : memref<28x448xf32, #tpu.memory_space<vmem>>, vector<28x224xf32>
    %c0_1 = arith.constant 0 : index
    %c224 = arith.constant 224 : index
    %1 = vector.load %arg1[%c0_1, %c224] : memref<28x448xf32, #tpu.memory_space<vmem>>, vector<28x224xf32>
    %2 = arith.maximumf %0, %1 : vector<28x224xf32>
    %c0_2 = arith.constant 0 : index
    %c0_3 = arith.constant 0 : index
    %3 = vector.load %arg2[%c0_2, %c0_3] : memref<28x224xf32, #tpu.memory_space<vmem>>, vector<28x224xf32>
    tpu.vector_store %arg2[%c0_2, %c0_3], %2 {strides = array<i32>} : memref<28x224xf32, #tpu.memory_space<vmem>>, vector<28x224xf32>,
    return
  }
  func.func @transform_0(%arg0: i32) -> (i32, i32) {
    %c0_i32 = arith.constant 0 : i32
    %c0_i32_0 = arith.constant 0 : i32
    return %arg0, %c0_i32 : i32, i32
  }
  func.func @transform_1(%arg0: i32) -> (i32, i32) {
    %c0_i32 = arith.constant 0 : i32
    %c0_i32_0 = arith.constant 0 : i32
    return %arg0, %c0_i32 : i32, i32
  }
}

module attributes {stable_mosaic.version = 11 : i64} {
  func.func @_conv_im2col_kernel(%arg0: i32, %arg1: memref<2x252x16xf32, #tpu.memory_space<vmem>>, %arg2: memref<144x32xf32, #tpu.memory_space<vmem>>, %arg3: memref<1x32xf32, #tpu.memory_space<vmem>>, %arg4: memref<2x196x32xf32, #tpu.memory_space<vmem>>, %arg5: memref<196x144xf32, #tpu.memory_space<vmem>>) attributes {dimension_semantics = [#tpu.dimension_semantics<parallel>], iteration_bounds = array<i64: 1>, scalar_prefetch = 0 : i64, scratch_operands = 1 : i64, tpu.core_type = #tpu.core_type<tc>, window_params = [{transform_indices = @transform_0, window_bounds = array<i64: 2, 252, 16>}, {pipeline_mode = #tpu.pipeline_mode<synchronous>, transform_indices = @transform_1, window_bounds = array<i64: 144, 32>}, {pipeline_mode = #tpu.pipeline_mode<synchronous>, transform_indices = @transform_2, window_bounds = array<i64: 1, 32>}, {transform_indices = @transform_3, window_bounds = array<i64: 2, 196, 32>}]} {
    %0 = tpu.iota {dimensions = array<i32: 0>} : vector<196x1xi32>
    %c14_i32 = arith.constant 14 : i32
    %c0_i32 = arith.constant 0 : i32
    %1 = arith.cmpi eq, %c14_i32, %c0_i32 : i32
    %c1_i32 = arith.constant 1 : i32
    %2 = arith.select %1, %c1_i32, %c14_i32 : i32
    %3 = vector.broadcast %2 : i32 to vector<196x1xi32>
    %4 = arith.remsi %0, %3 : vector<196x1xi32>
    %c0_i32_0 = arith.constant 0 : i32
    %5 = vector.broadcast %c0_i32_0 : i32 to vector<196x1xi32>
    %6 = arith.cmpi ne, %4, %5 : vector<196x1xi32>
    %c0_i32_1 = arith.constant 0 : i32
    %7 = vector.broadcast %c0_i32_1 : i32 to vector<196x1xi32>
    %8 = arith.cmpi slt, %4, %7 : vector<196x1xi32>
    %c0_i32_2 = arith.constant 0 : i32
    %9 = arith.cmpi slt, %2, %c0_i32_2 : i32
    %10 = vector.broadcast %9 : i1 to vector<196x1xi1>
    %11 = vector.broadcast %10 : vector<196x1xi1> to vector<196x1xi1>
    %12 = arith.xori %8, %11 : vector<196x1xi1>
    %13 = arith.andi %12, %6 : vector<196x1xi1>
    %14 = vector.broadcast %2 : i32 to vector<196x1xi32>
    %15 = arith.addi %4, %14 : vector<196x1xi32>
    %16 = arith.select %13, %15, %4 : vector<196x1xi1>, vector<196x1xi32>
    %c0_i32_3 = arith.constant 0 : i32
    %17 = vector.broadcast %c0_i32_3 : i32 to vector<196x1xi32>
    %18 = arith.cmpi sgt, %16, %17 : vector<196x1xi32>
    %c13_i32 = arith.constant 13 : i32
    %19 = vector.broadcast %c13_i32 : i32 to vector<196x1xi32>
    %20 = arith.cmpi slt, %16, %19 : vector<196x1xi32>
    %c0 = arith.constant 0 : index
    %c13 = arith.constant 13 : index
    %c0_4 = arith.constant 0 : index
    %21 = vector.load %arg1[%c0, %c13, %c0_4] : memref<2x252x16xf32, #tpu.memory_space<vmem>>, vector<1x196x16xf32>
    %22 = vector.shape_cast %21 : vector<1x196x16xf32> to vector<196x16xf32>
    %cst = arith.constant 0.000000e+00 : f32
    %23 = vector.shape_cast %18 : vector<196x1xi1> to vector<196x1xi1>
    %24 = vector.broadcast %23 : vector<196x1xi1> to vector<196x16xi1>
    %25 = vector.broadcast %cst : f32 to vector<196x16xf32>
    %26 = arith.select %24, %22, %25 : vector<196x16xi1>, vector<196x16xf32>
    %c0_5 = arith.constant 0 : index
    %c0_6 = arith.constant 0 : index
    %27 = vector.load %arg5[%c0_5, %c0_6] : memref<196x144xf32, #tpu.memory_space<vmem>>, vector<196x16xf32>
    tpu.vector_store %arg5[%c0_5, %c0_6], %26 {strides = array<i32>} : memref<196x144xf32, #tpu.memory_space<vmem>>, vector<196x16xf32>,
    %c0_7 = arith.constant 0 : index
    %c14 = arith.constant 14 : index
    %c0_8 = arith.constant 0 : index
    %28 = vector.load %arg1[%c0_7, %c14, %c0_8] : memref<2x252x16xf32, #tpu.memory_space<vmem>>, vector<1x196x16xf32>
    %29 = vector.shape_cast %28 : vector<1x196x16xf32> to vector<196x16xf32>
    %c0_9 = arith.constant 0 : index
    %c16 = arith.constant 16 : index
    %30 = vector.load %arg5[%c0_9, %c16] : memref<196x144xf32, #tpu.memory_space<vmem>>, vector<196x16xf32>
    tpu.vector_store %arg5[%c0_9, %c16], %29 {strides = array<i32>} : memref<196x144xf32, #tpu.memory_space<vmem>>, vector<196x16xf32>,
    %c0_10 = arith.constant 0 : index
    %c15 = arith.constant 15 : index
    %c0_11 = arith.constant 0 : index
    %31 = vector.load %arg1[%c0_10, %c15, %c0_11] : memref<2x252x16xf32, #tpu.memory_space<vmem>>, vector<1x196x16xf32>
    %32 = vector.shape_cast %31 : vector<1x196x16xf32> to vector<196x16xf32>
    %cst_12 = arith.constant 0.000000e+00 : f32
    %33 = vector.shape_cast %20 : vector<196x1xi1> to vector<196x1xi1>
    %34 = vector.broadcast %33 : vector<196x1xi1> to vector<196x16xi1>
    %35 = vector.broadcast %cst_12 : f32 to vector<196x16xf32>
    %36 = arith.select %34, %32, %35 : vector<196x16xi1>, vector<196x16xf32>
    %c0_13 = arith.constant 0 : index
    %c32 = arith.constant 32 : index
    %37 = vector.load %arg5[%c0_13, %c32] : memref<196x144xf32, #tpu.memory_space<vmem>>, vector<196x16xf32>
    tpu.vector_store %arg5[%c0_13, %c32], %36 {strides = array<i32>} : memref<196x144xf32, #tpu.memory_space<vmem>>, vector<196x16xf32>,
    %c0_14 = arith.constant 0 : index
    %c27 = arith.constant 27 : index
    %c0_15 = arith.constant 0 : index
    %38 = vector.load %arg1[%c0_14, %c27, %c0_15] : memref<2x252x16xf32, #tpu.memory_space<vmem>>, vector<1x196x16xf32>
    %39 = vector.shape_cast %38 : vector<1x196x16xf32> to vector<196x16xf32>
    %cst_16 = arith.constant 0.000000e+00 : f32
    %40 = vector.shape_cast %18 : vector<196x1xi1> to vector<196x1xi1>
    %41 = vector.broadcast %40 : vector<196x1xi1> to vector<196x16xi1>
    %42 = vector.broadcast %cst_16 : f32 to vector<196x16xf32>
    %43 = arith.select %41, %39, %42 : vector<196x16xi1>, vector<196x16xf32>
    %c0_17 = arith.constant 0 : index
    %c48 = arith.constant 48 : index
    %44 = vector.load %arg5[%c0_17, %c48] : memref<196x144xf32, #tpu.memory_space<vmem>>, vector<196x16xf32>
    tpu.vector_store %arg5[%c0_17, %c48], %43 {strides = array<i32>} : memref<196x144xf32, #tpu.memory_space<vmem>>, vector<196x16xf32>,
    %c0_18 = arith.constant 0 : index
    %c28 = arith.constant 28 : index
    %c0_19 = arith.constant 0 : index
    %45 = vector.load %arg1[%c0_18, %c28, %c0_19] : memref<2x252x16xf32, #tpu.memory_space<vmem>>, vector<1x196x16xf32>
    %46 = vector.shape_cast %45 : vector<1x196x16xf32> to vector<196x16xf32>
    %c0_20 = arith.constant 0 : index
    %c64 = arith.constant 64 : index
    %47 = vector.load %arg5[%c0_20, %c64] : memref<196x144xf32, #tpu.memory_space<vmem>>, vector<196x16xf32>
    tpu.vector_store %arg5[%c0_20, %c64], %46 {strides = array<i32>} : memref<196x144xf32, #tpu.memory_space<vmem>>, vector<196x16xf32>,
    %c0_21 = arith.constant 0 : index
    %c29 = arith.constant 29 : index
    %c0_22 = arith.constant 0 : index
    %48 = vector.load %arg1[%c0_21, %c29, %c0_22] : memref<2x252x16xf32, #tpu.memory_space<vmem>>, vector<1x196x16xf32>
    %49 = vector.shape_cast %48 : vector<1x196x16xf32> to vector<196x16xf32>
    %cst_23 = arith.constant 0.000000e+00 : f32
    %50 = vector.shape_cast %20 : vector<196x1xi1> to vector<196x1xi1>
    %51 = vector.broadcast %50 : vector<196x1xi1> to vector<196x16xi1>
    %52 = vector.broadcast %cst_23 : f32 to vector<196x16xf32>
    %53 = arith.select %51, %49, %52 : vector<196x16xi1>, vector<196x16xf32>
    %c0_24 = arith.constant 0 : index
    %c80 = arith.constant 80 : index
    %54 = vector.load %arg5[%c0_24, %c80] : memref<196x144xf32, #tpu.memory_space<vmem>>, vector<196x16xf32>
    tpu.vector_store %arg5[%c0_24, %c80], %53 {strides = array<i32>} : memref<196x144xf32, #tpu.memory_space<vmem>>, vector<196x16xf32>,
    %c0_25 = arith.constant 0 : index
    %c41 = arith.constant 41 : index
    %c0_26 = arith.constant 0 : index
    %55 = vector.load %arg1[%c0_25, %c41, %c0_26] : memref<2x252x16xf32, #tpu.memory_space<vmem>>, vector<1x196x16xf32>
    %56 = vector.shape_cast %55 : vector<1x196x16xf32> to vector<196x16xf32>
    %cst_27 = arith.constant 0.000000e+00 : f32
    %57 = vector.shape_cast %18 : vector<196x1xi1> to vector<196x1xi1>
    %58 = vector.broadcast %57 : vector<196x1xi1> to vector<196x16xi1>
    %59 = vector.broadcast %cst_27 : f32 to vector<196x16xf32>
    %60 = arith.select %58, %56, %59 : vector<196x16xi1>, vector<196x16xf32>
    %c0_28 = arith.constant 0 : index
    %c96 = arith.constant 96 : index
    %61 = vector.load %arg5[%c0_28, %c96] : memref<196x144xf32, #tpu.memory_space<vmem>>, vector<196x16xf32>
    tpu.vector_store %arg5[%c0_28, %c96], %60 {strides = array<i32>} : memref<196x144xf32, #tpu.memory_space<vmem>>, vector<196x16xf32>,
    %c0_29 = arith.constant 0 : index
    %c42 = arith.constant 42 : index
    %c0_30 = arith.constant 0 : index
    %62 = vector.load %arg1[%c0_29, %c42, %c0_30] : memref<2x252x16xf32, #tpu.memory_space<vmem>>, vector<1x196x16xf32>
    %63 = vector.shape_cast %62 : vector<1x196x16xf32> to vector<196x16xf32>
    %c0_31 = arith.constant 0 : index
    %c112 = arith.constant 112 : index
    %64 = vector.load %arg5[%c0_31, %c112] : memref<196x144xf32, #tpu.memory_space<vmem>>, vector<196x16xf32>
    tpu.vector_store %arg5[%c0_31, %c112], %63 {strides = array<i32>} : memref<196x144xf32, #tpu.memory_space<vmem>>, vector<196x16xf32>,
    %c0_32 = arith.constant 0 : index
    %c43 = arith.constant 43 : index
    %c0_33 = arith.constant 0 : index
    %65 = vector.load %arg1[%c0_32, %c43, %c0_33] : memref<2x252x16xf32, #tpu.memory_space<vmem>>, vector<1x196x16xf32>
    %66 = vector.shape_cast %65 : vector<1x196x16xf32> to vector<196x16xf32>
    %cst_34 = arith.constant 0.000000e+00 : f32
    %67 = vector.shape_cast %20 : vector<196x1xi1> to vector<196x1xi1>
    %68 = vector.broadcast %67 : vector<196x1xi1> to vector<196x16xi1>
    %69 = vector.broadcast %cst_34 : f32 to vector<196x16xf32>
    %70 = arith.select %68, %66, %69 : vector<196x16xi1>, vector<196x16xf32>
    %c0_35 = arith.constant 0 : index
    %c128 = arith.constant 128 : index
    %71 = vector.load %arg5[%c0_35, %c128] : memref<196x144xf32, #tpu.memory_space<vmem>>, vector<196x16xf32>
    tpu.vector_store %arg5[%c0_35, %c128], %70 {strides = array<i32>} : memref<196x144xf32, #tpu.memory_space<vmem>>, vector<196x16xf32>,
    %c0_36 = arith.constant 0 : index
    %c0_37 = arith.constant 0 : index
    %72 = vector.load %arg5[%c0_36, %c0_37] : memref<196x144xf32, #tpu.memory_space<vmem>>, vector<196x144xf32>
    %c0_38 = arith.constant 0 : index
    %c0_39 = arith.constant 0 : index
    %73 = vector.load %arg2[%c0_38, %c0_39] : memref<144x32xf32, #tpu.memory_space<vmem>>, vector<144x32xf32>
    %cst_40 = arith.constant dense<0.000000e+00> : vector<196x32xf32>
    %74 = tpu.matmul %72, %73, %cst_40 {dimension_numbers = #tpu.dot_dimension_numbers<[1], [0], [0], [1], [0, 0, 1, 1], [], []>} : vector<196x144xf32>, vector<144x32xf32>, vector<196x32xf32> -> vector<196x32xf32>
    %c0_41 = arith.constant 0 : index
    %c0_42 = arith.constant 0 : index
    %75 = vector.load %arg3[%c0_41, %c0_42] : memref<1x32xf32, #tpu.memory_space<vmem>>, vector<1x32xf32>
    %76 = vector.broadcast %75 : vector<1x32xf32> to vector<196x32xf32>
    %77 = arith.addf %74, %76 : vector<196x32xf32>
    %cst_43 = arith.constant 0.000000e+00 : f32
    %78 = vector.broadcast %cst_43 : f32 to vector<196x32xf32>
    %79 = arith.maximumf %77, %78 : vector<196x32xf32>
    %c0_44 = arith.constant 0 : index
    %c0_45 = arith.constant 0 : index
    %c0_46 = arith.constant 0 : index
    %80 = vector.load %arg4[%c0_44, %c0_45, %c0_46] : memref<2x196x32xf32, #tpu.memory_space<vmem>>, vector<1x196x32xf32>
    %81 = vector.shape_cast %80 : vector<1x196x32xf32> to vector<196x32xf32>
    %82 = vector.shape_cast %79 : vector<196x32xf32> to vector<1x196x32xf32>
    tpu.vector_store %arg4[%c0_44, %c0_45, %c0_46], %82 {strides = array<i32>} : memref<2x196x32xf32, #tpu.memory_space<vmem>>, vector<1x196x32xf32>,
    %c1 = arith.constant 1 : index
    %c13_47 = arith.constant 13 : index
    %c0_48 = arith.constant 0 : index
    %83 = vector.load %arg1[%c1, %c13_47, %c0_48] : memref<2x252x16xf32, #tpu.memory_space<vmem>>, vector<1x196x16xf32>
    %84 = vector.shape_cast %83 : vector<1x196x16xf32> to vector<196x16xf32>
    %cst_49 = arith.constant 0.000000e+00 : f32
    %85 = vector.shape_cast %18 : vector<196x1xi1> to vector<196x1xi1>
    %86 = vector.broadcast %85 : vector<196x1xi1> to vector<196x16xi1>
    %87 = vector.broadcast %cst_49 : f32 to vector<196x16xf32>
    %88 = arith.select %86, %84, %87 : vector<196x16xi1>, vector<196x16xf32>
    %c0_50 = arith.constant 0 : index
    %c0_51 = arith.constant 0 : index
    %89 = vector.load %arg5[%c0_50, %c0_51] : memref<196x144xf32, #tpu.memory_space<vmem>>, vector<196x16xf32>
    tpu.vector_store %arg5[%c0_50, %c0_51], %88 {strides = array<i32>} : memref<196x144xf32, #tpu.memory_space<vmem>>, vector<196x16xf32>,
    %c1_52 = arith.constant 1 : index
    %c14_53 = arith.constant 14 : index
    %c0_54 = arith.constant 0 : index
    %90 = vector.load %arg1[%c1_52, %c14_53, %c0_54] : memref<2x252x16xf32, #tpu.memory_space<vmem>>, vector<1x196x16xf32>
    %91 = vector.shape_cast %90 : vector<1x196x16xf32> to vector<196x16xf32>
    %c0_55 = arith.constant 0 : index
    %c16_56 = arith.constant 16 : index
    %92 = vector.load %arg5[%c0_55, %c16_56] : memref<196x144xf32, #tpu.memory_space<vmem>>, vector<196x16xf32>
    tpu.vector_store %arg5[%c0_55, %c16_56], %91 {strides = array<i32>} : memref<196x144xf32, #tpu.memory_space<vmem>>, vector<196x16xf32>,
    %c1_57 = arith.constant 1 : index
    %c15_58 = arith.constant 15 : index
    %c0_59 = arith.constant 0 : index
    %93 = vector.load %arg1[%c1_57, %c15_58, %c0_59] : memref<2x252x16xf32, #tpu.memory_space<vmem>>, vector<1x196x16xf32>
    %94 = vector.shape_cast %93 : vector<1x196x16xf32> to vector<196x16xf32>
    %cst_60 = arith.constant 0.000000e+00 : f32
    %95 = vector.shape_cast %20 : vector<196x1xi1> to vector<196x1xi1>
    %96 = vector.broadcast %95 : vector<196x1xi1> to vector<196x16xi1>
    %97 = vector.broadcast %cst_60 : f32 to vector<196x16xf32>
    %98 = arith.select %96, %94, %97 : vector<196x16xi1>, vector<196x16xf32>
    %c0_61 = arith.constant 0 : index
    %c32_62 = arith.constant 32 : index
    %99 = vector.load %arg5[%c0_61, %c32_62] : memref<196x144xf32, #tpu.memory_space<vmem>>, vector<196x16xf32>
    tpu.vector_store %arg5[%c0_61, %c32_62], %98 {strides = array<i32>} : memref<196x144xf32, #tpu.memory_space<vmem>>, vector<196x16xf32>,
    %c1_63 = arith.constant 1 : index
    %c27_64 = arith.constant 27 : index
    %c0_65 = arith.constant 0 : index
    %100 = vector.load %arg1[%c1_63, %c27_64, %c0_65] : memref<2x252x16xf32, #tpu.memory_space<vmem>>, vector<1x196x16xf32>
    %101 = vector.shape_cast %100 : vector<1x196x16xf32> to vector<196x16xf32>
    %cst_66 = arith.constant 0.000000e+00 : f32
    %102 = vector.shape_cast %18 : vector<196x1xi1> to vector<196x1xi1>
    %103 = vector.broadcast %102 : vector<196x1xi1> to vector<196x16xi1>
    %104 = vector.broadcast %cst_66 : f32 to vector<196x16xf32>
    %105 = arith.select %103, %101, %104 : vector<196x16xi1>, vector<196x16xf32>
    %c0_67 = arith.constant 0 : index
    %c48_68 = arith.constant 48 : index
    %106 = vector.load %arg5[%c0_67, %c48_68] : memref<196x144xf32, #tpu.memory_space<vmem>>, vector<196x16xf32>
    tpu.vector_store %arg5[%c0_67, %c48_68], %105 {strides = array<i32>} : memref<196x144xf32, #tpu.memory_space<vmem>>, vector<196x16xf32>,
    %c1_69 = arith.constant 1 : index
    %c28_70 = arith.constant 28 : index
    %c0_71 = arith.constant 0 : index
    %107 = vector.load %arg1[%c1_69, %c28_70, %c0_71] : memref<2x252x16xf32, #tpu.memory_space<vmem>>, vector<1x196x16xf32>
    %108 = vector.shape_cast %107 : vector<1x196x16xf32> to vector<196x16xf32>
    %c0_72 = arith.constant 0 : index
    %c64_73 = arith.constant 64 : index
    %109 = vector.load %arg5[%c0_72, %c64_73] : memref<196x144xf32, #tpu.memory_space<vmem>>, vector<196x16xf32>
    tpu.vector_store %arg5[%c0_72, %c64_73], %108 {strides = array<i32>} : memref<196x144xf32, #tpu.memory_space<vmem>>, vector<196x16xf32>,
    %c1_74 = arith.constant 1 : index
    %c29_75 = arith.constant 29 : index
    %c0_76 = arith.constant 0 : index
    %110 = vector.load %arg1[%c1_74, %c29_75, %c0_76] : memref<2x252x16xf32, #tpu.memory_space<vmem>>, vector<1x196x16xf32>
    %111 = vector.shape_cast %110 : vector<1x196x16xf32> to vector<196x16xf32>
    %cst_77 = arith.constant 0.000000e+00 : f32
    %112 = vector.shape_cast %20 : vector<196x1xi1> to vector<196x1xi1>
    %113 = vector.broadcast %112 : vector<196x1xi1> to vector<196x16xi1>
    %114 = vector.broadcast %cst_77 : f32 to vector<196x16xf32>
    %115 = arith.select %113, %111, %114 : vector<196x16xi1>, vector<196x16xf32>
    %c0_78 = arith.constant 0 : index
    %c80_79 = arith.constant 80 : index
    %116 = vector.load %arg5[%c0_78, %c80_79] : memref<196x144xf32, #tpu.memory_space<vmem>>, vector<196x16xf32>
    tpu.vector_store %arg5[%c0_78, %c80_79], %115 {strides = array<i32>} : memref<196x144xf32, #tpu.memory_space<vmem>>, vector<196x16xf32>,
    %c1_80 = arith.constant 1 : index
    %c41_81 = arith.constant 41 : index
    %c0_82 = arith.constant 0 : index
    %117 = vector.load %arg1[%c1_80, %c41_81, %c0_82] : memref<2x252x16xf32, #tpu.memory_space<vmem>>, vector<1x196x16xf32>
    %118 = vector.shape_cast %117 : vector<1x196x16xf32> to vector<196x16xf32>
    %cst_83 = arith.constant 0.000000e+00 : f32
    %119 = vector.shape_cast %18 : vector<196x1xi1> to vector<196x1xi1>
    %120 = vector.broadcast %119 : vector<196x1xi1> to vector<196x16xi1>
    %121 = vector.broadcast %cst_83 : f32 to vector<196x16xf32>
    %122 = arith.select %120, %118, %121 : vector<196x16xi1>, vector<196x16xf32>
    %c0_84 = arith.constant 0 : index
    %c96_85 = arith.constant 96 : index
    %123 = vector.load %arg5[%c0_84, %c96_85] : memref<196x144xf32, #tpu.memory_space<vmem>>, vector<196x16xf32>
    tpu.vector_store %arg5[%c0_84, %c96_85], %122 {strides = array<i32>} : memref<196x144xf32, #tpu.memory_space<vmem>>, vector<196x16xf32>,
    %c1_86 = arith.constant 1 : index
    %c42_87 = arith.constant 42 : index
    %c0_88 = arith.constant 0 : index
    %124 = vector.load %arg1[%c1_86, %c42_87, %c0_88] : memref<2x252x16xf32, #tpu.memory_space<vmem>>, vector<1x196x16xf32>
    %125 = vector.shape_cast %124 : vector<1x196x16xf32> to vector<196x16xf32>
    %c0_89 = arith.constant 0 : index
    %c112_90 = arith.constant 112 : index
    %126 = vector.load %arg5[%c0_89, %c112_90] : memref<196x144xf32, #tpu.memory_space<vmem>>, vector<196x16xf32>
    tpu.vector_store %arg5[%c0_89, %c112_90], %125 {strides = array<i32>} : memref<196x144xf32, #tpu.memory_space<vmem>>, vector<196x16xf32>,
    %c1_91 = arith.constant 1 : index
    %c43_92 = arith.constant 43 : index
    %c0_93 = arith.constant 0 : index
    %127 = vector.load %arg1[%c1_91, %c43_92, %c0_93] : memref<2x252x16xf32, #tpu.memory_space<vmem>>, vector<1x196x16xf32>
    %128 = vector.shape_cast %127 : vector<1x196x16xf32> to vector<196x16xf32>
    %cst_94 = arith.constant 0.000000e+00 : f32
    %129 = vector.shape_cast %20 : vector<196x1xi1> to vector<196x1xi1>
    %130 = vector.broadcast %129 : vector<196x1xi1> to vector<196x16xi1>
    %131 = vector.broadcast %cst_94 : f32 to vector<196x16xf32>
    %132 = arith.select %130, %128, %131 : vector<196x16xi1>, vector<196x16xf32>
    %c0_95 = arith.constant 0 : index
    %c128_96 = arith.constant 128 : index
    %133 = vector.load %arg5[%c0_95, %c128_96] : memref<196x144xf32, #tpu.memory_space<vmem>>, vector<196x16xf32>
    tpu.vector_store %arg5[%c0_95, %c128_96], %132 {strides = array<i32>} : memref<196x144xf32, #tpu.memory_space<vmem>>, vector<196x16xf32>,
    %c0_97 = arith.constant 0 : index
    %c0_98 = arith.constant 0 : index
    %134 = vector.load %arg5[%c0_97, %c0_98] : memref<196x144xf32, #tpu.memory_space<vmem>>, vector<196x144xf32>
    %c0_99 = arith.constant 0 : index
    %c0_100 = arith.constant 0 : index
    %135 = vector.load %arg2[%c0_99, %c0_100] : memref<144x32xf32, #tpu.memory_space<vmem>>, vector<144x32xf32>
    %cst_101 = arith.constant dense<0.000000e+00> : vector<196x32xf32>
    %136 = tpu.matmul %134, %135, %cst_101 {dimension_numbers = #tpu.dot_dimension_numbers<[1], [0], [0], [1], [0, 0, 1, 1], [], []>} : vector<196x144xf32>, vector<144x32xf32>, vector<196x32xf32> -> vector<196x32xf32>
    %c0_102 = arith.constant 0 : index
    %c0_103 = arith.constant 0 : index
    %137 = vector.load %arg3[%c0_102, %c0_103] : memref<1x32xf32, #tpu.memory_space<vmem>>, vector<1x32xf32>
    %138 = vector.broadcast %137 : vector<1x32xf32> to vector<196x32xf32>
    %139 = arith.addf %136, %138 : vector<196x32xf32>
    %cst_104 = arith.constant 0.000000e+00 : f32
    %140 = vector.broadcast %cst_104 : f32 to vector<196x32xf32>
    %141 = arith.maximumf %139, %140 : vector<196x32xf32>
    %c1_105 = arith.constant 1 : index
    %c0_106 = arith.constant 0 : index
    %c0_107 = arith.constant 0 : index
    %142 = vector.load %arg4[%c1_105, %c0_106, %c0_107] : memref<2x196x32xf32, #tpu.memory_space<vmem>>, vector<1x196x32xf32>
    %143 = vector.shape_cast %142 : vector<1x196x32xf32> to vector<196x32xf32>
    %144 = vector.shape_cast %141 : vector<196x32xf32> to vector<1x196x32xf32>
    tpu.vector_store %arg4[%c1_105, %c0_106, %c0_107], %144 {strides = array<i32>} : memref<2x196x32xf32, #tpu.memory_space<vmem>>, vector<1x196x32xf32>,
    return
  }
  func.func @transform_0(%arg0: i32) -> (i32, i32, i32) {
    %c0_i32 = arith.constant 0 : i32
    %c0_i32_0 = arith.constant 0 : i32
    %c0_i32_1 = arith.constant 0 : i32
    return %arg0, %c0_i32, %c0_i32_0 : i32, i32, i32
  }
  func.func @transform_1(%arg0: i32) -> (i32, i32) {
    %c0_i32 = arith.constant 0 : i32
    %c0_i32_0 = arith.constant 0 : i32
    %c0_i32_1 = arith.constant 0 : i32
    return %c0_i32, %c0_i32_0 : i32, i32
  }
  func.func @transform_2(%arg0: i32) -> (i32, i32) {
    %c0_i32 = arith.constant 0 : i32
    %c0_i32_0 = arith.constant 0 : i32
    %c0_i32_1 = arith.constant 0 : i32
    return %c0_i32, %c0_i32_0 : i32, i32
  }
  func.func @transform_3(%arg0: i32) -> (i32, i32, i32) {
    %c0_i32 = arith.constant 0 : i32
    %c0_i32_0 = arith.constant 0 : i32
    %c0_i32_1 = arith.constant 0 : i32
    return %arg0, %c0_i32, %c0_i32_0 : i32, i32, i32
  }
}

module attributes {stable_mosaic.version = 11 : i64} {
  func.func @_pool_pairs_kernel(%arg0: i32, %arg1: memref<196x64xf32, #tpu.memory_space<vmem>>, %arg2: memref<196x32xf32, #tpu.memory_space<vmem>>) attributes {dimension_semantics = [#tpu.dimension_semantics<parallel>], iteration_bounds = array<i64: 1>, scalar_prefetch = 0 : i64, scratch_operands = 0 : i64, tpu.core_type = #tpu.core_type<tc>, window_params = [{transform_indices = @transform_0, window_bounds = array<i64: 196, 64>}, {transform_indices = @transform_1, window_bounds = array<i64: 196, 32>}]} {
    %c0 = arith.constant 0 : index
    %c0_0 = arith.constant 0 : index
    %0 = vector.load %arg1[%c0, %c0_0] : memref<196x64xf32, #tpu.memory_space<vmem>>, vector<196x32xf32>
    %c0_1 = arith.constant 0 : index
    %c32 = arith.constant 32 : index
    %1 = vector.load %arg1[%c0_1, %c32] : memref<196x64xf32, #tpu.memory_space<vmem>>, vector<196x32xf32>
    %2 = arith.maximumf %0, %1 : vector<196x32xf32>
    %c0_2 = arith.constant 0 : index
    %c0_3 = arith.constant 0 : index
    %3 = vector.load %arg2[%c0_2, %c0_3] : memref<196x32xf32, #tpu.memory_space<vmem>>, vector<196x32xf32>
    tpu.vector_store %arg2[%c0_2, %c0_3], %2 {strides = array<i32>} : memref<196x32xf32, #tpu.memory_space<vmem>>, vector<196x32xf32>,
    return
  }
  func.func @transform_0(%arg0: i32) -> (i32, i32) {
    %c0_i32 = arith.constant 0 : i32
    %c0_i32_0 = arith.constant 0 : i32
    return %arg0, %c0_i32 : i32, i32
  }
  func.func @transform_1(%arg0: i32) -> (i32, i32) {
    %c0_i32 = arith.constant 0 : i32
    %c0_i32_0 = arith.constant 0 : i32
    return %arg0, %c0_i32 : i32, i32
  }
}

module attributes {stable_mosaic.version = 11 : i64} {
  func.func @_pool_pairs_kernel(%arg0: i32, %arg1: memref<14x448xf32, #tpu.memory_space<vmem>>, %arg2: memref<14x224xf32, #tpu.memory_space<vmem>>) attributes {dimension_semantics = [#tpu.dimension_semantics<parallel>], iteration_bounds = array<i64: 1>, scalar_prefetch = 0 : i64, scratch_operands = 0 : i64, tpu.core_type = #tpu.core_type<tc>, window_params = [{transform_indices = @transform_0, window_bounds = array<i64: 14, 448>}, {transform_indices = @transform_1, window_bounds = array<i64: 14, 224>}]} {
    %c0 = arith.constant 0 : index
    %c0_0 = arith.constant 0 : index
    %0 = vector.load %arg1[%c0, %c0_0] : memref<14x448xf32, #tpu.memory_space<vmem>>, vector<14x224xf32>
    %c0_1 = arith.constant 0 : index
    %c224 = arith.constant 224 : index
    %1 = vector.load %arg1[%c0_1, %c224] : memref<14x448xf32, #tpu.memory_space<vmem>>, vector<14x224xf32>
    %2 = arith.maximumf %0, %1 : vector<14x224xf32>
    %c0_2 = arith.constant 0 : index
    %c0_3 = arith.constant 0 : index
    %3 = vector.load %arg2[%c0_2, %c0_3] : memref<14x224xf32, #tpu.memory_space<vmem>>, vector<14x224xf32>
    tpu.vector_store %arg2[%c0_2, %c0_3], %2 {strides = array<i32>} : memref<14x224xf32, #tpu.memory_space<vmem>>, vector<14x224xf32>,
    return
  }
  func.func @transform_0(%arg0: i32) -> (i32, i32) {
    %c0_i32 = arith.constant 0 : i32
    %c0_i32_0 = arith.constant 0 : i32
    return %arg0, %c0_i32 : i32, i32
  }
  func.func @transform_1(%arg0: i32) -> (i32, i32) {
    %c0_i32 = arith.constant 0 : i32
    %c0_i32_0 = arith.constant 0 : i32
    return %arg0, %c0_i32 : i32, i32
  }
}

module attributes {stable_mosaic.version = 11 : i64} {
  func.func @_fc_head_kernel(%arg0: i32, %arg1: memref<2x1568xf32, #tpu.memory_space<vmem>>, %arg2: memref<1568x128xbf16, #tpu.memory_space<vmem>>, %arg3: memref<1x128xf32, #tpu.memory_space<vmem>>, %arg4: memref<128x10xbf16, #tpu.memory_space<vmem>>, %arg5: memref<1x10xf32, #tpu.memory_space<vmem>>, %arg6: memref<2x10xf32, #tpu.memory_space<vmem>>) attributes {dimension_semantics = [#tpu.dimension_semantics<parallel>], iteration_bounds = array<i64: 1>, scalar_prefetch = 0 : i64, scratch_operands = 0 : i64, tpu.core_type = #tpu.core_type<tc>, window_params = [{transform_indices = @transform_0, window_bounds = array<i64: 2, 1568>}, {pipeline_mode = #tpu.pipeline_mode<synchronous>, transform_indices = @transform_1, window_bounds = array<i64: 1568, 128>}, {pipeline_mode = #tpu.pipeline_mode<synchronous>, transform_indices = @transform_2, window_bounds = array<i64: 1, 128>}, {pipeline_mode = #tpu.pipeline_mode<synchronous>, transform_indices = @transform_3, window_bounds = array<i64: 128, 10>}, {pipeline_mode = #tpu.pipeline_mode<synchronous>, transform_indices = @transform_4, window_bounds = array<i64: 1, 10>}, {transform_indices = @transform_5, window_bounds = array<i64: 2, 10>}]} {
    %c0 = arith.constant 0 : index
    %c0_0 = arith.constant 0 : index
    %0 = vector.load %arg1[%c0, %c0_0] : memref<2x1568xf32, #tpu.memory_space<vmem>>, vector<2x1568xf32>
    %1 = arith.truncf %0 : vector<2x1568xf32> to vector<2x1568xbf16>
    %c0_1 = arith.constant 0 : index
    %c0_2 = arith.constant 0 : index
    %2 = vector.load %arg2[%c0_1, %c0_2] : memref<1568x128xbf16, #tpu.memory_space<vmem>>, vector<1568x128xbf16>
    %cst = arith.constant dense<0.000000e+00> : vector<2x128xf32>
    %3 = tpu.matmul %1, %2, %cst {dimension_numbers = #tpu.dot_dimension_numbers<[1], [0], [0], [1], [0, 0, 1, 1], [], []>} : vector<2x1568xbf16>, vector<1568x128xbf16>, vector<2x128xf32> -> vector<2x128xf32>
    %c0_3 = arith.constant 0 : index
    %c0_4 = arith.constant 0 : index
    %4 = vector.load %arg3[%c0_3, %c0_4] : memref<1x128xf32, #tpu.memory_space<vmem>>, vector<1x128xf32>
    %5 = vector.broadcast %4 : vector<1x128xf32> to vector<2x128xf32>
    %6 = arith.addf %3, %5 : vector<2x128xf32>
    %cst_5 = arith.constant 0.000000e+00 : f32
    %7 = vector.broadcast %cst_5 : f32 to vector<2x128xf32>
    %8 = arith.maximumf %6, %7 : vector<2x128xf32>
    %9 = arith.truncf %8 : vector<2x128xf32> to vector<2x128xbf16>
    %c0_6 = arith.constant 0 : index
    %c0_7 = arith.constant 0 : index
    %10 = vector.load %arg4[%c0_6, %c0_7] : memref<128x10xbf16, #tpu.memory_space<vmem>>, vector<128x10xbf16>
    %cst_8 = arith.constant dense<0.000000e+00> : vector<2x10xf32>
    %11 = tpu.matmul %9, %10, %cst_8 {dimension_numbers = #tpu.dot_dimension_numbers<[1], [0], [0], [1], [0, 0, 1, 1], [], []>} : vector<2x128xbf16>, vector<128x10xbf16>, vector<2x10xf32> -> vector<2x10xf32>
    %c0_9 = arith.constant 0 : index
    %c0_10 = arith.constant 0 : index
    %12 = vector.load %arg5[%c0_9, %c0_10] : memref<1x10xf32, #tpu.memory_space<vmem>>, vector<1x10xf32>
    %13 = vector.broadcast %12 : vector<1x10xf32> to vector<2x10xf32>
    %14 = arith.addf %11, %13 : vector<2x10xf32>
    %c0_11 = arith.constant 0 : index
    %c0_12 = arith.constant 0 : index
    %15 = vector.load %arg6[%c0_11, %c0_12] : memref<2x10xf32, #tpu.memory_space<vmem>>, vector<2x10xf32>
    tpu.vector_store %arg6[%c0_11, %c0_12], %14 {strides = array<i32>} : memref<2x10xf32, #tpu.memory_space<vmem>>, vector<2x10xf32>,
    return
  }
  func.func @transform_0(%arg0: i32) -> (i32, i32) {
    %c0_i32 = arith.constant 0 : i32
    %c0_i32_0 = arith.constant 0 : i32
    return %arg0, %c0_i32 : i32, i32
  }
  func.func @transform_1(%arg0: i32) -> (i32, i32) {
    %c0_i32 = arith.constant 0 : i32
    %c0_i32_0 = arith.constant 0 : i32
    %c0_i32_1 = arith.constant 0 : i32
    return %c0_i32, %c0_i32_0 : i32, i32
  }
  func.func @transform_2(%arg0: i32) -> (i32, i32) {
    %c0_i32 = arith.constant 0 : i32
    %c0_i32_0 = arith.constant 0 : i32
    %c0_i32_1 = arith.constant 0 : i32
    return %c0_i32, %c0_i32_0 : i32, i32
  }
  func.func @transform_3(%arg0: i32) -> (i32, i32) {
    %c0_i32 = arith.constant 0 : i32
    %c0_i32_0 = arith.constant 0 : i32
    %c0_i32_1 = arith.constant 0 : i32
    return %c0_i32, %c0_i32_0 : i32, i32
  }
  func.func @transform_4(%arg0: i32) -> (i32, i32) {
    %c0_i32 = arith.constant 0 : i32
    %c0_i32_0 = arith.constant 0 : i32
    %c0_i32_1 = arith.constant 0 : i32
    return %c0_i32, %c0_i32_0 : i32, i32
  }
  func.func @transform_5(%arg0: i32) -> (i32, i32) {
    %c0_i32 = arith.constant 0 : i32
    %c0_i32_0 = arith.constant 0 : i32
    return %arg0, %c0_i32 : i32, i32
  }
}

</mosaic_0001>

<bundles_post_ra>
// kernel: cnn_forward.8
= control target key start
LH: loop header
LB: loop body
LE: loop exit
PB: predicated region body
PF: predicated region fallthrough
CT: control target
= control target key end

     0   :  { %s700_s10 = smov 112   ;;  %vm596_vm0 = vcmask 130048   ;;  %s1887_s0 = inlined_call_operand.vmem [shape: f32[784,32], index: 0, kind: input, shape index: {}]   ;;  %s1888_s1 = inlined_call_operand.vmem [shape: f32[784,16], index: 1, kind: output, shape index: {}]  }
   0x1   :  { %v714_v0 = vld [vmem:[%s1887_s0 + $0x10] sm:$0xff]  ;;  %v719_v1 = vld [vmem:[%s1887_s0] sm:$0xff]  ;;  %v728_v2 = vld [vmem:[%s1887_s0 + $0x18] sm:$0xff] }
   0x2   :  { %208 = vrot.lane.b32.xlu1 %v714_v0, %s700_s10  ;;  %204 = vrot.lane.b32.xlu0 %v719_v1, %s700_s10  ;;  %v733_v3 = vld [vmem:[%s1887_s0 + $0x8] sm:$0xff]  ;;  %v747_v5 = vld [vmem:[%s1887_s0 + $0x20] sm:$0xff] }
   0x3   :  { %v742_v4 = vld [vmem:[%s1887_s0 + $0x28] sm:$0xff]  ;;  %v756_v6 = vld [vmem:[%s1887_s0 + $0x38] sm:$0xff]  ;;  %v761_v7 = vld [vmem:[%s1887_s0 + $0x30] sm:$0xff] }
   0x4   :  { %v770_v8 = vld [vmem:[%s1887_s0 + $0x48] sm:$0xff]  ;;  %v775_v9 = vld [vmem:[%s1887_s0 + $0x40] sm:$0xff]  ;;  %v784_v10 = vld [vmem:[%s1887_s0 + $0x58] sm:$0xff] }
   0x5   :  { %v789_v11 = vld [vmem:[%s1887_s0 + $0x50] sm:$0xff]  ;;  %v798_v12 = vld [vmem:[%s1887_s0 + $0x68] sm:$0xff]  ;;  %v803_v13 = vld [vmem:[%s1887_s0 + $0x60] sm:$0xff] }
   0x6   :  { %210 = vrot.lane.b32.xlu1 %v728_v2, %s700_s10  ;;  %206 = vrot.lane.b32.xlu0 %v733_v3, %s700_s10  ;;  %v812_v14 = vld [vmem:[%s1887_s0 + $0x78] sm:$0xff]  ;;  %v817_v15 = vld [vmem:[%s1887_s0 + $0x70] sm:$0xff] }
   0x7   :  { %v826_v16 = vld [vmem:[%s1887_s0 + $0x88] sm:$0xff]  ;;  %v831_v17 = vld [vmem:[%s1887_s0 + $0x80] sm:$0xff]  ;;  %v840_v18 = vld [vmem:[%s1887_s0 + $0x98] sm:$0xff] }
   0x8   :  { %v845_v19 = vld [vmem:[%s1887_s0 + $0x90] sm:$0xff]  ;;  %v854_v20 = vld [vmem:[%s1887_s0 + $0xa8] sm:$0xff]  ;;  %v859_v21 = vld [vmem:[%s1887_s0 + $0xa0] sm:$0xff] }
   0x9   :  { %v868_v22 = vld [vmem:[%s1887_s0 + $0xb8] sm:$0xff]  ;;  %v873_v23 = vld [vmem:[%s1887_s0 + $0xb0] sm:$0xff]  ;;  %v882_v24 = vld [vmem:[%s1887_s0 + $0xc8] sm:$0xff] }
   0xa   :  { %214 = vrot.lane.b32.xlu1 %v742_v4, %s700_s10  ;;  %212 = vrot.lane.b32.xlu0 %v747_v5, %s700_s10  ;;  %v887_v25 = vld [vmem:[%s1887_s0 + $0xc0] sm:$0xff]  ;;  %v896_v26 = vld [vmem:[%s1887_s0 + $0xd8] sm:$0xff] }
   0xb   :  { %v901_v27 = vld [vmem:[%s1887_s0 + $0xd0] sm:$0xff]  ;;  %v910_v28 = vld [vmem:[%s1887_s0 + $0xe8] sm:$0xff]  ;;  %v915_v29 = vld [vmem:[%s1887_s0 + $0xe0] sm:$0xff] }
   0xc   :  { %v924_v30 = vld [vmem:[%s1887_s0 + $0xf8] sm:$0xff]  ;;  %v929_v31 = vld [vmem:[%s1887_s0 + $0xf0] sm:$0xff]  ;;  %v938_v32 = vld [vmem:[%s1887_s0 + $0x108] sm:$0xff] }
   0xd   :  { %v943_v33 = vld [vmem:[%s1887_s0 + $0x100] sm:$0xff]  ;;  %v952_v34 = vld [vmem:[%s1887_s0 + $0x118] sm:$0xff]  ;;  %v957_v35 = vld [vmem:[%s1887_s0 + $0x110] sm:$0xff] }
   0xe   :  { %218 = vrot.lane.b32.xlu1 %v756_v6, %s700_s10  ;;  %216 = vrot.lane.b32.xlu0 %v761_v7, %s700_s10  ;;  %v966_v36 = vld [vmem:[%s1887_s0 + $0x128] sm:$0xff]  ;;  %v971_v37 = vld [vmem:[%s1887_s0 + $0x120] sm:$0xff] }
   0xf   :  { %v980_v38 = vld [vmem:[%s1887_s0 + $0x138] sm:$0xff]  ;;  %v985_v39 = vld [vmem:[%s1887_s0 + $0x130] sm:$0xff]  ;;  %v994_v40 = vld [vmem:[%s1887_s0 + $0x148] sm:$0xff] }
  0x10   :  { %v999_v41 = vld [vmem:[%s1887_s0 + $0x140] sm:$0xff]  ;;  %v1008_v42 = vld [vmem:[%s1887_s0 + $0x158] sm:$0xff]  ;;  %v1013_v43 = vld [vmem:[%s1887_s0 + $0x150] sm:$0xff] }
  0x11   :  { %v1022_v44 = vld [vmem:[%s1887_s0 + $0x168] sm:$0xff]  ;;  %v1027_v45 = vld [vmem:[%s1887_s0 + $0x160] sm:$0xff]  ;;  %v1036_v46 = vld [vmem:[%s1887_s0 + $0x178] sm:$0xff] }
  0x12   :  { %222 = vrot.lane.b32.xlu1 %v770_v8, %s700_s10  ;;  %220 = vrot.lane.b32.xlu0 %v775_v9, %s700_s10  ;;  %v1041_v47 = vld [vmem:[%s1887_s0 + $0x170] sm:$0xff]  ;;  %v1050_v48 = vld [vmem:[%s1887_s0 + $0x188] sm:$0xff] }
  0x13   :  { %v1055_v49 = vld [vmem:[%s1887_s0 + $0x180] sm:$0xff]  ;;  %v1064_v50 = vld [vmem:[%s1887_s0 + $0x198] sm:$0xff]  ;;  %v1069_v51 = vld [vmem:[%s1887_s0 + $0x190] sm:$0xff] }
  0x14   :  { %v1078_v52 = vld [vmem:[%s1887_s0 + $0x1a8] sm:$0xff]  ;;  %v1083_v53 = vld [vmem:[%s1887_s0 + $0x1a0] sm:$0xff]  ;;  %v1092_v54 = vld [vmem:[%s1887_s0 + $0x1b8] sm:$0xff] }
  0x15   :  { %v1097_v55 = vld [vmem:[%s1887_s0 + $0x1b0] sm:$0xff]  ;;  %v1106_v56 = vld [vmem:[%s1887_s0 + $0x1c8] sm:$0xff]  ;;  %v1111_v57 = vld [vmem:[%s1887_s0 + $0x1c0] sm:$0xff] }
  0x16   :  { %226 = vrot.lane.b32.xlu1 %v784_v10, %s700_s10  ;;  %224 = vrot.lane.b32.xlu0 %v789_v11, %s700_s10  ;;  %v1120_v58 = vld [vmem:[%s1887_s0 + $0x1d8] sm:$0xff]  ;;  %v1125_v59 = vld [vmem:[%s1887_s0 + $0x1d0] sm:$0xff] }
  0x17   :  { %1891 = vst [vmem:[#allocation2_spill] sm:$0xff] %v1125_v59 }
  0x1a   :  { %230 = vrot.lane.b32.xlu1 %v798_v12, %s700_s10  ;;  %228 = vrot.lane.b32.xlu0 %v803_v13, %s700_s10 }
  0x1e   :  { %234 = vrot.lane.b32.xlu1 %v812_v14, %s700_s10  ;;  %232 = vrot.lane.b32.xlu0 %v817_v15, %s700_s10 }
  0x22   :  { %238 = vrot.lane.b32.xlu1 %v826_v16, %s700_s10  ;;  %236 = vrot.lane.b32.xlu0 %v831_v17, %s700_s10 }
  0x26   :  { %242 = vrot.lane.b32.xlu1 %v840_v18, %s700_s10  ;;  %240 = vrot.lane.b32.xlu0 %v845_v19, %s700_s10 }
  0x2a   :  { %246 = vrot.lane.b32.xlu1 %v854_v20, %s700_s10  ;;  %244 = vrot.lane.b32.xlu0 %v859_v21, %s700_s10 }
  0x2e   :  { %250 = vrot.lane.b32.xlu1 %v868_v22, %s700_s10  ;;  %248 = vrot.lane.b32.xlu0 %v873_v23, %s700_s10 }
  0x32   :  { %254 = vrot.lane.b32.xlu1 %v882_v24, %s700_s10  ;;  %252 = vrot.lane.b32.xlu0 %v887_v25, %s700_s10 }
  0x36   :  { %258 = vrot.lane.b32.xlu1 %v896_v26, %s700_s10  ;;  %256 = vrot.lane.b32.xlu0 %v901_v27, %s700_s10 }
  0x3a   :  { %262 = vrot.lane.b32.xlu1 %v910_v28, %s700_s10  ;;  %260 = vrot.lane.b32.xlu0 %v915_v29, %s700_s10 }
  0x3e   :  { %266 = vrot.lane.b32.xlu1 %v924_v30, %s700_s10  ;;  %264 = vrot.lane.b32.xlu0 %v929_v31, %s700_s10 }
  0x42   :  { %270 = vrot.lane.b32.xlu1 %v938_v32, %s700_s10  ;;  %268 = vrot.lane.b32.xlu0 %v943_v33, %s700_s10 }
  0x46   :  { %274 = vrot.lane.b32.xlu1 %v952_v34, %s700_s10  ;;  %272 = vrot.lane.b32.xlu0 %v957_v35, %s700_s10 }
  0x4a   :  { %278 = vrot.lane.b32.xlu1 %v966_v36, %s700_s10  ;;  %276 = vrot.lane.b32.xlu0 %v971_v37, %s700_s10 }
  0x4e   :  { %282 = vrot.lane.b32.xlu1 %v980_v38, %s700_s10  ;;  %280 = vrot.lane.b32.xlu0 %v985_v39, %s700_s10 }
  0x52   :  { %286 = vrot.lane.b32.xlu1 %v994_v40, %s700_s10  ;;  %284 = vrot.lane.b32.xlu0 %v999_v41, %s700_s10 }
  0x56   :  { %290 = vrot.lane.b32.xlu1 %v1008_v42, %s700_s10  ;;  %288 = vrot.lane.b32.xlu0 %v1013_v43, %s700_s10 }
  0x5a   :  { %294 = vrot.lane.b32.xlu1 %v1022_v44, %s700_s10  ;;  %292 = vrot.lane.b32.xlu0 %v1027_v45, %s700_s10 }
  0x5e   :  { %298 = vrot.lane.b32.xlu1 %v1036_v46, %s700_s10  ;;  %296 = vrot.lane.b32.xlu0 %v1041_v47, %s700_s10 }
  0x62   :  { %302 = vrot.lane.b32.xlu1 %v1050_v48, %s700_s10  ;;  %300 = vrot.lane.b32.xlu0 %v1055_v49, %s700_s10 }
  0x66   :  { %306 = vrot.lane.b32.xlu1 %v1064_v50, %s700_s10  ;;  %304 = vrot.lane.b32.xlu0 %v1069_v51, %s700_s10 }
  0x6a   :  { %310 = vrot.lane.b32.xlu1 %v1078_v52, %s700_s10  ;;  %308 = vrot.lane.b32.xlu0 %v1083_v53, %s700_s10 }
  0x6e   :  { %314 = vrot.lane.b32.xlu1 %v1092_v54, %s700_s10  ;;  %312 = vrot.lane.b32.xlu0 %v1097_v55, %s700_s10 }
  0x72   :  { %318 = vrot.lane.b32.xlu1 %v1106_v56, %s700_s10  ;;  %316 = vrot.lane.b32.xlu0 %v1111_v57, %s700_s10 }
  0x74   :  { %v209_v60 = vpop.permute.xlu1 %208  ;;  %v205_v61 = vpop.permute.xlu0 %204 }
  0x75   :  { %v500_v62 = vmax.f32 %v714_v0, %v209_v60  ;;  %v498_v63 = vmax.f32 %v719_v1, %v205_v61  ;;  %v1144_v0 = vld [vmem:[%s1887_s0 + $0x1e8] sm:$0xff]  ;;  %v1149_v1 = vld [vmem:[%s1887_s0 + $0x1e0] sm:$0xff] }
  0x76   :  { %322 = vrot.lane.b32.xlu1 %v1120_v58, %s700_s10  ;;  %320 = vrot.lane.b32.xlu0 %v1125_v59, %s700_s10 }
  0x77   :  { %599 = vst.msk [vmem:[%s1888_s1 + $0x10] sm:$0xff] %vm596_vm0, %v500_v62  ;;  %597 = vst.msk [vmem:[%s1888_s1] sm:$0xff] %vm596_vm0, %v498_v63 }
  0x78   :  { %v211_v60 = vpop.permute.xlu1 %210  ;;  %v207_v61 = vpop.permute.xlu0 %206 }
  0x79   :  { %v501_v59 = vmax.f32 %v728_v2, %v211_v60  ;;  %v499_v62 = vmax.f32 %v733_v3, %v207_v61  ;;  %v1168_v2 = vld [vmem:[%s1887_s0 + $0x1f8] sm:$0xff]  ;;  %v1173_v3 = vld [vmem:[%s1887_s0 + $0x1f0] sm:$0xff] }
  0x7a   :  { %326 = vrot.lane.b32.xlu1 %v1144_v0, %s700_s10  ;;  %324 = vrot.lane.b32.xlu0 %v1149_v1, %s700_s10 }
  0x7b   :  { %600 = vst.msk [vmem:[%s1888_s1 + $0x18] sm:$0xff] %vm596_vm0, %v501_v59  ;;  %598 = vst.msk [vmem:[%s1888_s1 + $0x8] sm:$0xff] %vm596_vm0, %v499_v62 }
  0x7c   :  { %v215_v63 = vpop.permute.xlu1 %214  ;;  %v213_v60 = vpop.permute.xlu0 %212 }
  0x7d   :  { %v503_v61 = vmax.f32 %v742_v4, %v215_v63  ;;  %v502_v59 = vmax.f32 %v747_v5, %v213_v60  ;;  %v1192_v4 = vld [vmem:[%s1887_s0 + $0x208] sm:$0xff]  ;;  %v1197_v5 = vld [vmem:[%s1887_s0 + $0x200] sm:$0xff] }
  0x7e   :  { %330 = vrot.lane.b32.xlu1 %v1168_v2, %s700_s10  ;;  %328 = vrot.lane.b32.xlu0 %v1173_v3, %s700_s10 }
  0x7f   :  { %602 = vst.msk [vmem:[%s1888_s1 + $0x28] sm:$0xff] %vm596_vm0, %v503_v61  ;;  %601 = vst.msk [vmem:[%s1888_s1 + $0x20] sm:$0xff] %vm596_vm0, %v502_v59 }
  0x80   :  { %v219_v62 = vpop.permute.xlu1 %218  ;;  %v217_v63 = vpop.permute.xlu0 %216 }
  0x81   :  { %v505_v60 = vmax.f32 %v756_v6, %v219_v62  ;;  %v504_v61 = vmax.f32 %v761_v7, %v217_v63  ;;  %v1216_v6 = vld [vmem:[%s1887_s0 + $0x218] sm:$0xff]  ;;  %v1221_v7 = vld [vmem:[%s1887_s0 + $0x210] sm:$0xff] }
  0x82   :  { %334 = vrot.lane.b32.xlu1 %v1192_v4, %s700_s10  ;;  %332 = vrot.lane.b32.xlu0 %v1197_v5, %s700_s10 }
  0x83   :  { %604 = vst.msk [vmem:[%s1888_s1 + $0x38] sm:$0xff] %vm596_vm0, %v505_v60  ;;  %603 = vst.msk [vmem:[%s1888_s1 + $0x30] sm:$0xff] %vm596_vm0, %v504_v61 }
  0x84   :  { %v223_v59 = vpop.permute.xlu1 %222  ;;  %v221_v62 = vpop.permute.xlu0 %220 }
  0x85   :  { %v507_v63 = vmax.f32 %v770_v8, %v223_v59  ;;  %v506_v60 = vmax.f32 %v775_v9, %v221_v62  ;;  %v1240_v8 = vld [vmem:[%s1887_s0 + $0x228] sm:$0xff]  ;;  %v1245_v9 = vld [vmem:[%s1887_s0 + $0x220] sm:$0xff] }
  0x86   :  { %338 = vrot.lane.b32.xlu1 %v1216_v6, %s700_s10  ;;  %336 = vrot.lane.b32.xlu0 %v1221_v7, %s700_s10 }
  0x87   :  { %606 = vst.msk [vmem:[%s1888_s1 + $0x48] sm:$0xff] %vm596_vm0, %v507_v63  ;;  %605 = vst.msk [vmem:[%s1888_s1 + $0x40] sm:$0xff] %vm596_vm0, %v506_v60 }
  0x88   :  { %v227_v61 = vpop.permute.xlu1 %226  ;;  %v225_v59 = vpop.permute.xlu0 %224 }
  0x89   :  { %v509_v62 = vmax.f32 %v784_v10, %v227_v61  ;;  %v508_v63 = vmax.f32 %v789_v11, %v225_v59  ;;  %v1264_v10 = vld [vmem:[%s1887_s0 + $0x238] sm:$0xff]  ;;  %v1269_v11 = vld [vmem:[%s1887_s0 + $0x230] sm:$0xff] }
  0x8a   :  { %342 = vrot.lane.b32.xlu1 %v1240_v8, %s700_s10  ;;  %340 = vrot.lane.b32.xlu0 %v1245_v9, %s700_s10 }
  0x8b   :  { %608 = vst.msk [vmem:[%s1888_s1 + $0x58] sm:$0xff] %vm596_vm0, %v509_v62  ;;  %607 = vst.msk [vmem:[%s1888_s1 + $0x50] sm:$0xff] %vm596_vm0, %v508_v63 }
  0x8c   :  { %v231_v60 = vpop.permute.xlu1 %230  ;;  %v229_v61 = vpop.permute.xlu0 %228 }
  0x8d   :  { %v511_v59 = vmax.f32 %v798_v12, %v231_v60  ;;  %v510_v62 = vmax.f32 %v803_v13, %v229_v61  ;;  %v1288_v12 = vld [vmem:[%s1887_s0 + $0x248] sm:$0xff]  ;;  %v1293_v13 = vld [vmem:[%s1887_s0 + $0x240] sm:$0xff] }
  0x8e   :  { %346 = vrot.lane.b32.xlu1 %v1264_v10, %s700_s10  ;;  %344 = vrot.lane.b32.xlu0 %v1269_v11, %s700_s10 }
  0x8f   :  { %610 = vst.msk [vmem:[%s1888_s1 + $0x68] sm:$0xff] %vm596_vm0, %v511_v59  ;;  %609 = vst.msk [vmem:[%s1888_s1 + $0x60] sm:$0xff] %vm596_vm0, %v510_v62 }
  0x90   :  { %v235_v63 = vpop.permute.xlu1 %234  ;;  %v233_v60 = vpop.permute.xlu0 %232 }
  0x91   :  { %v513_v61 = vmax.f32 %v812_v14, %v235_v63  ;;  %v512_v59 = vmax.f32 %v817_v15, %v233_v60  ;;  %v1312_v14 = vld [vmem:[%s1887_s0 + $0x258] sm:$0xff]  ;;  %v1317_v15 = vld [vmem:[%s1887_s0 + $0x250] sm:$0xff] }
  0x92   :  { %350 = vrot.lane.b32.xlu1 %v1288_v12, %s700_s10  ;;  %348 = vrot.lane.b32.xlu0 %v1293_v13, %s700_s10 }
  0x93   :  { %612 = vst.msk [vmem:[%s1888_s1 + $0x78] sm:$0xff] %vm596_vm0, %v513_v61  ;;  %611 = vst.msk [vmem:[%s1888_s1 + $0x70] sm:$0xff] %vm596_vm0, %v512_v59 }
  0x94   :  { %v239_v62 = vpop.permute.xlu1 %238  ;;  %v237_v63 = vpop.permute.xlu0 %236 }
  0x95   :  { %v515_v60 = vmax.f32 %v826_v16, %v239_v62  ;;  %v514_v61 = vmax.f32 %v831_v17, %v237_v63  ;;  %v1336_v16 = vld [vmem:[%s1887_s0 + $0x268] sm:$0xff]  ;;  %v1341_v17 = vld [vmem:[%s1887_s0 + $0x260] sm:$0xff] }
  0x96   :  { %354 = vrot.lane.b32.xlu1 %v1312_v14, %s700_s10  ;;  %352 = vrot.lane.b32.xlu0 %v1317_v15, %s700_s10 }
  0x97   :  { %614 = vst.msk [vmem:[%s1888_s1 + $0x88] sm:$0xff] %vm596_vm0, %v515_v60  ;;  %613 = vst.msk [vmem:[%s1888_s1 + $0x80] sm:$0xff] %vm596_vm0, %v514_v61 }
  0x98   :  { %v243_v59 = vpop.permute.xlu1 %242  ;;  %v241_v62 = vpop.permute.xlu0 %240 }
  0x99   :  { %v517_v63 = vmax.f32 %v840_v18, %v243_v59  ;;  %v516_v60 = vmax.f32 %v845_v19, %v241_v62  ;;  %v1360_v18 = vld [vmem:[%s1887_s0 + $0x278] sm:$0xff]  ;;  %v1365_v19 = vld [vmem:[%s1887_s0 + $0x270] sm:$0xff] }
  0x9a   :  { %358 = vrot.lane.b32.xlu1 %v1336_v16, %s700_s10  ;;  %356 = vrot.lane.b32.xlu0 %v1341_v17, %s700_s10 }
  0x9b   :  { %616 = vst.msk [vmem:[%s1888_s1 + $0x98] sm:$0xff] %vm596_vm0, %v517_v63  ;;  %615 = vst.msk [vmem:[%s1888_s1 + $0x90] sm:$0xff] %vm596_vm0, %v516_v60 }
  0x9c   :  { %v247_v61 = vpop.permute.xlu1 %246  ;;  %v245_v59 = vpop.permute.xlu0 %244 }
  0x9d   :  { %v519_v62 = vmax.f32 %v854_v20, %v247_v61  ;;  %v518_v63 = vmax.f32 %v859_v21, %v245_v59  ;;  %v1384_v20 = vld [vmem:[%s1887_s0 + $0x288] sm:$0xff]  ;;  %v1389_v21 = vld [vmem:[%s1887_s0 + $0x280] sm:$0xff] }
  0x9e   :  { %362 = vrot.lane.b32.xlu1 %v1360_v18, %s700_s10  ;;  %360 = vrot.lane.b32.xlu0 %v1365_v19, %s700_s10 }
  0x9f   :  { %618 = vst.msk [vmem:[%s1888_s1 + $0xa8] sm:$0xff] %vm596_vm0, %v519_v62  ;;  %617 = vst.msk [vmem:[%s1888_s1 + $0xa0] sm:$0xff] %vm596_vm0, %v518_v63 }
  0xa0   :  { %v251_v60 = vpop.permute.xlu1 %250  ;;  %v249_v61 = vpop.permute.xlu0 %248 }
  0xa1   :  { %v521_v59 = vmax.f32 %v868_v22, %v251_v60  ;;  %v520_v62 = vmax.f32 %v873_v23, %v249_v61  ;;  %v1408_v22 = vld [vmem:[%s1887_s0 + $0x298] sm:$0xff]  ;;  %v1413_v23 = vld [vmem:[%s1887_s0 + $0x290] sm:$0xff] }
  0xa2   :  { %366 = vrot.lane.b32.xlu1 %v1384_v20, %s700_s10  ;;  %364 = vrot.lane.b32.xlu0 %v1389_v21, %s700_s10 }
  0xa3   :  { %620 = vst.msk [vmem:[%s1888_s1 + $0xb8] sm:$0xff] %vm596_vm0, %v521_v59  ;;  %619 = vst.msk [vmem:[%s1888_s1 + $0xb0] sm:$0xff] %vm596_vm0, %v520_v62 }
  0xa4   :  { %v255_v63 = vpop.permute.xlu1 %254  ;;  %v253_v60 = vpop.permute.xlu0 %252 }
  0xa5   :  { %v523_v61 = vmax.f32 %v882_v24, %v255_v63  ;;  %v522_v59 = vmax.f32 %v887_v25, %v253_v60  ;;  %v1432_v24 = vld [vmem:[%s1887_s0 + $0x2a8] sm:$0xff]  ;;  %v1437_v25 = vld [vmem:[%s1887_s0 + $0x2a0] sm:$0xff] }
  0xa6   :  { %370 = vrot.lane.b32.xlu1 %v1408_v22, %s700_s10  ;;  %368 = vrot.lane.b32.xlu0 %v1413_v23, %s700_s10 }
  0xa7   :  { %622 = vst.msk [vmem:[%s1888_s1 + $0xc8] sm:$0xff] %vm596_vm0, %v523_v61  ;;  %621 = vst.msk [vmem:[%s1888_s1 + $0xc0] sm:$0xff] %vm596_vm0, %v522_v59 }
  0xa8   :  { %v259_v62 = vpop.permute.xlu1 %258  ;;  %v257_v63 = vpop.permute.xlu0 %256 }
  0xa9   :  { %v525_v60 = vmax.f32 %v896_v26, %v259_v62  ;;  %v524_v61 = vmax.f32 %v901_v27, %v257_v63  ;;  %v1456_v26 = vld [vmem:[%s1887_s0 + $0x2b8] sm:$0xff]  ;;  %v1461_v27 = vld [vmem:[%s1887_s0 + $0x2b0] sm:$0xff] }
  0xaa   :  { %374 = vrot.lane.b32.xlu1 %v1432_v24, %s700_s10  ;;  %372 = vrot.lane.b32.xlu0 %v1437_v25, %s700_s10 }
  0xab   :  { %624 = vst.msk [vmem:[%s1888_s1 + $0xd8] sm:$0xff] %vm596_vm0, %v525_v60  ;;  %623 = vst.msk [vmem:[%s1888_s1 + $0xd0] sm:$0xff] %vm596_vm0, %v524_v61 }
  0xac   :  { %v263_v59 = vpop.permute.xlu1 %262  ;;  %v261_v62 = vpop.permute.xlu0 %260 }
  0xad   :  { %v527_v63 = vmax.f32 %v910_v28, %v263_v59  ;;  %v526_v60 = vmax.f32 %v915_v29, %v261_v62  ;;  %v1480_v28 = vld [vmem:[%s1887_s0 + $0x2c8] sm:$0xff]  ;;  %v1485_v29 = vld [vmem:[%s1887_s0 + $0x2c0] sm:$0xff] }
  0xae   :  { %378 = vrot.lane.b32.xlu1 %v1456_v26, %s700_s10  ;;  %376 = vrot.lane.b32.xlu0 %v1461_v27, %s700_s10 }
  0xaf   :  { %626 = vst.msk [vmem:[%s1888_s1 + $0xe8] sm:$0xff] %vm596_vm0, %v527_v63  ;;  %625 = vst.msk [vmem:[%s1888_s1 + $0xe0] sm:$0xff] %vm596_vm0, %v526_v60 }
  0xb0   :  { %v267_v61 = vpop.permute.xlu1 %266  ;;  %v265_v59 = vpop.permute.xlu0 %264 }
  0xb1   :  { %v529_v62 = vmax.f32 %v924_v30, %v267_v61  ;;  %v528_v63 = vmax.f32 %v929_v31, %v265_v59  ;;  %v1504_v30 = vld [vmem:[%s1887_s0 + $0x2d8] sm:$0xff]  ;;  %v1509_v31 = vld [vmem:[%s1887_s0 + $0x2d0] sm:$0xff] }
  0xb2   :  { %382 = vrot.lane.b32.xlu1 %v1480_v28, %s700_s10  ;;  %380 = vrot.lane.b32.xlu0 %v1485_v29, %s700_s10 }
  0xb3   :  { %628 = vst.msk [vmem:[%s1888_s1 + $0xf8] sm:$0xff] %vm596_vm0, %v529_v62  ;;  %627 = vst.msk [vmem:[%s1888_s1 + $0xf0] sm:$0xff] %vm596_vm0, %v528_v63 }
  0xb4   :  { %v271_v60 = vpop.permute.xlu1 %270  ;;  %v269_v61 = vpop.permute.xlu0 %268 }
  0xb5   :  { %v531_v59 = vmax.f32 %v938_v32, %v271_v60  ;;  %v530_v62 = vmax.f32 %v943_v33, %v269_v61  ;;  %v1528_v32 = vld [vmem:[%s1887_s0 + $0x2e8] sm:$0xff]  ;;  %v1533_v33 = vld [vmem:[%s1887_s0 + $0x2e0] sm:$0xff] }
  0xb6   :  { %386 = vrot.lane.b32.xlu1 %v1504_v30, %s700_s10  ;;  %384 = vrot.lane.b32.xlu0 %v1509_v31, %s700_s10 }
  0xb7   :  { %630 = vst.msk [vmem:[%s1888_s1 + $0x108] sm:$0xff] %vm596_vm0, %v531_v59  ;;  %629 = vst.msk [vmem:[%s1888_s1 + $0x100] sm:$0xff] %vm596_vm0, %v530_v62 }
  0xb8   :  { %v275_v63 = vpop.permute.xlu1 %274  ;;  %v273_v60 = vpop.permute.xlu0 %272 }
  0xb9   :  { %v533_v61 = vmax.f32 %v952_v34, %v275_v63  ;;  %v532_v59 = vmax.f32 %v957_v35, %v273_v60  ;;  %v1552_v34 = vld [vmem:[%s1887_s0 + $0x2f8] sm:$0xff]  ;;  %v1557_v35 = vld [vmem:[%s1887_s0 + $0x2f0] sm:$0xff] }
  0xba   :  { %390 = vrot.lane.b32.xlu1 %v1528_v32, %s700_s10  ;;  %388 = vrot.lane.b32.xlu0 %v1533_v33, %s700_s10 }
  0xbb   :  { %632 = vst.msk [vmem:[%s1888_s1 + $0x118] sm:$0xff] %vm596_vm0, %v533_v61  ;;  %631 = vst.msk [vmem:[%s1888_s1 + $0x110] sm:$0xff] %vm596_vm0, %v532_v59 }
  0xbc   :  { %v279_v62 = vpop.permute.xlu1 %278  ;;  %v277_v63 = vpop.permute.xlu0 %276 }
  0xbd   :  { %v535_v60 = vmax.f32 %v966_v36, %v279_v62  ;;  %v534_v61 = vmax.f32 %v971_v37, %v277_v63  ;;  %v1576_v36 = vld [vmem:[%s1887_s0 + $0x308] sm:$0xff]  ;;  %v1581_v37 = vld [vmem:[%s1887_s0 + $0x300] sm:$0xff] }
  0xbe   :  { %394 = vrot.lane.b32.xlu1 %v1552_v34, %s700_s10  ;;  %392 = vrot.lane.b32.xlu0 %v1557_v35, %s700_s10  ;;  %1892 = vst [vmem:[#allocation3_spill] sm:$0xff] %v1581_v37 }
  0xbf   :  { %634 = vst.msk [vmem:[%s1888_s1 + $0x128] sm:$0xff] %vm596_vm0, %v535_v60  ;;  %633 = vst.msk [vmem:[%s1888_s1 + $0x120] sm:$0xff] %vm596_vm0, %v534_v61 }
  0xc0   :  { %v283_v59 = vpop.permute.xlu1 %282  ;;  %v281_v62 = vpop.permute.xlu0 %280 }
  0xc1   :  { %v537_v63 = vmax.f32 %v980_v38, %v283_v59  ;;  %v536_v60 = vmax.f32 %v985_v39, %v281_v62 }
  0xc2   :  { %398 = vrot.lane.b32.xlu1 %v1576_v36, %s700_s10  ;;  %396 = vrot.lane.b32.xlu0 %v1581_v37, %s700_s10 }
  0xc3   :  { %636 = vst.msk [vmem:[%s1888_s1 + $0x138] sm:$0xff] %vm596_vm0, %v537_v63  ;;  %635 = vst.msk [vmem:[%s1888_s1 + $0x130] sm:$0xff] %vm596_vm0, %v536_v60 }
  0xc4   :  { %v287_v61 = vpop.permute.xlu1 %286  ;;  %v285_v38 = vpop.permute.xlu0 %284 }
  0xc5   :  { %v539_v39 = vmax.f32 %v994_v40, %v287_v61  ;;  %v538_v59 = vmax.f32 %v999_v41, %v285_v38 }
  0xc7   :  { %638 = vst.msk [vmem:[%s1888_s1 + $0x148] sm:$0xff] %vm596_vm0, %v539_v39  ;;  %637 = vst.msk [vmem:[%s1888_s1 + $0x140] sm:$0xff] %vm596_vm0, %v538_v59 }
  0xc8   :  { %v291_v62 = vpop.permute.xlu1 %290  ;;  %v289_v63 = vpop.permute.xlu0 %288 }
  0xc9   :  { %v541_v60 = vmax.f32 %v1008_v42, %v291_v62  ;;  %v540_v37 = vmax.f32 %v1013_v43, %v289_v63 }
  0xcb   :  { %640 = vst.msk [vmem:[%s1888_s1 + $0x158] sm:$0xff] %vm596_vm0, %v541_v60  ;;  %639 = vst.msk [vmem:[%s1888_s1 + $0x150] sm:$0xff] %vm596_vm0, %v540_v37 }
  0xcc   :  { %v295_v40 = vpop.permute.xlu1 %294  ;;  %v293_v41 = vpop.permute.xlu0 %292 }
  0xcd   :  { %v543_v61 = vmax.f32 %v1022_v44, %v295_v40  ;;  %v542_v38 = vmax.f32 %v1027_v45, %v293_v41 }
  0xcf   :  { %642 = vst.msk [vmem:[%s1888_s1 + $0x168] sm:$0xff] %vm596_vm0, %v543_v61  ;;  %641 = vst.msk [vmem:[%s1888_s1 + $0x160] sm:$0xff] %vm596_vm0, %v542_v38 }
  0xd0   :  { %v299_v42 = vpop.permute.xlu1 %298  ;;  %v297_v43 = vpop.permute.xlu0 %296 }
  0xd1   :  { %v545_v37 = vmax.f32 %v1036_v46, %v299_v42  ;;  %v544_v39 = vmax.f32 %v1041_v47, %v297_v43 }
  0xd3   :  { %644 = vst.msk [vmem:[%s1888_s1 + $0x178] sm:$0xff] %vm596_vm0, %v545_v37  ;;  %643 = vst.msk [vmem:[%s1888_s1 + $0x170] sm:$0xff] %vm596_vm0, %v544_v39  ;;  %v1893_v39 = vld [vmem:[#allocation2_spill] sm:$0xff] }
  0xd4   :  { %v303_v44 = vpop.permute.xlu1 %302  ;;  %v301_v45 = vpop.permute.xlu0 %300 }
  0xd5   :  { %v547_v59 = vmax.f32 %v1050_v48, %v303_v44  ;;  %v546_v62 = vmax.f32 %v1055_v49, %v301_v45 }
  0xd7   :  { %646 = vst.msk [vmem:[%s1888_s1 + $0x188] sm:$0xff] %vm596_vm0, %v547_v59  ;;  %645 = vst.msk [vmem:[%s1888_s1 + $0x180] sm:$0xff] %vm596_vm0, %v546_v62 }
  0xd8   :  { %v307_v46 = vpop.permute.xlu1 %306  ;;  %v305_v47 = vpop.permute.xlu0 %304 }
  0xd9   :  { %v549_v63 = vmax.f32 %v1064_v50, %v307_v46  ;;  %v548_v60 = vmax.f32 %v1069_v51, %v305_v47 }
  0xdb   :  { %648 = vst.msk [vmem:[%s1888_s1 + $0x198] sm:$0xff] %vm596_vm0, %v549_v63  ;;  %647 = vst.msk [vmem:[%s1888_s1 + $0x190] sm:$0xff] %vm596_vm0, %v548_v60 }
  0xdc   :  { %v311_v48 = vpop.permute.xlu1 %310  ;;  %v309_v49 = vpop.permute.xlu0 %308 }
  0xdd   :  { %v551_v40 = vmax.f32 %v1078_v52, %v311_v48  ;;  %v550_v41 = vmax.f32 %v1083_v53, %v309_v49 }
  0xdf   :  { %650 = vst.msk [vmem:[%s1888_s1 + $0x1a8] sm:$0xff] %vm596_vm0, %v551_v40  ;;  %649 = vst.msk [vmem:[%s1888_s1 + $0x1a0] sm:$0xff] %vm596_vm0, %v550_v41 }
  0xe0   :  { %v315_v50 = vpop.permute.xlu1 %314  ;;  %v313_v51 = vpop.permute.xlu0 %312 }
  0xe1   :  { %v553_v61 = vmax.f32 %v1092_v54, %v315_v50  ;;  %v552_v38 = vmax.f32 %v1097_v55, %v313_v51 }
  0xe3   :  { %652 = vst.msk [vmem:[%s1888_s1 + $0x1b8] sm:$0xff] %vm596_vm0, %v553_v61  ;;  %651 = vst.msk [vmem:[%s1888_s1 + $0x1b0] sm:$0xff] %vm596_vm0, %v552_v38 }
  0xe4   :  { %v319_v52 = vpop.permute.xlu1 %318  ;;  %v317_v53 = vpop.permute.xlu0 %316 }
  0xe5   :  { %v555_v42 = vmax.f32 %v1106_v56, %v319_v52  ;;  %v554_v43 = vmax.f32 %v1111_v57, %v317_v53 }
  0xe7   :  { %654 = vst.msk [vmem:[%s1888_s1 + $0x1c8] sm:$0xff] %vm596_vm0, %v555_v42  ;;  %653 = vst.msk [vmem:[%s1888_s1 + $0x1c0] sm:$0xff] %vm596_vm0, %v554_v43 }
  0xe8   :  { %v323_v54 = vpop.permute.xlu1 %322  ;;  %v321_v55 = vpop.permute.xlu0 %320 }
  0xe9   :  { %v557_v37 = vmax.f32 %v1120_v58, %v323_v54  ;;  %v556_v44 = vmax.f32 %v1893_v39, %v321_v55 }
  0xeb   :  { %656 = vst.msk [vmem:[%s1888_s1 + $0x1d8] sm:$0xff] %vm596_vm0, %v557_v37  ;;  %655 = vst.msk [vmem:[%s1888_s1 + $0x1d0] sm:$0xff] %vm596_vm0, %v556_v44 }
  0xec   :  { %v327_v56 = vpop.permute.xlu1 %326  ;;  %v325_v57 = vpop.permute.xlu0 %324 }
  0xed   :  { %v559_v45 = vmax.f32 %v1144_v0, %v327_v56  ;;  %v558_v59 = vmax.f32 %v1149_v1, %v325_v57 }
  0xef   :  { %658 = vst.msk [vmem:[%s1888_s1 + $0x1e8] sm:$0xff] %vm596_vm0, %v559_v45  ;;  %657 = vst.msk [vmem:[%s1888_s1 + $0x1e0] sm:$0xff] %vm596_vm0, %v558_v59 }
  0xf0   :  { %v331_v58 = vpop.permute.xlu1 %330  ;;  %v329_v62 = vpop.permute.xlu0 %328 }
  0xf1   :  { %v561_v46 = vmax.f32 %v1168_v2, %v331_v58  ;;  %v560_v47 = vmax.f32 %v1173_v3, %v329_v62 }
  0xf3   :  { %660 = vst.msk [vmem:[%s1888_s1 + $0x1f8] sm:$0xff] %vm596_vm0, %v561_v46  ;;  %659 = vst.msk [vmem:[%s1888_s1 + $0x1f0] sm:$0xff] %vm596_vm0, %v560_v47 }
  0xf4   :  { %v335_v0 = vpop.permute.xlu1 %334  ;;  %v333_v1 = vpop.permute.xlu0 %332 }
  0xf5   :  { %v563_v63 = vmax.f32 %v1192_v4, %v335_v0  ;;  %v562_v60 = vmax.f32 %v1197_v5, %v333_v1 }
  0xf7   :  { %662 = vst.msk [vmem:[%s1888_s1 + $0x208] sm:$0xff] %vm596_vm0, %v563_v63  ;;  %661 = vst.msk [vmem:[%s1888_s1 + $0x200] sm:$0xff] %vm596_vm0, %v562_v60 }
  0xf8   :  { %v339_v2 = vpop.permute.xlu1 %338  ;;  %v337_v3 = vpop.permute.xlu0 %336 }
  0xf9   :  { %v565_v48 = vmax.f32 %v1216_v6, %v339_v2  ;;  %v564_v49 = vmax.f32 %v1221_v7, %v337_v3 }
  0xfb   :  { %664 = vst.msk [vmem:[%s1888_s1 + $0x218] sm:$0xff] %vm596_vm0, %v565_v48  ;;  %663 = vst.msk [vmem:[%s1888_s1 + $0x210] sm:$0xff] %vm596_vm0, %v564_v49  ;;  %v1894_v48 = vld [vmem:[#allocation3_spill] sm:$0xff] }
  0xfc   :  { %v343_v4 = vpop.permute.xlu1 %342  ;;  %v341_v5 = vpop.permute.xlu0 %340 }
  0xfd   :  { %v567_v40 = vmax.f32 %v1240_v8, %v343_v4  ;;  %v566_v41 = vmax.f32 %v1245_v9, %v341_v5 }
  0xff   :  { %666 = vst.msk [vmem:[%s1888_s1 + $0x228] sm:$0xff] %vm596_vm0, %v567_v40  ;;  %665 = vst.msk [vmem:[%s1888_s1 + $0x220] sm:$0xff] %vm596_vm0, %v566_v41 }
 0x100   :  { %v347_v6 = vpop.permute.xlu1 %346  ;;  %v345_v7 = vpop.permute.xlu0 %344 }
 0x101   :  { %v569_v50 = vmax.f32 %v1264_v10, %v347_v6  ;;  %v568_v51 = vmax.f32 %v1269_v11, %v345_v7 }
 0x103   :  { %668 = vst.msk [vmem:[%s1888_s1 + $0x238] sm:$0xff] %vm596_vm0, %v569_v50  ;;  %667 = vst.msk [vmem:[%s1888_s1 + $0x230] sm:$0xff] %vm596_vm0, %v568_v51 }
 0x104   :  { %v351_v8 = vpop.permute.xlu1 %350  ;;  %v349_v9 = vpop.permute.xlu0 %348 }
 0x105   :  { %v571_v61 = vmax.f32 %v1288_v12, %v351_v8  ;;  %v570_v38 = vmax.f32 %v1293_v13, %v349_v9 }
 0x107   :  { %670 = vst.msk [vmem:[%s1888_s1 + $0x248] sm:$0xff] %vm596_vm0, %v571_v61  ;;  %669 = vst.msk [vmem:[%s1888_s1 + $0x240] sm:$0xff] %vm596_vm0, %v570_v38 }
 0x108   :  { %v355_v10 = vpop.permute.xlu1 %354  ;;  %v353_v11 = vpop.permute.xlu0 %352 }
 0x109   :  { %v573_v52 = vmax.f32 %v1312_v14, %v355_v10  ;;  %v572_v53 = vmax.f32 %v1317_v15, %v353_v11 }
 0x10b   :  { %672 = vst.msk [vmem:[%s1888_s1 + $0x258] sm:$0xff] %vm596_vm0, %v573_v52  ;;  %671 = vst.msk [vmem:[%s1888_s1 + $0x250] sm:$0xff] %vm596_vm0, %v572_v53 }
 0x10c   :  { %v359_v12 = vpop.permute.xlu1 %358  ;;  %v357_v13 = vpop.permute.xlu0 %356 }
 0x10d   :  { %v575_v42 = vmax.f32 %v1336_v16, %v359_v12  ;;  %v574_v43 = vmax.f32 %v1341_v17, %v357_v13 }
 0x10f   :  { %674 = vst.msk [vmem:[%s1888_s1 + $0x268] sm:$0xff] %vm596_vm0, %v575_v42  ;;  %673 = vst.msk [vmem:[%s1888_s1 + $0x260] sm:$0xff] %vm596_vm0, %v574_v43 }
 0x110   :  { %v363_v14 = vpop.permute.xlu1 %362  ;;  %v361_v15 = vpop.permute.xlu0 %360 }
 0x111   :  { %v577_v54 = vmax.f32 %v1360_v18, %v363_v14  ;;  %v576_v55 = vmax.f32 %v1365_v19, %v361_v15 }
 0x113   :  { %676 = vst.msk [vmem:[%s1888_s1 + $0x278] sm:$0xff] %vm596_vm0, %v577_v54  ;;  %675 = vst.msk [vmem:[%s1888_s1 + $0x270] sm:$0xff] %vm596_vm0, %v576_v55 }
 0x114   :  { %v367_v16 = vpop.permute.xlu1 %366  ;;  %v365_v17 = vpop.permute.xlu0 %364 }
 0x115   :  { %v579_v37 = vmax.f32 %v1384_v20, %v367_v16  ;;  %v578_v39 = vmax.f32 %v1389_v21, %v365_v17 }
 0x117   :  { %678 = vst.msk [vmem:[%s1888_s1 + $0x288] sm:$0xff] %vm596_vm0, %v579_v37  ;;  %677 = vst.msk [vmem:[%s1888_s1 + $0x280] sm:$0xff] %vm596_vm0, %v578_v39 }
 0x118   :  { %v371_v18 = vpop.permute.xlu1 %370  ;;  %v369_v19 = vpop.permute.xlu0 %368 }
 0x119   :  { %v581_v44 = vmax.f32 %v1408_v22, %v371_v18  ;;  %v580_v56 = vmax.f32 %v1413_v23, %v369_v19 }
 0x11b   :  { %680 = vst.msk [vmem:[%s1888_s1 + $0x298] sm:$0xff] %vm596_vm0, %v581_v44  ;;  %679 = vst.msk [vmem:[%s1888_s1 + $0x290] sm:$0xff] %vm596_vm0, %v580_v56 }
 0x11c   :  { %v375_v20 = vpop.permute.xlu1 %374  ;;  %v373_v21 = vpop.permute.xlu0 %372 }
 0x11d   :  { %v583_v57 = vmax.f32 %v1432_v24, %v375_v20  ;;  %v582_v45 = vmax.f32 %v1437_v25, %v373_v21 }
 0x11f   :  { %682 = vst.msk [vmem:[%s1888_s1 + $0x2a8] sm:$0xff] %vm596_vm0, %v583_v57  ;;  %681 = vst.msk [vmem:[%s1888_s1 + $0x2a0] sm:$0xff] %vm596_vm0, %v582_v45 }
 0x120   :  { %v379_v22 = vpop.permute.xlu1 %378  ;;  %v377_v23 = vpop.permute.xlu0 %376 }
 0x121   :  { %v585_v59 = vmax.f32 %v1456_v26, %v379_v22  ;;  %v584_v58 = vmax.f32 %v1461_v27, %v377_v23 }
 0x123   :  { %684 = vst.msk [vmem:[%s1888_s1 + $0x2b8] sm:$0xff] %vm596_vm0, %v585_v59  ;;  %683 = vst.msk [vmem:[%s1888_s1 + $0x2b0] sm:$0xff] %vm596_vm0, %v584_v58 }
 0x124   :  { %v383_v24 = vpop.permute.xlu1 %382  ;;  %v381_v25 = vpop.permute.xlu0 %380 }
 0x125   :  { %v587_v62 = vmax.f32 %v1480_v28, %v383_v24  ;;  %v586_v46 = vmax.f32 %v1485_v29, %v381_v25 }
 0x127   :  { %686 = vst.msk [vmem:[%s1888_s1 + $0x2c8] sm:$0xff] %vm596_vm0, %v587_v62  ;;  %685 = vst.msk [vmem:[%s1888_s1 + $0x2c0] sm:$0xff] %vm596_vm0, %v586_v46 }
 0x128   :  { %v387_v26 = vpop.permute.xlu1 %386  ;;  %v385_v27 = vpop.permute.xlu0 %384 }
 0x129   :  { %v589_v47 = vmax.f32 %v1504_v30, %v387_v26  ;;  %v588_v0 = vmax.f32 %v1509_v31, %v385_v27 }
 0x12b   :  { %688 = vst.msk [vmem:[%s1888_s1 + $0x2d8] sm:$0xff] %vm596_vm0, %v589_v47  ;;  %687 = vst.msk [vmem:[%s1888_s1 + $0x2d0] sm:$0xff] %vm596_vm0, %v588_v0 }
 0x12c   :  { %v391_v28 = vpop.permute.xlu1 %390  ;;  %v389_v29 = vpop.permute.xlu0 %388 }
 0x12d   :  { %v591_v1 = vmax.f32 %v1528_v32, %v391_v28  ;;  %v590_v63 = vmax.f32 %v1533_v33, %v389_v29 }
 0x12f   :  { %690 = vst.msk [vmem:[%s1888_s1 + $0x2e8] sm:$0xff] %vm596_vm0, %v591_v1  ;;  %689 = vst.msk [vmem:[%s1888_s1 + $0x2e0] sm:$0xff] %vm596_vm0, %v590_v63 }
 0x130   :  { %v395_v30 = vpop.permute.xlu1 %394  ;;  %v393_v31 = vpop.permute.xlu0 %392 }
 0x131   :  { %v593_v60 = vmax.f32 %v1552_v34, %v395_v30  ;;  %v592_v2 = vmax.f32 %v1557_v35, %v393_v31 }
 0x133   :  { %692 = vst.msk [vmem:[%s1888_s1 + $0x2f8] sm:$0xff] %vm596_vm0, %v593_v60  ;;  %691 = vst.msk [vmem:[%s1888_s1 + $0x2f0] sm:$0xff] %vm596_vm0, %v592_v2 }
 0x134   :  { %v399_v32 = vpop.permute.xlu1 %398  ;;  %v397_v33 = vpop.permute.xlu0 %396 }
 0x135   :  { %v595_v3 = vmax.f32 %v1576_v36, %v399_v32  ;;  %v594_v49 = vmax.f32 %v1894_v48, %v397_v33 }
 0x137   :  { %694 = vst.msk [vmem:[%s1888_s1 + $0x308] sm:$0xff] %vm596_vm0, %v595_v3  ;;  %693 = vst.msk [vmem:[%s1888_s1 + $0x300] sm:$0xff] %vm596_vm0, %v594_v49 }

// kernel: cnn_forward.9
= control target key start
LH: loop header
LB: loop body
LE: loop exit
PB: predicated region body
PF: predicated region fallthrough
CT: control target
= control target key end

     0   :  { %s100_s10 = smov 32   ;;  %vm60_vm0 = vcmask 261120   ;;  %vm86_vm1 = vcmask 785408   ;;  %vm93_vm2 = vcmask 781312   ;;  %s194_s0 = inlined_call_operand.vmem [shape: f32[28,448], index: 0, kind: input, shape index: {}]   ;;  %s195_s1 = inlined_call_operand.vmem [shape: f32[28,224], index: 1, kind: output, shape index: {}]  }
   0x1   :  { %v17_v0 = vld [vmem:[%s194_s0 + $0x18] sm:$0xff]  ;;  %v9_v1 = vld [vmem:[%s194_s0 + $0x8] sm:$0xff]  ;;  %v16_v3 = vld [vmem:[%s194_s0 + $0x10] sm:$0xff] }
   0x2   :  { %40 = vrot.lane.b32.xlu1 %v17_v0, %s100_s10  ;;  %36 = vrot.lane.b32.xlu0 %v9_v1, %s100_s10  ;;  %v11_v2 = vld [vmem:[%s194_s0 + $0x28] sm:$0xff]  ;;  %v19_v4 = vld [vmem:[%s194_s0 + $0x38] sm:$0xff] }
   0x3   :  { %v18_v5 = vld [vmem:[%s194_s0 + $0x30] sm:$0xff]  ;;  %v13_v7 = vld [vmem:[%s194_s0 + $0x48] sm:$0xff]  ;;  %v21_v9 = vld [vmem:[%s194_s0 + $0x58] sm:$0xff] }
   0x4   :  { %v20_v6 = vld [vmem:[%s194_s0 + $0x50] sm:$0xff]  ;;  %v15_v8 = vld [vmem:[%s194_s0 + $0x68] sm:$0xf]  ;;  %v23_v10 = vld [vmem:[%s194_s0 + $0x78] sm:$0xf] }
   0x5   :  { %v22_v11 = vld [vmem:[%s194_s0 + $0x70] sm:$0xf]  ;;  %v8_v14 = vld [vmem:[%s194_s0] sm:$0xff] }
   0x6   :  { %42 = vrot.lane.b32.xlu1 %v11_v2, %s100_s10  ;;  %38 = vrot.lane.b32.xlu0 %v16_v3, %s100_s10  ;;  %v10_v21 = vld [vmem:[%s194_s0 + $0x20] sm:$0xff] }
   0x7   :  { %v12_v28 = vld [vmem:[%s194_s0 + $0x40] sm:$0xff] }
   0x8   :  { %v14_v37 = vld [vmem:[%s194_s0 + $0x60] sm:$0xf] }
   0xa   :  { %46 = vrot.lane.b32.xlu1 %v19_v4, %s100_s10  ;;  %44 = vrot.lane.b32.xlu0 %v18_v5, %s100_s10 }
   0xe   :  { %50 = vrot.lane.b32.xlu1 %v20_v6, %s100_s10  ;;  %48 = vrot.lane.b32.xlu0 %v13_v7, %s100_s10 }
  0x12   :  { %54 = vrot.lane.b32.xlu1 %v15_v8, %s100_s10  ;;  %52 = vrot.lane.b32.xlu0 %v21_v9, %s100_s10 }
  0x16   :  { %58 = vrot.lane.b32.xlu1 %v23_v10, %s100_s10  ;;  %56 = vrot.lane.b32.xlu0 %v22_v11, %s100_s10 }
  0x74   :  { %v41_v12 = vpop.permute.xlu1 %40  ;;  %v37_v13 = vpop.permute.xlu0 %36 }
  0x78   :  { %v43_v15 = vpop.permute.xlu1 %42  ;;  %v39_v16 = vpop.permute.xlu0 %38 }
  0x79   :  { %v61_v17 = vsel %vm60_vm0, %v37_v13, %v39_v16  ;;  %v62_v18 = vsel %vm60_vm0, %v39_v16, %v41_v12 }
  0x7a   :  { %v77_v19 = vmax.f32 %v8_v14, %v61_v17  ;;  %v78_v20 = vmax.f32 %v9_v1, %v62_v18 }
  0x7c   :  { %85 = vst [vmem:[%s195_s1] sm:$0xff] %v77_v19  ;;  %87 = vst.msk [vmem:[%s195_s1 + $0x8] sm:$0xff] %vm86_vm1, %v78_v20  ;;  %v47_v22 = vpop.permute.xlu1 %46  ;;  %v45_v23 = vpop.permute.xlu0 %44 }
  0x7d   :  { %v63_v24 = vsel %vm60_vm0, %v43_v15, %v45_v23  ;;  %v64_v25 = vsel %vm60_vm0, %v45_v23, %v47_v22 }
  0x7e   :  { %v79_v26 = vmax.f32 %v10_v21, %v63_v24  ;;  %v80_v27 = vmax.f32 %v11_v2, %v64_v25 }
  0x80   :  { %88 = vst [vmem:[%s195_s1 + $0x10] sm:$0xff] %v79_v26  ;;  %89 = vst.msk [vmem:[%s195_s1 + $0x18] sm:$0xff] %vm86_vm1, %v80_v27  ;;  %v51_v29 = vpop.permute.xlu1 %50  ;;  %v49_v30 = vpop.permute.xlu0 %48 }
  0x81   :  { %v65_v31 = vsel %vm60_vm0, %v49_v30, %v51_v29 }
  0x82   :  { %v81_v32 = vmax.f32 %v12_v28, %v65_v31 }
  0x84   :  { %90 = vst [vmem:[%s195_s1 + $0x20] sm:$0xff] %v81_v32  ;;  %v55_v33 = vpop.permute.xlu1 %54  ;;  %v53_v34 = vpop.permute.xlu0 %52 }
  0x85   :  { %v66_v35 = vsel %vm60_vm0, %v51_v29, %v53_v34 }
  0x86   :  { %v82_v36 = vmax.f32 %v13_v7, %v66_v35 }
  0x88   :  { %91 = vst.msk [vmem:[%s195_s1 + $0x28] sm:$0xff] %vm86_vm1, %v82_v36  ;;  %v59_v38 = vpop.permute.xlu1 %58  ;;  %v57_v39 = vpop.permute.xlu0 %56 }
  0x89   :  { %v67_v40 = vsel %vm60_vm0, %v55_v33, %v57_v39  ;;  %v68_v41 = vsel %vm60_vm0, %v57_v39, %v59_v38 }
  0x8a   :  { %v83_v42 = vmax.f32 %v14_v37, %v67_v40  ;;  %v84_v43 = vmax.f32 %v15_v8, %v68_v41 }
  0x8c   :  { %92 = vst [vmem:[%s195_s1 + $0x30] sm:$0xf] %v83_v42  ;;  %94 = vst.msk [vmem:[%s195_s1 + $0x38] sm:$0xf] %vm93_vm2, %v84_v43 }

// kernel: cnn_forward.7
= control target key start
LH: loop header
LB: loop body
LE: loop exit
PB: predicated region body
PF: predicated region fallthrough
CT: control target
= control target key end

     0   :  { %vm808_vm0 = vcmask 1040384   ;;  %vm219_vm1 = vcmask 72704   ;;  %vm2958_vm2 = vmmov 1   ;;  %vm2053_vm4 = vcmask 130048   ;;  %s4759_s1 = inlined_call_operand.vmem [shape: f32[9,16], index: 1, kind: input, shape index: {}]   ;;  %s4760_s0 = inlined_call_operand.vmem [shape: f32[1568,9], index: 0, kind: input, shape index: {}]   ;;  %s4761_s2 = inlined_call_operand.vmem [shape: f32[1,16], index: 2, kind: input, shape index: {}]   ;;  %s4762_s3 = inlined_call_operand.vmem [shape: f32[1568,16], index: 3, kind: output, shape index: {}]  }
   0x1   :  { %v210_v0 = vld [vmem:[%s4759_s1] sm:$0xff]  ;;  %v211_v1 = vld [vmem:[%s4759_s1 + $0x8] sm:$0x1]  ;;  %vm2949_vm3 = vmpackc.low %vm808_vm0, %vm2958_vm2 }
   0x2   :  { %v2948_v2 = vpack.c.bf16 %v211_v1, %v210_v0  ;;  %v14_v3 = vld [vmem:[%s4760_s0] sm:$0xff]  ;;  %v112_v4 = vld [vmem:[%s4760_s0 + $0x310] sm:$0xff]  ;;  %v15_v5 = vld [vmem:[%s4760_s0 + $0x8] sm:$0xff] }
   0x3   :  { %2654 = vmatprep.mubr.msk.f32.mxu0 %vm219_vm1, %v14_v3  ;;  %2801 = vmatprep.mubr.msk.f32.mxu1 %vm219_vm1, %v112_v4  ;;  %v113_v6 = vld [vmem:[%s4760_s0 + $0x318] sm:$0xff]  ;;  %v16_v7 = vld [vmem:[%s4760_s0 + $0x10] sm:$0xff]  ;;  %v114_v8 = vld [vmem:[%s4760_s0 + $0x320] sm:$0xff] }
   0x4   :  { %2950 = vmatprep.subr.msk.bf16.mxu0 %vm2949_vm3, %v2948_v2  ;;  %2954 = vmatprep.subr.msk.bf16.mxu1 %vm2949_vm3, %v2948_v2  ;;  %v17_v9 = vld [vmem:[%s4760_s0 + $0x18] sm:$0xff]  ;;  %v115_v10 = vld [vmem:[%s4760_s0 + $0x328] sm:$0xff]  ;;  %v18_v11 = vld [vmem:[%s4760_s0 + $0x20] sm:$0xff] }
   0x5   :  { %2953 = vmatpush3.bf16.msk.msra.mxu0 %vm2949_vm3, %v2948_v2  ;;  %2955 = vmatpush3.bf16.msk.msra.mxu1 %vm2949_vm3, %v2948_v2  ;;  %v116_v12 = vld [vmem:[%s4760_s0 + $0x330] sm:$0xff]  ;;  %v19_v13 = vld [vmem:[%s4760_s0 + $0x28] sm:$0xff]  ;;  %v117_v14 = vld [vmem:[%s4760_s0 + $0x338] sm:$0xff] }
   0x6   :  { %v20_v15 = vld [vmem:[%s4760_s0 + $0x30] sm:$0xff]  ;;  %v118_v16 = vld [vmem:[%s4760_s0 + $0x340] sm:$0xff]  ;;  %v21_v17 = vld [vmem:[%s4760_s0 + $0x38] sm:$0xff] }
   0x7   :  { %v119_v18 = vld [vmem:[%s4760_s0 + $0x348] sm:$0xff]  ;;  %v22_v19 = vld [vmem:[%s4760_s0 + $0x40] sm:$0xff]  ;;  %v120_v20 = vld [vmem:[%s4760_s0 + $0x350] sm:$0xff] }
   0x8   :  { %2655 = vmatmul.mubr.msk.f32.vlgmr.msra.gmra.mrb[0].mxu0 %vm219_vm1, %v15_v5  ;;  %2802 = vmatmul.mubr.msk.f32.vlgmr.msra.gmra.mrb[0].mxu1 %vm219_vm1, %v113_v6  ;;  %v23_v21 = vld [vmem:[%s4760_s0 + $0x48] sm:$0xff]  ;;  %v121_v22 = vld [vmem:[%s4760_s0 + $0x358] sm:$0xff]  ;;  %v24_v23 = vld [vmem:[%s4760_s0 + $0x50] sm:$0xff] }
   0x9   :  { %2657 = vmatprep.mubr.msk.f32.mxu0 %vm219_vm1, %v16_v7  ;;  %2804 = vmatprep.mubr.msk.f32.mxu1 %vm219_vm1, %v114_v8  ;;  %v122_v24 = vld [vmem:[%s4760_s0 + $0x360] sm:$0xff]  ;;  %v25_v25 = vld [vmem:[%s4760_s0 + $0x58] sm:$0xff]  ;;  %v123_v26 = vld [vmem:[%s4760_s0 + $0x368] sm:$0xff] }
   0xa   :  { %v26_v27 = vld [vmem:[%s4760_s0 + $0x60] sm:$0xff]  ;;  %v124_v28 = vld [vmem:[%s4760_s0 + $0x370] sm:$0xff]  ;;  %v27_v29 = vld [vmem:[%s4760_s0 + $0x68] sm:$0xff] }
   0xb   :  { %v125_v30 = vld [vmem:[%s4760_s0 + $0x378] sm:$0xff]  ;;  %v28_v31 = vld [vmem:[%s4760_s0 + $0x70] sm:$0xff]  ;;  %v126_v32 = vld [vmem:[%s4760_s0 + $0x380] sm:$0xff] }
   0xc   :  { %2658 = vmatmul.mubr.msk.f32.gmra.mrb[2].mxu0 %vm219_vm1, %v17_v9  ;;  %2805 = vmatmul.mubr.msk.f32.gmra.mrb[2].mxu1 %vm219_vm1, %v115_v10  ;;  %v29_v33 = vld [vmem:[%s4760_s0 + $0x78] sm:$0xff]  ;;  %v127_v34 = vld [vmem:[%s4760_s0 + $0x388] sm:$0xff]  ;;  %v30_v35 = vld [vmem:[%s4760_s0 + $0x80] sm:$0xff] }
   0xd   :  { %2660 = vmatprep.mubr.msk.f32.mxu0 %vm219_vm1, %v18_v11  ;;  %2807 = vmatprep.mubr.msk.f32.mxu1 %vm219_vm1, %v116_v12  ;;  %v128_v36 = vld [vmem:[%s4760_s0 + $0x390] sm:$0xff]  ;;  %v31_v37 = vld [vmem:[%s4760_s0 + $0x88] sm:$0xff]  ;;  %v129_v38 = vld [vmem:[%s4760_s0 + $0x398] sm:$0xff] }
   0xe   :  { %v32_v39 = vld [vmem:[%s4760_s0 + $0x90] sm:$0xff]  ;;  %v130_v40 = vld [vmem:[%s4760_s0 + $0x3a0] sm:$0xff]  ;;  %v33_v41 = vld [vmem:[%s4760_s0 + $0x98] sm:$0xff] }
   0xf   :  { %v131_v42 = vld [vmem:[%s4760_s0 + $0x3a8] sm:$0xff]  ;;  %v34_v43 = vld [vmem:[%s4760_s0 + $0xa0] sm:$0xff]  ;;  %v132_v44 = vld [vmem:[%s4760_s0 + $0x3b0] sm:$0xff] }
  0x10   :  { %2661 = vmatmul.mubr.msk.f32.gmra.mrb[4].mxu0 %vm219_vm1, %v19_v13  ;;  %2808 = vmatmul.mubr.msk.f32.gmra.mrb[4].mxu1 %vm219_vm1, %v117_v14  ;;  %v35_v45 = vld [vmem:[%s4760_s0 + $0xa8] sm:$0xff]  ;;  %v133_v46 = vld [vmem:[%s4760_s0 + $0x3b8] sm:$0xff]  ;;  %v36_v47 = vld [vmem:[%s4760_s0 + $0xb0] sm:$0xff] }
  0x11   :  { %2663 = vmatprep.mubr.msk.f32.mxu0 %vm219_vm1, %v20_v15  ;;  %2810 = vmatprep.mubr.msk.f32.mxu1 %vm219_vm1, %v118_v16  ;;  %v134_v48 = vld [vmem:[%s4760_s0 + $0x3c0] sm:$0xff]  ;;  %v37_v49 = vld [vmem:[%s4760_s0 + $0xb8] sm:$0xff]  ;;  %v135_v50 = vld [vmem:[%s4760_s0 + $0x3c8] sm:$0xff] }
  0x12   :  { %v38_v51 = vld [vmem:[%s4760_s0 + $0xc0] sm:$0xff]  ;;  %v136_v52 = vld [vmem:[%s4760_s0 + $0x3d0] sm:$0xff]  ;;  %v39_v53 = vld [vmem:[%s4760_s0 + $0xc8] sm:$0xff] }
  0x13   :  { %v137_v54 = vld [vmem:[%s4760_s0 + $0x3d8] sm:$0xff]  ;;  %v40_v55 = vld [vmem:[%s4760_s0 + $0xd0] sm:$0xff]  ;;  %v138_v56 = vld [vmem:[%s4760_s0 + $0x3e0] sm:$0xff] }
  0x14   :  { %2664 = vmatmul.mubr.msk.f32.gmra.mrb[6].mxu0 %vm219_vm1, %v21_v17  ;;  %2811 = vmatmul.mubr.msk.f32.gmra.mrb[6].mxu1 %vm219_vm1, %v119_v18  ;;  %v41_v57 = vld [vmem:[%s4760_s0 + $0xd8] sm:$0xff]  ;;  %v139_v58 = vld [vmem:[%s4760_s0 + $0x3e8] sm:$0xff]  ;;  %v42_v59 = vld [vmem:[%s4760_s0 + $0xe0] sm:$0xff] }
  0x15   :  { %2666 = vmatprep.mubr.msk.f32.mxu0 %vm219_vm1, %v22_v19  ;;  %2813 = vmatprep.mubr.msk.f32.mxu1 %vm219_vm1, %v120_v20  ;;  %v140_v60 = vld [vmem:[%s4760_s0 + $0x3f0] sm:$0xff]  ;;  %v43_v61 = vld [vmem:[%s4760_s0 + $0xe8] sm:$0xff]  ;;  %v141_v62 = vld [vmem:[%s4760_s0 + $0x3f8] sm:$0xff] }
  0x16   :  { %v44_v63 = vld [vmem:[%s4760_s0 + $0xf0] sm:$0xff]  ;;  %v142_v0 = vld [vmem:[%s4760_s0 + $0x400] sm:$0xff]  ;;  %v45_v1 = vld [vmem:[%s4760_s0 + $0xf8] sm:$0xff] }
  0x17   :  { %v143_v2 = vld [vmem:[%s4760_s0 + $0x408] sm:$0xff]  ;;  %v46_v3 = vld [vmem:[%s4760_s0 + $0x100] sm:$0xff]  ;;  %v144_v4 = vld [vmem:[%s4760_s0 + $0x410] sm:$0xff] }
  0x18   :  { %2667 = vmatmul.mubr.msk.f32.gmra.mrb[8].mxu0 %vm219_vm1, %v23_v21  ;;  %2814 = vmatmul.mubr.msk.f32.gmra.mrb[8].mxu1 %vm219_vm1, %v121_v22  ;;  %v47_v5 = vld [vmem:[%s4760_s0 + $0x108] sm:$0xff]  ;;  %v145_v6 = vld [vmem:[%s4760_s0 + $0x418] sm:$0xff]  ;;  %v48_v7 = vld [vmem:[%s4760_s0 + $0x110] sm:$0xff] }
  0x19   :  { %2669 = vmatprep.mubr.msk.f32.mxu0 %vm219_vm1, %v24_v23  ;;  %2816 = vmatprep.mubr.msk.f32.mxu1 %vm219_vm1, %v122_v24  ;;  %v146_v8 = vld [vmem:[%s4760_s0 + $0x420] sm:$0xff]  ;;  %v49_v9 = vld [vmem:[%s4760_s0 + $0x118] sm:$0xff]  ;;  %v147_v10 = vld [vmem:[%s4760_s0 + $0x428] sm:$0xff] }
  0x1a   :  { %v50_v11 = vld [vmem:[%s4760_s0 + $0x120] sm:$0xff]  ;;  %v148_v12 = vld [vmem:[%s4760_s0 + $0x430] sm:$0xff]  ;;  %v51_v13 = vld [vmem:[%s4760_s0 + $0x128] sm:$0xff] }
  0x1b   :  { %v149_v14 = vld [vmem:[%s4760_s0 + $0x438] sm:$0xff]  ;;  %v52_v15 = vld [vmem:[%s4760_s0 + $0x130] sm:$0xff]  ;;  %v150_v16 = vld [vmem:[%s4760_s0 + $0x440] sm:$0xff] }
  0x1c   :  { %2670 = vmatmul.mubr.msk.f32.gmra.mrb[10].mxu0 %vm219_vm1, %v25_v25  ;;  %2817 = vmatmul.mubr.msk.f32.gmra.mrb[10].mxu1 %vm219_vm1, %v123_v26  ;;  %v53_v17 = vld [vmem:[%s4760_s0 + $0x138] sm:$0xff]  ;;  %v151_v18 = vld [vmem:[%s4760_s0 + $0x448] sm:$0xff]  ;;  %v54_v19 = vld [vmem:[%s4760_s0 + $0x140] sm:$0xff] }
  0x1d   :  { %2672 = vmatprep.mubr.msk.f32.mxu0 %vm219_vm1, %v26_v27  ;;  %2819 = vmatprep.mubr.msk.f32.mxu1 %vm219_vm1, %v124_v28  ;;  %v152_v20 = vld [vmem:[%s4760_s0 + $0x450] sm:$0xff]  ;;  %v55_v21 = vld [vmem:[%s4760_s0 + $0x148] sm:$0xff]  ;;  %v153_v22 = vld [vmem:[%s4760_s0 + $0x458] sm:$0xff] }
  0x1e   :  { %v56_v23 = vld [vmem:[%s4760_s0 + $0x150] sm:$0xff]  ;;  %v154_v24 = vld [vmem:[%s4760_s0 + $0x460] sm:$0xff]  ;;  %v57_v25 = vld [vmem:[%s4760_s0 + $0x158] sm:$0xff] }
  0x1f   :  { %v155_v26 = vld [vmem:[%s4760_s0 + $0x468] sm:$0xff]  ;;  %v58_v27 = vld [vmem:[%s4760_s0 + $0x160] sm:$0xff]  ;;  %v156_v28 = vld [vmem:[%s4760_s0 + $0x470] sm:$0xff] }
  0x20   :  { %2673 = vmatmul.mubr.msk.f32.gmra.mrb[12].mxu0 %vm219_vm1, %v27_v29  ;;  %2820 = vmatmul.mubr.msk.f32.gmra.mrb[12].mxu1 %vm219_vm1, %v125_v30  ;;  %v59_v29 = vld [vmem:[%s4760_s0 + $0x168] sm:$0xff]  ;;  %v157_v30 = vld [vmem:[%s4760_s0 + $0x478] sm:$0xff] }
  0x21   :  { %2675 = vmatprep.mubr.msk.f32.mxu0 %vm219_vm1, %v28_v31  ;;  %2822 = vmatprep.mubr.msk.f32.mxu1 %vm219_vm1, %v126_v32  ;;  %v60_v31 = vld [vmem:[%s4760_s0 + $0x170] sm:$0xff]  ;;  %v158_v32 = vld [vmem:[%s4760_s0 + $0x480] sm:$0xff] }
  0x24   :  { %2676 = vmatmul.mubr.msk.f32.gmra.mrb[14].mxu0 %vm219_vm1, %v29_v33  ;;  %2823 = vmatmul.mubr.msk.f32.gmra.mrb[14].mxu1 %vm219_vm1, %v127_v34  ;;  %v61_v33 = vld [vmem:[%s4760_s0 + $0x178] sm:$0xff]  ;;  %v159_v34 = vld [vmem:[%s4760_s0 + $0x488] sm:$0xff] }
  0x25   :  { %2678 = vmatprep.mubr.msk.f32.mxu0 %vm219_vm1, %v30_v35  ;;  %2825 = vmatprep.mubr.msk.f32.mxu1 %vm219_vm1, %v128_v36  ;;  %v62_v35 = vld [vmem:[%s4760_s0 + $0x180] sm:$0xff]  ;;  %v160_v36 = vld [vmem:[%s4760_s0 + $0x490] sm:$0xff] }
  0x28   :  { %2679 = vmatmul.mubr.msk.f32.gmra.mrb[16].mxu0 %vm219_vm1, %v31_v37  ;;  %2826 = vmatmul.mubr.msk.f32.gmra.mrb[16].mxu1 %vm219_vm1, %v129_v38  ;;  %v63_v37 = vld [vmem:[%s4760_s0 + $0x188] sm:$0xff]  ;;  %v161_v38 = vld [vmem:[%s4760_s0 + $0x498] sm:$0xff] }
  0x29   :  { %2681 = vmatprep.mubr.msk.f32.mxu0 %vm219_vm1, %v32_v39  ;;  %2828 = vmatprep.mubr.msk.f32.mxu1 %vm219_vm1, %v130_v40  ;;  %v64_v39 = vld [vmem:[%s4760_s0 + $0x190] sm:$0xff]  ;;  %v162_v40 = vld [vmem:[%s4760_s0 + $0x4a0] sm:$0xff] }
  0x2c   :  { %2682 = vmatmul.mubr.msk.f32.gmra.mrb[18].mxu0 %vm219_vm1, %v33_v41  ;;  %2829 = vmatmul.mubr.msk.f32.gmra.mrb[18].mxu1 %vm219_vm1, %v131_v42  ;;  %v65_v41 = vld [vmem:[%s4760_s0 + $0x198] sm:$0xff]  ;;  %v163_v42 = vld [vmem:[%s4760_s0 + $0x4a8] sm:$0xff] }
  0x2d   :  { %2684 = vmatprep.mubr.msk.f32.mxu0 %vm219_vm1, %v34_v43  ;;  %2831 = vmatprep.mubr.msk.f32.mxu1 %vm219_vm1, %v132_v44  ;;  %v66_v43 = vld [vmem:[%s4760_s0 + $0x1a0] sm:$0xff]  ;;  %v164_v44 = vld [vmem:[%s4760_s0 + $0x4b0] sm:$0xff] }
  0x30   :  { %2685 = vmatmul.mubr.msk.f32.gmra.mrb[20].mxu0 %vm219_vm1, %v35_v45  ;;  %2832 = vmatmul.mubr.msk.f32.gmra.mrb[20].mxu1 %vm219_vm1, %v133_v46  ;;  %v67_v45 = vld [vmem:[%s4760_s0 + $0x1a8] sm:$0xff]  ;;  %v165_v46 = vld [vmem:[%s4760_s0 + $0x4b8] sm:$0xff] }
  0x31   :  { %2687 = vmatprep.mubr.msk.f32.mxu0 %vm219_vm1, %v36_v47  ;;  %2834 = vmatprep.mubr.msk.f32.mxu1 %vm219_vm1, %v134_v48  ;;  %v68_v47 = vld [vmem:[%s4760_s0 + $0x1b0] sm:$0xff]  ;;  %v166_v48 = vld [vmem:[%s4760_s0 + $0x4c0] sm:$0xff] }
  0x34   :  { %2688 = vmatmul.mubr.msk.f32.gmra.mrb[22].mxu0 %vm219_vm1, %v37_v49  ;;  %2835 = vmatmul.mubr.msk.f32.gmra.mrb[22].mxu1 %vm219_vm1, %v135_v50  ;;  %v69_v49 = vld [vmem:[%s4760_s0 + $0x1b8] sm:$0xff]  ;;  %v167_v50 = vld [vmem:[%s4760_s0 + $0x4c8] sm:$0xff] }
  0x35   :  { %2690 = vmatprep.mubr.msk.f32.mxu0 %vm219_vm1, %v38_v51  ;;  %2837 = vmatprep.mubr.msk.f32.mxu1 %vm219_vm1, %v136_v52  ;;  %v70_v51 = vld [vmem:[%s4760_s0 + $0x1c0] sm:$0xff]  ;;  %v168_v52 = vld [vmem:[%s4760_s0 + $0x4d0] sm:$0xff] }
  0x38   :  { %2691 = vmatmul.mubr.msk.f32.gmra.mrb[24].mxu0 %vm219_vm1, %v39_v53  ;;  %2838 = vmatmul.mubr.msk.f32.gmra.mrb[24].mxu1 %vm219_vm1, %v137_v54  ;;  %v71_v53 = vld [vmem:[%s4760_s0 + $0x1c8] sm:$0xff]  ;;  %v169_v54 = vld [vmem:[%s4760_s0 + $0x4d8] sm:$0xff] }
  0x39   :  { %2693 = vmatprep.mubr.msk.f32.mxu0 %vm219_vm1, %v40_v55  ;;  %2840 = vmatprep.mubr.msk.f32.mxu1 %vm219_vm1, %v138_v56  ;;  %v72_v55 = vld [vmem:[%s4760_s0 + $0x1d0] sm:$0xff]  ;;  %v170_v56 = vld [vmem:[%s4760_s0 + $0x4e0] sm:$0xff] }
  0x3c   :  { %2694 = vmatmul.mubr.msk.f32.gmra.mrb[26].mxu0 %vm219_vm1, %v41_v57  ;;  %2841 = vmatmul.mubr.msk.f32.gmra.mrb[26].mxu1 %vm219_vm1, %v139_v58  ;;  %v73_v57 = vld [vmem:[%s4760_s0 + $0x1d8] sm:$0xff]  ;;  %v171_v58 = vld [vmem:[%s4760_s0 + $0x4e8] sm:$0xff] }
  0x3d   :  { %2696 = vmatprep.mubr.msk.f32.mxu0 %vm219_vm1, %v42_v59  ;;  %2843 = vmatprep.mubr.msk.f32.mxu1 %vm219_vm1, %v140_v60  ;;  %v74_v59 = vld [vmem:[%s4760_s0 + $0x1e0] sm:$0xff]  ;;  %v172_v60 = vld [vmem:[%s4760_s0 + $0x4f0] sm:$0xff] }
  0x40   :  { %2697 = vmatmul.mubr.msk.f32.gmra.mrb[28].mxu0 %vm219_vm1, %v43_v61  ;;  %2844 = vmatmul.mubr.msk.f32.gmra.mrb[28].mxu1 %vm219_vm1, %v141_v62  ;;  %v75_v61 = vld [vmem:[%s4760_s0 + $0x1e8] sm:$0xff]  ;;  %v173_v62 = vld [vmem:[%s4760_s0 + $0x4f8] sm:$0xff] }
  0x41   :  { %2699 = vmatprep.mubr.msk.f32.mxu0 %vm219_vm1, %v44_v63  ;;  %2846 = vmatprep.mubr.msk.f32.mxu1 %vm219_vm1, %v142_v0  ;;  %v76_v63 = vld [vmem:[%s4760_s0 + $0x1f0] sm:$0xff]  ;;  %v174_v0 = vld [vmem:[%s4760_s0 + $0x500] sm:$0xff] }
  0x44   :  { %2700 = vmatmul.mubr.msk.f32.gmra.mrb[30].mxu0 %vm219_vm1, %v45_v1  ;;  %2847 = vmatmul.mubr.msk.f32.gmra.mrb[30].mxu1 %vm219_vm1, %v143_v2  ;;  %v77_v1 = vld [vmem:[%s4760_s0 + $0x1f8] sm:$0xff]  ;;  %v175_v2 = vld [vmem:[%s4760_s0 + $0x508] sm:$0xff] }
  0x45   :  { %2702 = vmatprep.mubr.msk.f32.mxu0 %vm219_vm1, %v46_v3  ;;  %2849 = vmatprep.mubr.msk.f32.mxu1 %vm219_vm1, %v144_v4  ;;  %v78_v3 = vld [vmem:[%s4760_s0 + $0x200] sm:$0xff]  ;;  %v176_v4 = vld [vmem:[%s4760_s0 + $0x510] sm:$0xff] }
  0x48   :  { %2703 = vmatmul.mubr.msk.f32.gmra.mrb[32].mxu0 %vm219_vm1, %v47_v5  ;;  %2850 = vmatmul.mubr.msk.f32.gmra.mrb[32].mxu1 %vm219_vm1, %v145_v6  ;;  %v79_v5 = vld [vmem:[%s4760_s0 + $0x208] sm:$0xff]  ;;  %v177_v6 = vld [vmem:[%s4760_s0 + $0x518] sm:$0xff] }
  0x49   :  { %2705 = vmatprep.mubr.msk.f32.mxu0 %vm219_vm1, %v48_v7  ;;  %2852 = vmatprep.mubr.msk.f32.mxu1 %vm219_vm1, %v146_v8  ;;  %v80_v7 = vld [vmem:[%s4760_s0 + $0x210] sm:$0xff]  ;;  %v178_v8 = vld [vmem:[%s4760_s0 + $0x520] sm:$0xff] }
  0x4c   :  { %2706 = vmatmul.mubr.msk.f32.gmra.mrb[34].mxu0 %vm219_vm1, %v49_v9  ;;  %2853 = vmatmul.mubr.msk.f32.gmra.mrb[34].mxu1 %vm219_vm1, %v147_v10  ;;  %v81_v9 = vld [vmem:[%s4760_s0 + $0x218] sm:$0xff]  ;;  %v179_v10 = vld [vmem:[%s4760_s0 + $0x528] sm:$0xff] }
  0x4d   :  { %2708 = vmatprep.mubr.msk.f32.mxu0 %vm219_vm1, %v50_v11  ;;  %2855 = vmatprep.mubr.msk.f32.mxu1 %vm219_vm1, %v148_v12  ;;  %v82_v11 = vld [vmem:[%s4760_s0 + $0x220] sm:$0xff]  ;;  %v180_v12 = vld [vmem:[%s4760_s0 + $0x530] sm:$0xff] }
  0x50   :  { %2709 = vmatmul.mubr.msk.f32.gmra.mrb[36].mxu0 %vm219_vm1, %v51_v13  ;;  %2856 = vmatmul.mubr.msk.f32.gmra.mrb[36].mxu1 %vm219_vm1, %v149_v14  ;;  %v83_v13 = vld [vmem:[%s4760_s0 + $0x228] sm:$0xff]  ;;  %v181_v14 = vld [vmem:[%s4760_s0 + $0x538] sm:$0xff] }
  0x51   :  { %2711 = vmatprep.mubr.msk.f32.mxu0 %vm219_vm1, %v52_v15  ;;  %2858 = vmatprep.mubr.msk.f32.mxu1 %vm219_vm1, %v150_v16  ;;  %v84_v15 = vld [vmem:[%s4760_s0 + $0x230] sm:$0xff]  ;;  %v182_v16 = vld [vmem:[%s4760_s0 + $0x540] sm:$0xff] }
  0x54   :  { %2712 = vmatmul.mubr.msk.f32.gmra.mrb[38].mxu0 %vm219_vm1, %v53_v17  ;;  %2859 = vmatmul.mubr.msk.f32.gmra.mrb[38].mxu1 %vm219_vm1, %v151_v18  ;;  %v85_v17 = vld [vmem:[%s4760_s0 + $0x238] sm:$0xff]  ;;  %v183_v18 = vld [vmem:[%s4760_s0 + $0x548] sm:$0xff] }
  0x55   :  { %2714 = vmatprep.mubr.msk.f32.mxu0 %vm219_vm1, %v54_v19  ;;  %2861 = vmatprep.mubr.msk.f32.mxu1 %vm219_vm1, %v152_v20  ;;  %v86_v19 = vld [vmem:[%s4760_s0 + $0x240] sm:$0xff]  ;;  %v184_v20 = vld [vmem:[%s4760_s0 + $0x550] sm:$0xff] }
  0x58   :  { %2715 = vmatmul.mubr.msk.f32.gmra.mrb[40].mxu0 %vm219_vm1, %v55_v21  ;;  %2862 = vmatmul.mubr.msk.f32.gmra.mrb[40].mxu1 %vm219_vm1, %v153_v22  ;;  %v87_v21 = vld [vmem:[%s4760_s0 + $0x248] sm:$0xff]  ;;  %v185_v22 = vld [vmem:[%s4760_s0 + $0x558] sm:$0xff] }
  0x59   :  { %2717 = vmatprep.mubr.msk.f32.mxu0 %vm219_vm1, %v56_v23  ;;  %2864 = vmatprep.mubr.msk.f32.mxu1 %vm219_vm1, %v154_v24  ;;  %v88_v23 = vld [vmem:[%s4760_s0 + $0x250] sm:$0xff]  ;;  %v186_v24 = vld [vmem:[%s4760_s0 + $0x560] sm:$0xff] }
  0x5c   :  { %2718 = vmatmul.mubr.msk.f32.gmra.mrb[42].mxu0 %vm219_vm1, %v57_v25  ;;  %2865 = vmatmul.mubr.msk.f32.gmra.mrb[42].mxu1 %vm219_vm1, %v155_v26  ;;  %v89_v25 = vld [vmem:[%s4760_s0 + $0x258] sm:$0xff]  ;;  %v187_v26 = vld [vmem:[%s4760_s0 + $0x568] sm:$0xff] }
  0x5d   :  { %2720 = vmatprep.mubr.msk.f32.mxu0 %vm219_vm1, %v58_v27  ;;  %2867 = vmatprep.mubr.msk.f32.mxu1 %vm219_vm1, %v156_v28  ;;  %v90_v27 = vld [vmem:[%s4760_s0 + $0x260] sm:$0xff]  ;;  %v188_v28 = vld [vmem:[%s4760_s0 + $0x570] sm:$0xff] }
  0x60   :  { %2721 = vmatmul.mubr.msk.f32.gmra.mrb[44].mxu0 %vm219_vm1, %v59_v29  ;;  %2868 = vmatmul.mubr.msk.f32.gmra.mrb[44].mxu1 %vm219_vm1, %v157_v30  ;;  %v91_v29 = vld [vmem:[%s4760_s0 + $0x268] sm:$0xff]  ;;  %v189_v30 = vld [vmem:[%s4760_s0 + $0x578] sm:$0xff] }
  0x61   :  { %2723 = vmatprep.mubr.msk.f32.mxu0 %vm219_vm1, %v60_v31  ;;  %2870 = vmatprep.mubr.msk.f32.mxu1 %vm219_vm1, %v158_v32  ;;  %v92_v31 = vld [vmem:[%s4760_s0 + $0x270] sm:$0xff]  ;;  %v190_v32 = vld [vmem:[%s4760_s0 + $0x580] sm:$0xff] }
  0x64   :  { %2724 = vmatmul.mubr.msk.f32.gmra.mrb[46].mxu0 %vm219_vm1, %v61_v33  ;;  %2871 = vmatmul.mubr.msk.f32.gmra.mrb[46].mxu1 %vm219_vm1, %v159_v34  ;;  %v93_v33 = vld [vmem:[%s4760_s0 + $0x278] sm:$0xff]  ;;  %v191_v34 = vld [vmem:[%s4760_s0 + $0x588] sm:$0xff] }
  0x65   :  { %2726 = vmatprep.mubr.msk.f32.mxu0 %vm219_vm1, %v62_v35  ;;  %2873 = vmatprep.mubr.msk.f32.mxu1 %vm219_vm1, %v160_v36  ;;  %v94_v35 = vld [vmem:[%s4760_s0 + $0x280] sm:$0xff]  ;;  %v192_v36 = vld [vmem:[%s4760_s0 + $0x590] sm:$0xff] }
  0x68   :  { %2727 = vmatmul.mubr.msk.f32.gmra.mrb[48].mxu0 %vm219_vm1, %v63_v37  ;;  %2874 = vmatmul.mubr.msk.f32.gmra.mrb[48].mxu1 %vm219_vm1, %v161_v38  ;;  %v95_v37 = vld [vmem:[%s4760_s0 + $0x288] sm:$0xff]  ;;  %v193_v38 = vld [vmem:[%s4760_s0 + $0x598] sm:$0xff] }
  0x69   :  { %2729 = vmatprep.mubr.msk.f32.mxu0 %vm219_vm1, %v64_v39  ;;  %2876 = vmatprep.mubr.msk.f32.mxu1 %vm219_vm1, %v162_v40  ;;  %v96_v39 = vld [vmem:[%s4760_s0 + $0x290] sm:$0xff]  ;;  %v194_v40 = vld [vmem:[%s4760_s0 + $0x5a0] sm:$0xff] }
  0x6c   :  { %2730 = vmatmul.mubr.msk.f32.gmra.mrb[50].mxu0 %vm219_vm1, %v65_v41  ;;  %2877 = vmatmul.mubr.msk.f32.gmra.mrb[50].mxu1 %vm219_vm1, %v163_v42  ;;  %v97_v41 = vld [vmem:[%s4760_s0 + $0x298] sm:$0xff]  ;;  %v195_v42 = vld [vmem:[%s4760_s0 + $0x5a8] sm:$0xff] }
  0x6d   :  { %2732 = vmatprep.mubr.msk.f32.mxu0 %vm219_vm1, %v66_v43  ;;  %2879 = vmatprep.mubr.msk.f32.mxu1 %vm219_vm1, %v164_v44  ;;  %v98_v43 = vld [vmem:[%s4760_s0 + $0x2a0] sm:$0xff]  ;;  %v196_v44 = vld [vmem:[%s4760_s0 + $0x5b0] sm:$0xff] }
  0x70   :  { %2733 = vmatmul.mubr.msk.f32.gmra.mrb[52].mxu0 %vm219_vm1, %v67_v45  ;;  %2880 = vmatmul.mubr.msk.f32.gmra.mrb[52].mxu1 %vm219_vm1, %v165_v46  ;;  %v99_v45 = vld [vmem:[%s4760_s0 + $0x2a8] sm:$0xff]  ;;  %v197_v46 = vld [vmem:[%s4760_s0 + $0x5b8] sm:$0xff] }
  0x71   :  { %2735 = vmatprep.mubr.msk.f32.mxu0 %vm219_vm1, %v68_v47  ;;  %2882 = vmatprep.mubr.msk.f32.mxu1 %vm219_vm1, %v166_v48  ;;  %v100_v47 = vld [vmem:[%s4760_s0 + $0x2b0] sm:$0xff]  ;;  %v198_v48 = vld [vmem:[%s4760_s0 + $0x5c0] sm:$0xff] }
  0x74   :  { %2736 = vmatmul.mubr.msk.f32.gmra.mrb[54].mxu0 %vm219_vm1, %v69_v49  ;;  %2883 = vmatmul.mubr.msk.f32.gmra.mrb[54].mxu1 %vm219_vm1, %v167_v50  ;;  %v101_v49 = vld [vmem:[%s4760_s0 + $0x2b8] sm:$0xff]  ;;  %v199_v50 = vld [vmem:[%s4760_s0 + $0x5c8] sm:$0xff] }
  0x75   :  { %2738 = vmatprep.mubr.msk.f32.mxu0 %vm219_vm1, %v70_v51  ;;  %2885 = vmatprep.mubr.msk.f32.mxu1 %vm219_vm1, %v168_v52  ;;  %v102_v51 = vld [vmem:[%s4760_s0 + $0x2c0] sm:$0xff]  ;;  %v200_v52 = vld [vmem:[%s4760_s0 + $0x5d0] sm:$0xff] }
  0x78   :  { %2739 = vmatmul.mubr.msk.f32.gmra.mrb[56].mxu0 %vm219_vm1, %v71_v53  ;;  %2886 = vmatmul.mubr.msk.f32.gmra.mrb[56].mxu1 %vm219_vm1, %v169_v54  ;;  %v103_v53 = vld [vmem:[%s4760_s0 + $0x2c8] sm:$0xff]  ;;  %v201_v54 = vld [vmem:[%s4760_s0 + $0x5d8] sm:$0xff] }
  0x79   :  { %2741 = vmatprep.mubr.msk.f32.mxu0 %vm219_vm1, %v72_v55  ;;  %2888 = vmatprep.mubr.msk.f32.mxu1 %vm219_vm1, %v170_v56  ;;  %v104_v55 = vld [vmem:[%s4760_s0 + $0x2d0] sm:$0xff]  ;;  %v202_v56 = vld [vmem:[%s4760_s0 + $0x5e0] sm:$0xff] }
  0x7c   :  { %2742 = vmatmul.mubr.msk.f32.gmra.mrb[58].mxu0 %vm219_vm1, %v73_v57  ;;  %2889 = vmatmul.mubr.msk.f32.gmra.mrb[58].mxu1 %vm219_vm1, %v171_v58  ;;  %v105_v57 = vld [vmem:[%s4760_s0 + $0x2d8] sm:$0xff]  ;;  %v203_v58 = vld [vmem:[%s4760_s0 + $0x5e8] sm:$0xff] }
  0x7d   :  { %2744 = vmatprep.mubr.msk.f32.mxu0 %vm219_vm1, %v74_v59  ;;  %2891 = vmatprep.mubr.msk.f32.mxu1 %vm219_vm1, %v172_v60  ;;  %v106_v59 = vld [vmem:[%s4760_s0 + $0x2e0] sm:$0xff]  ;;  %v204_v60 = vld [vmem:[%s4760_s0 + $0x5f0] sm:$0xff] }
  0x80   :  { %2745 = vmatmul.mubr.msk.f32.gmra.mrb[60].mxu0 %vm219_vm1, %v75_v61  ;;  %2892 = vmatmul.mubr.msk.f32.gmra.mrb[60].mxu1 %vm219_vm1, %v173_v62  ;;  %v107_v61 = vld [vmem:[%s4760_s0 + $0x2e8] sm:$0xff]  ;;  %v205_v62 = vld [vmem:[%s4760_s0 + $0x5f8] sm:$0xff] }
  0x81   :  { %2747 = vmatprep.mubr.msk.f32.mxu0 %vm219_vm1, %v76_v63  ;;  %2894 = vmatprep.mubr.msk.f32.mxu1 %vm219_vm1, %v174_v0  ;;  %v108_v63 = vld [vmem:[%s4760_s0 + $0x2f0] sm:$0xff]  ;;  %v206_v0 = vld [vmem:[%s4760_s0 + $0x600] sm:$0xff] }
  0x84   :  { %2748 = vmatmul.mubr.msk.f32.gmra.mrb[62].mxu0 %vm219_vm1, %v77_v1  ;;  %2895 = vmatmul.mubr.msk.f32.gmra.mrb[62].mxu1 %vm219_vm1, %v175_v2  ;;  %v109_v1 = vld [vmem:[%s4760_s0 + $0x2f8] sm:$0xff]  ;;  %v207_v2 = vld [vmem:[%s4760_s0 + $0x608] sm:$0xff] }
  0x85   :  { %2750 = vmatprep.mubr.msk.f32.mxu0 %vm219_vm1, %v78_v3  ;;  %2897 = vmatprep.mubr.msk.f32.mxu1 %vm219_vm1, %v176_v4  ;;  %v110_v3 = vld [vmem:[%s4760_s0 + $0x300] sm:$0xff]  ;;  %v208_v4 = vld [vmem:[%s4760_s0 + $0x610] sm:$0xff] }
  0x88   :  { %2751 = vmatmul.mubr.msk.f32.gmra.mrb[64].mxu0 %vm219_vm1, %v79_v5  ;;  %2898 = vmatmul.mubr.msk.f32.gmra.mrb[64].mxu1 %vm219_vm1, %v177_v6  ;;  %v111_v5 = vld [vmem:[%s4760_s0 + $0x308] sm:$0xff]  ;;  %v209_v6 = vld [vmem:[%s4760_s0 + $0x618] sm:$0xff] }
  0x89   :  { %2753 = vmatprep.mubr.msk.f32.mxu0 %vm219_vm1, %v80_v7  ;;  %2900 = vmatprep.mubr.msk.f32.mxu1 %vm219_vm1, %v178_v8  ;;  %v3772_v7 = vld [vmem:[%s4761_s2] ss:$0 sm:$0xff] }
  0x8c   :  { %2754 = vmatmul.mubr.msk.f32.gmra.mrb[66].mxu0 %vm219_vm1, %v81_v9  ;;  %2901 = vmatmul.mubr.msk.f32.gmra.mrb[66].mxu1 %vm219_vm1, %v179_v10 }
  0x8d   :  { %2756 = vmatprep.mubr.msk.f32.mxu0 %vm219_vm1, %v82_v11  ;;  %2903 = vmatprep.mubr.msk.f32.mxu1 %vm219_vm1, %v180_v12 }
  0x90   :  { %2757 = vmatmul.mubr.msk.f32.gmra.mrb[68].mxu0 %vm219_vm1, %v83_v13  ;;  %2904 = vmatmul.mubr.msk.f32.gmra.mrb[68].mxu1 %vm219_vm1, %v181_v14 }
  0x91   :  { %2759 = vmatprep.mubr.msk.f32.mxu0 %vm219_vm1, %v84_v15  ;;  %2906 = vmatprep.mubr.msk.f32.mxu1 %vm219_vm1, %v182_v16 }
  0x94   :  { %2760 = vmatmul.mubr.msk.f32.gmra.mrb[70].mxu0 %vm219_vm1, %v85_v17  ;;  %2907 = vmatmul.mubr.msk.f32.gmra.mrb[70].mxu1 %vm219_vm1, %v183_v18 }
  0x95   :  { %2762 = vmatprep.mubr.msk.f32.mxu0 %vm219_vm1, %v86_v19  ;;  %2909 = vmatprep.mubr.msk.f32.mxu1 %vm219_vm1, %v184_v20 }
  0x98   :  { %2763 = vmatmul.mubr.msk.f32.gmra.mrb[72].mxu0 %vm219_vm1, %v87_v21  ;;  %2910 = vmatmul.mubr.msk.f32.gmra.mrb[72].mxu1 %vm219_vm1, %v185_v22 }
  0x99   :  { %2765 = vmatprep.mubr.msk.f32.mxu0 %vm219_vm1, %v88_v23  ;;  %2912 = vmatprep.mubr.msk.f32.mxu1 %vm219_vm1, %v186_v24 }
  0x9c   :  { %2766 = vmatmul.mubr.msk.f32.gmra.mrb[74].mxu0 %vm219_vm1, %v89_v25  ;;  %2913 = vmatmul.mubr.msk.f32.gmra.mrb[74].mxu1 %vm219_vm1, %v187_v26 }
  0x9d   :  { %2768 = vmatprep.mubr.msk.f32.mxu0 %vm219_vm1, %v90_v27  ;;  %2915 = vmatprep.mubr.msk.f32.mxu1 %vm219_vm1, %v188_v28 }
  0xa0   :  { %2769 = vmatmul.mubr.msk.f32.gmra.mrb[76].mxu0 %vm219_vm1, %v91_v29  ;;  %2916 = vmatmul.mubr.msk.f32.gmra.mrb[76].mxu1 %vm219_vm1, %v189_v30 }
  0xa1   :  { %2771 = vmatprep.mubr.msk.f32.mxu0 %vm219_vm1, %v92_v31  ;;  %2918 = vmatprep.mubr.msk.f32.mxu1 %vm219_vm1, %v190_v32 }
  0xa4   :  { %2772 = vmatmul.mubr.msk.f32.gmra.mrb[78].mxu0 %vm219_vm1, %v93_v33  ;;  %2919 = vmatmul.mubr.msk.f32.gmra.mrb[78].mxu1 %vm219_vm1, %v191_v34 }
  0xa5   :  { %2774 = vmatprep.mubr.msk.f32.mxu0 %vm219_vm1, %v94_v35  ;;  %2921 = vmatprep.mubr.msk.f32.mxu1 %vm219_vm1, %v192_v36 }
  0xa8   :  { %2775 = vmatmul.mubr.msk.f32.gmra.mrb[80].mxu0 %vm219_vm1, %v95_v37  ;;  %2922 = vmatmul.mubr.msk.f32.gmra.mrb[80].mxu1 %vm219_vm1, %v193_v38 }
  0xa9   :  { %2777 = vmatprep.mubr.msk.f32.mxu0 %vm219_vm1, %v96_v39  ;;  %2924 = vmatprep.mubr.msk.f32.mxu1 %vm219_vm1, %v194_v40 }
  0xac   :  { %2778 = vmatmul.mubr.msk.f32.gmra.mrb[82].mxu0 %vm219_vm1, %v97_v41  ;;  %2925 = vmatmul.mubr.msk.f32.gmra.mrb[82].mxu1 %vm219_vm1, %v195_v42 }
  0xad   :  { %2780 = vmatprep.mubr.msk.f32.mxu0 %vm219_vm1, %v98_v43  ;;  %2927 = vmatprep.mubr.msk.f32.mxu1 %vm219_vm1, %v196_v44 }
  0xb0   :  { %2781 = vmatmul.mubr.msk.f32.gmra.mrb[84].mxu0 %vm219_vm1, %v99_v45  ;;  %2928 = vmatmul.mubr.msk.f32.gmra.mrb[84].mxu1 %vm219_vm1, %v197_v46 }
  0xb1   :  { %2783 = vmatprep.mubr.msk.f32.mxu0 %vm219_vm1, %v100_v47  ;;  %2930 = vmatprep.mubr.msk.f32.mxu1 %vm219_vm1, %v198_v48 }
  0xb4   :  { %2784 = vmatmul.mubr.msk.f32.gmra.mrb[86].mxu0 %vm219_vm1, %v101_v49  ;;  %2931 = vmatmul.mubr.msk.f32.gmra.mrb[86].mxu1 %vm219_vm1, %v199_v50 }
  0xb5   :  { %2786 = vmatprep.mubr.msk.f32.mxu0 %vm219_vm1, %v102_v51  ;;  %2933 = vmatprep.mubr.msk.f32.mxu1 %vm219_vm1, %v200_v52 }
  0xb8   :  { %2787 = vmatmul.mubr.msk.f32.gmra.mrb[88].mxu0 %vm219_vm1, %v103_v53  ;;  %2934 = vmatmul.mubr.msk.f32.gmra.mrb[88].mxu1 %vm219_vm1, %v201_v54 }
  0xb9   :  { %2789 = vmatprep.mubr.msk.f32.mxu0 %vm219_vm1, %v104_v55  ;;  %2936 = vmatprep.mubr.msk.f32.mxu1 %vm219_vm1, %v202_v56 }
  0xbc   :  { %2790 = vmatmul.mubr.msk.f32.gmra.mrb[90].mxu0 %vm219_vm1, %v105_v57  ;;  %2937 = vmatmul.mubr.msk.f32.gmra.mrb[90].mxu1 %vm219_vm1, %v203_v58 }
  0xbd   :  { %2792 = vmatprep.mubr.msk.f32.mxu0 %vm219_vm1, %v106_v59  ;;  %2939 = vmatprep.mubr.msk.f32.mxu1 %vm219_vm1, %v204_v60 }
  0xc0   :  { %2793 = vmatmul.mubr.msk.f32.gmra.mrb[92].mxu0 %vm219_vm1, %v107_v61  ;;  %2940 = vmatmul.mubr.msk.f32.gmra.mrb[92].mxu1 %vm219_vm1, %v205_v62 }
  0xc1   :  { %2795 = vmatprep.mubr.msk.f32.mxu0 %vm219_vm1, %v108_v63  ;;  %2942 = vmatprep.mubr.msk.f32.mxu1 %vm219_vm1, %v206_v0 }
  0xc4   :  { %2796 = vmatmul.mubr.msk.f32.gmra.mrb[94].mxu0 %vm219_vm1, %v109_v1  ;;  %2943 = vmatmul.mubr.msk.f32.gmra.mrb[94].mxu1 %vm219_vm1, %v207_v2 }
  0xc5   :  { %2798 = vmatprep.mubr.msk.f32.mxu0 %vm219_vm1, %v110_v3  ;;  %2945 = vmatprep.mubr.msk.f32.mxu1 %vm219_vm1, %v208_v4 }
  0xc8   :  { %2799 = vmatmul.mubr.msk.f32.gmra.mrb[96].mxu0 %vm219_vm1, %v111_v5  ;;  %2946 = vmatmul.mubr.msk.f32.gmra.mrb[96].mxu1 %vm219_vm1, %v209_v6 }
  0xdb   :  { %v2656_v8 = vpop.f32.mrb[0].mxu0  ;;  %v2803_v9 = vpop.f32.mrb[0].mxu1 }
  0xdc   :  { %v884_v10 = vadd.f32 %v2656_v8, %v3772_v7  ;;  %v1374_v11 = vadd.f32 %v2803_v9, %v3772_v7  ;;  %v878_v12 = vpop.f32.mrb[1].mxu0  ;;  %v1368_v13 = vpop.f32.mrb[1].mxu1 }
  0xdd   :  { %v879_v14 = vadd.f32 %v3772_v7, %v878_v12  ;;  %v1369_v15 = vadd.f32 %v3772_v7, %v1368_v13 }
  0xde   :  { %v1858_v16 = vmax.f32 %v884_v10, 0.0  ;;  %v1956_v17 = vmax.f32 %v1374_v11, 0.0 }
  0xdf   :  { %v1857_v18 = vmax.f32 %v879_v14, 0.0  ;;  %v1955_v19 = vmax.f32 %v1369_v15, 0.0  ;;  %v2659_v20 = vpop.f32.mrb[2].mxu0  ;;  %v2806_v21 = vpop.f32.mrb[2].mxu1 }
  0xe0   :  { %2055 = vst.msk [vmem:[%s4762_s3 + $0x8] sm:$0xff] %vm2053_vm4, %v1858_v16  ;;  %2153 = vst.msk [vmem:[%s4762_s3 + $0x318] sm:$0xff] %vm2053_vm4, %v1956_v17  ;;  %v894_v22 = vadd.f32 %v2659_v20, %v3772_v7  ;;  %v1384_v23 = vadd.f32 %v2806_v21, %v3772_v7  ;;  %v888_v24 = vpop.f32.mrb[3].mxu0  ;;  %v1378_v25 = vpop.f32.mrb[3].mxu1 }
  0xe1   :  { %2054 = vst.msk [vmem:[%s4762_s3] sm:$0xff] %vm2053_vm4, %v1857_v18  ;;  %2152 = vst.msk [vmem:[%s4762_s3 + $0x310] sm:$0xff] %vm2053_vm4, %v1955_v19  ;;  %v889_v26 = vadd.f32 %v3772_v7, %v888_v24  ;;  %v1379_v27 = vadd.f32 %v3772_v7, %v1378_v25 }
  0xe2   :  { %v1860_v28 = vmax.f32 %v894_v22, 0.0  ;;  %v1958_v29 = vmax.f32 %v1384_v23, 0.0 }
  0xe3   :  { %v1859_v30 = vmax.f32 %v889_v26, 0.0  ;;  %v1957_v31 = vmax.f32 %v1379_v27, 0.0  ;;  %v2662_v32 = vpop.f32.mrb[4].mxu0  ;;  %v2809_v33 = vpop.f32.mrb[4].mxu1 }
  0xe4   :  { %2057 = vst.msk [vmem:[%s4762_s3 + $0x18] sm:$0xff] %vm2053_vm4, %v1860_v28  ;;  %2155 = vst.msk [vmem:[%s4762_s3 + $0x328] sm:$0xff] %vm2053_vm4, %v1958_v29  ;;  %v904_v34 = vadd.f32 %v2662_v32, %v3772_v7  ;;  %v1394_v35 = vadd.f32 %v2809_v33, %v3772_v7  ;;  %v898_v36 = vpop.f32.mrb[5].mxu0  ;;  %v1388_v37 = vpop.f32.mrb[5].mxu1 }
  0xe5   :  { %2056 = vst.msk [vmem:[%s4762_s3 + $0x10] sm:$0xff] %vm2053_vm4, %v1859_v30  ;;  %2154 = vst.msk [vmem:[%s4762_s3 + $0x320] sm:$0xff] %vm2053_vm4, %v1957_v31  ;;  %v899_v38 = vadd.f32 %v3772_v7, %v898_v36  ;;  %v1389_v39 = vadd.f32 %v3772_v7, %v1388_v37 }
  0xe6   :  { %v1862_v40 = vmax.f32 %v904_v34, 0.0  ;;  %v1960_v41 = vmax.f32 %v1394_v35, 0.0 }
  0xe7   :  { %v1861_v42 = vmax.f32 %v899_v38, 0.0  ;;  %v1959_v43 = vmax.f32 %v1389_v39, 0.0  ;;  %v2665_v44 = vpop.f32.mrb[6].mxu0  ;;  %v2812_v45 = vpop.f32.mrb[6].mxu1 }
  0xe8   :  { %2059 = vst.msk [vmem:[%s4762_s3 + $0x28] sm:$0xff] %vm2053_vm4, %v1862_v40  ;;  %2157 = vst.msk [vmem:[%s4762_s3 + $0x338] sm:$0xff] %vm2053_vm4, %v1960_v41  ;;  %v914_v46 = vadd.f32 %v2665_v44, %v3772_v7  ;;  %v1404_v47 = vadd.f32 %v2812_v45, %v3772_v7  ;;  %v908_v48 = vpop.f32.mrb[7].mxu0  ;;  %v1398_v49 = vpop.f32.mrb[7].mxu1 }
  0xe9   :  { %2058 = vst.msk [vmem:[%s4762_s3 + $0x20] sm:$0xff] %vm2053_vm4, %v1861_v42  ;;  %2156 = vst.msk [vmem:[%s4762_s3 + $0x330] sm:$0xff] %vm2053_vm4, %v1959_v43  ;;  %v909_v50 = vadd.f32 %v3772_v7, %v908_v48  ;;  %v1399_v51 = vadd.f32 %v3772_v7, %v1398_v49 }
  0xea   :  { %v1864_v52 = vmax.f32 %v914_v46, 0.0  ;;  %v1962_v53 = vmax.f32 %v1404_v47, 0.0 }
  0xeb   :  { %v1863_v54 = vmax.f32 %v909_v50, 0.0  ;;  %v1961_v55 = vmax.f32 %v1399_v51, 0.0  ;;  %v2668_v56 = vpop.f32.mrb[8].mxu0  ;;  %v2815_v57 = vpop.f32.mrb[8].mxu1 }
  0xec   :  { %2061 = vst.msk [vmem:[%s4762_s3 + $0x38] sm:$0xff] %vm2053_vm4, %v1864_v52  ;;  %2159 = vst.msk [vmem:[%s4762_s3 + $0x348] sm:$0xff] %vm2053_vm4, %v1962_v53  ;;  %v924_v58 = vadd.f32 %v2668_v56, %v3772_v7  ;;  %v1414_v59 = vadd.f32 %v2815_v57, %v3772_v7  ;;  %v918_v60 = vpop.f32.mrb[9].mxu0  ;;  %v1408_v61 = vpop.f32.mrb[9].mxu1 }
  0xed   :  { %2060 = vst.msk [vmem:[%s4762_s3 + $0x30] sm:$0xff] %vm2053_vm4, %v1863_v54  ;;  %2158 = vst.msk [vmem:[%s4762_s3 + $0x340] sm:$0xff] %vm2053_vm4, %v1961_v55  ;;  %v919_v62 = vadd.f32 %v3772_v7, %v918_v60  ;;  %v1409_v63 = vadd.f32 %v3772_v7, %v1408_v61 }
  0xee   :  { %v1866_v0 = vmax.f32 %v924_v58, 0.0  ;;  %v1964_v1 = vmax.f32 %v1414_v59, 0.0 }
  0xef   :  { %v1865_v2 = vmax.f32 %v919_v62, 0.0  ;;  %v1963_v3 = vmax.f32 %v1409_v63, 0.0  ;;  %v2671_v4 = vpop.f32.mrb[10].mxu0  ;;  %v2818_v5 = vpop.f32.mrb[10].mxu1 }
  0xf0   :  { %2063 = vst.msk [vmem:[%s4762_s3 + $0x48] sm:$0xff] %vm2053_vm4, %v1866_v0  ;;  %2161 = vst.msk [vmem:[%s4762_s3 + $0x358] sm:$0xff] %vm2053_vm4, %v1964_v1  ;;  %v934_v6 = vadd.f32 %v2671_v4, %v3772_v7  ;;  %v1424_v8 = vadd.f32 %v2818_v5, %v3772_v7  ;;  %v928_v9 = vpop.f32.mrb[11].mxu0  ;;  %v1418_v10 = vpop.f32.mrb[11].mxu1 }
  0xf1   :  { %2062 = vst.msk [vmem:[%s4762_s3 + $0x40] sm:$0xff] %vm2053_vm4, %v1865_v2  ;;  %2160 = vst.msk [vmem:[%s4762_s3 + $0x350] sm:$0xff] %vm2053_vm4, %v1963_v3  ;;  %v929_v11 = vadd.f32 %v3772_v7, %v928_v9  ;;  %v1419_v12 = vadd.f32 %v3772_v7, %v1418_v10 }
  0xf2   :  { %v1868_v13 = vmax.f32 %v934_v6, 0.0  ;;  %v1966_v14 = vmax.f32 %v1424_v8, 0.0 }
  0xf3   :  { %v1867_v15 = vmax.f32 %v929_v11, 0.0  ;;  %v1965_v16 = vmax.f32 %v1419_v12, 0.0  ;;  %v2674_v17 = vpop.f32.mrb[12].mxu0  ;;  %v2821_v18 = vpop.f32.mrb[12].mxu1 }
  0xf4   :  { %2065 = vst.msk [vmem:[%s4762_s3 + $0x58] sm:$0xff] %vm2053_vm4, %v1868_v13  ;;  %2163 = vst.msk [vmem:[%s4762_s3 + $0x368] sm:$0xff] %vm2053_vm4, %v1966_v14  ;;  %v944_v19 = vadd.f32 %v2674_v17, %v3772_v7  ;;  %v1434_v20 = vadd.f32 %v2821_v18, %v3772_v7  ;;  %v938_v21 = vpop.f32.mrb[13].mxu0  ;;  %v1428_v22 = vpop.f32.mrb[13].mxu1 }
  0xf5   :  { %2064 = vst.msk [vmem:[%s4762_s3 + $0x50] sm:$0xff] %vm2053_vm4, %v1867_v15  ;;  %2162 = vst.msk [vmem:[%s4762_s3 + $0x360] sm:$0xff] %vm2053_vm4, %v1965_v16  ;;  %v939_v23 = vadd.f32 %v3772_v7, %v938_v21  ;;  %v1429_v24 = vadd.f32 %v3772_v7, %v1428_v22 }
  0xf6   :  { %v1870_v25 = vmax.f32 %v944_v19, 0.0  ;;  %v1968_v26 = vmax.f32 %v1434_v20, 0.0 }
  0xf7   :  { %v1869_v27 = vmax.f32 %v939_v23, 0.0  ;;  %v1967_v28 = vmax.f32 %v1429_v24, 0.0  ;;  %v2677_v29 = vpop.f32.mrb[14].mxu0  ;;  %v2824_v30 = vpop.f32.mrb[14].mxu1 }
  0xf8   :  { %2067 = vst.msk [vmem:[%s4762_s3 + $0x68] sm:$0xff] %vm2053_vm4, %v1870_v25  ;;  %2165 = vst.msk [vmem:[%s4762_s3 + $0x378] sm:$0xff] %vm2053_vm4, %v1968_v26  ;;  %v954_v31 = vadd.f32 %v2677_v29, %v3772_v7  ;;  %v1444_v32 = vadd.f32 %v2824_v30, %v3772_v7  ;;  %v948_v33 = vpop.f32.mrb[15].mxu0  ;;  %v1438_v34 = vpop.f32.mrb[15].mxu1 }
  0xf9   :  { %2066 = vst.msk [vmem:[%s4762_s3 + $0x60] sm:$0xff] %vm2053_vm4, %v1869_v27  ;;  %2164 = vst.msk [vmem:[%s4762_s3 + $0x370] sm:$0xff] %vm2053_vm4, %v1967_v28  ;;  %v949_v35 = vadd.f32 %v3772_v7, %v948_v33  ;;  %v1439_v36 = vadd.f32 %v3772_v7, %v1438_v34 }
  0xfa   :  { %v1872_v37 = vmax.f32 %v954_v31, 0.0  ;;  %v1970_v38 = vmax.f32 %v1444_v32, 0.0 }
  0xfb   :  { %v1871_v39 = vmax.f32 %v949_v35, 0.0  ;;  %v1969_v40 = vmax.f32 %v1439_v36, 0.0  ;;  %v2680_v41 = vpop.f32.mrb[16].mxu0  ;;  %v2827_v42 = vpop.f32.mrb[16].mxu1 }
  0xfc   :  { %2069 = vst.msk [vmem:[%s4762_s3 + $0x78] sm:$0xff] %vm2053_vm4, %v1872_v37  ;;  %2167 = vst.msk [vmem:[%s4762_s3 + $0x388] sm:$0xff] %vm2053_vm4, %v1970_v38  ;;  %v964_v43 = vadd.f32 %v2680_v41, %v3772_v7  ;;  %v1454_v44 = vadd.f32 %v2827_v42, %v3772_v7  ;;  %v958_v45 = vpop.f32.mrb[17].mxu0  ;;  %v1448_v46 = vpop.f32.mrb[17].mxu1 }
  0xfd   :  { %2068 = vst.msk [vmem:[%s4762_s3 + $0x70] sm:$0xff] %vm2053_vm4, %v1871_v39  ;;  %2166 = vst.msk [vmem:[%s4762_s3 + $0x380] sm:$0xff] %vm2053_vm4, %v1969_v40  ;;  %v959_v47 = vadd.f32 %v3772_v7, %v958_v45  ;;  %v1449_v48 = vadd.f32 %v3772_v7, %v1448_v46 }
  0xfe   :  { %v1874_v49 = vmax.f32 %v964_v43, 0.0  ;;  %v1972_v50 = vmax.f32 %v1454_v44, 0.0 }
  0xff   :  { %v1873_v51 = vmax.f32 %v959_v47, 0.0  ;;  %v1971_v52 = vmax.f32 %v1449_v48, 0.0  ;;  %v2683_v53 = vpop.f32.mrb[18].mxu0  ;;  %v2830_v54 = vpop.f32.mrb[18].mxu1 }
 0x100   :  { %2071 = vst.msk [vmem:[%s4762_s3 + $0x88] sm:$0xff] %vm2053_vm4, %v1874_v49  ;;  %2169 = vst.msk [vmem:[%s4762_s3 + $0x398] sm:$0xff] %vm2053_vm4, %v1972_v50  ;;  %v974_v55 = vadd.f32 %v2683_v53, %v3772_v7  ;;  %v1464_v56 = vadd.f32 %v2830_v54, %v3772_v7  ;;  %v968_v57 = vpop.f32.mrb[19].mxu0  ;;  %v1458_v58 = vpop.f32.mrb[19].mxu1 }
 0x101   :  { %2070 = vst.msk [vmem:[%s4762_s3 + $0x80] sm:$0xff] %vm2053_vm4, %v1873_v51  ;;  %2168 = vst.msk [vmem:[%s4762_s3 + $0x390] sm:$0xff] %vm2053_vm4, %v1971_v52  ;;  %v969_v59 = vadd.f32 %v3772_v7, %v968_v57  ;;  %v1459_v60 = vadd.f32 %v3772_v7, %v1458_v58 }
 0x102   :  { %v1876_v61 = vmax.f32 %v974_v55, 0.0  ;;  %v1974_v62 = vmax.f32 %v1464_v56, 0.0 }
 0x103   :  { %v1875_v63 = vmax.f32 %v969_v59, 0.0  ;;  %v1973_v0 = vmax.f32 %v1459_v60, 0.0  ;;  %v2686_v1 = vpop.f32.mrb[20].mxu0  ;;  %v2833_v2 = vpop.f32.mrb[20].mxu1 }
 0x104   :  { %2073 = vst.msk [vmem:[%s4762_s3 + $0x98] sm:$0xff] %vm2053_vm4, %v1876_v61  ;;  %2171 = vst.msk [vmem:[%s4762_s3 + $0x3a8] sm:$0xff] %vm2053_vm4, %v1974_v62  ;;  %v984_v3 = vadd.f32 %v2686_v1, %v3772_v7  ;;  %v1474_v4 = vadd.f32 %v2833_v2, %v3772_v7  ;;  %v978_v5 = vpop.f32.mrb[21].mxu0  ;;  %v1468_v6 = vpop.f32.mrb[21].mxu1 }
 0x105   :  { %2072 = vst.msk [vmem:[%s4762_s3 + $0x90] sm:$0xff] %vm2053_vm4, %v1875_v63  ;;  %2170 = vst.msk [vmem:[%s4762_s3 + $0x3a0] sm:$0xff] %vm2053_vm4, %v1973_v0  ;;  %v979_v8 = vadd.f32 %v3772_v7, %v978_v5  ;;  %v1469_v9 = vadd.f32 %v3772_v7, %v1468_v6 }
 0x106   :  { %v1878_v10 = vmax.f32 %v984_v3, 0.0  ;;  %v1976_v11 = vmax.f32 %v1474_v4, 0.0 }
 0x107   :  { %v1877_v12 = vmax.f32 %v979_v8, 0.0  ;;  %v1975_v13 = vmax.f32 %v1469_v9, 0.0  ;;  %v2689_v14 = vpop.f32.mrb[22].mxu0  ;;  %v2836_v15 = vpop.f32.mrb[22].mxu1 }
 0x108   :  { %2075 = vst.msk [vmem:[%s4762_s3 + $0xa8] sm:$0xff] %vm2053_vm4, %v1878_v10  ;;  %2173 = vst.msk [vmem:[%s4762_s3 + $0x3b8] sm:$0xff] %vm2053_vm4, %v1976_v11  ;;  %v994_v16 = vadd.f32 %v2689_v14, %v3772_v7  ;;  %v1484_v17 = vadd.f32 %v2836_v15, %v3772_v7  ;;  %v988_v18 = vpop.f32.mrb[23].mxu0  ;;  %v1478_v19 = vpop.f32.mrb[23].mxu1 }
 0x109   :  { %2074 = vst.msk [vmem:[%s4762_s3 + $0xa0] sm:$0xff] %vm2053_vm4, %v1877_v12  ;;  %2172 = vst.msk [vmem:[%s4762_s3 + $0x3b0] sm:$0xff] %vm2053_vm4, %v1975_v13  ;;  %v989_v20 = vadd.f32 %v3772_v7, %v988_v18  ;;  %v1479_v21 = vadd.f32 %v3772_v7, %v1478_v19 }
 0x10a   :  { %v1880_v22 = vmax.f32 %v994_v16, 0.0  ;;  %v1978_v23 = vmax.f32 %v1484_v17, 0.0 }
 0x10b   :  { %v1879_v24 = vmax.f32 %v989_v20, 0.0  ;;  %v1977_v25 = vmax.f32 %v1479_v21, 0.0  ;;  %v2692_v26 = vpop.f32.mrb[24].mxu0  ;;  %v2839_v27 = vpop.f32.mrb[24].mxu1 }
 0x10c   :  { %2077 = vst.msk [vmem:[%s4762_s3 + $0xb8] sm:$0xff] %vm2053_vm4, %v1880_v22  ;;  %2175 = vst.msk [vmem:[%s4762_s3 + $0x3c8] sm:$0xff] %vm2053_vm4, %v1978_v23  ;;  %v1004_v28 = vadd.f32 %v2692_v26, %v3772_v7  ;;  %v1494_v29 = vadd.f32 %v2839_v27, %v3772_v7  ;;  %v998_v30 = vpop.f32.mrb[25].mxu0  ;;  %v1488_v31 = vpop.f32.mrb[25].mxu1 }
 0x10d   :  { %2076 = vst.msk [vmem:[%s4762_s3 + $0xb0] sm:$0xff] %vm2053_vm4, %v1879_v24  ;;  %2174 = vst.msk [vmem:[%s4762_s3 + $0x3c0] sm:$0xff] %vm2053_vm4, %v1977_v25  ;;  %v999_v32 = vadd.f32 %v3772_v7, %v998_v30  ;;  %v1489_v33 = vadd.f32 %v3772_v7, %v1488_v31 }
 0x10e   :  { %v1882_v34 = vmax.f32 %v1004_v28, 0.0  ;;  %v1980_v35 = vmax.f32 %v1494_v29, 0.0 }
 0x10f   :  { %v1881_v36 = vmax.f32 %v999_v32, 0.0  ;;  %v1979_v37 = vmax.f32 %v1489_v33, 0.0  ;;  %v2695_v38 = vpop.f32.mrb[26].mxu0  ;;  %v2842_v39 = vpop.f32.mrb[26].mxu1 }
 0x110   :  { %2079 = vst.msk [vmem:[%s4762_s3 + $0xc8] sm:$0xff] %vm2053_vm4, %v1882_v34  ;;  %2177 = vst.msk [vmem:[%s4762_s3 + $0x3d8] sm:$0xff] %vm2053_vm4, %v1980_v35  ;;  %v1014_v40 = vadd.f32 %v2695_v38, %v3772_v7  ;;  %v1504_v41 = vadd.f32 %v2842_v39, %v3772_v7  ;;  %v1008_v42 = vpop.f32.mrb[27].mxu0  ;;  %v1498_v43 = vpop.f32.mrb[27].mxu1 }
 0x111   :  { %2078 = vst.msk [vmem:[%s4762_s3 + $0xc0] sm:$0xff] %vm2053_vm4, %v1881_v36  ;;  %2176 = vst.msk [vmem:[%s4762_s3 + $0x3d0] sm:$0xff] %vm2053_vm4, %v1979_v37  ;;  %v1009_v44 = vadd.f32 %v3772_v7, %v1008_v42  ;;  %v1499_v45 = vadd.f32 %v3772_v7, %v1498_v43 }
 0x112   :  { %v1884_v46 = vmax.f32 %v1014_v40, 0.0  ;;  %v1982_v47 = vmax.f32 %v1504_v41, 0.0 }
 0x113   :  { %v1883_v48 = vmax.f32 %v1009_v44, 0.0  ;;  %v1981_v49 = vmax.f32 %v1499_v45, 0.0  ;;  %v2698_v50 = vpop.f32.mrb[28].mxu0  ;;  %v2845_v51 = vpop.f32.mrb[28].mxu1 }
 0x114   :  { %2081 = vst.msk [vmem:[%s4762_s3 + $0xd8] sm:$0xff] %vm2053_vm4, %v1884_v46  ;;  %2179 = vst.msk [vmem:[%s4762_s3 + $0x3e8] sm:$0xff] %vm2053_vm4, %v1982_v47  ;;  %v1024_v52 = vadd.f32 %v2698_v50, %v3772_v7  ;;  %v1514_v53 = vadd.f32 %v2845_v51, %v3772_v7  ;;  %v1018_v54 = vpop.f32.mrb[29].mxu0  ;;  %v1508_v55 = vpop.f32.mrb[29].mxu1 }
 0x115   :  { %2080 = vst.msk [vmem:[%s4762_s3 + $0xd0] sm:$0xff] %vm2053_vm4, %v1883_v48  ;;  %2178 = vst.msk [vmem:[%s4762_s3 + $0x3e0] sm:$0xff] %vm2053_vm4, %v1981_v49  ;;  %v1019_v56 = vadd.f32 %v3772_v7, %v1018_v54  ;;  %v1509_v57 = vadd.f32 %v3772_v7, %v1508_v55 }
 0x116   :  { %v1886_v58 = vmax.f32 %v1024_v52, 0.0  ;;  %v1984_v59 = vmax.f32 %v1514_v53, 0.0 }
 0x117   :  { %v1885_v60 = vmax.f32 %v1019_v56, 0.0  ;;  %v1983_v61 = vmax.f32 %v1509_v57, 0.0  ;;  %v2701_v62 = vpop.f32.mrb[30].mxu0  ;;  %v2848_v63 = vpop.f32.mrb[30].mxu1 }
 0x118   :  { %2083 = vst.msk [vmem:[%s4762_s3 + $0xe8] sm:$0xff] %vm2053_vm4, %v1886_v58  ;;  %2181 = vst.msk [vmem:[%s4762_s3 + $0x3f8] sm:$0xff] %vm2053_vm4, %v1984_v59  ;;  %v1034_v0 = vadd.f32 %v2701_v62, %v3772_v7  ;;  %v1524_v1 = vadd.f32 %v2848_v63, %v3772_v7  ;;  %v1028_v2 = vpop.f32.mrb[31].mxu0  ;;  %v1518_v3 = vpop.f32.mrb[31].mxu1 }
 0x119   :  { %2082 = vst.msk [vmem:[%s4762_s3 + $0xe0] sm:$0xff] %vm2053_vm4, %v1885_v60  ;;  %2180 = vst.msk [vmem:[%s4762_s3 + $0x3f0] sm:$0xff] %vm2053_vm4, %v1983_v61  ;;  %v1029_v4 = vadd.f32 %v3772_v7, %v1028_v2  ;;  %v1519_v5 = vadd.f32 %v3772_v7, %v1518_v3 }
 0x11a   :  { %v1888_v6 = vmax.f32 %v1034_v0, 0.0  ;;  %v1986_v8 = vmax.f32 %v1524_v1, 0.0 }
 0x11b   :  { %v1887_v9 = vmax.f32 %v1029_v4, 0.0  ;;  %v1985_v10 = vmax.f32 %v1519_v5, 0.0  ;;  %v2704_v11 = vpop.f32.mrb[32].mxu0  ;;  %v2851_v12 = vpop.f32.mrb[32].mxu1 }
 0x11c   :  { %2085 = vst.msk [vmem:[%s4762_s3 + $0xf8] sm:$0xff] %vm2053_vm4, %v1888_v6  ;;  %2183 = vst.msk [vmem:[%s4762_s3 + $0x408] sm:$0xff] %vm2053_vm4, %v1986_v8  ;;  %v1044_v13 = vadd.f32 %v2704_v11, %v3772_v7  ;;  %v1534_v14 = vadd.f32 %v2851_v12, %v3772_v7  ;;  %v1038_v15 = vpop.f32.mrb[33].mxu0  ;;  %v1528_v16 = vpop.f32.mrb[33].mxu1 }
 0x11d   :  { %2084 = vst.msk [vmem:[%s4762_s3 + $0xf0] sm:$0xff] %vm2053_vm4, %v1887_v9  ;;  %2182 = vst.msk [vmem:[%s4762_s3 + $0x400] sm:$0xff] %vm2053_vm4, %v1985_v10  ;;  %v1039_v17 = vadd.f32 %v3772_v7, %v1038_v15  ;;  %v1529_v18 = vadd.f32 %v3772_v7, %v1528_v16 }
 0x11e   :  { %v1890_v19 = vmax.f32 %v1044_v13, 0.0  ;;  %v1988_v20 = vmax.f32 %v1534_v14, 0.0 }
 0x11f   :  { %v1889_v21 = vmax.f32 %v1039_v17, 0.0  ;;  %v1987_v22 = vmax.f32 %v1529_v18, 0.0  ;;  %v2707_v23 = vpop.f32.mrb[34].mxu0  ;;  %v2854_v24 = vpop.f32.mrb[34].mxu1 }
 0x120   :  { %2087 = vst.msk [vmem:[%s4762_s3 + $0x108] sm:$0xff] %vm2053_vm4, %v1890_v19  ;;  %2185 = vst.msk [vmem:[%s4762_s3 + $0x418] sm:$0xff] %vm2053_vm4, %v1988_v20  ;;  %v1054_v25 = vadd.f32 %v2707_v23, %v3772_v7  ;;  %v1544_v26 = vadd.f32 %v2854_v24, %v3772_v7  ;;  %v1048_v27 = vpop.f32.mrb[35].mxu0  ;;  %v1538_v28 = vpop.f32.mrb[35].mxu1 }
 0x121   :  { %2086 = vst.msk [vmem:[%s4762_s3 + $0x100] sm:$0xff] %vm2053_vm4, %v1889_v21  ;;  %2184 = vst.msk [vmem:[%s4762_s3 + $0x410] sm:$0xff] %vm2053_vm4, %v1987_v22  ;;  %v1049_v29 = vadd.f32 %v3772_v7, %v1048_v27  ;;  %v1539_v30 = vadd.f32 %v3772_v7, %v1538_v28 }
 0x122   :  { %v1892_v31 = vmax.f32 %v1054_v25, 0.0  ;;  %v1990_v32 = vmax.f32 %v1544_v26, 0.0 }
 0x123   :  { %v1891_v33 = vmax.f32 %v1049_v29, 0.0  ;;  %v1989_v34 = vmax.f32 %v1539_v30, 0.0  ;;  %v2710_v35 = vpop.f32.mrb[36].mxu0  ;;  %v2857_v36 = vpop.f32.mrb[36].mxu1 }
 0x124   :  { %2089 = vst.msk [vmem:[%s4762_s3 + $0x118] sm:$0xff] %vm2053_vm4, %v1892_v31  ;;  %2187 = vst.msk [vmem:[%s4762_s3 + $0x428] sm:$0xff] %vm2053_vm4, %v1990_v32  ;;  %v1064_v37 = vadd.f32 %v2710_v35, %v3772_v7  ;;  %v1554_v38 = vadd.f32 %v2857_v36, %v3772_v7  ;;  %v1058_v39 = vpop.f32.mrb[37].mxu0  ;;  %v1548_v40 = vpop.f32.mrb[37].mxu1 }
 0x125   :  { %2088 = vst.msk [vmem:[%s4762_s3 + $0x110] sm:$0xff] %vm2053_vm4, %v1891_v33  ;;  %2186 = vst.msk [vmem:[%s4762_s3 + $0x420] sm:$0xff] %vm2053_vm4, %v1989_v34  ;;  %v1059_v41 = vadd.f32 %v3772_v7, %v1058_v39  ;;  %v1549_v42 = vadd.f32 %v3772_v7, %v1548_v40 }
 0x126   :  { %v1894_v43 = vmax.f32 %v1064_v37, 0.0  ;;  %v1992_v44 = vmax.f32 %v1554_v38, 0.0 }
 0x127   :  { %v1893_v45 = vmax.f32 %v1059_v41, 0.0  ;;  %v1991_v46 = vmax.f32 %v1549_v42, 0.0  ;;  %v2713_v47 = vpop.f32.mrb[38].mxu0  ;;  %v2860_v48 = vpop.f32.mrb[38].mxu1 }
 0x128   :  { %2091 = vst.msk [vmem:[%s4762_s3 + $0x128] sm:$0xff] %vm2053_vm4, %v1894_v43  ;;  %2189 = vst.msk [vmem:[%s4762_s3 + $0x438] sm:$0xff] %vm2053_vm4, %v1992_v44  ;;  %v1074_v49 = vadd.f32 %v2713_v47, %v3772_v7  ;;  %v1564_v50 = vadd.f32 %v2860_v48, %v3772_v7  ;;  %v1068_v51 = vpop.f32.mrb[39].mxu0  ;;  %v1558_v52 = vpop.f32.mrb[39].mxu1 }
 0x129   :  { %2090 = vst.msk [vmem:[%s4762_s3 + $0x120] sm:$0xff] %vm2053_vm4, %v1893_v45  ;;  %2188 = vst.msk [vmem:[%s4762_s3 + $0x430] sm:$0xff] %vm2053_vm4, %v1991_v46  ;;  %v1069_v53 = vadd.f32 %v3772_v7, %v1068_v51  ;;  %v1559_v54 = vadd.f32 %v3772_v7, %v1558_v52 }
 0x12a   :  { %v1896_v55 = vmax.f32 %v1074_v49, 0.0  ;;  %v1994_v56 = vmax.f32 %v1564_v50, 0.0 }
 0x12b   :  { %v1895_v57 = vmax.f32 %v1069_v53, 0.0  ;;  %v1993_v58 = vmax.f32 %v1559_v54, 0.0  ;;  %v2716_v59 = vpop.f32.mrb[40].mxu0  ;;  %v2863_v60 = vpop.f32.mrb[40].mxu1 }
 0x12c   :  { %2093 = vst.msk [vmem:[%s4762_s3 + $0x138] sm:$0xff] %vm2053_vm4, %v1896_v55  ;;  %2191 = vst.msk [vmem:[%s4762_s3 + $0x448] sm:$0xff] %vm2053_vm4, %v1994_v56  ;;  %v1084_v61 = vadd.f32 %v2716_v59, %v3772_v7  ;;  %v1574_v62 = vadd.f32 %v2863_v60, %v3772_v7  ;;  %v1078_v63 = vpop.f32.mrb[41].mxu0  ;;  %v1568_v0 = vpop.f32.mrb[41].mxu1 }
 0x12d   :  { %2092 = vst.msk [vmem:[%s4762_s3 + $0x130] sm:$0xff] %vm2053_vm4, %v1895_v57  ;;  %2190 = vst.msk [vmem:[%s4762_s3 + $0x440] sm:$0xff] %vm2053_vm4, %v1993_v58  ;;  %v1079_v1 = vadd.f32 %v3772_v7, %v1078_v63  ;;  %v1569_v2 = vadd.f32 %v3772_v7, %v1568_v0 }
 0x12e   :  { %v1898_v3 = vmax.f32 %v1084_v61, 0.0  ;;  %v1996_v4 = vmax.f32 %v1574_v62, 0.0 }
 0x12f   :  { %v1897_v5 = vmax.f32 %v1079_v1, 0.0  ;;  %v1995_v6 = vmax.f32 %v1569_v2, 0.0  ;;  %v2719_v8 = vpop.f32.mrb[42].mxu0  ;;  %v2866_v9 = vpop.f32.mrb[42].mxu1 }
 0x130   :  { %2095 = vst.msk [vmem:[%s4762_s3 + $0x148] sm:$0xff] %vm2053_vm4, %v1898_v3  ;;  %2193 = vst.msk [vmem:[%s4762_s3 + $0x458] sm:$0xff] %vm2053_vm4, %v1996_v4  ;;  %v1094_v10 = vadd.f32 %v2719_v8, %v3772_v7  ;;  %v1584_v11 = vadd.f32 %v2866_v9, %v3772_v7  ;;  %v1088_v12 = vpop.f32.mrb[43].mxu0  ;;  %v1578_v13 = vpop.f32.mrb[43].mxu1 }
 0x131   :  { %2094 = vst.msk [vmem:[%s4762_s3 + $0x140] sm:$0xff] %vm2053_vm4, %v1897_v5  ;;  %2192 = vst.msk [vmem:[%s4762_s3 + $0x450] sm:$0xff] %vm2053_vm4, %v1995_v6  ;;  %v1089_v14 = vadd.f32 %v3772_v7, %v1088_v12  ;;  %v1579_v15 = vadd.f32 %v3772_v7, %v1578_v13 }
 0x132   :  { %v1900_v16 = vmax.f32 %v1094_v10, 0.0  ;;  %v1998_v17 = vmax.f32 %v1584_v11, 0.0 }
 0x133   :  { %v1899_v18 = vmax.f32 %v1089_v14, 0.0  ;;  %v1997_v19 = vmax.f32 %v1579_v15, 0.0  ;;  %v2722_v20 = vpop.f32.mrb[44].mxu0  ;;  %v2869_v21 = vpop.f32.mrb[44].mxu1 }
 0x134   :  { %2097 = vst.msk [vmem:[%s4762_s3 + $0x158] sm:$0xff] %vm2053_vm4, %v1900_v16  ;;  %2195 = vst.msk [vmem:[%s4762_s3 + $0x468] sm:$0xff] %vm2053_vm4, %v1998_v17  ;;  %v1104_v22 = vadd.f32 %v2722_v20, %v3772_v7  ;;  %v1594_v23 = vadd.f32 %v2869_v21, %v3772_v7  ;;  %v1098_v24 = vpop.f32.mrb[45].mxu0  ;;  %v1588_v25 = vpop.f32.mrb[45].mxu1 }
 0x135   :  { %2096 = vst.msk [vmem:[%s4762_s3 + $0x150] sm:$0xff] %vm2053_vm4, %v1899_v18  ;;  %2194 = vst.msk [vmem:[%s4762_s3 + $0x460] sm:$0xff] %vm2053_vm4, %v1997_v19  ;;  %v1099_v26 = vadd.f32 %v3772_v7, %v1098_v24  ;;  %v1589_v27 = vadd.f32 %v3772_v7, %v1588_v25 }
 0x136   :  { %v1902_v28 = vmax.f32 %v1104_v22, 0.0  ;;  %v2000_v29 = vmax.f32 %v1594_v23, 0.0 }
 0x137   :  { %v1901_v30 = vmax.f32 %v1099_v26, 0.0  ;;  %v1999_v31 = vmax.f32 %v1589_v27, 0.0  ;;  %v2725_v32 = vpop.f32.mrb[46].mxu0  ;;  %v2872_v33 = vpop.f32.mrb[46].mxu1 }
 0x138   :  { %2099 = vst.msk [vmem:[%s4762_s3 + $0x168] sm:$0xff] %vm2053_vm4, %v1902_v28  ;;  %2197 = vst.msk [vmem:[%s4762_s3 + $0x478] sm:$0xff] %vm2053_vm4, %v2000_v29  ;;  %v1114_v34 = vadd.f32 %v2725_v32, %v3772_v7  ;;  %v1604_v35 = vadd.f32 %v2872_v33, %v3772_v7  ;;  %v1108_v36 = vpop.f32.mrb[47].mxu0  ;;  %v1598_v37 = vpop.f32.mrb[47].mxu1 }
 0x139   :  { %2098 = vst.msk [vmem:[%s4762_s3 + $0x160] sm:$0xff] %vm2053_vm4, %v1901_v30  ;;  %2196 = vst.msk [vmem:[%s4762_s3 + $0x470] sm:$0xff] %vm2053_vm4, %v1999_v31  ;;  %v1109_v38 = vadd.f32 %v3772_v7, %v1108_v36  ;;  %v1599_v39 = vadd.f32 %v3772_v7, %v1598_v37 }
 0x13a   :  { %v1904_v40 = vmax.f32 %v1114_v34, 0.0  ;;  %v2002_v41 = vmax.f32 %v1604_v35, 0.0 }
 0x13b   :  { %v1903_v42 = vmax.f32 %v1109_v38, 0.0  ;;  %v2001_v43 = vmax.f32 %v1599_v39, 0.0  ;;  %v2728_v44 = vpop.f32.mrb[48].mxu0  ;;  %v2875_v45 = vpop.f32.mrb[48].mxu1 }
 0x13c   :  { %2101 = vst.msk [vmem:[%s4762_s3 + $0x178] sm:$0xff] %vm2053_vm4, %v1904_v40  ;;  %2199 = vst.msk [vmem:[%s4762_s3 + $0x488] sm:$0xff] %vm2053_vm4, %v2002_v41  ;;  %v1124_v46 = vadd.f32 %v2728_v44, %v3772_v7  ;;  %v1614_v47 = vadd.f32 %v2875_v45, %v3772_v7  ;;  %v1118_v48 = vpop.f32.mrb[49].mxu0  ;;  %v1608_v49 = vpop.f32.mrb[49].mxu1 }
 0x13d   :  { %2100 = vst.msk [vmem:[%s4762_s3 + $0x170] sm:$0xff] %vm2053_vm4, %v1903_v42  ;;  %2198 = vst.msk [vmem:[%s4762_s3 + $0x480] sm:$0xff] %vm2053_vm4, %v2001_v43  ;;  %v1119_v50 = vadd.f32 %v3772_v7, %v1118_v48  ;;  %v1609_v51 = vadd.f32 %v3772_v7, %v1608_v49 }
 0x13e   :  { %v1906_v52 = vmax.f32 %v1124_v46, 0.0  ;;  %v2004_v53 = vmax.f32 %v1614_v47, 0.0 }
 0x13f   :  { %v1905_v54 = vmax.f32 %v1119_v50, 0.0  ;;  %v2003_v55 = vmax.f32 %v1609_v51, 0.0  ;;  %v2731_v56 = vpop.f32.mrb[50].mxu0  ;;  %v2878_v57 = vpop.f32.mrb[50].mxu1 }
 0x140   :  { %2103 = vst.msk [vmem:[%s4762_s3 + $0x188] sm:$0xff] %vm2053_vm4, %v1906_v52  ;;  %2201 = vst.msk [vmem:[%s4762_s3 + $0x498] sm:$0xff] %vm2053_vm4, %v2004_v53  ;;  %v1134_v58 = vadd.f32 %v2731_v56, %v3772_v7  ;;  %v1624_v59 = vadd.f32 %v2878_v57, %v3772_v7  ;;  %v1128_v60 = vpop.f32.mrb[51].mxu0  ;;  %v1618_v61 = vpop.f32.mrb[51].mxu1 }
 0x141   :  { %2102 = vst.msk [vmem:[%s4762_s3 + $0x180] sm:$0xff] %vm2053_vm4, %v1905_v54  ;;  %2200 = vst.msk [vmem:[%s4762_s3 + $0x490] sm:$0xff] %vm2053_vm4, %v2003_v55  ;;  %v1129_v62 = vadd.f32 %v3772_v7, %v1128_v60  ;;  %v1619_v63 = vadd.f32 %v3772_v7, %v1618_v61 }
 0x142   :  { %v1908_v0 = vmax.f32 %v1134_v58, 0.0  ;;  %v2006_v1 = vmax.f32 %v1624_v59, 0.0 }
 0x143   :  { %v1907_v2 = vmax.f32 %v1129_v62, 0.0  ;;  %v2005_v3 = vmax.f32 %v1619_v63, 0.0  ;;  %v2734_v4 = vpop.f32.mrb[52].mxu0  ;;  %v2881_v5 = vpop.f32.mrb[52].mxu1 }
 0x144   :  { %2105 = vst.msk [vmem:[%s4762_s3 + $0x198] sm:$0xff] %vm2053_vm4, %v1908_v0  ;;  %2203 = vst.msk [vmem:[%s4762_s3 + $0x4a8] sm:$0xff] %vm2053_vm4, %v2006_v1  ;;  %v1144_v6 = vadd.f32 %v2734_v4, %v3772_v7  ;;  %v1634_v8 = vadd.f32 %v2881_v5, %v3772_v7  ;;  %v1138_v9 = vpop.f32.mrb[53].mxu0  ;;  %v1628_v10 = vpop.f32.mrb[53].mxu1 }
 0x145   :  { %2104 = vst.msk [vmem:[%s4762_s3 + $0x190] sm:$0xff] %vm2053_vm4, %v1907_v2  ;;  %2202 = vst.msk [vmem:[%s4762_s3 + $0x4a0] sm:$0xff] %vm2053_vm4, %v2005_v3  ;;  %v1139_v11 = vadd.f32 %v3772_v7, %v1138_v9  ;;  %v1629_v12 = vadd.f32 %v3772_v7, %v1628_v10 }
 0x146   :  { %v1910_v13 = vmax.f32 %v1144_v6, 0.0  ;;  %v2008_v14 = vmax.f32 %v1634_v8, 0.0 }
 0x147   :  { %v1909_v15 = vmax.f32 %v1139_v11, 0.0  ;;  %v2007_v16 = vmax.f32 %v1629_v12, 0.0  ;;  %v2737_v17 = vpop.f32.mrb[54].mxu0  ;;  %v2884_v18 = vpop.f32.mrb[54].mxu1 }
 0x148   :  { %2107 = vst.msk [vmem:[%s4762_s3 + $0x1a8] sm:$0xff] %vm2053_vm4, %v1910_v13  ;;  %2205 = vst.msk [vmem:[%s4762_s3 + $0x4b8] sm:$0xff] %vm2053_vm4, %v2008_v14  ;;  %v1154_v19 = vadd.f32 %v2737_v17, %v3772_v7  ;;  %v1644_v20 = vadd.f32 %v2884_v18, %v3772_v7  ;;  %v1148_v21 = vpop.f32.mrb[55].mxu0  ;;  %v1638_v22 = vpop.f32.mrb[55].mxu1 }
 0x149   :  { %2106 = vst.msk [vmem:[%s4762_s3 + $0x1a0] sm:$0xff] %vm2053_vm4, %v1909_v15  ;;  %2204 = vst.msk [vmem:[%s4762_s3 + $0x4b0] sm:$0xff] %vm2053_vm4, %v2007_v16  ;;  %v1149_v23 = vadd.f32 %v3772_v7, %v1148_v21  ;;  %v1639_v24 = vadd.f32 %v3772_v7, %v1638_v22 }
 0x14a   :  { %v1912_v25 = vmax.f32 %v1154_v19, 0.0  ;;  %v2010_v26 = vmax.f32 %v1644_v20, 0.0 }
 0x14b   :  { %v1911_v27 = vmax.f32 %v1149_v23, 0.0  ;;  %v2009_v28 = vmax.f32 %v1639_v24, 0.0  ;;  %v2740_v29 = vpop.f32.mrb[56].mxu0  ;;  %v2887_v30 = vpop.f32.mrb[56].mxu1 }
 0x14c   :  { %2109 = vst.msk [vmem:[%s4762_s3 + $0x1b8] sm:$0xff] %vm2053_vm4, %v1912_v25  ;;  %2207 = vst.msk [vmem:[%s4762_s3 + $0x4c8] sm:$0xff] %vm2053_vm4, %v2010_v26  ;;  %v1164_v31 = vadd.f32 %v2740_v29, %v3772_v7  ;;  %v1654_v32 = vadd.f32 %v2887_v30, %v3772_v7  ;;  %v1158_v33 = vpop.f32.mrb[57].mxu0  ;;  %v1648_v34 = vpop.f32.mrb[57].mxu1 }
 0x14d   :  { %2108 = vst.msk [vmem:[%s4762_s3 + $0x1b0] sm:$0xff] %vm2053_vm4, %v1911_v27  ;;  %2206 = vst.msk [vmem:[%s4762_s3 + $0x4c0] sm:$0xff] %vm2053_vm4, %v2009_v28  ;;  %v1159_v35 = vadd.f32 %v3772_v7, %v1158_v33  ;;  %v1649_v36 = vadd.f32 %v3772_v7, %v1648_v34 }
 0x14e   :  { %v1914_v37 = vmax.f32 %v1164_v31, 0.0  ;;  %v2012_v38 = vmax.f32 %v1654_v32, 0.0 }
 0x14f   :  { %v1913_v39 = vmax.f32 %v1159_v35, 0.0  ;;  %v2011_v40 = vmax.f32 %v1649_v36, 0.0  ;;  %v2743_v41 = vpop.f32.mrb[58].mxu0  ;;  %v2890_v42 = vpop.f32.mrb[58].mxu1 }
 0x150   :  { %2111 = vst.msk [vmem:[%s4762_s3 + $0x1c8] sm:$0xff] %vm2053_vm4, %v1914_v37  ;;  %2209 = vst.msk [vmem:[%s4762_s3 + $0x4d8] sm:$0xff] %vm2053_vm4, %v2012_v38  ;;  %v1174_v43 = vadd.f32 %v2743_v41, %v3772_v7  ;;  %v1664_v44 = vadd.f32 %v2890_v42, %v3772_v7  ;;  %v1168_v45 = vpop.f32.mrb[59].mxu0  ;;  %v1658_v46 = vpop.f32.mrb[59].mxu1 }
 0x151   :  { %2110 = vst.msk [vmem:[%s4762_s3 + $0x1c0] sm:$0xff] %vm2053_vm4, %v1913_v39  ;;  %2208 = vst.msk [vmem:[%s4762_s3 + $0x4d0] sm:$0xff] %vm2053_vm4, %v2011_v40  ;;  %v1169_v47 = vadd.f32 %v3772_v7, %v1168_v45  ;;  %v1659_v48 = vadd.f32 %v3772_v7, %v1658_v46 }
 0x152   :  { %v1916_v49 = vmax.f32 %v1174_v43, 0.0  ;;  %v2014_v50 = vmax.f32 %v1664_v44, 0.0 }
 0x153   :  { %v1915_v51 = vmax.f32 %v1169_v47, 0.0  ;;  %v2013_v52 = vmax.f32 %v1659_v48, 0.0  ;;  %v2746_v53 = vpop.f32.mrb[60].mxu0  ;;  %v2893_v54 = vpop.f32.mrb[60].mxu1 }
 0x154   :  { %2113 = vst.msk [vmem:[%s4762_s3 + $0x1d8] sm:$0xff] %vm2053_vm4, %v1916_v49  ;;  %2211 = vst.msk [vmem:[%s4762_s3 + $0x4e8] sm:$0xff] %vm2053_vm4, %v2014_v50  ;;  %v1184_v55 = vadd.f32 %v2746_v53, %v3772_v7  ;;  %v1674_v56 = vadd.f32 %v2893_v54, %v3772_v7  ;;  %v1178_v57 = vpop.f32.mrb[61].mxu0  ;;  %v1668_v58 = vpop.f32.mrb[61].mxu1 }
 0x155   :  { %2112 = vst.msk [vmem:[%s4762_s3 + $0x1d0] sm:$0xff] %vm2053_vm4, %v1915_v51  ;;  %2210 = vst.msk [vmem:[%s4762_s3 + $0x4e0] sm:$0xff] %vm2053_vm4, %v2013_v52  ;;  %v1179_v59 = vadd.f32 %v3772_v7, %v1178_v57  ;;  %v1669_v60 = vadd.f32 %v3772_v7, %v1668_v58 }
 0x156   :  { %v1918_v61 = vmax.f32 %v1184_v55, 0.0  ;;  %v2016_v62 = vmax.f32 %v1674_v56, 0.0 }
 0x157   :  { %v1917_v63 = vmax.f32 %v1179_v59, 0.0  ;;  %v2015_v0 = vmax.f32 %v1669_v60, 0.0  ;;  %v2749_v1 = vpop.f32.mrb[62].mxu0  ;;  %v2896_v2 = vpop.f32.mrb[62].mxu1 }
 0x158   :  { %2115 = vst.msk [vmem:[%s4762_s3 + $0x1e8] sm:$0xff] %vm2053_vm4, %v1918_v61  ;;  %2213 = vst.msk [vmem:[%s4762_s3 + $0x4f8] sm:$0xff] %vm2053_vm4, %v2016_v62  ;;  %v1194_v3 = vadd.f32 %v2749_v1, %v3772_v7  ;;  %v1684_v4 = vadd.f32 %v2896_v2, %v3772_v7  ;;  %v1188_v5 = vpop.f32.mrb[63].mxu0  ;;  %v1678_v6 = vpop.f32.mrb[63].mxu1 }
 0x159   :  { %2114 = vst.msk [vmem:[%s4762_s3 + $0x1e0] sm:$0xff] %vm2053_vm4, %v1917_v63  ;;  %2212 = vst.msk [vmem:[%s4762_s3 + $0x4f0] sm:$0xff] %vm2053_vm4, %v2015_v0  ;;  %v1189_v8 = vadd.f32 %v3772_v7, %v1188_v5  ;;  %v1679_v9 = vadd.f32 %v3772_v7, %v1678_v6  ;;  %v4409_v7 = vld [vmem:[%s4761_s2] ss:$0 sm:$0xff] }
 0x15a   :  { %v1920_v10 = vmax.f32 %v1194_v3, 0.0  ;;  %v2018_v11 = vmax.f32 %v1684_v4, 0.0 }
 0x15b   :  { %v1919_v12 = vmax.f32 %v1189_v8, 0.0  ;;  %v2017_v13 = vmax.f32 %v1679_v9, 0.0  ;;  %v2752_v14 = vpop.f32.mrb[64].mxu0  ;;  %v2899_v15 = vpop.f32.mrb[64].mxu1 }
 0x15c   :  { %2117 = vst.msk [vmem:[%s4762_s3 + $0x1f8] sm:$0xff] %vm2053_vm4, %v1920_v10  ;;  %2215 = vst.msk [vmem:[%s4762_s3 + $0x508] sm:$0xff] %vm2053_vm4, %v2018_v11  ;;  %v1204_v16 = vadd.f32 %v4409_v7, %v2752_v14  ;;  %v1694_v17 = vadd.f32 %v4409_v7, %v2899_v15  ;;  %v1198_v18 = vpop.f32.mrb[65].mxu0  ;;  %v1688_v19 = vpop.f32.mrb[65].mxu1 }
 0x15d   :  { %2116 = vst.msk [vmem:[%s4762_s3 + $0x1f0] sm:$0xff] %vm2053_vm4, %v1919_v12  ;;  %2214 = vst.msk [vmem:[%s4762_s3 + $0x500] sm:$0xff] %vm2053_vm4, %v2017_v13  ;;  %v1199_v20 = vadd.f32 %v4409_v7, %v1198_v18  ;;  %v1689_v21 = vadd.f32 %v4409_v7, %v1688_v19 }
 0x15e   :  { %v1922_v22 = vmax.f32 %v1204_v16, 0.0  ;;  %v2020_v23 = vmax.f32 %v1694_v17, 0.0 }
 0x15f   :  { %v1921_v24 = vmax.f32 %v1199_v20, 0.0  ;;  %v2019_v25 = vmax.f32 %v1689_v21, 0.0  ;;  %v2755_v26 = vpop.f32.mrb[66].mxu0  ;;  %v2902_v27 = vpop.f32.mrb[66].mxu1 }
 0x160   :  { %2119 = vst.msk [vmem:[%s4762_s3 + $0x208] sm:$0xff] %vm2053_vm4, %v1922_v22  ;;  %2217 = vst.msk [vmem:[%s4762_s3 + $0x518] sm:$0xff] %vm2053_vm4, %v2020_v23  ;;  %v1214_v28 = vadd.f32 %v4409_v7, %v2755_v26  ;;  %v1704_v29 = vadd.f32 %v4409_v7, %v2902_v27  ;;  %v1208_v30 = vpop.f32.mrb[67].mxu0  ;;  %v1698_v31 = vpop.f32.mrb[67].mxu1 }
 0x161   :  { %2118 = vst.msk [vmem:[%s4762_s3 + $0x200] sm:$0xff] %vm2053_vm4, %v1921_v24  ;;  %2216 = vst.msk [vmem:[%s4762_s3 + $0x510] sm:$0xff] %vm2053_vm4, %v2019_v25  ;;  %v1209_v32 = vadd.f32 %v4409_v7, %v1208_v30  ;;  %v1699_v33 = vadd.f32 %v4409_v7, %v1698_v31 }
 0x162   :  { %v1924_v34 = vmax.f32 %v1214_v28, 0.0  ;;  %v2022_v35 = vmax.f32 %v1704_v29, 0.0 }
 0x163   :  { %v1923_v36 = vmax.f32 %v1209_v32, 0.0  ;;  %v2021_v37 = vmax.f32 %v1699_v33, 0.0  ;;  %v2758_v38 = vpop.f32.mrb[68].mxu0  ;;  %v2905_v39 = vpop.f32.mrb[68].mxu1 }
 0x164   :  { %2121 = vst.msk [vmem:[%s4762_s3 + $0x218] sm:$0xff] %vm2053_vm4, %v1924_v34  ;;  %2219 = vst.msk [vmem:[%s4762_s3 + $0x528] sm:$0xff] %vm2053_vm4, %v2022_v35  ;;  %v1224_v40 = vadd.f32 %v4409_v7, %v2758_v38  ;;  %v1714_v41 = vadd.f32 %v4409_v7, %v2905_v39  ;;  %v1218_v42 = vpop.f32.mrb[69].mxu0  ;;  %v1708_v43 = vpop.f32.mrb[69].mxu1 }
 0x165   :  { %2120 = vst.msk [vmem:[%s4762_s3 + $0x210] sm:$0xff] %vm2053_vm4, %v1923_v36  ;;  %2218 = vst.msk [vmem:[%s4762_s3 + $0x520] sm:$0xff] %vm2053_vm4, %v2021_v37  ;;  %v1219_v44 = vadd.f32 %v4409_v7, %v1218_v42  ;;  %v1709_v45 = vadd.f32 %v4409_v7, %v1708_v43 }
 0x166   :  { %v1926_v46 = vmax.f32 %v1224_v40, 0.0  ;;  %v2024_v47 = vmax.f32 %v1714_v41, 0.0 }
 0x167   :  { %v1925_v48 = vmax.f32 %v1219_v44, 0.0  ;;  %v2023_v49 = vmax.f32 %v1709_v45, 0.0  ;;  %v2761_v50 = vpop.f32.mrb[70].mxu0  ;;  %v2908_v51 = vpop.f32.mrb[70].mxu1 }
 0x168   :  { %2123 = vst.msk [vmem:[%s4762_s3 + $0x228] sm:$0xff] %vm2053_vm4, %v1926_v46  ;;  %2221 = vst.msk [vmem:[%s4762_s3 + $0x538] sm:$0xff] %vm2053_vm4, %v2024_v47  ;;  %v1234_v52 = vadd.f32 %v4409_v7, %v2761_v50  ;;  %v1724_v53 = vadd.f32 %v4409_v7, %v2908_v51  ;;  %v1228_v54 = vpop.f32.mrb[71].mxu0  ;;  %v1718_v55 = vpop.f32.mrb[71].mxu1 }
 0x169   :  { %2122 = vst.msk [vmem:[%s4762_s3 + $0x220] sm:$0xff] %vm2053_vm4, %v1925_v48  ;;  %2220 = vst.msk [vmem:[%s4762_s3 + $0x530] sm:$0xff] %vm2053_vm4, %v2023_v49  ;;  %v1229_v56 = vadd.f32 %v4409_v7, %v1228_v54  ;;  %v1719_v57 = vadd.f32 %v4409_v7, %v1718_v55 }
 0x16a   :  { %v1928_v58 = vmax.f32 %v1234_v52, 0.0  ;;  %v2026_v59 = vmax.f32 %v1724_v53, 0.0 }
 0x16b   :  { %v1927_v60 = vmax.f32 %v1229_v56, 0.0  ;;  %v2025_v61 = vmax.f32 %v1719_v57, 0.0  ;;  %v2764_v62 = vpop.f32.mrb[72].mxu0  ;;  %v2911_v63 = vpop.f32.mrb[72].mxu1 }
 0x16c   :  { %2125 = vst.msk [vmem:[%s4762_s3 + $0x238] sm:$0xff] %vm2053_vm4, %v1928_v58  ;;  %2223 = vst.msk [vmem:[%s4762_s3 + $0x548] sm:$0xff] %vm2053_vm4, %v2026_v59  ;;  %v1244_v0 = vadd.f32 %v4409_v7, %v2764_v62  ;;  %v1734_v1 = vadd.f32 %v4409_v7, %v2911_v63  ;;  %v1238_v2 = vpop.f32.mrb[73].mxu0  ;;  %v1728_v3 = vpop.f32.mrb[73].mxu1 }
 0x16d   :  { %2124 = vst.msk [vmem:[%s4762_s3 + $0x230] sm:$0xff] %vm2053_vm4, %v1927_v60  ;;  %2222 = vst.msk [vmem:[%s4762_s3 + $0x540] sm:$0xff] %vm2053_vm4, %v2025_v61  ;;  %v1239_v4 = vadd.f32 %v4409_v7, %v1238_v2  ;;  %v1729_v5 = vadd.f32 %v4409_v7, %v1728_v3 }
 0x16e   :  { %v1930_v6 = vmax.f32 %v1244_v0, 0.0  ;;  %v2028_v8 = vmax.f32 %v1734_v1, 0.0 }
 0x16f   :  { %v1929_v9 = vmax.f32 %v1239_v4, 0.0  ;;  %v2027_v10 = vmax.f32 %v1729_v5, 0.0  ;;  %v2767_v11 = vpop.f32.mrb[74].mxu0  ;;  %v2914_v12 = vpop.f32.mrb[74].mxu1 }
 0x170   :  { %2127 = vst.msk [vmem:[%s4762_s3 + $0x248] sm:$0xff] %vm2053_vm4, %v1930_v6  ;;  %2225 = vst.msk [vmem:[%s4762_s3 + $0x558] sm:$0xff] %vm2053_vm4, %v2028_v8  ;;  %v1254_v13 = vadd.f32 %v4409_v7, %v2767_v11  ;;  %v1744_v14 = vadd.f32 %v4409_v7, %v2914_v12  ;;  %v1248_v15 = vpop.f32.mrb[75].mxu0  ;;  %v1738_v16 = vpop.f32.mrb[75].mxu1 }
 0x171   :  { %2126 = vst.msk [vmem:[%s4762_s3 + $0x240] sm:$0xff] %vm2053_vm4, %v1929_v9  ;;  %2224 = vst.msk [vmem:[%s4762_s3 + $0x550] sm:$0xff] %vm2053_vm4, %v2027_v10  ;;  %v1249_v17 = vadd.f32 %v4409_v7, %v1248_v15  ;;  %v1739_v18 = vadd.f32 %v4409_v7, %v1738_v16 }
 0x172   :  { %v1932_v19 = vmax.f32 %v1254_v13, 0.0  ;;  %v2030_v20 = vmax.f32 %v1744_v14, 0.0 }
 0x173   :  { %v1931_v21 = vmax.f32 %v1249_v17, 0.0  ;;  %v2029_v22 = vmax.f32 %v1739_v18, 0.0  ;;  %v2770_v23 = vpop.f32.mrb[76].mxu0  ;;  %v2917_v24 = vpop.f32.mrb[76].mxu1 }
 0x174   :  { %2129 = vst.msk [vmem:[%s4762_s3 + $0x258] sm:$0xff] %vm2053_vm4, %v1932_v19  ;;  %2227 = vst.msk [vmem:[%s4762_s3 + $0x568] sm:$0xff] %vm2053_vm4, %v2030_v20  ;;  %v1264_v25 = vadd.f32 %v4409_v7, %v2770_v23  ;;  %v1754_v26 = vadd.f32 %v4409_v7, %v2917_v24  ;;  %v1258_v27 = vpop.f32.mrb[77].mxu0  ;;  %v1748_v28 = vpop.f32.mrb[77].mxu1 }
 0x175   :  { %2128 = vst.msk [vmem:[%s4762_s3 + $0x250] sm:$0xff] %vm2053_vm4, %v1931_v21  ;;  %2226 = vst.msk [vmem:[%s4762_s3 + $0x560] sm:$0xff] %vm2053_vm4, %v2029_v22  ;;  %v1259_v29 = vadd.f32 %v4409_v7, %v1258_v27  ;;  %v1749_v30 = vadd.f32 %v4409_v7, %v1748_v28 }
 0x176   :  { %v1934_v31 = vmax.f32 %v1264_v25, 0.0  ;;  %v2032_v32 = vmax.f32 %v1754_v26, 0.0 }
 0x177   :  { %v1933_v33 = vmax.f32 %v1259_v29, 0.0  ;;  %v2031_v34 = vmax.f32 %v1749_v30, 0.0  ;;  %v2773_v35 = vpop.f32.mrb[78].mxu0  ;;  %v2920_v36 = vpop.f32.mrb[78].mxu1 }
 0x178   :  { %2131 = vst.msk [vmem:[%s4762_s3 + $0x268] sm:$0xff] %vm2053_vm4, %v1934_v31  ;;  %2229 = vst.msk [vmem:[%s4762_s3 + $0x578] sm:$0xff] %vm2053_vm4, %v2032_v32  ;;  %v1274_v37 = vadd.f32 %v4409_v7, %v2773_v35  ;;  %v1764_v38 = vadd.f32 %v4409_v7, %v2920_v36  ;;  %v1268_v39 = vpop.f32.mrb[79].mxu0  ;;  %v1758_v40 = vpop.f32.mrb[79].mxu1 }
 0x179   :  { %2130 = vst.msk [vmem:[%s4762_s3 + $0x260] sm:$0xff] %vm2053_vm4, %v1933_v33  ;;  %2228 = vst.msk [vmem:[%s4762_s3 + $0x570] sm:$0xff] %vm2053_vm4, %v2031_v34  ;;  %v1269_v41 = vadd.f32 %v4409_v7, %v1268_v39  ;;  %v1759_v42 = vadd.f32 %v4409_v7, %v1758_v40 }
 0x17a   :  { %v1936_v43 = vmax.f32 %v1274_v37, 0.0  ;;  %v2034_v44 = vmax.f32 %v1764_v38, 0.0 }
 0x17b   :  { %v1935_v45 = vmax.f32 %v1269_v41, 0.0  ;;  %v2033_v46 = vmax.f32 %v1759_v42, 0.0  ;;  %v2776_v47 = vpop.f32.mrb[80].mxu0  ;;  %v2923_v48 = vpop.f32.mrb[80].mxu1 }
 0x17c   :  { %2133 = vst.msk [vmem:[%s4762_s3 + $0x278] sm:$0xff] %vm2053_vm4, %v1936_v43  ;;  %2231 = vst.msk [vmem:[%s4762_s3 + $0x588] sm:$0xff] %vm2053_vm4, %v2034_v44  ;;  %v1284_v49 = vadd.f32 %v4409_v7, %v2776_v47  ;;  %v1774_v50 = vadd.f32 %v4409_v7, %v2923_v48  ;;  %v1278_v51 = vpop.f32.mrb[81].mxu0  ;;  %v1768_v52 = vpop.f32.mrb[81].mxu1 }
 0x17d   :  { %2132 = vst.msk [vmem:[%s4762_s3 + $0x270] sm:$0xff] %vm2053_vm4, %v1935_v45  ;;  %2230 = vst.msk [vmem:[%s4762_s3 + $0x580] sm:$0xff] %vm2053_vm4, %v2033_v46  ;;  %v1279_v53 = vadd.f32 %v4409_v7, %v1278_v51  ;;  %v1769_v54 = vadd.f32 %v4409_v7, %v1768_v52 }
 0x17e   :  { %v1938_v55 = vmax.f32 %v1284_v49, 0.0  ;;  %v2036_v56 = vmax.f32 %v1774_v50, 0.0 }
 0x17f   :  { %v1937_v57 = vmax.f32 %v1279_v53, 0.0  ;;  %v2035_v58 = vmax.f32 %v1769_v54, 0.0  ;;  %v2779_v59 = vpop.f32.mrb[82].mxu0  ;;  %v2926_v60 = vpop.f32.mrb[82].mxu1 }
 0x180   :  { %2135 = vst.msk [vmem:[%s4762_s3 + $0x288] sm:$0xff] %vm2053_vm4, %v1938_v55  ;;  %2233 = vst.msk [vmem:[%s4762_s3 + $0x598] sm:$0xff] %vm2053_vm4, %v2036_v56  ;;  %v1294_v61 = vadd.f32 %v4409_v7, %v2779_v59  ;;  %v1784_v62 = vadd.f32 %v4409_v7, %v2926_v60  ;;  %v1288_v63 = vpop.f32.mrb[83].mxu0  ;;  %v1778_v0 = vpop.f32.mrb[83].mxu1 }
 0x181   :  { %2134 = vst.msk [vmem:[%s4762_s3 + $0x280] sm:$0xff] %vm2053_vm4, %v1937_v57  ;;  %2232 = vst.msk [vmem:[%s4762_s3 + $0x590] sm:$0xff] %vm2053_vm4, %v2035_v58  ;;  %v1289_v1 = vadd.f32 %v4409_v7, %v1288_v63  ;;  %v1779_v2 = vadd.f32 %v4409_v7, %v1778_v0 }
 0x182   :  { %v1940_v3 = vmax.f32 %v1294_v61, 0.0  ;;  %v2038_v4 = vmax.f32 %v1784_v62, 0.0 }
 0x183   :  { %v1939_v5 = vmax.f32 %v1289_v1, 0.0  ;;  %v2037_v6 = vmax.f32 %v1779_v2, 0.0  ;;  %v2782_v8 = vpop.f32.mrb[84].mxu0  ;;  %v2929_v9 = vpop.f32.mrb[84].mxu1 }
 0x184   :  { %2137 = vst.msk [vmem:[%s4762_s3 + $0x298] sm:$0xff] %vm2053_vm4, %v1940_v3  ;;  %2235 = vst.msk [vmem:[%s4762_s3 + $0x5a8] sm:$0xff] %vm2053_vm4, %v2038_v4  ;;  %v1304_v10 = vadd.f32 %v4409_v7, %v2782_v8  ;;  %v1794_v11 = vadd.f32 %v4409_v7, %v2929_v9  ;;  %v1298_v12 = vpop.f32.mrb[85].mxu0  ;;  %v1788_v13 = vpop.f32.mrb[85].mxu1 }
 0x185   :  { %2136 = vst.msk [vmem:[%s4762_s3 + $0x290] sm:$0xff] %vm2053_vm4, %v1939_v5  ;;  %2234 = vst.msk [vmem:[%s4762_s3 + $0x5a0] sm:$0xff] %vm2053_vm4, %v2037_v6  ;;  %v1299_v14 = vadd.f32 %v4409_v7, %v1298_v12  ;;  %v1789_v15 = vadd.f32 %v4409_v7, %v1788_v13 }
 0x186   :  { %v1942_v16 = vmax.f32 %v1304_v10, 0.0  ;;  %v2040_v17 = vmax.f32 %v1794_v11, 0.0 }
 0x187   :  { %v1941_v18 = vmax.f32 %v1299_v14, 0.0  ;;  %v2039_v19 = vmax.f32 %v1789_v15, 0.0  ;;  %v2785_v20 = vpop.f32.mrb[86].mxu0  ;;  %v2932_v21 = vpop.f32.mrb[86].mxu1 }
 0x188   :  { %2139 = vst.msk [vmem:[%s4762_s3 + $0x2a8] sm:$0xff] %vm2053_vm4, %v1942_v16  ;;  %2237 = vst.msk [vmem:[%s4762_s3 + $0x5b8] sm:$0xff] %vm2053_vm4, %v2040_v17  ;;  %v1314_v22 = vadd.f32 %v4409_v7, %v2785_v20  ;;  %v1804_v23 = vadd.f32 %v4409_v7, %v2932_v21  ;;  %v1308_v24 = vpop.f32.mrb[87].mxu0  ;;  %v1798_v25 = vpop.f32.mrb[87].mxu1 }
 0x189   :  { %2138 = vst.msk [vmem:[%s4762_s3 + $0x2a0] sm:$0xff] %vm2053_vm4, %v1941_v18  ;;  %2236 = vst.msk [vmem:[%s4762_s3 + $0x5b0] sm:$0xff] %vm2053_vm4, %v2039_v19  ;;  %v1309_v26 = vadd.f32 %v4409_v7, %v1308_v24  ;;  %v1799_v27 = vadd.f32 %v4409_v7, %v1798_v25 }
 0x18a   :  { %v1944_v28 = vmax.f32 %v1314_v22, 0.0  ;;  %v2042_v29 = vmax.f32 %v1804_v23, 0.0 }
 0x18b   :  { %v1943_v30 = vmax.f32 %v1309_v26, 0.0  ;;  %v2041_v31 = vmax.f32 %v1799_v27, 0.0  ;;  %v2788_v32 = vpop.f32.mrb[88].mxu0  ;;  %v2935_v33 = vpop.f32.mrb[88].mxu1 }
 0x18c   :  { %2141 = vst.msk [vmem:[%s4762_s3 + $0x2b8] sm:$0xff] %vm2053_vm4, %v1944_v28  ;;  %2239 = vst.msk [vmem:[%s4762_s3 + $0x5c8] sm:$0xff] %vm2053_vm4, %v2042_v29  ;;  %v1324_v34 = vadd.f32 %v4409_v7, %v2788_v32  ;;  %v1814_v35 = vadd.f32 %v4409_v7, %v2935_v33  ;;  %v1318_v36 = vpop.f32.mrb[89].mxu0  ;;  %v1808_v37 = vpop.f32.mrb[89].mxu1 }
 0x18d   :  { %2140 = vst.msk [vmem:[%s4762_s3 + $0x2b0] sm:$0xff] %vm2053_vm4, %v1943_v30  ;;  %2238 = vst.msk [vmem:[%s4762_s3 + $0x5c0] sm:$0xff] %vm2053_vm4, %v2041_v31  ;;  %v1319_v38 = vadd.f32 %v4409_v7, %v1318_v36  ;;  %v1809_v39 = vadd.f32 %v4409_v7, %v1808_v37 }
 0x18e   :  { %v1946_v40 = vmax.f32 %v1324_v34, 0.0  ;;  %v2044_v41 = vmax.f32 %v1814_v35, 0.0 }
 0x18f   :  { %v1945_v42 = vmax.f32 %v1319_v38, 0.0  ;;  %v2043_v43 = vmax.f32 %v1809_v39, 0.0  ;;  %v2791_v44 = vpop.f32.mrb[90].mxu0  ;;  %v2938_v45 = vpop.f32.mrb[90].mxu1 }
 0x190   :  { %2143 = vst.msk [vmem:[%s4762_s3 + $0x2c8] sm:$0xff] %vm2053_vm4, %v1946_v40  ;;  %2241 = vst.msk [vmem:[%s4762_s3 + $0x5d8] sm:$0xff] %vm2053_vm4, %v2044_v41  ;;  %v1334_v46 = vadd.f32 %v4409_v7, %v2791_v44  ;;  %v1824_v47 = vadd.f32 %v4409_v7, %v2938_v45  ;;  %v1328_v48 = vpop.f32.mrb[91].mxu0  ;;  %v1818_v49 = vpop.f32.mrb[91].mxu1 }
 0x191   :  { %2142 = vst.msk [vmem:[%s4762_s3 + $0x2c0] sm:$0xff] %vm2053_vm4, %v1945_v42  ;;  %2240 = vst.msk [vmem:[%s4762_s3 + $0x5d0] sm:$0xff] %vm2053_vm4, %v2043_v43  ;;  %v1329_v50 = vadd.f32 %v4409_v7, %v1328_v48  ;;  %v1819_v51 = vadd.f32 %v4409_v7, %v1818_v49 }
 0x192   :  { %v1948_v52 = vmax.f32 %v1334_v46, 0.0  ;;  %v2046_v53 = vmax.f32 %v1824_v47, 0.0 }
 0x193   :  { %v1947_v54 = vmax.f32 %v1329_v50, 0.0  ;;  %v2045_v55 = vmax.f32 %v1819_v51, 0.0  ;;  %v2794_v56 = vpop.f32.mrb[92].mxu0  ;;  %v2941_v57 = vpop.f32.mrb[92].mxu1 }
 0x194   :  { %2145 = vst.msk [vmem:[%s4762_s3 + $0x2d8] sm:$0xff] %vm2053_vm4, %v1948_v52  ;;  %2243 = vst.msk [vmem:[%s4762_s3 + $0x5e8] sm:$0xff] %vm2053_vm4, %v2046_v53  ;;  %v1344_v58 = vadd.f32 %v4409_v7, %v2794_v56  ;;  %v1834_v59 = vadd.f32 %v4409_v7, %v2941_v57  ;;  %v1338_v60 = vpop.f32.mrb[93].mxu0  ;;  %v1828_v61 = vpop.f32.mrb[93].mxu1 }
 0x195   :  { %2144 = vst.msk [vmem:[%s4762_s3 + $0x2d0] sm:$0xff] %vm2053_vm4, %v1947_v54  ;;  %2242 = vst.msk [vmem:[%s4762_s3 + $0x5e0] sm:$0xff] %vm2053_vm4, %v2045_v55  ;;  %v1339_v62 = vadd.f32 %v4409_v7, %v1338_v60  ;;  %v1829_v63 = vadd.f32 %v4409_v7, %v1828_v61 }
 0x196   :  { %v1950_v0 = vmax.f32 %v1344_v58, 0.0  ;;  %v2048_v1 = vmax.f32 %v1834_v59, 0.0 }
 0x197   :  { %v1949_v2 = vmax.f32 %v1339_v62, 0.0  ;;  %v2047_v3 = vmax.f32 %v1829_v63, 0.0  ;;  %v2797_v4 = vpop.f32.mrb[94].mxu0  ;;  %v2944_v5 = vpop.f32.mrb[94].mxu1 }
 0x198   :  { %2147 = vst.msk [vmem:[%s4762_s3 + $0x2e8] sm:$0xff] %vm2053_vm4, %v1950_v0  ;;  %2245 = vst.msk [vmem:[%s4762_s3 + $0x5f8] sm:$0xff] %vm2053_vm4, %v2048_v1  ;;  %v1354_v6 = vadd.f32 %v4409_v7, %v2797_v4  ;;  %v1844_v8 = vadd.f32 %v4409_v7, %v2944_v5  ;;  %v1348_v9 = vpop.f32.mrb[95].mxu0  ;;  %v1838_v10 = vpop.f32.mrb[95].mxu1 }
 0x199   :  { %2146 = vst.msk [vmem:[%s4762_s3 + $0x2e0] sm:$0xff] %vm2053_vm4, %v1949_v2  ;;  %2244 = vst.msk [vmem:[%s4762_s3 + $0x5f0] sm:$0xff] %vm2053_vm4, %v2047_v3  ;;  %v1349_v11 = vadd.f32 %v4409_v7, %v1348_v9  ;;  %v1839_v12 = vadd.f32 %v4409_v7, %v1838_v10 }
 0x19a   :  { %v1952_v13 = vmax.f32 %v1354_v6, 0.0  ;;  %v2050_v14 = vmax.f32 %v1844_v8, 0.0 }
 0x19b   :  { %v1951_v15 = vmax.f32 %v1349_v11, 0.0  ;;  %v2049_v16 = vmax.f32 %v1839_v12, 0.0  ;;  %v2800_v17 = vpop.f32.mrb[96].mxu0  ;;  %v2947_v18 = vpop.f32.mrb[96].mxu1 }
 0x19c   :  { %2149 = vst.msk [vmem:[%s4762_s3 + $0x2f8] sm:$0xff] %vm2053_vm4, %v1952_v13  ;;  %2247 = vst.msk [vmem:[%s4762_s3 + $0x608] sm:$0xff] %vm2053_vm4, %v2050_v14  ;;  %v1364_v19 = vadd.f32 %v4409_v7, %v2800_v17  ;;  %v1854_v20 = vadd.f32 %v4409_v7, %v2947_v18  ;;  %v1358_v21 = vpop.f32.mrb[97].mxu0  ;;  %v1848_v22 = vpop.f32.mrb[97].mxu1 }
 0x19d   :  { %2148 = vst.msk [vmem:[%s4762_s3 + $0x2f0] sm:$0xff] %vm2053_vm4, %v1951_v15  ;;  %2246 = vst.msk [vmem:[%s4762_s3 + $0x600] sm:$0xff] %vm2053_vm4, %v2049_v16  ;;  %v1359_v23 = vadd.f32 %v4409_v7, %v1358_v21  ;;  %v1849_v24 = vadd.f32 %v4409_v7, %v1848_v22 }
 0x19e   :  { %v1954_v25 = vmax.f32 %v1364_v19, 0.0  ;;  %v2052_v26 = vmax.f32 %v1854_v20, 0.0 }
 0x19f   :  { %v1953_v27 = vmax.f32 %v1359_v23, 0.0  ;;  %v2051_v28 = vmax.f32 %v1849_v24, 0.0 }
 0x1a0   :  { %2151 = vst.msk [vmem:[%s4762_s3 + $0x308] sm:$0xff] %vm2053_vm4, %v1954_v25  ;;  %2249 = vst.msk [vmem:[%s4762_s3 + $0x618] sm:$0xff] %vm2053_vm4, %v2052_v26 }
 0x1a1   :  { %2150 = vst.msk [vmem:[%s4762_s3 + $0x300] sm:$0xff] %vm2053_vm4, %v1953_v27  ;;  %2248 = vst.msk [vmem:[%s4762_s3 + $0x610] sm:$0xff] %vm2053_vm4, %v2051_v28 }

// kernel: cnn_forward.11
= control target key start
LH: loop header
LB: loop body
LE: loop exit
PB: predicated region body
PF: predicated region fallthrough
CT: control target
= control target key end

     0   :  { %s190_s10 = smov 96   ;;  %vm158_vm0 = vcmask 261120   ;;  %vm183_vm1 = vcmask 257024   ;;  %s476_s0 = inlined_call_operand.vmem [shape: f32[196,64], index: 0, kind: input, shape index: {}]   ;;  %s477_s1 = inlined_call_operand.vmem [shape: f32[196,32], index: 1, kind: output, shape index: {}]  }
   0x1   :  { %v8_v0 = vld [vmem:[%s476_s0] sm:$0xff]  ;;  %v10_v1 = vld [vmem:[%s476_s0 + $0x10] sm:$0xff]  ;;  %v9_v2 = vld [vmem:[%s476_s0 + $0x8] sm:$0xff] }
   0x2   :  { %58 = vrot.lane.b32.xlu0 %v8_v0, %s190_s10  ;;  %62 = vrot.lane.b32.xlu1 %v10_v1, %s190_s10  ;;  %v11_v3 = vld [vmem:[%s476_s0 + $0x18] sm:$0xff]  ;;  %v12_v4 = vld [vmem:[%s476_s0 + $0x20] sm:$0xff] }
   0x3   :  { %v13_v5 = vld [vmem:[%s476_s0 + $0x28] sm:$0xff]  ;;  %v228_v6 = vld [vmem:[%s476_s0 + $0x30] sm:$0xff]  ;;  %v233_v7 = vld [vmem:[%s476_s0 + $0x38] sm:$0xff] }
   0x4   :  { %v242_v8 = vld [vmem:[%s476_s0 + $0x40] sm:$0xff]  ;;  %v247_v9 = vld [vmem:[%s476_s0 + $0x48] sm:$0xff]  ;;  %v256_v10 = vld [vmem:[%s476_s0 + $0x50] sm:$0xff] }
   0x5   :  { %v261_v11 = vld [vmem:[%s476_s0 + $0x58] sm:$0xff]  ;;  %v270_v12 = vld [vmem:[%s476_s0 + $0x60] sm:$0xff]  ;;  %v275_v13 = vld [vmem:[%s476_s0 + $0x68] sm:$0xff] }
   0x6   :  { %60 = vrot.lane.b32.xlu0 %v9_v2, %s190_s10  ;;  %64 = vrot.lane.b32.xlu1 %v11_v3, %s190_s10  ;;  %v284_v14 = vld [vmem:[%s476_s0 + $0x70] sm:$0xff]  ;;  %v289_v15 = vld [vmem:[%s476_s0 + $0x78] sm:$0xff] }
   0x7   :  { %v298_v16 = vld [vmem:[%s476_s0 + $0x80] sm:$0xff]  ;;  %v303_v17 = vld [vmem:[%s476_s0 + $0x88] sm:$0xff]  ;;  %v312_v18 = vld [vmem:[%s476_s0 + $0x90] sm:$0xff] }
   0x8   :  { %v317_v19 = vld [vmem:[%s476_s0 + $0x98] sm:$0xff]  ;;  %v326_v20 = vld [vmem:[%s476_s0 + $0xa0] sm:$0xff]  ;;  %v331_v21 = vld [vmem:[%s476_s0 + $0xa8] sm:$0xff] }
   0x9   :  { %v340_v22 = vld [vmem:[%s476_s0 + $0xb0] sm:$0xff]  ;;  %v345_v23 = vld [vmem:[%s476_s0 + $0xb8] sm:$0xff]  ;;  %v354_v24 = vld [vmem:[%s476_s0 + $0xc0] sm:$0xf] }
   0xa   :  { %66 = vrot.lane.b32.xlu0 %v12_v4, %s190_s10  ;;  %68 = vrot.lane.b32.xlu1 %v13_v5, %s190_s10 }
   0xe   :  { %70 = vrot.lane.b32.xlu0 %v228_v6, %s190_s10  ;;  %72 = vrot.lane.b32.xlu1 %v233_v7, %s190_s10 }
  0x12   :  { %74 = vrot.lane.b32.xlu0 %v242_v8, %s190_s10  ;;  %76 = vrot.lane.b32.xlu1 %v247_v9, %s190_s10 }
  0x16   :  { %78 = vrot.lane.b32.xlu0 %v256_v10, %s190_s10  ;;  %80 = vrot.lane.b32.xlu1 %v261_v11, %s190_s10 }
  0x1a   :  { %82 = vrot.lane.b32.xlu0 %v270_v12, %s190_s10  ;;  %84 = vrot.lane.b32.xlu1 %v275_v13, %s190_s10 }
  0x1e   :  { %86 = vrot.lane.b32.xlu0 %v284_v14, %s190_s10  ;;  %88 = vrot.lane.b32.xlu1 %v289_v15, %s190_s10 }
  0x22   :  { %90 = vrot.lane.b32.xlu0 %v298_v16, %s190_s10  ;;  %92 = vrot.lane.b32.xlu1 %v303_v17, %s190_s10 }
  0x26   :  { %94 = vrot.lane.b32.xlu0 %v312_v18, %s190_s10  ;;  %96 = vrot.lane.b32.xlu1 %v317_v19, %s190_s10 }
  0x2a   :  { %98 = vrot.lane.b32.xlu0 %v326_v20, %s190_s10  ;;  %100 = vrot.lane.b32.xlu1 %v331_v21, %s190_s10 }
  0x2e   :  { %102 = vrot.lane.b32.xlu0 %v340_v22, %s190_s10  ;;  %104 = vrot.lane.b32.xlu1 %v345_v23, %s190_s10 }
  0x32   :  { %106 = vrot.lane.b32.xlu0 %v354_v24, %s190_s10 }
  0x74   :  { %v59_v25 = vpop.permute.xlu0 %58  ;;  %v63_v26 = vpop.permute.xlu1 %62 }
  0x75   :  { %v133_v27 = vmax.f32 %v8_v0, %v59_v25  ;;  %v135_v28 = vmax.f32 %v10_v1, %v63_v26 }
  0x77   :  { %159 = vst.msk [vmem:[%s477_s1] sm:$0xff] %vm158_vm0, %v133_v27  ;;  %161 = vst.msk [vmem:[%s477_s1 + $0x10] sm:$0xff] %vm158_vm0, %v135_v28 }
  0x78   :  { %v61_v29 = vpop.permute.xlu0 %60  ;;  %v65_v30 = vpop.permute.xlu1 %64 }
  0x79   :  { %v134_v31 = vmax.f32 %v9_v2, %v61_v29  ;;  %v136_v32 = vmax.f32 %v11_v3, %v65_v30 }
  0x7b   :  { %160 = vst.msk [vmem:[%s477_s1 + $0x8] sm:$0xff] %vm158_vm0, %v134_v31  ;;  %162 = vst.msk [vmem:[%s477_s1 + $0x18] sm:$0xff] %vm158_vm0, %v136_v32 }
  0x7c   :  { %v67_v33 = vpop.permute.xlu0 %66  ;;  %v69_v34 = vpop.permute.xlu1 %68 }
  0x7d   :  { %v137_v35 = vmax.f32 %v12_v4, %v67_v33  ;;  %v138_v36 = vmax.f32 %v13_v5, %v69_v34 }
  0x7f   :  { %163 = vst.msk [vmem:[%s477_s1 + $0x20] sm:$0xff] %vm158_vm0, %v137_v35  ;;  %164 = vst.msk [vmem:[%s477_s1 + $0x28] sm:$0xff] %vm158_vm0, %v138_v36 }
  0x80   :  { %v71_v37 = vpop.permute.xlu0 %70  ;;  %v73_v38 = vpop.permute.xlu1 %72 }
  0x81   :  { %v139_v39 = vmax.f32 %v228_v6, %v71_v37  ;;  %v140_v40 = vmax.f32 %v233_v7, %v73_v38 }
  0x83   :  { %165 = vst.msk [vmem:[%s477_s1 + $0x30] sm:$0xff] %vm158_vm0, %v139_v39  ;;  %166 = vst.msk [vmem:[%s477_s1 + $0x38] sm:$0xff] %vm158_vm0, %v140_v40 }
  0x84   :  { %v75_v41 = vpop.permute.xlu0 %74  ;;  %v77_v42 = vpop.permute.xlu1 %76 }
  0x85   :  { %v141_v43 = vmax.f32 %v242_v8, %v75_v41  ;;  %v142_v44 = vmax.f32 %v247_v9, %v77_v42 }
  0x87   :  { %167 = vst.msk [vmem:[%s477_s1 + $0x40] sm:$0xff] %vm158_vm0, %v141_v43  ;;  %168 = vst.msk [vmem:[%s477_s1 + $0x48] sm:$0xff] %vm158_vm0, %v142_v44 }
  0x88   :  { %v79_v45 = vpop.permute.xlu0 %78  ;;  %v81_v46 = vpop.permute.xlu1 %80 }
  0x89   :  { %v143_v47 = vmax.f32 %v256_v10, %v79_v45  ;;  %v144_v48 = vmax.f32 %v261_v11, %v81_v46 }
  0x8b   :  { %169 = vst.msk [vmem:[%s477_s1 + $0x50] sm:$0xff] %vm158_vm0, %v143_v47  ;;  %170 = vst.msk [vmem:[%s477_s1 + $0x58] sm:$0xff] %vm158_vm0, %v144_v48 }
  0x8c   :  { %v83_v49 = vpop.permute.xlu0 %82  ;;  %v85_v50 = vpop.permute.xlu1 %84 }
  0x8d   :  { %v145_v51 = vmax.f32 %v270_v12, %v83_v49  ;;  %v146_v52 = vmax.f32 %v275_v13, %v85_v50 }
  0x8f   :  { %171 = vst.msk [vmem:[%s477_s1 + $0x60] sm:$0xff] %vm158_vm0, %v145_v51  ;;  %172 = vst.msk [vmem:[%s477_s1 + $0x68] sm:$0xff] %vm158_vm0, %v146_v52 }
  0x90   :  { %v87_v53 = vpop.permute.xlu0 %86  ;;  %v89_v54 = vpop.permute.xlu1 %88 }
  0x91   :  { %v147_v55 = vmax.f32 %v284_v14, %v87_v53  ;;  %v148_v56 = vmax.f32 %v289_v15, %v89_v54 }
  0x93   :  { %173 = vst.msk [vmem:[%s477_s1 + $0x70] sm:$0xff] %vm158_vm0, %v147_v55  ;;  %174 = vst.msk [vmem:[%s477_s1 + $0x78] sm:$0xff] %vm158_vm0, %v148_v56 }
  0x94   :  { %v91_v57 = vpop.permute.xlu0 %90  ;;  %v93_v58 = vpop.permute.xlu1 %92 }
  0x95   :  { %v149_v59 = vmax.f32 %v298_v16, %v91_v57  ;;  %v150_v60 = vmax.f32 %v303_v17, %v93_v58 }
  0x97   :  { %175 = vst.msk [vmem:[%s477_s1 + $0x80] sm:$0xff] %vm158_vm0, %v149_v59  ;;  %176 = vst.msk [vmem:[%s477_s1 + $0x88] sm:$0xff] %vm158_vm0, %v150_v60 }
  0x98   :  { %v95_v61 = vpop.permute.xlu0 %94  ;;  %v97_v62 = vpop.permute.xlu1 %96 }
  0x99   :  { %v151_v63 = vmax.f32 %v312_v18, %v95_v61  ;;  %v152_v0 = vmax.f32 %v317_v19, %v97_v62 }
  0x9b   :  { %177 = vst.msk [vmem:[%s477_s1 + $0x90] sm:$0xff] %vm158_vm0, %v151_v63  ;;  %178 = vst.msk [vmem:[%s477_s1 + $0x98] sm:$0xff] %vm158_vm0, %v152_v0 }
  0x9c   :  { %v99_v1 = vpop.permute.xlu0 %98  ;;  %v101_v2 = vpop.permute.xlu1 %100 }
  0x9d   :  { %v153_v3 = vmax.f32 %v326_v20, %v99_v1  ;;  %v154_v4 = vmax.f32 %v331_v21, %v101_v2 }
  0x9f   :  { %179 = vst.msk [vmem:[%s477_s1 + $0xa0] sm:$0xff] %vm158_vm0, %v153_v3  ;;  %180 = vst.msk [vmem:[%s477_s1 + $0xa8] sm:$0xff] %vm158_vm0, %v154_v4 }
  0xa0   :  { %v103_v5 = vpop.permute.xlu0 %102  ;;  %v105_v6 = vpop.permute.xlu1 %104 }
  0xa1   :  { %v155_v7 = vmax.f32 %v340_v22, %v103_v5  ;;  %v156_v8 = vmax.f32 %v345_v23, %v105_v6 }
  0xa3   :  { %181 = vst.msk [vmem:[%s477_s1 + $0xb0] sm:$0xff] %vm158_vm0, %v155_v7  ;;  %182 = vst.msk [vmem:[%s477_s1 + $0xb8] sm:$0xff] %vm158_vm0, %v156_v8 }
  0xa4   :  { %v107_v9 = vpop.permute.xlu0 %106 }
  0xa5   :  { %v157_v10 = vmax.f32 %v354_v24, %v107_v9 }
  0xa7   :  { %184 = vst.msk [vmem:[%s477_s1 + $0xc0] sm:$0xf] %vm183_vm1, %v157_v10 }

// kernel: cnn_forward.12
= control target key start
LH: loop header
LB: loop body
LE: loop exit
PB: predicated region body
PF: predicated region fallthrough
CT: control target
= control target key end

     0   :  { %s58_s10 = smov 32   ;;  %vm34_vm0 = vcmask 261120   ;;  %vm48_vm1 = vcmask 785408   ;;  %vm51_vm2 = vcmask 783360   ;;  %s109_s0 = inlined_call_operand.vmem [shape: f32[14,448], index: 0, kind: input, shape index: {}]   ;;  %s110_s1 = inlined_call_operand.vmem [shape: f32[14,224], index: 1, kind: output, shape index: {}]  }
   0x1   :  { %v13_v0 = vld [vmem:[%s109_s0 + $0x18] sm:$0xff]  ;;  %v9_v1 = vld [vmem:[%s109_s0 + $0x8] sm:$0xff]  ;;  %v12_v3 = vld [vmem:[%s109_s0 + $0x10] sm:$0xff] }
   0x2   :  { %26 = vrot.lane.b32.xlu1 %v13_v0, %s58_s10  ;;  %22 = vrot.lane.b32.xlu0 %v9_v1, %s58_s10  ;;  %v11_v2 = vld [vmem:[%s109_s0 + $0x28] sm:$0x3f]  ;;  %v15_v4 = vld [vmem:[%s109_s0 + $0x38] sm:$0x3f] }
   0x3   :  { %v14_v5 = vld [vmem:[%s109_s0 + $0x30] sm:$0x3f]  ;;  %v8_v8 = vld [vmem:[%s109_s0] sm:$0xff] }
   0x4   :  { %v10_v15 = vld [vmem:[%s109_s0 + $0x20] sm:$0x3f] }
   0x6   :  { %28 = vrot.lane.b32.xlu1 %v11_v2, %s58_s10  ;;  %24 = vrot.lane.b32.xlu0 %v12_v3, %s58_s10 }
   0xa   :  { %32 = vrot.lane.b32.xlu1 %v15_v4, %s58_s10  ;;  %30 = vrot.lane.b32.xlu0 %v14_v5, %s58_s10 }
  0x74   :  { %v27_v6 = vpop.permute.xlu1 %26  ;;  %v23_v7 = vpop.permute.xlu0 %22 }
  0x78   :  { %v29_v9 = vpop.permute.xlu1 %28  ;;  %v25_v10 = vpop.permute.xlu0 %24 }
  0x79   :  { %v35_v11 = vsel %vm34_vm0, %v23_v7, %v25_v10  ;;  %v36_v12 = vsel %vm34_vm0, %v25_v10, %v27_v6 }
  0x7a   :  { %v43_v13 = vmax.f32 %v8_v8, %v35_v11  ;;  %v44_v14 = vmax.f32 %v9_v1, %v36_v12 }
  0x7c   :  { %47 = vst [vmem:[%s110_s1] sm:$0xff] %v43_v13  ;;  %49 = vst.msk [vmem:[%s110_s1 + $0x8] sm:$0xff] %vm48_vm1, %v44_v14  ;;  %v33_v16 = vpop.permute.xlu1 %32  ;;  %v31_v17 = vpop.permute.xlu0 %30 }
  0x7d   :  { %v37_v18 = vsel %vm34_vm0, %v29_v9, %v31_v17  ;;  %v38_v19 = vsel %vm34_vm0, %v31_v17, %v33_v16 }
  0x7e   :  { %v45_v20 = vmax.f32 %v10_v15, %v37_v18  ;;  %v46_v21 = vmax.f32 %v11_v2, %v38_v19 }
  0x80   :  { %50 = vst [vmem:[%s110_s1 + $0x10] sm:$0x3f] %v45_v20  ;;  %52 = vst.msk [vmem:[%s110_s1 + $0x18] sm:$0x3f] %vm51_vm2, %v46_v21 }

// kernel: cnn_forward.13
= control target key start
LH: loop header
LB: loop body
LE: loop exit
PB: predicated region body
PF: predicated region fallthrough
CT: control target
= control target key end

     0   :  { %v34_v28 = vlaneseq  ;;  %v1737_v36 = vmov 1983009808   ;;  %s2127_s0 = inlined_call_operand.vmem [shape: f32[2,1568], index: 0, kind: input, shape index: {}]   ;;  %s2128_s1 = inlined_call_operand.vmem [shape: bf16[1568,128], index: 1, kind: input, shape index: {}]   ;;  %s2129_s2 = inlined_call_operand.vmem [shape: f32[1,128], index: 2, kind: input, shape index: {}]   ;;  %s2130_s3 = inlined_call_operand.vmem [shape: bf16[128,10], index: 3, kind: input, shape index: {}]   ;;  %s2131_s4 = inlined_call_operand.vmem [shape: f32[1,10], index: 4, kind: input, shape index: {}]   ;;  %s2132_s5 = inlined_call_operand.hbm [shape: f32[2,10], index: 5, kind: output, shape index: {}]  }
   0x1   :  { %v1604_v0 = vld [vmem:[%s2128_s1 + $0x40] sm:$0xff]   ;;  %v1608_v4 = vld [vmem:[%s2128_s1 + $0x48] sm:$0xff]   ;;  %v1612_v8 = vld [vmem:[%s2128_s1 + $0x50] sm:$0xff]   ;;  %v32_v37 = vunpack.c.l.s4 %v1737_v36 }
   0x2   :  { %v1605_v1 = vld [vmem:[%s2128_s1] sm:$0xff]   ;;  %1428 = vmatprep.subr.bf16.mxu0 %v1604_v0  ;;  %v1609_v5 = vld [vmem:[%s2128_s1 + $0x8] sm:$0xff]   ;;  %v1613_v9 = vld [vmem:[%s2128_s1 + $0x10] sm:$0xff]   ;;  %v35_v33 = vshrl.u32 %v34_v28, 7 }
   0x3   :  { %v1606_v2 = vld [vmem:[%s2128_s1 + $0xc0] sm:$0xff]   ;;  %1429 = vmatpush3.bf16.msra.mxu0 %v1605_v1  ;;  %v1610_v6 = vld [vmem:[%s2128_s1 + $0xc8] sm:$0xff]   ;;  %v1614_v10 = vld [vmem:[%s2128_s1 + $0xd0] sm:$0xff]   ;;  %v33_v38 = vunpack.c.0.s8 %v32_v37 }
   0x4   :  { %v1607_v3 = vld [vmem:[%s2128_s1 + $0x80] sm:$0xff]   ;;  %1450 = vmatprep.subr.bf16.mxu1 %v1606_v2  ;;  %1430 = vmatprep.subr.bf16.mxu0 %v1608_v4  ;;  %v1611_v7 = vld [vmem:[%s2128_s1 + $0x88] sm:$0xff]   ;;  %v1615_v11 = vld [vmem:[%s2128_s1 + $0x90] sm:$0xff]  }
   0x5   :  { %1451 = vmatpush3.bf16.msra.mxu1 %v1607_v3  ;;  %v1616_v12 = vld [vmem:[%s2128_s1 + $0x58] sm:$0xff]   ;;  %v1620_v16 = vld [vmem:[%s2128_s1 + $0x60] sm:$0xff]   ;;  %v1624_v20 = vld [vmem:[%s2128_s1 + $0x68] sm:$0xff]   ;;  %v1876_v41 = vsub.s32 %v33_v38, %v35_v33 }
   0x6   :  { %1452 = vmatprep.subr.bf16.mxu1 %v1610_v6  ;;  %v1617_v13 = vld [vmem:[%s2128_s1 + $0x18] sm:$0xff]   ;;  %v1621_v17 = vld [vmem:[%s2128_s1 + $0x20] sm:$0xff]   ;;  %v1625_v21 = vld [vmem:[%s2128_s1 + $0x28] sm:$0xff]  }
   0x7   :  { %1431 = vmatpush3.bf16.msra.mxu0 %v1609_v5  ;;  %v1618_v14 = vld [vmem:[%s2128_s1 + $0xd8] sm:$0xff]   ;;  %v1622_v18 = vld [vmem:[%s2128_s1 + $0xe0] sm:$0xff]   ;;  %v1626_v22 = vld [vmem:[%s2128_s1 + $0xe8] sm:$0xff]  }
   0x8   :  { %1432 = vmatprep.subr.bf16.mxu0 %v1612_v8  ;;  %v1619_v15 = vld [vmem:[%s2128_s1 + $0x98] sm:$0xff]   ;;  %v1623_v19 = vld [vmem:[%s2128_s1 + $0xa0] sm:$0xff]   ;;  %v1627_v23 = vld [vmem:[%s2128_s1 + $0xa8] sm:$0xff]  }
   0x9   :  { %1453 = vmatpush3.bf16.msra.mxu1 %v1611_v7  ;;  %v1628_v24 = vld [vmem:[%s2128_s1 + $0x70] sm:$0xff]   ;;  %v1632_v29 = vld [vmem:[%s2128_s1 + $0x78] sm:$0xff]   ;;  %v22_v34 = vld [vmem:[%s2127_s0] sm:$0xff] }
   0xa   :  { %1454 = vmatprep.subr.bf16.mxu1 %v1614_v10  ;;  %v1629_v25 = vld [vmem:[%s2128_s1 + $0x30] sm:$0xff]   ;;  %v1633_v30 = vld [vmem:[%s2128_s1 + $0x38] sm:$0xff]   ;;  %v1636_v35 = vld [vmem:[%s2128_s1 + $0x140] sm:$0xff]   ;;  %v30_v39 = vcombine.high %v22_v34, %v22_v34  ;;  %v37_v42 = vrot.slane %v22_v34, %v1876_v41 }
   0xb   :  { %1433 = vmatpush3.bf16.msra.mxu0 %v1613_v9  ;;  %v1630_v26 = vld [vmem:[%s2128_s1 + $0xf0] sm:$0xff]   ;;  %v1634_v31 = vld [vmem:[%s2128_s1 + $0xf8] sm:$0xff]   ;;  %v1639_v40 = vld [vmem:[%s2128_s1 + $0x1c0] sm:$0xff]  }
   0xc   :  { %1434 = vmatprep.subr.bf16.mxu0 %v1616_v12  ;;  %v1631_v27 = vld [vmem:[%s2128_s1 + $0xb0] sm:$0xff]   ;;  %v1635_v32 = vld [vmem:[%s2128_s1 + $0xb8] sm:$0xff]   ;;  %v44_v43 = vrot.slane %v30_v39, %v1876_v41  ;;  %v45_v44 = vcombine.high %v37_v42, %v37_v42  ;;  %v1638_v46 = vld [vmem:[%s2128_s1 + $0x100] sm:$0xff]   ;;  %v101_v47 = vpack.c.bf16 %v37_v42, %v37_v42 }
   0xd   :  { %1455 = vmatpush3.bf16.msra.mxu1 %v1615_v11  ;;  %v1640_v49 = vld [vmem:[%s2128_s1 + $0x180] sm:$0xff]   ;;  %v1641_v52 = vld [vmem:[%s2128_s1 + $0x148] sm:$0xff]   ;;  %v1645_v56 = vld [vmem:[%s2128_s1 + $0x150] sm:$0xff]  }
   0xe   :  { %1456 = vmatprep.subr.bf16.mxu1 %v1618_v14  ;;  %v46_v45 = vcombine.high %v44_v43, %v44_v43  ;;  %v103_v48 = vpack.c.bf16 %v44_v43, %v44_v43  ;;  %v102_v50 = vpack.c.bf16 %v45_v44, %v45_v44  ;;  %v1643_v53 = vld [vmem:[%s2128_s1 + $0x1c8] sm:$0xff]   ;;  %v1647_v57 = vld [vmem:[%s2128_s1 + $0x1d0] sm:$0xff]   ;;  %v1649_v60 = vld [vmem:[%s2128_s1 + $0x158] sm:$0xff]  }
   0xf   :  { %1435 = vmatpush3.bf16.msra.mxu0 %v1617_v13  ;;  %v1642_v54 = vld [vmem:[%s2128_s1 + $0x108] sm:$0xff]   ;;  %v1646_v58 = vld [vmem:[%s2128_s1 + $0x110] sm:$0xff]   ;;  %v1651_v61 = vld [vmem:[%s2128_s1 + $0x1d8] sm:$0xff]  }
  0x10   :  { %1436 = vmatprep.subr.bf16.mxu0 %v1620_v16  ;;  %v104_v51 = vpack.c.bf16 %v46_v45, %v46_v45  ;;  %941 = vmatprep.mubr.bf16.mxu0 %v102_v50  ;;  %v1644_v55 = vld [vmem:[%s2128_s1 + $0x188] sm:$0xff]   ;;  %v1648_v59 = vld [vmem:[%s2128_s1 + $0x190] sm:$0xff]   ;;  %v1650_v62 = vld [vmem:[%s2128_s1 + $0x118] sm:$0xff]  }
  0x11   :  { %1457 = vmatpush3.bf16.msra.mxu1 %v1619_v15  ;;  %v1652_v63 = vld [vmem:[%s2128_s1 + $0x198] sm:$0xff]   ;;  %v1653_v0 = vld [vmem:[%s2128_s1 + $0x160] sm:$0xff]   ;;  %v1657_v4 = vld [vmem:[%s2128_s1 + $0x168] sm:$0xff]  }
  0x12   :  { %1458 = vmatprep.subr.bf16.mxu1 %v1622_v18  ;;  %981 = vmatprep.mubr.bf16.mxu1 %v104_v51  ;;  %v1655_v1 = vld [vmem:[%s2128_s1 + $0x1e0] sm:$0xff]   ;;  %v1659_v5 = vld [vmem:[%s2128_s1 + $0x1e8] sm:$0xff]   ;;  %v1661_v8 = vld [vmem:[%s2128_s1 + $0x170] sm:$0xff]  }
  0x13   :  { %1437 = vmatpush3.bf16.msra.mxu0 %v1621_v17  ;;  %v1654_v2 = vld [vmem:[%s2128_s1 + $0x120] sm:$0xff]   ;;  %v1658_v6 = vld [vmem:[%s2128_s1 + $0x128] sm:$0xff]   ;;  %v1663_v9 = vld [vmem:[%s2128_s1 + $0x1f0] sm:$0xff]  }
  0x14   :  { %1438 = vmatprep.subr.bf16.mxu0 %v1624_v20  ;;  %v1656_v3 = vld [vmem:[%s2128_s1 + $0x1a0] sm:$0xff]   ;;  %v1660_v7 = vld [vmem:[%s2128_s1 + $0x1a8] sm:$0xff]   ;;  %v1662_v11 = vld [vmem:[%s2128_s1 + $0x130] sm:$0xff]  }
  0x15   :  { %1459 = vmatpush3.bf16.msra.mxu1 %v1623_v19  ;;  %v23_v10 = vld [vmem:[%s2127_s0 + $0x8] sm:$0xff]  ;;  %v1664_v14 = vld [vmem:[%s2128_s1 + $0x1b0] sm:$0xff]   ;;  %v1665_v15 = vld [vmem:[%s2128_s1 + $0x178] sm:$0xff]  }
  0x16   :  { %1460 = vmatprep.subr.bf16.mxu1 %v1626_v22  ;;  %v54_v12 = vrot.slane %v23_v10, %v1876_v41  ;;  %v47_v13 = vcombine.high %v23_v10, %v23_v10  ;;  %v1667_v18 = vld [vmem:[%s2128_s1 + $0x1f8] sm:$0xff]   ;;  %v1677_v33 = vld [vmem:[%s2128_s1 + $0x288] sm:$0xff]   ;;  %v1678_v34 = vld [vmem:[%s2128_s1 + $0x250] sm:$0xff]  }
  0x17   :  { %1439 = vmatpush3.bf16.msra.mxu0 %v1625_v21  ;;  %v1666_v19 = vld [vmem:[%s2128_s1 + $0x138] sm:$0xff]   ;;  %v1679_v36 = vld [vmem:[%s2128_s1 + $0x210] sm:$0xff]   ;;  %v1686_v43 = vld [vmem:[%s2128_s1 + $0x260] sm:$0xff]  }
  0x18   :  { %1440 = vmatprep.subr.bf16.mxu0 %v1628_v24  ;;  %v62_v16 = vcombine.high %v54_v12, %v54_v12  ;;  %v61_v17 = vrot.slane %v47_v13, %v1876_v41  ;;  %v1668_v22 = vld [vmem:[%s2128_s1 + $0x1b8] sm:$0xff]   ;;  %v1681_v37 = vld [vmem:[%s2128_s1 + $0x290] sm:$0xff]   ;;  %v1688_v44 = vld [vmem:[%s2128_s1 + $0x2e0] sm:$0xff]  }
  0x19   :  { %1461 = vmatpush3.bf16.msra.mxu1 %v1627_v23  ;;  %v1669_v23 = vld [vmem:[%s2128_s1 + $0x240] sm:$0xff]   ;;  %v1682_v38 = vld [vmem:[%s2128_s1 + $0x258] sm:$0xff]   ;;  %v1693_v50 = vld [vmem:[%s2128_s1 + $0x2a8] sm:$0xff]  }
  0x1a   :  { %1462 = vmatprep.subr.bf16.mxu1 %v1630_v26  ;;  %v106_v20 = vpack.c.bf16 %v62_v16, %v62_v16  ;;  %v63_v21 = vcombine.high %v61_v17, %v61_v17  ;;  %v1671_v26 = vld [vmem:[%s2128_s1 + $0x200] sm:$0xff]   ;;  %v107_v28 = vpack.c.bf16 %v61_v17, %v61_v17  ;;  %v1684_v39 = vld [vmem:[%s2128_s1 + $0x2d8] sm:$0xff]   ;;  %v1694_v51 = vld [vmem:[%s2128_s1 + $0x270] sm:$0xff]  }
  0x1b   :  { %1441 = vmatpush3.bf16.msra.mxu0 %v1629_v25  ;;  %v1672_v25 = vld [vmem:[%s2128_s1 + $0x2c0] sm:$0xff]   ;;  %v1685_v42 = vld [vmem:[%s2128_s1 + $0x298] sm:$0xff]  }
  0x1c   :  { %1442 = vmatprep.subr.bf16.mxu0 %v1632_v29  ;;  %v108_v24 = vpack.c.bf16 %v63_v21, %v63_v21  ;;  %v1673_v29 = vld [vmem:[%s2128_s1 + $0x280] sm:$0xff]  }
  0x1d   :  { %1463 = vmatpush3.bf16.msra.mxu1 %v1631_v27  ;;  %v105_v27 = vpack.c.bf16 %v54_v12, %v54_v12  ;;  %v1687_v45 = vld [vmem:[%s2128_s1 + $0x220] sm:$0xff]  }
  0x1e   :  { %1464 = vmatprep.subr.bf16.mxu1 %v1634_v31  ;;  %v1676_v31 = vld [vmem:[%s2128_s1 + $0x2c8] sm:$0xff]  }
  0x1f   :  { %1443 = vmatpush3.bf16.msra.mxu0 %v1633_v30  ;;  %v1674_v30 = vld [vmem:[%s2128_s1 + $0x248] sm:$0xff]  }
  0x20   :  { %1472 = vmatprep.subr.bf16.mxu0 %v1636_v35  ;;  %v1680_v35 = vld [vmem:[%s2128_s1 + $0x2d0] sm:$0xff]  }
  0x21   :  { %1465 = vmatpush3.bf16.msra.mxu1 %v1635_v32  ;;  %v1675_v32 = vld [vmem:[%s2128_s1 + $0x208] sm:$0xff]  }
  0x22   :  { %1494 = vmatprep.subr.bf16.mxu1 %v1639_v40  ;;  %942 = vmatmul.mubr.bf16.vlgmr.msra.gmra.mrb[0].mxu0 %v101_v47  ;;  %v1683_v40 = vld [vmem:[%s2128_s1 + $0x218] sm:$0xff]   ;;  %v1690_v47 = vld [vmem:[%s2128_s1 + $0x268] sm:$0xff]  }
  0x23   :  { %1473 = vmatpush3.bf16.msra.mxu0 %v1638_v46  ;;  %1021 = vmatprep.mubr.bf16.mxu0 %v106_v20  ;;  %v1689_v46 = vld [vmem:[%s2128_s1 + $0x2a0] sm:$0xff]  }
  0x24   :  { %982 = vmatmul.mubr.bf16.vlgmr.msra.gmra.mrb[0].mxu1 %v103_v48  ;;  %1474 = vmatprep.subr.bf16.mxu0 %v1641_v52  ;;  %v1692_v48 = vld [vmem:[%s2128_s1 + $0x2e8] sm:$0xff]   ;;  %v1696_v52 = vld [vmem:[%s2128_s1 + $0x2f0] sm:$0xff]  }
  0x25   :  { %1495 = vmatpush3.bf16.msra.mxu1 %v1640_v49  ;;  %1061 = vmatprep.mubr.bf16.mxu1 %v108_v24  ;;  %v1691_v49 = vld [vmem:[%s2128_s1 + $0x228] sm:$0xff]  }
  0x26   :  { %1496 = vmatprep.subr.bf16.mxu1 %v1643_v53  ;;  %v24_v53 = vld [vmem:[%s2127_s0 + $0x10] sm:$0xff] }
  0x27   :  { %1475 = vmatpush3.bf16.msra.mxu0 %v1642_v54  ;;  %v1695_v54 = vld [vmem:[%s2128_s1 + $0x230] sm:$0xff]  }
  0x28   :  { %1476 = vmatprep.subr.bf16.mxu0 %v1645_v56  ;;  %v64_v56 = vcombine.high %v24_v53, %v24_v53 }
  0x29   :  { %1497 = vmatpush3.bf16.msra.mxu1 %v1644_v55  ;;  %v71_v55 = vrot.slane %v24_v53, %v1876_v41 }
  0x2a   :  { %1498 = vmatprep.subr.bf16.mxu1 %v1647_v57  ;;  %v1697_v57 = vld [vmem:[%s2128_s1 + $0x2b0] sm:$0xff]  }
  0x2b   :  { %1477 = vmatpush3.bf16.msra.mxu0 %v1646_v58  ;;  %v1698_v58 = vld [vmem:[%s2128_s1 + $0x278] sm:$0xff]  }
  0x2c   :  { %1478 = vmatprep.subr.bf16.mxu0 %v1649_v60  ;;  %v79_v60 = vcombine.high %v71_v55, %v71_v55 }
  0x2d   :  { %1499 = vmatpush3.bf16.msra.mxu1 %v1648_v59  ;;  %v1700_v59 = vld [vmem:[%s2128_s1 + $0x2f8] sm:$0xff]  }
  0x2e   :  { %1500 = vmatprep.subr.bf16.mxu1 %v1651_v61  ;;  %v78_v61 = vrot.slane %v64_v56, %v1876_v41 }
  0x2f   :  { %1479 = vmatpush3.bf16.msra.mxu0 %v1650_v62  ;;  %v1699_v62 = vld [vmem:[%s2128_s1 + $0x238] sm:$0xff]  }
  0x30   :  { %1480 = vmatprep.subr.bf16.mxu0 %v1653_v0  ;;  %v110_v0 = vpack.c.bf16 %v79_v60, %v79_v60 }
  0x31   :  { %1501 = vmatpush3.bf16.msra.mxu1 %v1652_v63  ;;  %v1701_v63 = vld [vmem:[%s2128_s1 + $0x2b8] sm:$0xff]  }
  0x32   :  { %1502 = vmatprep.subr.bf16.mxu1 %v1655_v1  ;;  %v80_v1 = vcombine.high %v78_v61, %v78_v61 }
  0x33   :  { %1481 = vmatpush3.bf16.msra.mxu0 %v1654_v2 }
  0x34   :  { %1482 = vmatprep.subr.bf16.mxu0 %v1657_v4  ;;  %v112_v2 = vpack.c.bf16 %v80_v1, %v80_v1 }
  0x35   :  { %1503 = vmatpush3.bf16.msra.mxu1 %v1656_v3 }
  0x36   :  { %1504 = vmatprep.subr.bf16.mxu1 %v1659_v5 }
  0x37   :  { %1483 = vmatpush3.bf16.msra.mxu0 %v1658_v6 }
  0x38   :  { %1484 = vmatprep.subr.bf16.mxu0 %v1661_v8 }
  0x39   :  { %1505 = vmatpush3.bf16.msra.mxu1 %v1660_v7 }
  0x3a   :  { %1506 = vmatprep.subr.bf16.mxu1 %v1663_v9 }
  0x3b   :  { %1485 = vmatpush3.bf16.msra.mxu0 %v1662_v11 }
  0x3c   :  { %1486 = vmatprep.subr.bf16.mxu0 %v1665_v15 }
  0x3d   :  { %1507 = vmatpush3.bf16.msra.mxu1 %v1664_v14 }
  0x3e   :  { %1508 = vmatprep.subr.bf16.mxu1 %v1667_v18 }
  0x3f   :  { %1487 = vmatpush3.bf16.msra.mxu0 %v1666_v19 }
  0x40   :  { %1516 = vmatprep.subr.bf16.mxu0 %v1669_v23 }
  0x41   :  { %1509 = vmatpush3.bf16.msra.mxu1 %v1668_v22 }
  0x42   :  { %1538 = vmatprep.subr.bf16.mxu1 %v1672_v25  ;;  %1022 = vmatmul.mubr.bf16.vlgmr.msra.gmra.mrb[4].mxu0 %v105_v27 }
  0x43   :  { %1517 = vmatpush3.bf16.msra.mxu0 %v1671_v26  ;;  %1101 = vmatprep.mubr.bf16.mxu0 %v110_v0 }
  0x44   :  { %1062 = vmatmul.mubr.bf16.vlgmr.msra.gmra.mrb[4].mxu1 %v107_v28  ;;  %1518 = vmatprep.subr.bf16.mxu0 %v1674_v30 }
  0x45   :  { %1539 = vmatpush3.bf16.msra.mxu1 %v1673_v29  ;;  %1141 = vmatprep.mubr.bf16.mxu1 %v112_v2 }
  0x46   :  { %1540 = vmatprep.subr.bf16.mxu1 %v1676_v31 }
  0x47   :  { %1519 = vmatpush3.bf16.msra.mxu0 %v1675_v32 }
  0x48   :  { %1520 = vmatprep.subr.bf16.mxu0 %v1678_v34 }
  0x49   :  { %1541 = vmatpush3.bf16.msra.mxu1 %v1677_v33 }
  0x4a   :  { %1542 = vmatprep.subr.bf16.mxu1 %v1680_v35 }
  0x4b   :  { %1521 = vmatpush3.bf16.msra.mxu0 %v1679_v36 }
  0x4c   :  { %1522 = vmatprep.subr.bf16.mxu0 %v1682_v38 }
  0x4d   :  { %1543 = vmatpush3.bf16.msra.mxu1 %v1681_v37 }
  0x4e   :  { %1544 = vmatprep.subr.bf16.mxu1 %v1684_v39 }
  0x4f   :  { %1523 = vmatpush3.bf16.msra.mxu0 %v1683_v40 }
  0x50   :  { %1524 = vmatprep.subr.bf16.mxu0 %v1686_v43 }
  0x51   :  { %1545 = vmatpush3.bf16.msra.mxu1 %v1685_v42 }
  0x52   :  { %1546 = vmatprep.subr.bf16.mxu1 %v1688_v44 }
  0x53   :  { %1525 = vmatpush3.bf16.msra.mxu0 %v1687_v45 }
  0x54   :  { %1526 = vmatprep.subr.bf16.mxu0 %v1690_v47 }
  0x55   :  { %1547 = vmatpush3.bf16.msra.mxu1 %v1689_v46 }
  0x56   :  { %1548 = vmatprep.subr.bf16.mxu1 %v1692_v48 }
  0x57   :  { %1527 = vmatpush3.bf16.msra.mxu0 %v1691_v49 }
  0x58   :  { %1528 = vmatprep.subr.bf16.mxu0 %v1694_v51 }
  0x59   :  { %1549 = vmatpush3.bf16.msra.mxu1 %v1693_v50 }
  0x5a   :  { %1550 = vmatprep.subr.bf16.mxu1 %v1696_v52 }
  0x5b   :  { %1529 = vmatpush3.bf16.msra.mxu0 %v1695_v54 }
  0x5c   :  { %1530 = vmatprep.subr.bf16.mxu0 %v1698_v58 }
  0x5d   :  { %1551 = vmatpush3.bf16.msra.mxu1 %v1697_v57 }
  0x5e   :  { %1552 = vmatprep.subr.bf16.mxu1 %v1700_v59 }
  0x5f   :  { %10 = vsyncpa [#allocation3], 0  ;;  %v109_v41 = vpack.c.bf16 %v71_v55, %v71_v55  ;;  %v111_v3 = vpack.c.bf16 %v78_v61, %v78_v61  ;;  %1531 = vmatpush3.bf16.msra.mxu0 %v1699_v62  ;;  %v1703_v4 = vld [vmem:[%s2128_s1 + $0x300] sm:$0xff]   ;;  %v1738_v5 = vmov 0.0   ;;  %v1704_v6 = vld [vmem:[%s2128_s1 + $0x308] sm:$0xff]   ;;  %vm1739_vm0 = vmmov 0  }
  0x60   :  { %1572 = vmatprep.subr.bf16.mxu0 %v1738_v5  ;;  %v1318_v7 = vld.sshfl [vmem:[%s2127_s0 + $0x18] sm:$0x3 pattern:$0x76325410]  ;;  %vm905_vm1 = vcmask 261120   ;;  %v1705_v9 = vld [vmem:[%s2130_s3] sm:$0xff]  }
  0x61   :  { %1553 = vmatpush3.bf16.msra.mxu1 %v1701_v63  ;;  %v113_v8 = vpack.c.bf16 %v1318_v7, %v1318_v7  ;;  %v1706_v10 = vld [vmem:[%s2130_s3 + $0x8] sm:$0xff]   ;;  %v1707_v11 = vld [vmem:[%s2130_s3 + $0x10] sm:$0xff]   ;;  %v1708_v12 = vld [vmem:[%s2130_s3 + $0x18] sm:$0xff]   ;;  %s1740_s13 = smov [#allocation2]   ;;  %vm1302_vm2 = vcmask 74752  }
  0x62   :  { %1580 = vmatprep.subr.bf16.mxu1 %v1738_v5  ;;  %1102 = vmatmul.mubr.bf16.vlgmr.msra.gmra.mrb[8].mxu0 %v109_v41  ;;  %v1709_v13 = vld [vmem:[%s2130_s3 + $0x20] sm:$0xff]   ;;  %v1710_v14 = vld [vmem:[%s2130_s3 + $0x28] sm:$0xff]   ;;  %v1711_v15 = vld [vmem:[%s2130_s3 + $0x30] sm:$0xff]   ;;  %s1310_s14 = sshll.u32 %s1740_s13, 4  ;;  %s1311_s14 = int_to_ptr.vmem [resolvable:$true] %s1310_s14 }
  0x63   :  { %1573 = vmatpush3.bf16.msra.mxu0 %v1703_v4  ;;  %1576 = vmatprep.mubr.msk.bf16.mxu0 %vm1739_vm0, %v1738_v5  ;;  %v1712_v16 = vld [vmem:[%s2130_s3 + $0x38] sm:$0xff]   ;;  %v1319_v19 = vld [vmem:[%s2129_s2] ss:$0 sm:$0xff]  ;;  %s1713_s15 = scalar_lea.vmem %s1311_s14, 32  ;;  %p1718_p1 = scmp.lt.s32.totalorder %s1311_s14, %s1311_s14 }
  0x64   :  { %1142 = vmatmul.mubr.bf16.vlgmr.msra.gmra.mrb[8].mxu1 %v111_v3  ;;  %1574 = vmatprep.subr.bf16.mxu0 %v1738_v5  ;;  %v1419_v62 = vld [vmem:[%s2131_s4] ss:$0 sm:$0xff]  ;;  %p1714_p0 = scmp.ne.s32.totalorder %s1311_s14, %s1713_s15  ;;  %p1719_p2 = scmp.lt.s32.totalorder %s1713_s15, %s1713_s15 }
  0x65   :  { %1596 = vmatprep.mubr.msk.bf16.mxu1 %vm1739_vm0, %v1738_v5  ;;  %1581 = vmatpush3.bf16.msra.mxu1 %v1705_v9 }
  0x66   :  { %1582 = vmatprep.subr.bf16.mxu1 %v1738_v5  ;;  %p1720_p3 = por %p1719_p2, %p1718_p1 }
  0x67   :  { %1575 = vmatpush3.bf16.msra.mxu0 %v1704_v6 }
  0x68   :  { %p1721_p4 = pnand %p1720_p3, %p1714_p0 }
  0x69   :  { %1583 = vmatpush3.bf16.msra.mxu1 %v1706_v10 }
  0x6a   :  { %1577 = vmatmul.mubr.msk.bf16.vlgmr.msra.gmra.mrb[12].mxu0 %vm905_vm1, %v113_v8  ;;  %1584 = vmatprep.subr.bf16.mxu1 %v1738_v5 }
  0x6d   :  { %1585 = vmatpush3.bf16.msra.mxu1 %v1707_v11 }
  0x6e   :  { %1586 = vmatprep.subr.bf16.mxu1 %v1738_v5 }
  0x71   :  { %1587 = vmatpush3.bf16.msra.mxu1 %v1708_v12 }
  0x72   :  { %1588 = vmatprep.subr.bf16.mxu1 %v1738_v5 }
  0x75   :  { %1589 = vmatpush3.bf16.msra.mxu1 %v1709_v13 }
  0x76   :  { %1590 = vmatprep.subr.bf16.mxu1 %v1738_v5 }
  0x79   :  { %1591 = vmatpush3.bf16.msra.mxu1 %v1710_v14 }
  0x7a   :  { %1592 = vmatprep.subr.bf16.mxu1 %v1738_v5 }
  0x7d   :  { %1593 = vmatpush3.bf16.msra.mxu1 %v1711_v15 }
  0x7e   :  { %1594 = vmatprep.subr.bf16.mxu1 %v1738_v5 }
  0x81   :  { %1595 = vmatpush3.bf16.msra.mxu1 %v1712_v16 }
  0xf5   :  { %v1444_v17 = vpop.f32.mrb[0].mxu0 }
  0xf6   :  { %v1445_v20 = vpop.f32.mrb[1].mxu0 }
  0xf7   :  { %v1466_v18 = vpop.f32.mrb[0].mxu1  ;;  %v1446_v22 = vadd.f32 %v1445_v20, %v1444_v17  ;;  %v1447_v23 = vpop.f32.mrb[2].mxu0 }
  0xf8   :  { %v1467_v21 = vpop.f32.mrb[1].mxu1  ;;  %v1448_v26 = vpop.f32.mrb[3].mxu0 }
  0xf9   :  { %v1468_v24 = vadd.f32 %v1467_v21, %v1466_v18  ;;  %v1469_v25 = vpop.f32.mrb[2].mxu1  ;;  %v944_v28 = vadd.f32 %v1446_v22, %v1319_v19 }
  0xfa   :  { %v1470_v27 = vpop.f32.mrb[3].mxu1 }
  0xfb   :  { %v984_v29 = vadd.f32 %v1468_v24, %v944_v28 }
 0x115   :  { %v1488_v30 = vpop.f32.mrb[4].mxu0 }
 0x116   :  { %v1489_v32 = vpop.f32.mrb[5].mxu0 }
 0x117   :  { %v1510_v31 = vpop.f32.mrb[4].mxu1  ;;  %v1490_v34 = vadd.f32 %v1489_v32, %v1488_v30  ;;  %v1491_v35 = vpop.f32.mrb[6].mxu0 }
 0x118   :  { %v1511_v33 = vpop.f32.mrb[5].mxu1  ;;  %v1492_v38 = vpop.f32.mrb[7].mxu0 }
 0x119   :  { %v1512_v36 = vadd.f32 %v1511_v33, %v1510_v31  ;;  %v1513_v37 = vpop.f32.mrb[6].mxu1  ;;  %v1024_v40 = vadd.f32 %v1490_v34, %v984_v29 }
 0x11a   :  { %v1514_v39 = vpop.f32.mrb[7].mxu1 }
 0x11b   :  { %v1064_v42 = vadd.f32 %v1512_v36, %v1024_v40 }
 0x135   :  { %v1532_v43 = vpop.f32.mrb[8].mxu0 }
 0x136   :  { %v1533_v45 = vpop.f32.mrb[9].mxu0 }
 0x137   :  { %v1554_v44 = vpop.f32.mrb[8].mxu1  ;;  %v1534_v47 = vadd.f32 %v1533_v45, %v1532_v43  ;;  %v1535_v48 = vpop.f32.mrb[10].mxu0 }
 0x138   :  { %v1555_v46 = vpop.f32.mrb[9].mxu1  ;;  %v1536_v51 = vpop.f32.mrb[11].mxu0 }
 0x139   :  { %v1556_v49 = vadd.f32 %v1555_v46, %v1554_v44  ;;  %v1557_v50 = vpop.f32.mrb[10].mxu1  ;;  %v1104_v53 = vadd.f32 %v1534_v47, %v1064_v42 }
 0x13a   :  { %v1558_v52 = vpop.f32.mrb[11].mxu1 }
 0x13b   :  { %v1144_v54 = vadd.f32 %v1556_v49, %v1104_v53 }
 0x13d   :  { %v1183_v55 = vpop.f32.mrb[12].mxu0 }
 0x13e   :  { %v1184_v56 = vadd.f32 %v1183_v55, %v1144_v54  ;;  %v1578_v57 = vpop.f32.mrb[13].mxu0 }
 0x13f   :  { %v1186_v58 = vpop.f32.mrb[14].mxu0 }
 0x140   :  { %v1189_v59 = vmax.f32 %v1184_v56, 0.0  ;;  %v1579_v60 = vpop.f32.mrb[15].mxu0 }
 0x142   :  { %v1190_v61 = vpack.c.bf16 %v1189_v59, %v1189_v59 }
 0x144   :  { %1597 = vmatmul.mubr.bf16.vlgmr.msra.gmra.mrb[12].mxu1 %v1190_v61 }
 0x217   :  { %v1296_v63 = vpop.f32.mrb[12].mxu1 }
 0x218   :  { %v1297_v0 = vadd.f32 %v1419_v62, %v1296_v63  ;;  %v1598_v1 = vpop.f32.mrb[13].mxu1 }
 0x219   :  { %v1299_v2 = vpop.f32.mrb[14].mxu1 }
 0x21a   :  { %v1599_v41 = vpop.f32.mrb[15].mxu1  ;;  %1303 = vst.msk [vmem:[#allocation2] sm:$0x3] %vm1302_vm2, %v1297_v0 }
 0x21b   :  { %1724 = shalt.err (!%p1721_p4)
}
 0x21c   :  { %s1725_s4 = scalar_lea.hbm %s2132_s5, 32 }
 0x21d   :  { %p1726_p5 = scmp.ne.s32.totalorder %s2132_s5, %s1725_s4  ;;  %p1729_p6 = scmp.lt.u32.totalorder %s1725_s4, %s2132_s5 }
 0x21f   :  { %p1731_p7 = pnand %p1729_p6, %p1726_p5 }
 0x221   :  { %1734 = shalt.err (!%p1731_p7)
}
 0x222   :  { %1313 = dma.vmem_to_hbm [thread:$0]  %s1311_s14, 32, %s2132_s5, [#allocation3]  }
 0x223   :  { %1735 = dma.done.wait [#allocation3], 32  }
 0x224   :  { %1736 = vsyncadd [#allocation3], 4294967264 }
 0x225   :  { %1317 = vsyncpa [#allocation3], 1 }

// kernel: cnn_forward.10
= control target key start
LH: loop header
LB: loop body
LE: loop exit
PB: predicated region body
PF: predicated region fallthrough
CT: control target
= control target key end

     0   :  { %v14_v0 = vlaneseq  ;;  %s4485_s16 = smov 16   ;;  %v4486_v14 = vmov 0   ;;  %s4487_s4 = smov 32   ;;  %s8169_s0 = inlined_call_operand.vmem [shape: f32[2,252,16], index: 0, kind: input, shape index: {}]   ;;  %s8170_s1 = inlined_call_operand.vmem [shape: f32[144,32], index: 1, kind: input, shape index: {}]   ;;  %s8171_s2 = inlined_call_operand.vmem [shape: f32[1,32], index: 2, kind: input, shape index: {}]   ;;  %s8172_s3 = inlined_call_operand.vmem [shape: f32[2,196,32], index: 3, kind: output, shape index: {}]  }
   0x1   :  { %v694_v1 = vld [vmem:[%s8169_s0 + $0x1e] sm:$0xff]  ;;  %v692_v2 = vld [vmem:[%s8169_s0 + $0xe] sm:$0xff]  ;;  %v695_v4 = vld [vmem:[%s8169_s0 + $0x26] sm:$0xff]  ;;  %s4488_s13 = smov 48   ;;  %s4489_s17 = smov 64  }
   0x2   :  { %746 = vrot.lane.b32.xlu1 %v694_v1, %s4485_s16  ;;  %742 = vrot.lane.b32.xlu0 %v692_v2, %s4485_s16  ;;  %v4522_v3 = vshrl.u32 %v14_v0, 7  ;;  %v693_v5 = vld [vmem:[%s8169_s0 + $0x16] sm:$0xff]  ;;  %v696_v13 = vld [vmem:[%s8169_s0 + $0x2e] sm:$0xff]  ;;  %s4490_s20 = smov 80   ;;  %s4491_s5 = smov 96  }
   0x3   :  { %v697_v12 = vld [vmem:[%s8169_s0 + $0x36] sm:$0xff]  ;;  %v699_v26 = vld [vmem:[%s8169_s0 + $0x46] sm:$0xff]  ;;  %v698_v27 = vld [vmem:[%s8169_s0 + $0x3e] sm:$0xff]  ;;  %s4493_s14 = smov 112  }
   0x4   :  { %v4531_v6 = vmul.u32.u64.low 2454267026, %v4522_v3  ;;  %v4532_v7 = vmul.u32.u64.high 2454267026, %v4522_v3, %v4531_v6  ;;  %v17_v8 = vadd.s32 16, %v4522_v3  ;;  %v16_v9 = vadd.s32 8, %v4522_v3  ;;  %v701_v42 = vld [vmem:[%s8169_s0 + $0x56] sm:$0xff]  ;;  %v700_v43 = vld [vmem:[%s8169_s0 + $0x4e] sm:$0xff] }
   0x5   :  { %v4552_v18 = vadd.s32 32, %v4522_v3  ;;  %v4556_v20 = vadd.s32 24, %v4522_v3  ;;  %v4560_v22 = vadd.s32 48, %v4522_v3  ;;  %v4578_v31 = vadd.s32 40, %v4522_v3  ;;  %v844_v54 = vld [vmem:[%s8169_s0 + $0xf] sm:$0xff]  ;;  %v703_v56 = vld [vmem:[%s8169_s0 + $0x66] sm:$0xff] }
   0x6   :  { %748 = vrot.lane.b32.xlu1 %v695_v4, %s4485_s16  ;;  %744 = vrot.lane.b32.xlu0 %v693_v5, %s4485_s16  ;;  %vm46_vm0 = vc.u32 %v4531_v6, 2454267026  ;;  %v4538_v10 = vmul.u32.u64.low 2454267026, %v17_v8  ;;  %v4539_v11 = vmul.u32.u64.high 2454267026, %v17_v8, %v4538_v10  ;;  %v702_v57 = vld [vmem:[%s8169_s0 + $0x5e] sm:$0xff]  ;;  %v4628_v1 = vadd.s32 64, %v4522_v3 }
   0x7   :  { %v47_v15 = vsel %vm46_vm0, 1, %v4486_v14  ;;  %v4548_v16 = vmul.u32.u64.low 2454267026, %v16_v9  ;;  %v4549_v17 = vmul.u32.u64.high 2454267026, %v16_v9, %v4548_v16  ;;  %v846_v60 = vld [vmem:[%s8169_s0 + $0x1f] sm:$0xff]  ;;  %v4636_v6 = vadd.s32 56, %v4522_v3 }
   0x8   :  { %v48_v19 = vadd.s32 %v4532_v7, %v47_v15  ;;  %vm74_vm1 = vc.u32 %v4538_v10, 2454267026  ;;  %v4574_v29 = vmul.u32.u64.low 2454267026, %v4552_v18  ;;  %v4575_v30 = vmul.u32.u64.high 2454267026, %v4552_v18, %v4574_v29  ;;  %v705_v7 = vld [vmem:[%s8169_s0 + $0x76] sm:$0xff] }
   0x9   :  { %v75_v21 = vsel %vm74_vm1, 1, %v4486_v14  ;;  %vm60_vm2 = vc.u32 %v4548_v16, 2454267026  ;;  %v4581_v34 = vmul.u32.u64.low 2454267026, %v4556_v20  ;;  %v4582_v35 = vmul.u32.u64.high 2454267026, %v4556_v20, %v4581_v34 }
   0xa   :  { %752 = vrot.lane.b32.xlu1 %v697_v12, %s4485_s16  ;;  %750 = vrot.lane.b32.xlu0 %v696_v13, %s4485_s16  ;;  %v49_v23 = vshrl.u32 %v48_v19, 3  ;;  %v76_v24 = vadd.s32 %v4539_v11, %v75_v21  ;;  %v61_v25 = vsel %vm60_vm2, 1, %v4486_v14  ;;  %vm102_vm3 = vc.u32 %v4574_v29, 2454267026  ;;  %v707_v19 = vld [vmem:[%s8169_s0 + $0x86] sm:$0xff] }
   0xb   :  { %v62_v28 = vadd.s32 %v4549_v17, %v61_v25  ;;  %v4585_v37 = vmul.u32.u64.low 2454267026, %v4560_v22  ;;  %v4586_v38 = vmul.u32.u64.high 2454267026, %v4560_v22, %v4585_v37  ;;  %v103_v41 = vsel %vm102_vm3, 1, %v4486_v14 }
   0xc   :  { %v50_v32 = vmul.u32 14, %v49_v23  ;;  %v77_v33 = vshrl.u32 %v76_v24, 3  ;;  %vm88_vm4 = vc.u32 %v4581_v34, 2454267026  ;;  %v104_v45 = vadd.s32 %v4575_v30, %v103_v41  ;;  %v706_v23 = vld [vmem:[%s8169_s0 + $0x7e] sm:$0xff]  ;;  %v848_v30 = vld [vmem:[%s8169_s0 + $0x2f] sm:$0xff] }
   0xd   :  { %v63_v36 = vshrl.u32 %v62_v28, 3  ;;  %v89_v46 = vsel %vm88_vm4, 1, %v4486_v14  ;;  %vm130_vm5 = vc.u32 %v4585_v37, 2454267026  ;;  %v845_v24 = vld [vmem:[%s8169_s0 + $0x17] sm:$0xff] }
   0xe   :  { %756 = vrot.lane.b32.xlu1 %v699_v26, %s4485_s16  ;;  %754 = vrot.lane.b32.xlu0 %v698_v27, %s4485_s16  ;;  %v51_v39 = vsub.s32 %v4522_v3, %v50_v32  ;;  %v78_v40 = vmul.u32 14, %v77_v33  ;;  %v105_v50 = vshrl.u32 %v104_v45, 3  ;;  %v90_v51 = vadd.s32 %v4582_v35, %v89_v46  ;;  %v709_v37 = vld [vmem:[%s8169_s0 + $0x96] sm:$0xff] }
   0xf   :  { %v64_v44 = vmul.u32 14, %v63_v36  ;;  %v131_v52 = vsel %vm130_vm5, 1, %v4486_v14  ;;  %v4649_v11 = vmul.u32.u64.low 2454267026, %v4578_v31  ;;  %v4650_v12 = vmul.u32.u64.high 2454267026, %v4578_v31, %v4649_v11 }
  0x10   :  { %vm390_vm6 = vcmp.ne.s32.totalorder %v51_v39, 0  ;;  %vm415_vm7 = vcmp.lt.s32.totalorder %v51_v39, 0  ;;  %v465_v47 = vadd.s32 14, %v51_v39  ;;  %v79_v48 = vsub.s32 %v17_v8, %v78_v40  ;;  %v704_v8 = vld [vmem:[%s8169_s0 + $0x6e] sm:$0xff] }
  0x11   :  { %vm440_vm8 = vmand %vm415_vm7, %vm390_vm6  ;;  %v65_v49 = vsub.s32 %v16_v9, %v64_v44  ;;  %v106_v61 = vmul.u32 14, %v105_v50  ;;  %v91_v62 = vshrl.u32 %v90_v51, 3  ;;  %v132_v0 = vadd.s32 %v4586_v38, %v131_v52  ;;  %v708_v38 = vld [vmem:[%s8169_s0 + $0x8e] sm:$0xff] }
  0x12   :  { %760 = vrot.lane.b32.xlu1 %v701_v42, %s4485_s16  ;;  %758 = vrot.lane.b32.xlu0 %v700_v43, %s4485_s16  ;;  %v4604_v53 = vsel %vm440_vm8, %v465_v47, %v51_v39  ;;  %vm392_vm9 = vcmp.ne.s32.totalorder %v79_v48, 0  ;;  %vm417_vm10 = vcmp.lt.s32.totalorder %v79_v48, 0  ;;  %v467_v55 = vadd.s32 14, %v79_v48 }
  0x13   :  { %vm8202_vm11 = vcmp.lt.s32.totalorder %v4604_v53, 13  ;;  %vm442_vm12 = vmand %vm417_vm10, %vm392_vm9  ;;  %vm391_vm13 = vcmp.ne.s32.totalorder %v65_v49, 0  ;;  %vm416_vm14 = vcmp.lt.s32.totalorder %v65_v49, 0  ;;  %v466_v58 = vadd.s32 14, %v65_v49 }
  0x14   :  { %v4616_v59 = vsel %vm442_vm12, %v467_v55, %v79_v48  ;;  %vm441_vm15 = vmand %vm416_vm14, %vm391_vm13  ;;  %v4623_v63 = vsel %vm8202_vm11, %v844_v54, 0.0  ;;  %v107_v4 = vsub.s32 %v4552_v18, %v106_v61  ;;  %v92_v5 = vmul.u32 14, %v91_v62  ;;  %v711_v55 = vld [vmem:[%s8169_s0 + $0xa6] sm:$0xff] }
  0x15   :  { %vm8195_vm0 = vcmp.lt.s32.totalorder %v4616_v59, 13  ;;  %v4632_v2 = vsel %vm441_vm15, %v466_v58, %v65_v49  ;;  %v133_v10 = vshrl.u32 %v132_v0, 3  ;;  %vm116_vm4 = vc.u32 %v4649_v11, 2454267026  ;;  %v850_v49 = vld [vmem:[%s8169_s0 + $0x3f] sm:$0xff] }
  0x16   :  { %764 = vrot.lane.b32.xlu1 %v703_v56, %s4485_s16  ;;  %762 = vrot.lane.b32.xlu0 %v702_v57, %s4485_s16  ;;  %v4646_v9 = vsel %vm8195_vm0, %v846_v60, 0.0  ;;  %vm394_vm1 = vcmp.ne.s32.totalorder %v107_v4, 0  ;;  %vm419_vm2 = vcmp.lt.s32.totalorder %v107_v4, 0  ;;  %v469_v13 = vadd.s32 14, %v107_v4  ;;  %v710_v56 = vld [vmem:[%s8169_s0 + $0x9e] sm:$0xff] }
  0x17   :  { %v93_v15 = vsub.s32 %v4556_v20, %v92_v5  ;;  %vm444_vm3 = vmand %vm419_vm2, %vm394_vm1  ;;  %v134_v16 = vmul.u32 14, %v133_v10  ;;  %v4654_v17 = vmul.u32.u64.low 2454267026, %v4628_v1  ;;  %v4655_v18 = vmul.u32.u64.high 2454267026, %v4628_v1, %v4654_v17  ;;  %v712_v10 = vld [vmem:[%s8169_s0 + $0xae] sm:$0xff] }
  0x18   :  { %v4662_v21 = vsel %vm444_vm3, %v469_v13, %v107_v4  ;;  %vm8204_vm7 = vcmp.lt.s32.totalorder %v4632_v2, 13  ;;  %v117_v26 = vsel %vm116_vm4, 1, %v4486_v14  ;;  %v4693_v36 = vadd.s32 80, %v4522_v3 }
  0x19   :  { %vm393_vm5 = vcmp.ne.s32.totalorder %v93_v15, 0  ;;  %vm418_vm6 = vcmp.lt.s32.totalorder %v93_v15, 0  ;;  %v468_v20 = vadd.s32 14, %v93_v15  ;;  %v135_v25 = vsub.s32 %v4560_v22, %v134_v16  ;;  %v847_v22 = vld [vmem:[%s8169_s0 + $0x27] sm:$0xff] }
  0x1a   :  { %768 = vrot.lane.b32.xlu1 %v705_v7, %s4485_s16  ;;  %766 = vrot.lane.b32.xlu0 %v704_v8, %s4485_s16  ;;  %vm443_vm8 = vmand %vm418_vm6, %vm393_vm5  ;;  %vm158_vm9 = vc.u32 %v4654_v17, 2454267026  ;;  %vm8179_vm10 = vcmp.lt.s32.totalorder %v4662_v21, 13  ;;  %v118_v28 = vadd.s32 %v4650_v12, %v117_v26  ;;  %v4689_v33 = vsel %vm8204_vm7, %v845_v24, 0.0  ;;  %v849_v7 = vld [vmem:[%s8169_s0 + $0x37] sm:$0xff] }
  0x1b   :  { %v4674_v27 = vsel %vm443_vm8, %v468_v20, %v93_v15  ;;  %v159_v29 = vsel %vm158_vm9, 1, %v4486_v14  ;;  %vm396_vm13 = vcmp.ne.s32.totalorder %v135_v25, 0  ;;  %vm421_vm14 = vcmp.lt.s32.totalorder %v135_v25, 0  ;;  %v713_v8 = vld [vmem:[%s8169_s0 + $0xb6] sm:$0xff] }
  0x1c   :  { %vm8203_vm12 = vcmp.lt.s32.totalorder %v4674_v27, 13  ;;  %v471_v32 = vadd.s32 14, %v135_v25  ;;  %vm446_vm15 = vmand %vm421_vm14, %vm396_vm13  ;;  %v119_v34 = vshrl.u32 %v118_v28, 3  ;;  %v160_v35 = vadd.s32 %v4655_v18, %v159_v29 }
  0x1d   :  { %v4704_v40 = vmul.u32.u64.low 2454267026, %v4636_v6  ;;  %v4705_v41 = vmul.u32.u64.high 2454267026, %v4636_v6, %v4704_v40  ;;  %v4708_v42 = vadd.s32 72, %v4522_v3  ;;  %v4712_v43 = vsel %vm8179_vm10, %v848_v30, 0.0  ;;  %v852_v30 = vld [vmem:[%s8169_s0 + $0x4f] sm:$0xff] }
  0x1e   :  { %772 = vrot.lane.b32.xlu1 %v707_v19, %s4485_s16  ;;  %770 = vrot.lane.b32.xlu0 %v706_v23, %s4485_s16  ;;  %v4701_v39 = vsel %vm446_vm15, %v471_v32, %v135_v25  ;;  %v4716_v44 = vsel %vm8203_vm12, %v847_v22, 0.0  ;;  %v120_v45 = vmul.u32 14, %v119_v34  ;;  %v161_v46 = vshrl.u32 %v160_v35, 3  ;;  %v715_v25 = vld [vmem:[%s8169_s0 + $0xc6] sm:$0xff] }
  0x1f   :  { %vm8177_vm1 = vcmp.lt.s32.totalorder %v4701_v39, 13  ;;  %vm144_vm2 = vc.u32 %v4704_v40, 2454267026  ;;  %v4720_v47 = vmul.u32.u64.low 2454267026, %v4693_v36  ;;  %v4721_v48 = vmul.u32.u64.high 2454267026, %v4693_v36, %v4720_v47 }
  0x20   :  { %v121_v50 = vsub.s32 %v4578_v31, %v120_v45  ;;  %v162_v51 = vmul.u32 14, %v161_v46  ;;  %v145_v52 = vsel %vm144_vm2, 1, %v4486_v14  ;;  %v4731_v54 = vadd.s32 96, %v4522_v3 }
  0x21   :  { %v146_v57 = vadd.s32 %v4705_v41, %v145_v52  ;;  %vm186_vm3 = vc.u32 %v4720_v47, 2454267026  ;;  %v4741_v58 = vmul.u32.u64.low 2454267026, %v4708_v42  ;;  %v4742_v31 = vmul.u32.u64.high 2454267026, %v4708_v42, %v4741_v58 }
  0x22   :  { %776 = vrot.lane.b32.xlu1 %v709_v37, %s4485_s16  ;;  %774 = vrot.lane.b32.xlu0 %v708_v38, %s4485_s16  ;;  %vm395_vm4 = vcmp.ne.s32.totalorder %v121_v50, 0  ;;  %vm420_vm5 = vcmp.lt.s32.totalorder %v121_v50, 0  ;;  %v470_v60 = vadd.s32 14, %v121_v50  ;;  %v163_v61 = vsub.s32 %v4628_v1, %v162_v51 }
  0x23   :  { %v4747_v62 = vsel %vm8177_vm1, %v850_v49, 0.0  ;;  %vm445_vm6 = vmand %vm420_vm5, %vm395_vm4  ;;  %v147_v0 = vshrl.u32 %v146_v57, 3  ;;  %v187_v4 = vsel %vm186_vm3, 1, %v4486_v14  ;;  %vm172_vm8 = vc.u32 %v4741_v58, 2454267026 }
  0x24   :  { %v4752_v5 = vsel %vm445_vm6, %v470_v60, %v121_v50  ;;  %vm398_vm9 = vcmp.ne.s32.totalorder %v163_v61, 0  ;;  %vm423_vm13 = vcmp.lt.s32.totalorder %v163_v61, 0  ;;  %v473_v1 = vadd.s32 14, %v163_v61  ;;  %v851_v50 = vld [vmem:[%s8169_s0 + $0x47] sm:$0xff] }
  0x25   :  { %vm8197_vm14 = vcmp.lt.s32.totalorder %v4752_v5, 13  ;;  %vm448_vm15 = vmand %vm423_vm13, %vm398_vm9  ;;  %v148_v11 = vmul.u32 14, %v147_v0  ;;  %v188_v12 = vadd.s32 %v4721_v48, %v187_v4  ;;  %v173_v13 = vsel %vm172_vm8, 1, %v4486_v14 }
  0x26   :  { %780 = vrot.lane.b32.xlu1 %v711_v55, %s4485_s16  ;;  %778 = vrot.lane.b32.xlu0 %v710_v56, %s4485_s16  ;;  %v4766_v15 = vsel %vm448_vm15, %v473_v1, %v163_v61  ;;  %v174_v16 = vadd.s32 %v4742_v31, %v173_v13  ;;  %v4770_v17 = vadd.s32 88, %v4522_v3  ;;  %v4773_v18 = vadd.s32 112, %v4522_v3 }
  0x27   :  { %v4777_v19 = vsel %vm8197_vm14, %v849_v7, 0.0  ;;  %v149_v20 = vsub.s32 %v4636_v6, %v148_v11  ;;  %v189_v23 = vshrl.u32 %v188_v12, 3  ;;  %v4781_v24 = vadd.s32 104, %v4522_v3  ;;  %v714_v6 = vld [vmem:[%s8169_s0 + $0xbe] sm:$0xff] }
  0x28   :  { %vm8175_vm2 = vcmp.lt.s32.totalorder %v4766_v15, 13  ;;  %v175_v26 = vshrl.u32 %v174_v16, 3  ;;  %v4790_v28 = vmul.u32.u64.low 2454267026, %v4731_v54  ;;  %v4791_v29 = vmul.u32.u64.high 2454267026, %v4731_v54, %v4790_v28 }
  0x29   :  { %vm397_vm3 = vcmp.ne.s32.totalorder %v149_v20, 0  ;;  %vm422_vm4 = vcmp.lt.s32.totalorder %v149_v20, 0  ;;  %v472_v22 = vadd.s32 14, %v149_v20  ;;  %v190_v32 = vmul.u32 14, %v189_v23 }
  0x2a   :  { %784 = vrot.lane.b32.xlu1 %v713_v8, %s4485_s16  ;;  %782 = vrot.lane.b32.xlu0 %v712_v10, %s4485_s16  ;;  %vm447_vm5 = vmand %vm422_vm4, %vm397_vm3  ;;  %v176_v34 = vmul.u32 14, %v175_v26  ;;  %vm214_vm6 = vc.u32 %v4790_v28, 2454267026  ;;  %v4800_v35 = vmul.u32.u64.low 2454267026, %v4770_v17  ;;  %v4801_v37 = vmul.u32.u64.high 2454267026, %v4770_v17, %v4800_v35  ;;  %v853_v10 = vld [vmem:[%s8169_s0 + $0x57] sm:$0xff] }
  0x2b   :  { %v4803_v38 = vsel %vm447_vm5, %v472_v22, %v149_v20  ;;  %v191_v40 = vsub.s32 %v4693_v36, %v190_v32  ;;  %v215_v41 = vsel %vm214_vm6, 1, %v4486_v14  ;;  %v4808_v45 = vadd.s32 128, %v4522_v3  ;;  %v716_v36 = vld [vmem:[%s8169_s0 + $0xce] sm:$0xf] }
  0x2c   :  { %v4814_v46 = vsel %vm8175_vm2, %v852_v30, 0.0  ;;  %v177_v47 = vsub.s32 %v4708_v42, %v176_v34  ;;  %v216_v48 = vadd.s32 %v4791_v29, %v215_v41  ;;  %vm200_vm8 = vc.u32 %v4800_v35, 2454267026  ;;  %v854_v42 = vld [vmem:[%s8169_s0 + $0x5f] sm:$0xff] }
  0x2d   :  { %vm8192_vm9 = vcmp.lt.s32.totalorder %v4803_v38, 13  ;;  %vm400_vm13 = vcmp.ne.s32.totalorder %v191_v40, 0  ;;  %vm425_vm15 = vcmp.lt.s32.totalorder %v191_v40, 0  ;;  %v475_v49 = vadd.s32 14, %v191_v40 }
  0x2e   :  { %788 = vrot.lane.b32.xlu1 %v715_v25, %s4485_s16  ;;  %786 = vrot.lane.b32.xlu0 %v714_v6, %s4485_s16  ;;  %vm450_vm3 = vmand %vm425_vm15, %vm400_vm13  ;;  %vm399_vm4 = vcmp.ne.s32.totalorder %v177_v47, 0  ;;  %vm424_vm5 = vcmp.lt.s32.totalorder %v177_v47, 0  ;;  %v474_v51 = vadd.s32 14, %v177_v47  ;;  %v217_v52 = vshrl.u32 %v216_v48, 3 }
  0x2f   :  { %v4828_v55 = vsel %vm450_vm3, %v475_v49, %v191_v40  ;;  %vm449_vm6 = vmand %vm424_vm5, %vm399_vm4  ;;  %v201_v56 = vsel %vm200_vm8, 1, %v4486_v14  ;;  %v4833_v57 = vmul.u32.u64.low 2454267026, %v4773_v18  ;;  %v4834_v58 = vmul.u32.u64.high 2454267026, %v4773_v18, %v4833_v57 }
  0x30   :  { %vm8174_vm13 = vcmp.lt.s32.totalorder %v4828_v55, 13  ;;  %v4840_v31 = vsel %vm449_vm6, %v474_v51, %v177_v47  ;;  %v218_v60 = vmul.u32 14, %v217_v52  ;;  %v202_v61 = vadd.s32 %v4801_v37, %v201_v56 }
  0x31   :  { %v4845_v0 = vsel %vm8192_vm9, %v851_v50, 0.0  ;;  %v4849_v4 = vsel %vm8174_vm13, %v854_v42, 0.0  ;;  %vm242_vm8 = vc.u32 %v4833_v57, 2454267026  ;;  %vm8178_vm15 = vcmp.lt.s32.totalorder %v4840_v31, 13 }
  0x32   :  { %969 = vrot.lane.b32.xlu1 %v4623_v63, %s4487_s4  ;;  %790 = vrot.lane.b32.xlu0 %v716_v36, %s4485_s16  ;;  %v4852_v63 = vadd.s32 120, %v4522_v3  ;;  %v219_v7 = vsub.s32 %v4731_v54, %v218_v60  ;;  %v203_v1 = vshrl.u32 %v202_v61, 3  ;;  %v243_v8 = vsel %vm242_vm8, 1, %v4486_v14  ;;  %v855_v36 = vld [vmem:[%s8169_s0 + $0x67] sm:$0xff] }
  0x33   :  { %v244_v11 = vadd.s32 %v4834_v58, %v243_v8  ;;  %v4862_v12 = vmul.u32.u64.low 2454267026, %v4781_v24  ;;  %v4863_v13 = vmul.u32.u64.high 2454267026, %v4781_v24, %v4862_v12  ;;  %v4866_v16 = vadd.s32 144, %v4522_v3  ;;  %v858_v8 = vld [vmem:[%s8169_s0 + $0x7f] sm:$0xff] }
  0x34   :  { %vm402_vm3 = vcmp.ne.s32.totalorder %v219_v7, 0  ;;  %vm427_vm4 = vcmp.lt.s32.totalorder %v219_v7, 0  ;;  %v477_v54 = vadd.s32 14, %v219_v7  ;;  %v204_v20 = vmul.u32 14, %v203_v1 }
  0x35   :  { %vm452_vm5 = vmand %vm427_vm4, %vm402_vm3  ;;  %v245_v23 = vshrl.u32 %v244_v11, 3  ;;  %vm228_vm6 = vc.u32 %v4862_v12, 2454267026  ;;  %v4873_v25 = vmul.u32.u64.low 2454267026, %v4808_v45  ;;  %v4874_v26 = vmul.u32.u64.high 2454267026, %v4808_v45, %v4873_v25 }
  0x36   :  { %973 = vrot.lane.b32.xlu1 %v4646_v9, %s4487_s4  ;;  %971 = vrot.lane.b32.xlu0 %v4689_v33, %s4487_s4  ;;  %v4878_v28 = vsel %vm8178_vm15, %v853_v10, 0.0  ;;  %v4880_v29 = vsel %vm452_vm5, %v477_v54, %v219_v7  ;;  %v205_v9 = vsub.s32 %v4770_v17, %v204_v20  ;;  %v229_v33 = vsel %vm228_vm6, 1, %v4486_v14  ;;  %v856_v17 = vld [vmem:[%s8169_s0 + $0x6f] sm:$0xff] }
  0x37   :  { %v246_v6 = vmul.u32 14, %v245_v23  ;;  %v230_v30 = vadd.s32 %v4863_v13, %v229_v33  ;;  %vm270_vm8 = vc.u32 %v4873_v25, 2454267026  ;;  %v4886_v22 = vadd.s32 136, %v4522_v3 }
  0x38   :  { %vm8173_vm3 = vcmp.lt.s32.totalorder %v4880_v29, 13  ;;  %vm401_vm4 = vcmp.ne.s32.totalorder %v205_v9, 0  ;;  %vm426_vm5 = vcmp.lt.s32.totalorder %v205_v9, 0  ;;  %v476_v32 = vadd.s32 14, %v205_v9 }
  0x39   :  { %vm451_vm6 = vmand %vm426_vm5, %vm401_vm4  ;;  %v247_v34 = vsub.s32 %v4773_v18, %v246_v6  ;;  %v231_v35 = vshrl.u32 %v230_v30, 3  ;;  %v271_v37 = vsel %vm270_vm8, 1, %v4486_v14  ;;  %v4910_v48 = vsel %vm8173_vm3, %v856_v17, 0.0 }
  0x3a   :  { %977 = vrot.lane.b32.xlu1 %v4712_v43, %s4487_s4  ;;  %975 = vrot.lane.b32.xlu0 %v4716_v44, %s4487_s4  ;;  %v4899_v43 = vadd.s32 160, %v4522_v3  ;;  %v4901_v40 = vsel %vm451_vm6, %v476_v32, %v205_v9  ;;  %v272_v44 = vadd.s32 %v4874_v26, %v271_v37  ;;  %v4966_v26 = vadd.s32 176, %v4522_v3 }
  0x3b   :  { %v4905_v41 = vmul.u32.u64.low 2454267026, %v4852_v63  ;;  %v4906_v47 = vmul.u32.u64.high 2454267026, %v4852_v63, %v4905_v41  ;;  %vm404_vm4 = vcmp.ne.s32.totalorder %v247_v34, 0  ;;  %vm429_vm5 = vcmp.lt.s32.totalorder %v247_v34, 0 }
  0x3c   :  { %v479_v18 = vadd.s32 14, %v247_v34  ;;  %vm8176_vm8 = vcmp.lt.s32.totalorder %v4901_v40, 13  ;;  %vm454_vm6 = vmand %vm429_vm5, %vm404_vm4  ;;  %v232_v49 = vmul.u32 14, %v231_v35  ;;  %v273_v50 = vshrl.u32 %v272_v44, 3 }
  0x3d   :  { %vm256_vm3 = vc.u32 %v4905_v41, 2454267026  ;;  %v4922_v51 = vmul.u32.u64.low 2454267026, %v4866_v16  ;;  %v4923_v52 = vmul.u32.u64.high 2454267026, %v4866_v16, %v4922_v51  ;;  %v930_v60 = vsel %vm8176_vm8, %v855_v36, 0.0 }
  0x3e   :  { %981 = vrot.lane.b32.xlu1 %v4747_v62, %s4487_s4  ;;  %979 = vrot.lane.b32.xlu0 %v4777_v19, %s4487_s4  ;;  %v257_v42 = vsel %vm256_vm3, 1, %v4486_v14  ;;  %v4926_v62 = vadd.s32 152, %v4522_v3  ;;  %v4928_v19 = vsel %vm454_vm6, %v479_v18, %v247_v34  ;;  %v233_v56 = vsub.s32 %v4781_v24, %v232_v49 }
  0x3f   :  { %v274_v57 = vmul.u32 14, %v273_v50  ;;  %v258_v58 = vadd.s32 %v4906_v47, %v257_v42  ;;  %vm298_vm4 = vc.u32 %v4922_v51, 2454267026  ;;  %vm8185_vm6 = vcmp.lt.s32.totalorder %v4928_v19, 13 }
  0x40   :  { %v4935_v61 = vmul.u32.u64.low 2454267026, %v4886_v22  ;;  %v4936_v7 = vmul.u32.u64.high 2454267026, %v4886_v22, %v4935_v61  ;;  %vm403_vm3 = vcmp.ne.s32.totalorder %v233_v56, 0  ;;  %vm428_vm5 = vcmp.lt.s32.totalorder %v233_v56, 0 }
  0x41   :  { %v478_v24 = vadd.s32 14, %v233_v56  ;;  %v275_v1 = vsub.s32 %v4808_v45, %v274_v57  ;;  %vm453_vm13 = vmand %vm428_vm5, %vm403_vm3  ;;  %v259_v10 = vshrl.u32 %v258_v58, 3  ;;  %v299_v11 = vsel %vm298_vm4, 1, %v4486_v14 }
  0x42   :  { %985 = vrot.lane.b32.xlu1 %v4814_v46, %s4487_s4  ;;  %983 = vrot.lane.b32.xlu0 %v4845_v0, %s4487_s4  ;;  %vm284_vm2 = vc.u32 %v4935_v61, 2454267026  ;;  %v857_v0 = vld [vmem:[%s8169_s0 + $0x77] sm:$0xff]  ;;  %v300_v13 = vadd.s32 %v4923_v52, %v299_v11  ;;  %v933_v20 = vsel %vm8185_vm6, %v858_v8, 0.0  ;;  %v5025_v8 = vadd.s32 192, %v4522_v3 }
  0x43   :  { %v4948_v46 = vsel %vm453_vm13, %v478_v24, %v233_v56  ;;  %vm406_vm8 = vcmp.ne.s32.totalorder %v275_v1, 0  ;;  %vm431_vm1 = vcmp.lt.s32.totalorder %v275_v1, 0  ;;  %v481_v45 = vadd.s32 14, %v275_v1 }
  0x44   :  { %vm8191_vm15 = vcmp.lt.s32.totalorder %v4948_v46, 13  ;;  %vm456_vm10 = vmand %vm431_vm1, %vm406_vm8  ;;  %v260_v12 = vmul.u32 14, %v259_v10  ;;  %v285_v54 = vsel %vm284_vm2, 1, %v4486_v14  ;;  %v301_v6 = vshrl.u32 %v300_v13, 3 }
  0x45   :  { %v4962_v23 = vsel %vm456_vm10, %v481_v45, %v275_v1  ;;  %v286_v25 = vadd.s32 %v4936_v7, %v285_v54  ;;  %v932_v9 = vsel %vm8191_vm15, %v857_v0, 0.0  ;;  %v861_v7 = vld [vmem:[%s8169_s0 + $0x97] sm:$0xff]  ;;  %vm8190_vm6 = vcmp.gt.s32.totalorder %v4632_v2, 0 }
  0x46   :  { %989 = vrot.lane.b32.xlu1 %v4849_v4, %s4487_s4  ;;  %987 = vrot.lane.b32.xlu0 %v4878_v28, %s4487_s4  ;;  %v261_v33 = vsub.s32 %v4852_v63, %v260_v12  ;;  %v4972_v4 = vadd.s32 168, %v4522_v3  ;;  %vm8180_vm1 = vcmp.lt.s32.totalorder %v4962_v23, 13  ;;  %v860_v28 = vld [vmem:[%s8169_s0 + $0x8f] sm:$0xff]  ;;  %v302_v35 = vmul.u32 14, %v301_v6  ;;  %v859_v63 = vld [vmem:[%s8169_s0 + $0x87] sm:$0xff] }
  0x47   :  { %v287_v30 = vshrl.u32 %v286_v25, 3  ;;  %v4979_v17 = vmul.u32.u64.low 2454267026, %v4899_v43  ;;  %v4980_v32 = vmul.u32.u64.high 2454267026, %v4899_v43, %v4979_v17  ;;  %v935_v47 = vsel %vm8180_vm1, %v860_v28, 0.0 }
  0x48   :  { %vm405_vm10 = vcmp.ne.s32.totalorder %v261_v33, 0  ;;  %vm430_vm2 = vcmp.lt.s32.totalorder %v261_v33, 0  ;;  %v480_v34 = vadd.s32 14, %v261_v33  ;;  %vm521_vm15 = vcmp.gt.s32.totalorder %v4701_v39, 0 }
  0x49   :  { %vm455_vm13 = vmand %vm430_vm2, %vm405_vm10  ;;  %v288_v37 = vmul.u32 14, %v287_v30  ;;  %vm326_vm8 = vc.u32 %v4979_v17, 2454267026  ;;  %v4989_v44 = vmul.u32.u64.low 2454267026, %v4926_v62  ;;  %v4990_v41 = vmul.u32.u64.high 2454267026, %v4926_v62, %v4989_v44 }
  0x4a   :  { %993 = vrot.lane.b32.xlu1 %v4910_v48, %s4487_s4  ;;  %991 = vrot.lane.b32.xlu0 %v930_v60, %s4487_s4  ;;  %v4994_v18 = vsel %vm455_vm13, %v480_v34, %v261_v33  ;;  %v303_v48 = vsub.s32 %v4866_v16, %v302_v35  ;;  %v327_v36 = vsel %vm326_vm8, 1, %v4486_v14  ;;  %v5054_v34 = vadd.s32 184, %v4522_v3 }
  0x4b   :  { %vm8189_vm4 = vcmp.lt.s32.totalorder %v4994_v18, 13  ;;  %v289_v49 = vsub.s32 %v4886_v22, %v288_v37  ;;  %v328_v50 = vadd.s32 %v4980_v32, %v327_v36  ;;  %vm312_vm3 = vc.u32 %v4989_v44, 2454267026  ;;  %v862_v22 = vld [vmem:[%s8169_s0 + $0x9f] sm:$0xff] }
  0x4c   :  { %v934_v42 = vsel %vm8189_vm4, %v859_v63, 0.0  ;;  %vm408_vm5 = vcmp.ne.s32.totalorder %v303_v48, 0  ;;  %vm433_vm10 = vcmp.lt.s32.totalorder %v303_v48, 0  ;;  %v483_v51 = vadd.s32 14, %v303_v48 }
  0x4d   :  { %vm458_vm2 = vmand %vm433_vm10, %vm408_vm5  ;;  %vm407_vm13 = vcmp.ne.s32.totalorder %v289_v49, 0  ;;  %vm432_vm8 = vcmp.lt.s32.totalorder %v289_v49, 0  ;;  %v482_v16 = vadd.s32 14, %v289_v49  ;;  %v329_v52 = vshrl.u32 %v328_v50, 3 }
  0x4e   :  { %997 = vrot.lane.b32.xlu1 %v933_v20, %s4487_s4  ;;  %995 = vrot.lane.b32.xlu0 %v932_v9, %s4487_s4  ;;  %v5005_v56 = vsel %vm458_vm2, %v483_v51, %v303_v48  ;;  %vm457_vm1 = vmand %vm432_vm8, %vm407_vm13  ;;  %v313_v57 = vsel %vm312_vm3, 1, %v4486_v14  ;;  %v5013_v58 = vmul.u32.u64.low 2454267026, %v4966_v26  ;;  %v5014_v60 = vmul.u32.u64.high 2454267026, %v4966_v26, %v5013_v58  ;;  %v866_v51 = vld [vmem:[%s8169_s0 + $0xbf] sm:$0xff] }
  0x4f   :  { %vm8181_vm5 = vcmp.lt.s32.totalorder %v5005_v56, 13  ;;  %v5017_v61 = vsel %vm457_vm1, %v482_v16, %v289_v49  ;;  %v330_v24 = vmul.u32 14, %v329_v52  ;;  %v314_v1 = vadd.s32 %v4990_v41, %v313_v57 }
  0x50   :  { %vm8186_vm10 = vcmp.lt.s32.totalorder %v5017_v61, 13  ;;  %vm354_vm2 = vc.u32 %v5013_v58, 2454267026  ;;  %v937_v10 = vsel %vm8181_vm5, %v862_v22, 0.0  ;;  %vm8198_vm4 = vcmp.gt.s32.totalorder %v4752_v5, 0 }
  0x51   :  { %v331_v11 = vsub.s32 %v4899_v43, %v330_v24  ;;  %v315_v0 = vshrl.u32 %v314_v1, 3  ;;  %v355_v45 = vsel %vm354_vm2, 1, %v4486_v14  ;;  %v936_v12 = vsel %vm8186_vm10, %v861_v7, 0.0  ;;  %v864_v43 = vld [vmem:[%s8169_s0 + $0xaf] sm:$0xff] }
  0x52   :  { %1001 = vrot.lane.b32.xlu1 %v935_v47, %s4487_s4  ;;  %999 = vrot.lane.b32.xlu0 %v934_v42, %s4487_s4  ;;  %v356_v13 = vadd.s32 %v5014_v60, %v355_v45  ;;  %v5037_v54 = vmul.u32.u64.low 2454267026, %v4972_v4  ;;  %v5038_v20 = vmul.u32.u64.high 2454267026, %v4972_v4, %v5037_v54  ;;  %vm8196_vm10 = vcmp.gt.s32.totalorder %v4604_v53, 0 }
  0x53   :  { %vm410_vm1 = vcmp.ne.s32.totalorder %v331_v11, 0  ;;  %vm435_vm3 = vcmp.lt.s32.totalorder %v331_v11, 0  ;;  %v485_v25 = vadd.s32 14, %v331_v11  ;;  %v316_v9 = vmul.u32 14, %v315_v0 }
  0x54   :  { %vm460_vm13 = vmand %vm435_vm3, %vm410_vm1  ;;  %v357_v33 = vshrl.u32 %v356_v13, 3  ;;  %vm340_vm8 = vc.u32 %v5037_v54, 2454267026  ;;  %v5044_v6 = vmul.u32.u64.low 2454267026, %v5025_v8  ;;  %v5045_v28 = vmul.u32.u64.high 2454267026, %v5025_v8, %v5044_v6  ;;  %v5112_v54 = vld [vmem:[%s8169_s0 + $0x25] sm:$0xff] }
  0x55   :  { %v5049_v30 = vsel %vm460_vm13, %v485_v25, %v331_v11  ;;  %v317_v17 = vsub.s32 %v4926_v62, %v316_v9  ;;  %v341_v32 = vsel %vm340_vm8, 1, %v4486_v14  ;;  %v863_v62 = vld [vmem:[%s8169_s0 + $0xa7] sm:$0xff]  ;;  %vm524_vm9 = vcmp.gt.s32.totalorder %v4840_v31, 0 }
  0x56   :  { %1005 = vrot.lane.b32.xlu1 %v937_v10, %s4487_s4  ;;  %1003 = vrot.lane.b32.xlu0 %v936_v12, %s4487_s4  ;;  %vm8182_vm2 = vcmp.lt.s32.totalorder %v5049_v30, 13  ;;  %v358_v35 = vmul.u32 14, %v357_v33  ;;  %v342_v63 = vadd.s32 %v5038_v20, %v341_v32  ;;  %vm382_vm1 = vc.u32 %v5044_v6, 2454267026  ;;  %v565_v12 = vld [vmem:[%s8169_s0 + $0xd] sm:$0xff]  ;;  %v1072_v33 = vld [vmem:[%s8169_s0 + $0x23] sm:$0xff] }
  0x57   :  { %v939_v37 = vsel %vm8182_vm2, %v864_v43, 0.0  ;;  %vm409_vm3 = vcmp.ne.s32.totalorder %v317_v17, 0  ;;  %vm434_vm5 = vcmp.lt.s32.totalorder %v317_v17, 0  ;;  %v484_v44 = vadd.s32 14, %v317_v17 }
  0x58   :  { %vm459_vm13 = vmand %vm434_vm5, %vm409_vm3  ;;  %v359_v3 = vsub.s32 %v4966_v26, %v358_v35  ;;  %v343_v41 = vshrl.u32 %v342_v63, 3  ;;  %v383_v47 = vsel %vm382_vm1, 1, %v4486_v14  ;;  %v640_v6 = vsel %vm8196_vm10, %v565_v12, 0.0  ;;  %v5151_v63 = vld [vmem:[%s8169_s0 + $0x2d] sm:$0xff] }
  0x59   :  { %v5066_v48 = vsel %vm459_vm13, %v484_v44, %v317_v17  ;;  %v384_v36 = vadd.s32 %v5045_v28, %v383_v47  ;;  %v5070_v49 = vmul.u32.u64.low 2454267026, %v5054_v34  ;;  %v5071_v50 = vmul.u32.u64.high 2454267026, %v5054_v34, %v5070_v49  ;;  %v566_v28 = vld [vmem:[%s8169_s0 + $0x15] sm:$0xff]  ;;  %v5256_v12 = vld [vmem:[%s8169_s0 + $0x6d] sm:$0xff] }
  0x5a   :  { %1009 = vrot.lane.b32.xlu1 %v939_v37, %s4487_s4  ;;  %vm8184_vm5 = vcmp.lt.s32.totalorder %v5066_v48, 13  ;;  %vm412_vm8 = vcmp.ne.s32.totalorder %v359_v3, 0  ;;  %vm437_vm3 = vcmp.lt.s32.totalorder %v359_v3, 0  ;;  %v487_v42 = vadd.s32 14, %v359_v3  ;;  %v867_v37 = vld [vmem:[%s8169_s0 + $0xc7] sm:$0xff]  ;;  %v1074_v47 = vld [vmem:[%s8169_s0 + $0x33] sm:$0xff] }
  0x5b   :  { %v938_v26 = vsel %vm8184_vm5, %v863_v62, 0.0  ;;  %vm462_vm2 = vmand %vm437_vm3, %vm412_vm8  ;;  %v344_v16 = vmul.u32 14, %v343_v41  ;;  %v385_v52 = vshrl.u32 %v384_v36, 3  ;;  %vm368_vm1 = vc.u32 %v5070_v49, 2454267026  ;;  %v5179_v49 = vld [vmem:[%s8169_s0 + $0x3d] sm:$0xff] }
  0x5c   :  { %1007 = vrot.lane.b32.xlu0 %v938_v26, %s4487_s4  ;;  %v5080_v22 = vsel %vm462_vm2, %v487_v42, %v359_v3  ;;  %v369_v57 = vsel %vm368_vm1, 1, %v4486_v14  ;;  %v865_v14 = vld [vmem:[%s8169_s0 + $0xb7] sm:$0xff]  ;;  %vm8211_vm1 = vcmask 130048   ;;  %v1097_v44 = vsel %vm8190_vm6, %v1072_v33, 0.0  ;;  %v5164_v3 = vld [vmem:[%s8169_s0 + $0x45] sm:$0xff] }
  0x5d   :  { %vm8183_vm13 = vcmp.lt.s32.totalorder %v5080_v22, 13  ;;  %v345_v58 = vsub.s32 %v4972_v4, %v344_v16  ;;  %v386_v60 = vmul.u32 14, %v385_v52  ;;  %v370_v7 = vadd.s32 %v5071_v50, %v369_v57  ;;  %v5096_v4 = vld [vmem:[%s8169_s0 + $0x1d] sm:$0xff]  ;;  %666 = vst.msk [vmem:[#allocation2] sm:$0xff] %vm8211_vm1, %v640_v6  ;;  %v5184_v50 = vld [vmem:[%s8169_s0 + $0x55] sm:$0xff]  ;;  %v1073_v26 = vld [vmem:[%s8169_s0 + $0x2b] sm:$0xff] }
  0x5e   :  { %v941_v24 = vsel %vm8183_vm13, %v866_v51, 0.0  ;;  %v641_v62 = vsel %vm8190_vm6, %v566_v28, 0.0  ;;  %v1071_v42 = vld [vmem:[%s8169_s0 + $0x1b] sm:$0xff]  ;;  %vm8213_vm6 = vcmask 261248   ;;  %v5201_v16 = vld [vmem:[%s8169_s0 + $0x4d] sm:$0xff]  ;;  %vm525_vm0 = vcmp.gt.s32.totalorder %v4828_v55, 0 }
  0x5f   :  { %1013 = vrot.lane.b32.xlu1 %v941_v24, %s4487_s4  ;;  %vm411_vm8 = vcmp.ne.s32.totalorder %v345_v58, 0  ;;  %vm436_vm3 = vcmp.lt.s32.totalorder %v345_v58, 0  ;;  %v486_v1 = vadd.s32 14, %v345_v58  ;;  %v387_v10 = vsub.s32 %v5025_v8, %v386_v60  ;;  %v868_v8 = vld [vmem:[%s8169_s0 + $0xcf] sm:$0xf]  ;;  %667 = vst.msk [vmem:[#allocation2 + $0x10] sm:$0xff] %vm8211_vm1, %v641_v62 }
  0x60   :  { %vm461_vm2 = vmand %vm436_vm3, %vm411_vm8  ;;  %v371_v11 = vshrl.u32 %v370_v7, 3  ;;  %v5220_v60 = vld [vmem:[%s8169_s0 + $0x5d] sm:$0xff]  ;;  %vm8206_vm14 = vcmp.gt.s32.totalorder %v4880_v29, 0  ;;  %v5312_v62 = vld [vmem:[%s8169_s0 + $0xa5] sm:$0xff]  ;;  %vm8217_vm11 = vcmp.gt.s32.totalorder %v5066_v48, 0  ;;  %vm8209_vm12 = vcmp.gt.s32.totalorder %v5005_v56, 0 }
  0x61   :  { %v5098_v0 = vsel %vm461_vm2, %v486_v1, %v345_v58  ;;  %vm414_vm13 = vcmp.ne.s32.totalorder %v387_v10, 0  ;;  %vm439_vm5 = vcmp.lt.s32.totalorder %v387_v10, 0  ;;  %v489_v45 = vadd.s32 14, %v387_v10  ;;  %v5215_v58 = vld [vmem:[%s8169_s0 + $0x65] sm:$0xff]  ;;  %v5277_v33 = vld [vmem:[%s8169_s0 + $0x7d] sm:$0xff] }
  0x62   :  { %vm8187_vm8 = vcmp.lt.s32.totalorder %v5098_v0, 13  ;;  %vm464_vm3 = vmand %vm439_vm5, %vm414_vm13  ;;  %v372_v13 = vmul.u32 14, %v371_v11  ;;  %vm8199_vm2 = vcmp.gt.s32.totalorder %v4616_v59, 0  ;;  %vm8194_vm13 = vcmp.gt.s32.totalorder %v4674_v27, 0  ;;  %v1076_v24 = vld [vmem:[%s8169_s0 + $0x43] sm:$0xff] }
  0x63   :  { %v940_v20 = vsel %vm8187_vm8, %v865_v14, 0.0  ;;  %v5116_v25 = vsel %vm464_vm3, %v489_v45, %v387_v10  ;;  %v642_v9 = vsel %vm8199_vm2, %v5096_v4, 0.0  ;;  %v643_v32 = vsel %vm8194_vm13, %v5112_v54, 0.0  ;;  %v5239_v14 = vld [vmem:[%s8169_s0 + $0x75] sm:$0xff] }
  0x64   :  { %1011 = vrot.lane.b32.xlu0 %v940_v20, %s4487_s4  ;;  %vm8188_vm5 = vcmp.lt.s32.totalorder %v5116_v25, 13  ;;  %v373_v43 = vsub.s32 %v5054_v34, %v372_v13  ;;  %668 = vst.msk [vmem:[#allocation2 + $0x20] sm:$0xff] %vm8211_vm1, %v642_v9  ;;  %v5144_v34 = vld [vmem:[%s8169_s0 + $0x35] sm:$0xff]  ;;  %669 = vst.msk [vmem:[#allocation2 + $0x30] sm:$0xff] %vm8211_vm1, %v643_v32  ;;  %v1099_v7 = vsel %vm8194_vm13, %v1074_v47, 0.0  ;;  %v646_v1 = vsel %vm521_vm15, %v5179_v49, 0.0 }
  0x65   :  { %v943_v17 = vsel %vm8188_vm5, %v868_v8, 0.0  ;;  %v645_v36 = vsel %vm8198_vm4, %v5144_v34, 0.0  ;;  %v649_v10 = vsel %vm524_vm9, %v5184_v50, 0.0  ;;  %v1096_v11 = vsel %vm8196_vm10, %v1071_v42, 0.0  ;;  %v1075_v45 = vld [vmem:[%s8169_s0 + $0x3b] sm:$0xff]  ;;  %672 = vst.msk [vmem:[#allocation2 + $0x60] sm:$0xff] %vm8211_vm1, %v646_v1 }
  0x66   :  { %1017 = vrot.lane.b32.xlu1 %v943_v17, %s4487_s4  ;;  %vm413_vm3 = vcmp.ne.s32.totalorder %v373_v43, 0  ;;  %vm438_vm8 = vcmp.lt.s32.totalorder %v373_v43, 0  ;;  %v488_v35 = vadd.s32 14, %v373_v43  ;;  %671 = vst.msk [vmem:[#allocation2 + $0x50] sm:$0xff] %vm8211_vm1, %v645_v36  ;;  %vm526_vm13 = vcmp.gt.s32.totalorder %v4901_v40, 0  ;;  %675 = vst.msk [vmem:[#allocation2 + $0x90] sm:$0xff] %vm8211_vm1, %v649_v10 }
  0x67   :  { %vm463_vm5 = vmand %vm438_vm8, %vm413_vm3  ;;  %vm8200_vm8 = vcmp.gt.s32.totalorder %v4662_v21, 0  ;;  %vm8201_vm3 = vcmp.gt.s32.totalorder %v4803_v38, 0  ;;  %v1078_v13 = vld [vmem:[%s8169_s0 + $0x53] sm:$0xff]  ;;  %vm8226_vm10 = vcmp.gt.s32.totalorder %v4948_v46, 0  ;;  %v651_v20 = vsel %vm526_vm13, %v5215_v58, 0.0  ;;  %v5317_v47 = vld [vmem:[%s8169_s0 + $0x9d] sm:$0xff] }
  0x68   :  { %v5166_v41 = vsel %vm463_vm5, %v488_v35, %v373_v43  ;;  %v644_v51 = vsel %vm8200_vm8, %v5151_v63, 0.0  ;;  %v647_v57 = vsel %vm8201_vm3, %v5164_v3, 0.0  ;;  %v650_v9 = vsel %vm525_vm0, %v5220_v60, 0.0  ;;  %v5272_v43 = vld [vmem:[%s8169_s0 + $0x85] sm:$0xff]  ;;  %677 = vst.msk [vmem:[#allocation2 + $0xb0] sm:$0xff] %vm8211_vm1, %v651_v20  ;;  %v5293_v32 = vld [vmem:[%s8169_s0 + $0x95] sm:$0xff] }
  0x69   :  { %vm8193_vm5 = vcmp.lt.s32.totalorder %v5166_v41, 13  ;;  %670 = vst.msk [vmem:[#allocation2 + $0x40] sm:$0xff] %vm8211_vm1, %v644_v51  ;;  %673 = vst.msk [vmem:[#allocation2 + $0x70] sm:$0xff] %vm8211_vm1, %v647_v57  ;;  %v1098_v6 = vsel %vm8199_vm2, %v1073_v26, 0.0  ;;  %v1101_v28 = vsel %vm8198_vm4, %v1076_v24, 0.0  ;;  %v653_v17 = vsel %vm8226_vm10, %v5239_v14, 0.0 }
  0x6a   :  { %v942_v52 = vsel %vm8193_vm5, %v867_v37, 0.0  ;;  %1148 = vrot.lane.b32.xlu1 %v1097_v44, %s4488_s13  ;;  %vm523_vm5 = vcmp.gt.s32.totalorder %v4766_v15, 0  ;;  %676 = vst.msk [vmem:[#allocation2 + $0xa0] sm:$0xff] %vm8211_vm1, %v650_v9  ;;  %v5298_v35 = vld [vmem:[%s8169_s0 + $0x8d] sm:$0xff]  ;;  %v1100_v37 = vsel %vm8200_vm8, %v1075_v45, 0.0  ;;  %vm8225_vm4 = vcmp.gt.s32.totalorder %v4994_v18, 0 }
  0x6b   :  { %1015 = vrot.lane.b32.xlu0 %v942_v52, %s4487_s4  ;;  %v648_v8 = vsel %vm523_vm5, %v5201_v16, 0.0  ;;  %vm8205_vm2 = vcmp.gt.s32.totalorder %v4928_v19, 0  ;;  %679 = vst.msk [vmem:[#allocation2 + $0xd0] sm:$0xff] %vm8211_vm1, %v653_v17  ;;  %v652_v44 = vsel %vm8206_vm14, %v5256_v12, 0.0  ;;  %v1103_v36 = vsel %vm8201_vm3, %v1078_v13, 0.0  ;;  %v5332_v51 = vld [vmem:[%s8169_s0 + $0xb5] sm:$0xff] }
  0x6c   :  { %674 = vst.msk [vmem:[#allocation2 + $0x80] sm:$0xff] %vm8211_vm1, %v648_v8  ;;  %vm8207_vm8 = vcmp.gt.s32.totalorder %v5017_v61, 0  ;;  %678 = vst.msk [vmem:[#allocation2 + $0xc0] sm:$0xff] %vm8211_vm1, %v652_v44  ;;  %v655_v42 = vsel %vm8225_vm4, %v5272_v43, 0.0  ;;  %v654_v26 = vsel %vm8205_vm2, %v5277_v33, 0.0  ;;  %v5337_v52 = vld [vmem:[%s8169_s0 + $0xad] sm:$0xff] }
  0x6d   :  { %vm8208_vm3 = vcmp.gt.s32.totalorder %v4962_v23, 0  ;;  %681 = vst.msk [vmem:[#allocation2 + $0xf0] sm:$0xff] %vm8211_vm1, %v655_v42  ;;  %680 = vst.msk [vmem:[#allocation2 + $0xe0] sm:$0xff] %vm8211_vm1, %v654_v26  ;;  %v657_v57 = vsel %vm8207_vm8, %v5293_v32, 0.0  ;;  %v5355_v24 = vld [vmem:[%s8169_s0 + $0xbd] sm:$0xff]  ;;  %vm8215_vm7 = vcmp.gt.s32.totalorder %v5098_v0, 0 }
  0x6e   :  { %1152 = vrot.lane.b32.xlu1 %v1099_v7, %s4488_s13  ;;  %v5350_v7 = vld [vmem:[%s8169_s0 + $0xc5] sm:$0xff]  ;;  %vm8223_vm2 = vcmp.gt.s32.totalorder %v5049_v30, 0  ;;  %vm8214_vm14 = vcmp.gt.s32.totalorder %v5166_v41, 0  ;;  %683 = vst.msk [vmem:[#allocation2 + $0x110] sm:$0xff] %vm8211_vm1, %v657_v57  ;;  %v656_v1 = vsel %vm8208_vm3, %v5298_v35, 0.0  ;;  %vm8220_vm8 = vcmp.gt.s32.totalorder %v5080_v22, 0 }
  0x6f   :  { %1146 = vrot.lane.b32.xlu0 %v1096_v11, %s4488_s13  ;;  %v589_v10 = vld [vmem:[%s8169_s0 + $0xcd] sm:$0xf]  ;;  %682 = vst.msk [vmem:[#allocation2 + $0x100] sm:$0xff] %vm8211_vm1, %v656_v1  ;;  %v659_v8 = vsel %vm8217_vm11, %v5312_v62, 0.0  ;;  %v658_v13 = vsel %vm8209_vm12, %v5317_v47, 0.0  ;;  %v661_v20 = vsel %vm8215_vm7, %v5332_v51, 0.0 }
  0x70   :  { %v1080_v9 = vld [vmem:[%s8169_s0 + $0x63] sm:$0xff]  ;;  %vm8216_vm3 = vcmp.gt.s32.totalorder %v5116_v25, 0  ;;  %685 = vst.msk [vmem:[#allocation2 + $0x130] sm:$0xff] %vm8211_vm1, %v659_v8  ;;  %684 = vst.msk [vmem:[#allocation2 + $0x120] sm:$0xff] %vm8211_vm1, %v658_v13  ;;  %v662_v17 = vsel %vm8220_vm8, %v5355_v24, 0.0  ;;  %v1077_v44 = vld [vmem:[%s8169_s0 + $0x4b] sm:$0xff] }
  0x71   :  { %687 = vst.msk [vmem:[#allocation2 + $0x150] sm:$0xff] %vm8211_vm1, %v661_v20  ;;  %688 = vst.msk [vmem:[#allocation2 + $0x160] sm:$0xff] %vm8211_vm1, %v662_v17  ;;  %vm8210_vm12 = vcmask 125952   ;;  %v664_v42 = vsel %vm8216_vm3, %v589_v10, 0.0  ;;  %v1105_v26 = vsel %vm524_vm9, %v1080_v9, 0.0  ;;  %v1084_v20 = vld [vmem:[%s8169_s0 + $0x83] sm:$0xff] }
  0x72   :  { %1156 = vrot.lane.b32.xlu1 %v1101_v28, %s4488_s13  ;;  %v663_v28 = vsel %vm8214_vm14, %v5350_v7, 0.0  ;;  %691 = vst.msk [vmem:[#allocation2 + $0x180] sm:$0xf] %vm8210_vm12, %v664_v42  ;;  %v1081_v9 = vld [vmem:[%s8169_s0 + $0x6b] sm:$0xff]  ;;  %v1086_v42 = vld [vmem:[%s8169_s0 + $0x93] sm:$0xff]  ;;  %vm8227_vm12 = vcmp.gt.s32.totalorder %v4880_v29, 0 }
  0x73   :  { %1150 = vrot.lane.b32.xlu0 %v1098_v6, %s4488_s13  ;;  %v660_v6 = vsel %vm8223_vm2, %v5337_v52, 0.0  ;;  %689 = vst.msk [vmem:[#allocation2 + $0x170] sm:$0xff] %vm8211_vm1, %v663_v28 }
  0x74   :  { %v747_v11 = vpop.permute.xlu1 %746  ;;  %v743_v45 = vpop.permute.xlu0 %742  ;;  %686 = vst.msk [vmem:[#allocation2 + $0x140] sm:$0xff] %vm8211_vm1, %v660_v6  ;;  %v1109_v6 = vsel %vm8226_vm10, %v1084_v20, 0.0  ;;  %vm8228_vm1 = vcmp.gt.s32.totalorder %v5017_v61, 0 }
  0x75   :  { %820 = vst.msk [vmem:[#allocation2 + $0x20] sm:$0xff] %vm8213_vm6, %v747_v11  ;;  %818 = vst.msk [vmem:[#allocation2] sm:$0xff] %vm8213_vm6, %v743_v45  ;;  %v1102_v11 = vsel %vm521_vm15, %v1077_v44, 0.0  ;;  %v1106_v44 = vsel %vm525_vm0, %v1081_v9, 0.0  ;;  %v1090_v9 = vld [vmem:[%s8169_s0 + $0xb3] sm:$0xff] }
  0x76   :  { %1160 = vrot.lane.b32.xlu1 %v1103_v36, %s4488_s13  ;;  %v1082_v36 = vld [vmem:[%s8169_s0 + $0x73] sm:$0xff] }
  0x77   :  { %1154 = vrot.lane.b32.xlu0 %v1100_v37, %s4488_s13  ;;  %v1079_v37 = vld [vmem:[%s8169_s0 + $0x5b] sm:$0xff]  ;;  %v1107_v10 = vsel %vm526_vm13, %v1082_v36, 0.0 }
  0x78   :  { %v749_v57 = vpop.permute.xlu1 %748  ;;  %v745_v1 = vpop.permute.xlu0 %744  ;;  %v1104_v13 = vsel %vm523_vm5, %v1079_v37, 0.0  ;;  %v1088_v37 = vld [vmem:[%s8169_s0 + $0xa3] sm:$0xff] }
  0x79   :  { %821 = vst.msk [vmem:[#allocation2 + $0x30] sm:$0xff] %vm8213_vm6, %v749_v57  ;;  %819 = vst.msk [vmem:[#allocation2 + $0x10] sm:$0xff] %vm8213_vm6, %v745_v1  ;;  %v1111_v57 = vsel %vm8225_vm4, %v1086_v42, 0.0 }
  0x7a   :  { %1164 = vrot.lane.b32.xlu1 %v1105_v26, %s4488_s13  ;;  %v1083_v26 = vld [vmem:[%s8169_s0 + $0x7b] sm:$0xff] }
  0x7b   :  { %1158 = vrot.lane.b32.xlu0 %v1102_v11, %s4488_s13  ;;  %v1108_v36 = vsel %vm8227_vm12, %v1083_v26, 0.0  ;;  %vm8229_vm12 = vcmp.gt.s32.totalorder %v4928_v19, 0  ;;  %v1092_v26 = vld [vmem:[%s8169_s0 + $0xc3] sm:$0xff] }
  0x7c   :  { %v753_v45 = vpop.permute.xlu1 %752  ;;  %v751_v8 = vpop.permute.xlu0 %750 }
  0x7d   :  { %823 = vst.msk [vmem:[#allocation2 + $0x50] sm:$0xff] %vm8213_vm6, %v753_v45  ;;  %822 = vst.msk [vmem:[#allocation2 + $0x40] sm:$0xff] %vm8213_vm6, %v751_v8  ;;  %v1113_v45 = vsel %vm8228_vm1, %v1088_v37, 0.0  ;;  %vm8230_vm1 = vcmp.gt.s32.totalorder %v4962_v23, 0 }
  0x7e   :  { %1168 = vrot.lane.b32.xlu1 %v1107_v10, %s4488_s13  ;;  %v1085_v10 = vld [vmem:[%s8169_s0 + $0x8b] sm:$0xff] }
  0x7f   :  { %1162 = vrot.lane.b32.xlu0 %v1104_v13, %s4488_s13  ;;  %v1110_v20 = vsel %vm8229_vm12, %v1085_v10, 0.0  ;;  %vm8231_vm12 = vcmp.gt.s32.totalorder %v5005_v56, 0  ;;  %v1094_v10 = vld [vmem:[%s8169_s0 + $0xd3] sm:$0xff] }
  0x80   :  { %v757_v28 = vpop.permute.xlu1 %756  ;;  %v755_v17 = vpop.permute.xlu0 %754 }
  0x81   :  { %825 = vst.msk [vmem:[#allocation2 + $0x70] sm:$0xff] %vm8213_vm6, %v757_v28  ;;  %824 = vst.msk [vmem:[#allocation2 + $0x60] sm:$0xff] %vm8213_vm6, %v755_v17  ;;  %v1115_v28 = vsel %vm8217_vm11, %v1090_v9, 0.0  ;;  %vm8240_vm11 = vcmp.lt.s32.totalorder %v4701_v39, 13 }
  0x82   :  { %1172 = vrot.lane.b32.xlu1 %v1109_v6, %s4488_s13  ;;  %v1087_v6 = vld [vmem:[%s8169_s0 + $0x9b] sm:$0xff] }
  0x83   :  { %1166 = vrot.lane.b32.xlu0 %v1106_v44, %s4488_s13  ;;  %v1112_v42 = vsel %vm8230_vm1, %v1087_v6, 0.0  ;;  %v1093_v6 = vld [vmem:[%s8169_s0 + $0xcb] sm:$0xff]  ;;  %vm1044_vm1 = vcmask 392448  }
  0x84   :  { %v761_v1 = vpop.permute.xlu1 %760  ;;  %v759_v11 = vpop.permute.xlu0 %758 }
  0x85   :  { %827 = vst.msk [vmem:[#allocation2 + $0x90] sm:$0xff] %vm8213_vm6, %v761_v1  ;;  %826 = vst.msk [vmem:[#allocation2 + $0x80] sm:$0xff] %vm8213_vm6, %v759_v11  ;;  %v1117_v1 = vsel %vm8215_vm7, %v1092_v26, 0.0  ;;  %v1095_v26 = vld [vmem:[%s8169_s0 + $0xdb] sm:$0xf]  ;;  %vm8236_vm7 = vcmp.lt.s32.totalorder %v4616_v59, 13 }
  0x86   :  { %1176 = vrot.lane.b32.xlu1 %v1111_v57, %s4488_s13  ;;  %v1089_v57 = vld [vmem:[%s8169_s0 + $0xab] sm:$0xff] }
  0x87   :  { %1170 = vrot.lane.b32.xlu0 %v1108_v36, %s4488_s13  ;;  %v1114_v37 = vsel %vm8231_vm12, %v1089_v57, 0.0  ;;  %v1250_v57 = vld [vmem:[%s8169_s0 + $0x2c] sm:$0xff]  ;;  %vm8212_vm12 = vcmask 257152  }
  0x88   :  { %v765_v8 = vpop.permute.xlu1 %764  ;;  %v763_v13 = vpop.permute.xlu0 %762 }
  0x89   :  { %829 = vst.msk [vmem:[#allocation2 + $0xb0] sm:$0xff] %vm8213_vm6, %v765_v8  ;;  %828 = vst.msk [vmem:[#allocation2 + $0xa0] sm:$0xff] %vm8213_vm6, %v763_v13  ;;  %v1119_v8 = vsel %vm8214_vm14, %v1094_v10, 0.0  ;;  %vm8235_vm14 = vcmp.lt.s32.totalorder %v4752_v5, 13 }
  0x8a   :  { %1180 = vrot.lane.b32.xlu1 %v1113_v45, %s4488_s13  ;;  %v1091_v45 = vld [vmem:[%s8169_s0 + $0xbb] sm:$0xff] }
  0x8b   :  { %1174 = vrot.lane.b32.xlu0 %v1110_v20, %s4488_s13  ;;  %v1116_v9 = vsel %vm8223_vm2, %v1091_v45, 0.0 }
  0x8c   :  { %v769_v17 = vpop.permute.xlu1 %768  ;;  %v767_v44 = vpop.permute.xlu0 %766 }
  0x8d   :  { %831 = vst.msk [vmem:[#allocation2 + $0xd0] sm:$0xff] %vm8213_vm6, %v769_v17  ;;  %830 = vst.msk [vmem:[#allocation2 + $0xc0] sm:$0xff] %vm8213_vm6, %v767_v44 }
  0x8e   :  { %1184 = vrot.lane.b32.xlu1 %v1115_v28, %s4488_s13  ;;  %v1248_v28 = vld [vmem:[%s8169_s0 + $0x1c] sm:$0xff] }
  0x8f   :  { %1178 = vrot.lane.b32.xlu0 %v1112_v42, %s4488_s13  ;;  %v1118_v42 = vsel %vm8220_vm8, %v1093_v6, 0.0  ;;  %v1251_v6 = vld [vmem:[%s8169_s0 + $0x34] sm:$0xff] }
  0x90   :  { %v773_v11 = vpop.permute.xlu1 %772  ;;  %v771_v36 = vpop.permute.xlu0 %770 }
  0x91   :  { %833 = vst.msk [vmem:[#allocation2 + $0xf0] sm:$0xff] %vm8213_vm6, %v773_v11  ;;  %832 = vst.msk [vmem:[#allocation2 + $0xe0] sm:$0xff] %vm8213_vm6, %v771_v36  ;;  %v1120_v36 = vsel %vm8216_vm3, %v1095_v26, 0.0  ;;  %v1258_v26 = vld [vmem:[%s8169_s0 + $0x6c] sm:$0xff]  ;;  %vm8238_vm3 = vcmp.lt.s32.totalorder %v4662_v21, 13 }
  0x92   :  { %1188 = vrot.lane.b32.xlu1 %v1117_v1, %s4488_s13 }
  0x93   :  { %1182 = vrot.lane.b32.xlu0 %v1114_v37, %s4488_s13  ;;  %v1252_v37 = vld [vmem:[%s8169_s0 + $0x3c] sm:$0xff] }
  0x94   :  { %v777_v13 = vpop.permute.xlu1 %776  ;;  %v775_v20 = vpop.permute.xlu0 %774 }
  0x95   :  { %835 = vst.msk [vmem:[#allocation2 + $0x110] sm:$0xff] %vm8213_vm6, %v777_v13  ;;  %834 = vst.msk [vmem:[#allocation2 + $0x100] sm:$0xff] %vm8213_vm6, %v775_v20  ;;  %v1254_v13 = vld [vmem:[%s8169_s0 + $0x4c] sm:$0xff] }
  0x96   :  { %1192 = vrot.lane.b32.xlu1 %v1119_v8, %s4488_s13  ;;  %v1249_v8 = vld [vmem:[%s8169_s0 + $0x24] sm:$0xff] }
  0x97   :  { %1186 = vrot.lane.b32.xlu0 %v1116_v9, %s4488_s13 }
  0x98   :  { %v781_v17 = vpop.permute.xlu1 %780  ;;  %v779_v44 = vpop.permute.xlu0 %778 }
  0x99   :  { %837 = vst.msk [vmem:[#allocation2 + $0x130] sm:$0xff] %vm8213_vm6, %v781_v17  ;;  %836 = vst.msk [vmem:[#allocation2 + $0x120] sm:$0xff] %vm8213_vm6, %v779_v44 }
  0x9a   :  { %1298 = vrot.lane.b32.xlu1 %v1248_v28, %s4489_s17  ;;  %v1256_v28 = vld [vmem:[%s8169_s0 + $0x5c] sm:$0xff] }
  0x9b   :  { %1190 = vrot.lane.b32.xlu0 %v1118_v42, %s4488_s13  ;;  %v1253_v42 = vld [vmem:[%s8169_s0 + $0x44] sm:$0xff] }
  0x9c   :  { %v785_v1 = vpop.permute.xlu1 %784  ;;  %v783_v11 = vpop.permute.xlu0 %782 }
  0x9d   :  { %839 = vst.msk [vmem:[#allocation2 + $0x150] sm:$0xff] %vm8213_vm6, %v785_v1  ;;  %838 = vst.msk [vmem:[#allocation2 + $0x140] sm:$0xff] %vm8213_vm6, %v783_v11  ;;  %v1255_v11 = vld [vmem:[%s8169_s0 + $0x54] sm:$0xff] }
  0x9e   :  { %1302 = vrot.lane.b32.xlu1 %v1250_v57, %s4489_s17 }
  0x9f   :  { %1194 = vrot.lane.b32.xlu0 %v1120_v36, %s4488_s13  ;;  %v1260_v36 = vld [vmem:[%s8169_s0 + $0x7c] sm:$0xff] }
  0xa0   :  { %v789_v10 = vpop.permute.xlu1 %788  ;;  %v787_v45 = vpop.permute.xlu0 %786 }
  0xa1   :  { %841 = vst.msk [vmem:[#allocation2 + $0x170] sm:$0xff] %vm8213_vm6, %v789_v10  ;;  %840 = vst.msk [vmem:[#allocation2 + $0x160] sm:$0xff] %vm8213_vm6, %v787_v45  ;;  %v1257_v45 = vld [vmem:[%s8169_s0 + $0x64] sm:$0xff]  ;;  %vm8233_vm6 = vcmp.lt.s32.totalorder %v4674_v27, 13 }
  0xa2   :  { %1306 = vrot.lane.b32.xlu1 %v1252_v37, %s4489_s17 }
  0xa3   :  { %1300 = vrot.lane.b32.xlu0 %v1249_v8, %s4489_s17  ;;  %v1262_v8 = vld [vmem:[%s8169_s0 + $0x8c] sm:$0xff] }
  0xa4   :  { %v970_v20 = vpop.permute.xlu1 %969  ;;  %v791_v9 = vpop.permute.xlu0 %790 }
  0xa5   :  { %1045 = vst.msk [vmem:[#allocation2] sm:$0xff] %vm1044_vm1, %v970_v20 }
  0xa6   :  { %843 = vst.msk [vmem:[#allocation2 + $0x180] sm:$0xf] %vm8212_vm12, %v791_v9  ;;  %1310 = vrot.lane.b32.xlu1 %v1254_v13, %s4489_s17  ;;  %v1259_v9 = vld [vmem:[%s8169_s0 + $0x74] sm:$0xff]  ;;  %vm8232_vm12 = vcmp.lt.s32.totalorder %v4632_v2, 13 }
  0xa7   :  { %1304 = vrot.lane.b32.xlu0 %v1251_v6, %s4489_s17  ;;  %v1264_v6 = vld [vmem:[%s8169_s0 + $0x9c] sm:$0xff] }
  0xa8   :  { %v974_v17 = vpop.permute.xlu1 %973  ;;  %v972_v44 = vpop.permute.xlu0 %971 }
  0xa9   :  { %1047 = vst.msk [vmem:[#allocation2 + $0x20] sm:$0xff] %vm1044_vm1, %v974_v17  ;;  %1046 = vst.msk [vmem:[#allocation2 + $0x10] sm:$0xff] %vm1044_vm1, %v972_v44  ;;  %v1261_v44 = vld [vmem:[%s8169_s0 + $0x84] sm:$0xff] }
  0xaa   :  { %1314 = vrot.lane.b32.xlu1 %v1256_v28, %s4489_s17 }
  0xab   :  { %1308 = vrot.lane.b32.xlu0 %v1253_v42, %s4489_s17  ;;  %v1266_v42 = vld [vmem:[%s8169_s0 + $0xac] sm:$0xff] }
  0xac   :  { %v978_v57 = vpop.permute.xlu1 %977  ;;  %v976_v1 = vpop.permute.xlu0 %975 }
  0xad   :  { %1049 = vst.msk [vmem:[#allocation2 + $0x40] sm:$0xff] %vm1044_vm1, %v978_v57  ;;  %1048 = vst.msk [vmem:[#allocation2 + $0x30] sm:$0xff] %vm1044_vm1, %v976_v1  ;;  %v1263_v1 = vld [vmem:[%s8169_s0 + $0x94] sm:$0xff] }
  0xae   :  { %1318 = vrot.lane.b32.xlu1 %v1258_v26, %s4489_s17 }
  0xaf   :  { %1312 = vrot.lane.b32.xlu0 %v1255_v11, %s4489_s17  ;;  %v1268_v11 = vld [vmem:[%s8169_s0 + $0xbc] sm:$0xff] }
  0xb0   :  { %v982_v37 = vpop.permute.xlu1 %981  ;;  %v980_v10 = vpop.permute.xlu0 %979 }
  0xb1   :  { %1051 = vst.msk [vmem:[#allocation2 + $0x60] sm:$0xff] %vm1044_vm1, %v982_v37  ;;  %1050 = vst.msk [vmem:[#allocation2 + $0x50] sm:$0xff] %vm1044_vm1, %v980_v10  ;;  %v1265_v10 = vld [vmem:[%s8169_s0 + $0xa4] sm:$0xff] }
  0xb2   :  { %1322 = vrot.lane.b32.xlu1 %v1260_v36, %s4489_s17 }
  0xb3   :  { %1316 = vrot.lane.b32.xlu0 %v1257_v45, %s4489_s17  ;;  %v1270_v45 = vld [vmem:[%s8169_s0 + $0xcc] sm:$0xff] }
  0xb4   :  { %v986_v13 = vpop.permute.xlu1 %985  ;;  %v984_v20 = vpop.permute.xlu0 %983 }
  0xb5   :  { %1053 = vst.msk [vmem:[#allocation2 + $0x80] sm:$0xff] %vm1044_vm1, %v986_v13  ;;  %1052 = vst.msk [vmem:[#allocation2 + $0x70] sm:$0xff] %vm1044_vm1, %v984_v20  ;;  %v1267_v20 = vld [vmem:[%s8169_s0 + $0xb4] sm:$0xff] }
  0xb6   :  { %1326 = vrot.lane.b32.xlu1 %v1262_v8, %s4489_s17 }
  0xb7   :  { %1320 = vrot.lane.b32.xlu0 %v1259_v9, %s4489_s17  ;;  %v1272_v9 = vld [vmem:[%s8169_s0 + $0xdc] sm:$0xf] }
  0xb8   :  { %v990_v28 = vpop.permute.xlu1 %989  ;;  %v988_v17 = vpop.permute.xlu0 %987 }
  0xb9   :  { %1055 = vst.msk [vmem:[#allocation2 + $0xa0] sm:$0xff] %vm1044_vm1, %v990_v28  ;;  %1054 = vst.msk [vmem:[#allocation2 + $0x90] sm:$0xff] %vm1044_vm1, %v988_v17  ;;  %v1269_v17 = vld [vmem:[%s8169_s0 + $0xc4] sm:$0xff] }
  0xba   :  { %1330 = vrot.lane.b32.xlu1 %v1264_v6, %s4489_s17 }
  0xbb   :  { %1324 = vrot.lane.b32.xlu0 %v1261_v44, %s4489_s17  ;;  %v1426_v44 = vsel %vm8232_vm12, %v5112_v54, 0.0  ;;  %vm8234_vm12 = vcmp.lt.s32.totalorder %v4604_v53, 13 }
  0xbc   :  { %v994_v26 = vpop.permute.xlu1 %993  ;;  %v992_v57 = vpop.permute.xlu0 %991  ;;  %v1425_v54 = vsel %vm8234_vm12, %v5096_v4, 0.0  ;;  %vm8237_vm12 = vcmp.lt.s32.totalorder %v4803_v38, 13 }
  0xbd   :  { %1057 = vst.msk [vmem:[#allocation2 + $0xc0] sm:$0xff] %vm1044_vm1, %v994_v26  ;;  %1056 = vst.msk [vmem:[#allocation2 + $0xb0] sm:$0xff] %vm1044_vm1, %v992_v57  ;;  %v1271_v26 = vld [vmem:[%s8169_s0 + $0xd4] sm:$0xff]  ;;  %v1432_v4 = vsel %vm8237_vm12, %v5184_v50, 0.0  ;;  %v1431_v50 = vsel %vm8240_vm11, %v5201_v16, 0.0  ;;  %vm8242_vm12 = vcmp.lt.s32.totalorder %v4766_v15, 13 }
  0xbe   :  { %1334 = vrot.lane.b32.xlu1 %v1266_v42, %s4489_s17  ;;  %vm8243_vm11 = vcmp.lt.s32.totalorder %v4948_v46, 13 }
  0xbf   :  { %1328 = vrot.lane.b32.xlu0 %v1263_v1, %s4489_s17  ;;  %v1428_v1 = vsel %vm8233_vm6, %v5144_v34, 0.0  ;;  %vm8219_vm6 = vcmask 388352  }
  0xc0   :  { %v998_v36 = vpop.permute.xlu1 %997  ;;  %v996_v37 = vpop.permute.xlu0 %995 }
  0xc1   :  { %1059 = vst.msk [vmem:[#allocation2 + $0xe0] sm:$0xff] %vm1044_vm1, %v998_v36  ;;  %1058 = vst.msk [vmem:[#allocation2 + $0xd0] sm:$0xff] %vm1044_vm1, %v996_v37  ;;  %v1430_v36 = vsel %vm8235_vm14, %v5164_v3, 0.0  ;;  %v1427_v37 = vsel %vm8236_vm7, %v5151_v63, 0.0  ;;  %v1429_v3 = vsel %vm8238_vm3, %v5179_v49, 0.0  ;;  %vm1221_vm7 = vcmask 523648  }
  0xc2   :  { %1338 = vrot.lane.b32.xlu1 %v1268_v11, %s4489_s17  ;;  %vm8239_vm14 = vcmp.lt.s32.totalorder %v4840_v31, 13  ;;  %vm8241_vm3 = vcmp.lt.s32.totalorder %v4901_v40, 13 }
  0xc3   :  { %1332 = vrot.lane.b32.xlu0 %v1265_v10, %s4489_s17  ;;  %v1434_v63 = vsel %vm8239_vm14, %v5215_v58, 0.0  ;;  %v1436_v49 = vsel %vm8241_vm3, %v5239_v14, 0.0  ;;  %v1433_v58 = vsel %vm8242_vm12, %v5220_v60, 0.0  ;;  %vm8244_vm14 = vcmp.lt.s32.totalorder %v4828_v55, 13 }
  0xc4   :  { %v1002_v8 = vpop.permute.xlu1 %1001  ;;  %v1000_v13 = vpop.permute.xlu0 %999  ;;  %v1435_v14 = vsel %vm8244_vm14, %v5256_v12, 0.0  ;;  %vm8245_vm3 = vcmp.lt.s32.totalorder %v4994_v18, 13  ;;  %vm8246_vm12 = vcmp.lt.s32.totalorder %v4880_v29, 13  ;;  %vm8248_vm14 = vcmp.lt.s32.totalorder %v4928_v19, 13 }
  0xc5   :  { %1061 = vst.msk [vmem:[#allocation2 + $0x100] sm:$0xff] %vm1044_vm1, %v1002_v8  ;;  %1060 = vst.msk [vmem:[#allocation2 + $0xf0] sm:$0xff] %vm1044_vm1, %v1000_v13 }
  0xc6   :  { %1342 = vrot.lane.b32.xlu1 %v1270_v45, %s4489_s17 }
  0xc7   :  { %1336 = vrot.lane.b32.xlu0 %v1267_v20, %s4489_s17  ;;  %v1438_v20 = vsel %vm8243_vm11, %v5272_v43, 0.0  ;;  %v1437_v43 = vsel %vm8246_vm12, %v5277_v33, 0.0  ;;  %vm8247_vm11 = vcmp.lt.s32.totalorder %v5017_v61, 13  ;;  %vm8250_vm12 = vcmp.lt.s32.totalorder %v4962_v23, 13 }
  0xc8   :  { %v1006_v6 = vpop.permute.xlu1 %1005  ;;  %v1004_v28 = vpop.permute.xlu0 %1003 }
  0xc9   :  { %1063 = vst.msk [vmem:[#allocation2 + $0x120] sm:$0xff] %vm1044_vm1, %v1006_v6  ;;  %1062 = vst.msk [vmem:[#allocation2 + $0x110] sm:$0xff] %vm1044_vm1, %v1004_v28  ;;  %v1440_v6 = vsel %vm8245_vm3, %v5293_v32, 0.0  ;;  %v1439_v32 = vsel %vm8248_vm14, %v5298_v35, 0.0  ;;  %vm8249_vm3 = vcmp.lt.s32.totalorder %v5066_v48, 13  ;;  %vm8252_vm14 = vcmp.lt.s32.totalorder %v5005_v56, 13 }
  0xca   :  { %1346 = vrot.lane.b32.xlu1 %v1272_v9, %s4489_s17 }
  0xcb   :  { %1340 = vrot.lane.b32.xlu0 %v1269_v17, %s4489_s17  ;;  %v1442_v17 = vsel %vm8247_vm11, %v5312_v62, 0.0  ;;  %v1441_v62 = vsel %vm8250_vm12, %v5317_v47, 0.0  ;;  %vm8251_vm11 = vcmp.lt.s32.totalorder %v5098_v0, 13  ;;  %v1423_v47 = vld [vmem:[%s8169_s0 + $0xd5] sm:$0xff]  ;;  %vm8254_vm12 = vcmp.lt.s32.totalorder %v5049_v30, 13 }
  0xcc   :  { %v1010_v42 = vpop.permute.xlu1 %1009 }
  0xcd   :  { %1065 = vst.msk [vmem:[#allocation2 + $0x140] sm:$0xff] %vm1044_vm1, %v1010_v42  ;;  %v1444_v42 = vsel %vm8249_vm3, %v5332_v51, 0.0  ;;  %v1443_v51 = vsel %vm8252_vm14, %v5337_v52, 0.0  ;;  %vm8253_vm3 = vcmp.lt.s32.totalorder %v5166_v41, 13  ;;  %v1445_v52 = vsel %vm8254_vm12, %v5355_v24, 0.0 }
  0xce   :  { %1477 = vrot.lane.b32.xlu1 %v1426_v44, %s4490_s20  ;;  %v1008_v57 = vpop.permute.xlu0 %1007  ;;  %vm8256_vm14 = vcmp.lt.s32.totalorder %v5080_v22, 13  ;;  %vm8258_vm12 = vcmp.lt.s32.totalorder %v5116_v25, 13 }
  0xcf   :  { %1344 = vrot.lane.b32.xlu0 %v1271_v26, %s4489_s17  ;;  %1064 = vst.msk [vmem:[#allocation2 + $0x130] sm:$0xff] %vm1044_vm1, %v1008_v57  ;;  %v1446_v57 = vsel %vm8251_vm11, %v5350_v7, 0.0  ;;  %v1448_v7 = vsel %vm8253_vm3, %v1423_v47, 0.0  ;;  %vm8255_vm11 = vcmp.gt.s32.totalorder %v4604_v53, 0  ;;  %vm8257_vm3 = vcmp.gt.s32.totalorder %v4616_v59, 0  ;;  %v1584_v47 = vld [vmem:[%s8169_s0 + $0x61] sm:$0xff] }
  0xd1   :  { %v1014_v11 = vpop.permute.xlu1 %1013 }
  0xd2   :  { %1481 = vrot.lane.b32.xlu1 %v1428_v1, %s4490_s20  ;;  %1067 = vst.msk [vmem:[#allocation2 + $0x160] sm:$0xff] %vm1044_vm1, %v1014_v11 }
  0xd3   :  { %1475 = vrot.lane.b32.xlu0 %v1425_v54, %s4490_s20 }
  0xd6   :  { %v1012_v34 = vpop.permute.xlu0 %1011  ;;  %1485 = vrot.lane.b32.xlu1 %v1430_v36, %s4490_s20  ;;  %v1577_v36 = vld [vmem:[%s8169_s0 + $0x29] sm:$0xff] }
  0xd7   :  { %1479 = vrot.lane.b32.xlu0 %v1427_v37, %s4490_s20  ;;  %1066 = vst.msk [vmem:[#allocation2 + $0x150] sm:$0xff] %vm1044_vm1, %v1012_v34  ;;  %v1422_v34 = vld [vmem:[%s8169_s0 + $0xcd] sm:$0xff]  ;;  %v1602_v24 = vsel %vm8255_vm11, %v1577_v36, 0.0  ;;  %vm8259_vm11 = vcmp.gt.s32.totalorder %v4662_v21, 0 }
  0xd8   :  { %v1018_v10 = vpop.permute.xlu1 %1017 }
  0xd9   :  { %1070 = vst.msk [vmem:[#allocation2 + $0x180] sm:$0xf] %vm8219_vm6, %v1018_v10  ;;  %v1579_v10 = vld [vmem:[%s8169_s0 + $0x39] sm:$0xff]  ;;  %vm8279_vm6 = vcmask 130048  }
  0xda   :  { %1489 = vrot.lane.b32.xlu1 %v1432_v4, %s4490_s20  ;;  %v1447_v4 = vsel %vm8256_vm14, %v1422_v34, 0.0  ;;  %vm8260_vm14 = vcmp.gt.s32.totalorder %v4632_v2, 0  ;;  %v2033_v34 = vld [vmem:[%s8170_s1 + $0x10] sm:$0xff] }
  0xdb   :  { %1483 = vrot.lane.b32.xlu0 %v1429_v3, %s4490_s20 }
  0xdc   :  { %v1149_v45 = vpop.permute.xlu1 %1148 }
  0xdd   :  { %v1016_v8 = vpop.permute.xlu0 %1015  ;;  %1223 = vst.msk [vmem:[#allocation2 + $0x10] sm:$0xff] %vm1221_vm7, %v1149_v45  ;;  %v1604_v45 = vsel %vm8257_vm3, %v1579_v10, 0.0  ;;  %vm8261_vm3 = vcmp.gt.s32.totalorder %v4674_v27, 0 }
  0xde   :  { %1068 = vst.msk [vmem:[#allocation2 + $0x170] sm:$0xff] %vm1044_vm1, %v1016_v8  ;;  %1493 = vrot.lane.b32.xlu1 %v1434_v63, %s4490_s20 }
  0xdf   :  { %1487 = vrot.lane.b32.xlu0 %v1431_v50, %s4490_s20  ;;  %v1424_v50 = vld [vmem:[%s8169_s0 + $0xdd] sm:$0xf] }
  0xe0   :  { %v1153_v13 = vpop.permute.xlu1 %1152  ;;  %v1449_v8 = vsel %vm8258_vm12, %v1424_v50, 0.0  ;;  %vm1373_vm12 = vcmask 654848  }
  0xe1   :  { %v1147_v16 = vpop.permute.xlu0 %1146  ;;  %1225 = vst.msk [vmem:[#allocation2 + $0x30] sm:$0xff] %vm1221_vm7, %v1153_v13 }
  0xe2   :  { %1222 = vst.msk [vmem:[#allocation2] sm:$0xff] %vm1221_vm7, %v1147_v16  ;;  %1497 = vrot.lane.b32.xlu1 %v1436_v49, %s4490_s20  ;;  %v1578_v16 = vld [vmem:[%s8169_s0 + $0x31] sm:$0xff] }
  0xe3   :  { %1491 = vrot.lane.b32.xlu0 %v1433_v58, %s4490_s20  ;;  %v1581_v58 = vld [vmem:[%s8169_s0 + $0x49] sm:$0xff] }
  0xe4   :  { %v1157_v9 = vpop.permute.xlu1 %1156 }
  0xe5   :  { %v1151_v60 = vpop.permute.xlu0 %1150  ;;  %1227 = vst.msk [vmem:[#allocation2 + $0x50] sm:$0xff] %vm1221_vm7, %v1157_v9 }
  0xe6   :  { %1224 = vst.msk [vmem:[#allocation2 + $0x20] sm:$0xff] %vm1221_vm7, %v1151_v60  ;;  %1501 = vrot.lane.b32.xlu1 %v1438_v20, %s4490_s20  ;;  %v1606_v20 = vsel %vm8259_vm11, %v1581_v58, 0.0  ;;  %v1583_v60 = vld [vmem:[%s8169_s0 + $0x59] sm:$0xff]  ;;  %vm8262_vm11 = vcmp.gt.s32.totalorder %v4752_v5, 0  ;;  %v2036_v58 = vld [vmem:[%s8170_s1 + $0x28] sm:$0xff] }
  0xe7   :  { %1495 = vrot.lane.b32.xlu0 %v1435_v14, %s4490_s20  ;;  %v1603_v14 = vsel %vm8260_vm14, %v1578_v16, 0.0  ;;  %vm8218_vm14 = vcmask 519552   ;;  %v1588_v16 = vld [vmem:[%s8169_s0 + $0x81] sm:$0xff] }
  0xe8   :  { %v1161_v28 = vpop.permute.xlu1 %1160 }
  0xe9   :  { %v1155_v12 = vpop.permute.xlu0 %1154  ;;  %1229 = vst.msk [vmem:[#allocation2 + $0x70] sm:$0xff] %vm1221_vm7, %v1161_v28  ;;  %v1608_v28 = vsel %vm521_vm15, %v1583_v60, 0.0 }
  0xea   :  { %1226 = vst.msk [vmem:[#allocation2 + $0x40] sm:$0xff] %vm1221_vm7, %v1155_v12  ;;  %1505 = vrot.lane.b32.xlu1 %v1440_v6, %s4490_s20 }
  0xeb   :  { %1499 = vrot.lane.b32.xlu0 %v1437_v43, %s4490_s20  ;;  %v1580_v43 = vld [vmem:[%s8169_s0 + $0x41] sm:$0xff] }
  0xec   :  { %v1165_v44 = vpop.permute.xlu1 %1164  ;;  %v1605_v12 = vsel %vm8261_vm3, %v1580_v43, 0.0  ;;  %vm8263_vm3 = vcmp.gt.s32.totalorder %v4803_v38, 0  ;;  %v2037_v43 = vld [vmem:[%s8170_s1 + $0x30] sm:$0xff] }
  0xed   :  { %v1159_v33 = vpop.permute.xlu0 %1158  ;;  %1231 = vst.msk [vmem:[#allocation2 + $0x90] sm:$0xff] %vm1221_vm7, %v1165_v44 }
  0xee   :  { %1228 = vst.msk [vmem:[#allocation2 + $0x60] sm:$0xff] %vm1221_vm7, %v1159_v33  ;;  %1509 = vrot.lane.b32.xlu1 %v1442_v17, %s4490_s20  ;;  %v1582_v33 = vld [vmem:[%s8169_s0 + $0x51] sm:$0xff] }
  0xef   :  { %1503 = vrot.lane.b32.xlu0 %v1439_v32, %s4490_s20  ;;  %v1585_v32 = vld [vmem:[%s8169_s0 + $0x69] sm:$0xff] }
  0xf0   :  { %v1169_v26 = vpop.permute.xlu1 %1168 }
  0xf1   :  { %v1163_v35 = vpop.permute.xlu0 %1162  ;;  %1233 = vst.msk [vmem:[#allocation2 + $0xb0] sm:$0xff] %vm1221_vm7, %v1169_v26 }
  0xf2   :  { %1230 = vst.msk [vmem:[#allocation2 + $0x80] sm:$0xff] %vm1221_vm7, %v1163_v35  ;;  %1513 = vrot.lane.b32.xlu1 %v1444_v42, %s4490_s20  ;;  %v1610_v42 = vsel %vm523_vm5, %v1585_v32, 0.0  ;;  %v1587_v35 = vld [vmem:[%s8169_s0 + $0x79] sm:$0xff] }
  0xf3   :  { %1507 = vrot.lane.b32.xlu0 %v1441_v62, %s4490_s20  ;;  %v1607_v62 = vsel %vm8262_vm11, %v1582_v33, 0.0  ;;  %vm8264_vm11 = vcmp.gt.s32.totalorder %v4880_v29, 0 }
  0xf4   :  { %v1173_v1 = vpop.permute.xlu1 %1172 }
  0xf5   :  { %v1167_v54 = vpop.permute.xlu0 %1166  ;;  %1235 = vst.msk [vmem:[#allocation2 + $0xd0] sm:$0xff] %vm1221_vm7, %v1173_v1 }
  0xf6   :  { %1232 = vst.msk [vmem:[#allocation2 + $0xa0] sm:$0xff] %vm1221_vm7, %v1167_v54  ;;  %1517 = vrot.lane.b32.xlu1 %v1446_v57, %s4490_s20  ;;  %v2031_v57 = vld [vmem:[%s8170_s1] sm:$0xff] }
  0xf7   :  { %1511 = vrot.lane.b32.xlu0 %v1443_v51, %s4490_s20  ;;  %v2032_v51 = vld [vmem:[%s8170_s1 + $0x8] sm:$0xff] }
  0xf8   :  { %v1177_v11 = vpop.permute.xlu1 %1176  ;;  %v4372_v54 = vpack.c.bf16 %v2032_v51, %v2031_v57  ;;  %v1592_v51 = vld [vmem:[%s8169_s0 + $0xa1] sm:$0xff] }
  0xf9   :  { %v1171_v37 = vpop.permute.xlu0 %1170  ;;  %1237 = vst.msk [vmem:[#allocation2 + $0xf0] sm:$0xff] %vm1221_vm7, %v1177_v11  ;;  %v1609_v11 = vsel %vm8263_vm3, %v1584_v47, 0.0  ;;  %vm8265_vm3 = vcmp.gt.s32.totalorder %v4928_v19, 0 }
  0xfa   :  { %1234 = vst.msk [vmem:[#allocation2 + $0xc0] sm:$0xff] %vm1221_vm7, %v1171_v37  ;;  %1521 = vrot.lane.b32.xlu1 %v1448_v7, %s4490_s20  ;;  %v4492_v7 = vmov 0.0|0.0   ;;  %v1589_v37 = vld [vmem:[%s8169_s0 + $0x89] sm:$0xff] }
  0xfb   :  { %1515 = vrot.lane.b32.xlu0 %v1445_v52, %s4490_s20  ;;  %4371 = vmatprep.subr.bf16.mxu0 %v4492_v7  ;;  %v1612_v52 = vsel %vm525_vm0, %v1587_v35, 0.0  ;;  %v2040_v35 = vld [vmem:[%s8170_s1 + $0x48] sm:$0xff] }
  0xfc   :  { %v1181_v3 = vpop.permute.xlu1 %1180  ;;  %4373 = vmatpush1.bf16.msra.mxu0 %v4372_v54  ;;  %4398 = vmatprep.subr.bf16.mxu1 %v4492_v7 }
  0xfd   :  { %v1175_v63 = vpop.permute.xlu0 %1174  ;;  %1239 = vst.msk [vmem:[#allocation2 + $0x110] sm:$0xff] %vm1221_vm7, %v1181_v3  ;;  %4374 = vmatprep.subr.bf16.mxu0 %v4492_v7  ;;  %v1586_v3 = vld [vmem:[%s8169_s0 + $0x71] sm:$0xff]  ;;  %4400 = vmatpush1.bf16.msra.mxu1 %v4372_v54  ;;  %v1617_v54 = vsel %vm8225_vm4, %v1592_v51, 0.0  ;;  %vm8341_vm4 = vcmp.gt.s32.totalorder %v4604_v53, 0 }
  0xfe   :  { %1236 = vst.msk [vmem:[#allocation2 + $0xe0] sm:$0xff] %vm1221_vm7, %v1175_v63  ;;  %1652 = vrot.lane.b32.xlu1 %v1602_v24, %s4491_s5  ;;  %v2034_v24 = vld [vmem:[%s8170_s1 + $0x18] sm:$0xff]  ;;  %4401 = vmatprep.subr.bf16.mxu1 %v4492_v7  ;;  %v1614_v63 = vsel %vm8264_vm11, %v1589_v37, 0.0  ;;  %v1611_v50 = vsel %vm524_vm9, %v1586_v3, 0.0  ;;  %vm8266_vm11 = vcmp.gt.s32.totalorder %v4962_v23, 0 }
  0xff   :  { %1519 = vrot.lane.b32.xlu0 %v1447_v4, %s4490_s20  ;;  %v4375_v10 = vpack.c.bf16 %v2034_v24, %v2033_v34  ;;  %v2042_v37 = vld [vmem:[%s8170_s1 + $0x58] sm:$0xff] }
 0x100   :  { %v1185_v49 = vpop.permute.xlu1 %1184  ;;  %v1594_v24 = vld [vmem:[%s8169_s0 + $0xb1] sm:$0xff] }
 0x101   :  { %v1179_v13 = vpop.permute.xlu0 %1178  ;;  %1241 = vst.msk [vmem:[#allocation2 + $0x130] sm:$0xff] %vm1221_vm7, %v1185_v49  ;;  %4376 = vmatpush1.bf16.msra.mxu0 %v4375_v10  ;;  %v2035_v49 = vld [vmem:[%s8170_s1 + $0x20] sm:$0xff]  ;;  %4403 = vmatpush1.bf16.msra.mxu1 %v4375_v10 }
 0x102   :  { %1238 = vst.msk [vmem:[#allocation2 + $0x100] sm:$0xff] %vm1221_vm7, %v1179_v13  ;;  %1656 = vrot.lane.b32.xlu1 %v1604_v45, %s4491_s5  ;;  %4377 = vmatprep.subr.bf16.mxu0 %v4492_v7 }
 0x103   :  { %1523 = vrot.lane.b32.xlu0 %v1449_v8, %s4490_s20  ;;  %v1591_v8 = vld [vmem:[%s8169_s0 + $0x99] sm:$0xff]  ;;  %4404 = vmatprep.subr.bf16.mxu1 %v4492_v7 }
 0x104   :  { %v1189_v9 = vpop.permute.xlu1 %1188 }
 0x105   :  { %v1183_v6 = vpop.permute.xlu0 %1182  ;;  %1243 = vst.msk [vmem:[#allocation2 + $0x150] sm:$0xff] %vm1221_vm7, %v1189_v9  ;;  %v1613_v9 = vsel %vm526_vm13, %v1588_v16, 0.0 }
 0x106   :  { %1240 = vst.msk [vmem:[#allocation2 + $0x120] sm:$0xff] %vm1221_vm7, %v1183_v6  ;;  %1660 = vrot.lane.b32.xlu1 %v1606_v20, %s4491_s5  ;;  %v4378_v20 = vpack.c.bf16 %v2036_v58, %v2035_v49  ;;  %v1593_v6 = vld [vmem:[%s8169_s0 + $0xa9] sm:$0xff]  ;;  %v1596_v58 = vld [vmem:[%s8169_s0 + $0xc1] sm:$0xff] }
 0x107   :  { %1654 = vrot.lane.b32.xlu0 %v1603_v14, %s4491_s5  ;;  %v1616_v14 = vsel %vm8265_vm3, %v1591_v8, 0.0  ;;  %vm8267_vm3 = vcmp.gt.s32.totalorder %v5005_v56, 0  ;;  %v2044_v8 = vld [vmem:[%s8170_s1 + $0x68] sm:$0xff] }
 0x108   :  { %v1193_v17 = vpop.permute.xlu1 %1192  ;;  %4379 = vmatpush1.bf16.msra.mxu0 %v4378_v20  ;;  %4406 = vmatpush1.bf16.msra.mxu1 %v4378_v20  ;;  %v1906_v20 = vld [vmem:[%s8169_s0 + $0x2b] sm:$0xff] }
 0x109   :  { %v1187_v44 = vpop.permute.xlu0 %1186  ;;  %1245 = vst.msk [vmem:[#allocation2 + $0x170] sm:$0xff] %vm1221_vm7, %v1193_v17  ;;  %4380 = vmatprep.subr.bf16.mxu0 %v4492_v7  ;;  %v1590_v17 = vld [vmem:[%s8169_s0 + $0x91] sm:$0xff]  ;;  %4407 = vmatprep.subr.bf16.mxu1 %v4492_v7 }
 0x10a   :  { %1242 = vst.msk [vmem:[#allocation2 + $0x140] sm:$0xff] %vm1221_vm7, %v1187_v44  ;;  %1664 = vrot.lane.b32.xlu1 %v1608_v28, %s4491_s5  ;;  %v2038_v28 = vld [vmem:[%s8170_s1 + $0x38] sm:$0xff]  ;;  %v1618_v44 = vsel %vm8266_vm11, %v1593_v6, 0.0  ;;  %v1615_v33 = vsel %vm8226_vm10, %v1590_v17, 0.0  ;;  %vm8268_vm11 = vcmp.gt.s32.totalorder %v5017_v61, 0  ;;  %v2045_v6 = vld [vmem:[%s8170_s1 + $0x70] sm:$0xff] }
 0x10b   :  { %1658 = vrot.lane.b32.xlu0 %v1605_v12, %s4491_s5  ;;  %v4381_v32 = vpack.c.bf16 %v2038_v28, %v2037_v43  ;;  %v1619_v10 = vsel %vm8268_vm11, %v1594_v24, 0.0  ;;  %v2046_v43 = vld [vmem:[%s8170_s1 + $0x78] sm:$0xff]  ;;  %vm8270_vm11 = vcmp.lt.s32.totalorder %v4604_v53, 13  ;;  %vm8342_vm10 = vcmask 130048  }
 0x10c   :  { %v1299_v26 = vpop.permute.xlu1 %1298  ;;  %v1931_v28 = vsel %vm8270_vm11, %v1906_v20, 0.0  ;;  %v1598_v17 = vld [vmem:[%s8169_s0 + $0xd1] sm:$0xff]  ;;  %vm8272_vm11 = vcmp.gt.s32.totalorder %v5116_v25, 0 }
 0x10d   :  { %v1191_v1 = vpop.permute.xlu0 %1190  ;;  %1374 = vst.msk [vmem:[#allocation2] sm:$0xff] %vm1373_vm12, %v1299_v26  ;;  %4382 = vmatpush1.bf16.msra.mxu0 %v4381_v32  ;;  %v2039_v26 = vld [vmem:[%s8170_s1 + $0x40] sm:$0xff]  ;;  %4409 = vmatpush1.bf16.msra.mxu1 %v4381_v32  ;;  %v4393_v32 = vpack.c.bf16 %v2046_v43, %v2045_v6  ;;  %v1910_v20 = vld [vmem:[%s8169_s0 + $0x4b] sm:$0xff] }
 0x10e   :  { %1244 = vst.msk [vmem:[#allocation2 + $0x160] sm:$0xff] %vm1221_vm7, %v1191_v1  ;;  %1668 = vrot.lane.b32.xlu1 %v1610_v42, %s4491_s5  ;;  %4383 = vmatprep.subr.bf16.mxu0 %v4492_v7  ;;  %v4384_v1 = vpack.c.bf16 %v2040_v35, %v2039_v26  ;;  %v2047_v26 = vld [vmem:[%s8170_s1 + $0x80] sm:$0xff]  ;;  %v2048_v35 = vld [vmem:[%s8170_s1 + $0x88] sm:$0xff] }
 0x10f   :  { %1662 = vrot.lane.b32.xlu0 %v1607_v62, %s4491_s5  ;;  %v1595_v62 = vld [vmem:[%s8169_s0 + $0xb9] sm:$0xff]  ;;  %4410 = vmatprep.subr.bf16.mxu1 %v4492_v7 }
 0x110   :  { %v1303_v36 = vpop.permute.xlu1 %1302  ;;  %v1620_v47 = vsel %vm8267_vm3, %v1595_v62, 0.0  ;;  %vm8269_vm3 = vcmp.gt.s32.totalorder %v5066_v48, 0  ;;  %v6107_v43 = vld [vmem:[%s8169_s0 + $0x13b] sm:$0xff] }
 0x111   :  { %v1195_v4 = vpop.permute.xlu0 %1194  ;;  %1376 = vst.msk [vmem:[#allocation2 + $0x20] sm:$0xff] %vm1373_vm12, %v1303_v36  ;;  %4385 = vmatpush1.bf16.msra.mxu0 %v4384_v1  ;;  %v2041_v36 = vld [vmem:[%s8170_s1 + $0x50] sm:$0xff]  ;;  %4412 = vmatpush1.bf16.msra.mxu1 %v4384_v1  ;;  %v1600_v1 = vld [vmem:[%s8169_s0 + $0xe1] sm:$0xff] }
 0x112   :  { %1247 = vst.msk [vmem:[#allocation2 + $0x180] sm:$0xf] %vm8218_vm14, %v1195_v4  ;;  %1672 = vrot.lane.b32.xlu1 %v1612_v52, %s4491_s5  ;;  %4386 = vmatprep.subr.bf16.mxu0 %v4492_v7  ;;  %v4387_v4 = vpack.c.bf16 %v2042_v37, %v2041_v36  ;;  %vm8273_vm14 = vcmp.gt.s32.totalorder %v5098_v0, 0  ;;  %v1908_v36 = vld [vmem:[%s8169_s0 + $0x3b] sm:$0xff] }
 0x113   :  { %1666 = vrot.lane.b32.xlu0 %v1609_v11, %s4491_s5  ;;  %v1597_v11 = vld [vmem:[%s8169_s0 + $0xc9] sm:$0xff]  ;;  %4413 = vmatprep.subr.bf16.mxu1 %v4492_v7 }
 0x114   :  { %v1307_v45 = vpop.permute.xlu1 %1306  ;;  %v1622_v3 = vsel %vm8223_vm2, %v1597_v11, 0.0  ;;  %vm8331_vm2 = vcmask 130048  }
 0x115   :  { %v1301_v13 = vpop.permute.xlu0 %1300  ;;  %1378 = vst.msk [vmem:[#allocation2 + $0x40] sm:$0xff] %vm1373_vm12, %v1307_v45  ;;  %4388 = vmatpush1.bf16.msra.mxu0 %v4387_v4  ;;  %v2043_v45 = vld [vmem:[%s8170_s1 + $0x60] sm:$0xff]  ;;  %4415 = vmatpush1.bf16.msra.mxu1 %v4387_v4 }
 0x116   :  { %1375 = vst.msk [vmem:[#allocation2 + $0x10] sm:$0xff] %vm1373_vm12, %v1301_v13  ;;  %1676 = vrot.lane.b32.xlu1 %v1614_v63, %s4491_s5  ;;  %4389 = vmatprep.subr.bf16.mxu0 %v4492_v7  ;;  %v4390_v13 = vpack.c.bf16 %v2044_v8, %v2043_v45 }
 0x117   :  { %1670 = vrot.lane.b32.xlu0 %v1611_v50, %s4491_s5  ;;  %v1599_v50 = vld [vmem:[%s8169_s0 + $0xd9] sm:$0xff]  ;;  %4416 = vmatprep.subr.bf16.mxu1 %v4492_v7 }
 0x118   :  { %v1311_v60 = vpop.permute.xlu1 %1310  ;;  %v1624_v16 = vsel %vm8220_vm8, %v1599_v50, 0.0  ;;  %vm8280_vm8 = vmmov %vm8279_vm6 }
 0x119   :  { %v1305_v12 = vpop.permute.xlu0 %1304  ;;  %1380 = vst.msk [vmem:[#allocation2 + $0x60] sm:$0xff] %vm1373_vm12, %v1311_v60  ;;  %4391 = vmatpush1.bf16.msra.mxu0 %v4390_v13  ;;  %v1601_v60 = vld [vmem:[%s8169_s0 + $0xe9] sm:$0xf]  ;;  %4418 = vmatpush1.bf16.msra.mxu1 %v4390_v13 }
 0x11a   :  { %1377 = vst.msk [vmem:[#allocation2 + $0x30] sm:$0xff] %vm1373_vm12, %v1305_v12  ;;  %1680 = vrot.lane.b32.xlu1 %v1616_v14, %s4491_s5  ;;  %v1621_v14 = vsel %vm8269_vm3, %v1596_v58, 0.0  ;;  %4392 = vmatprep.subr.bf16.mxu0 %v4492_v7  ;;  %vm8271_vm3 = vcmask 130048  }
 0x11b   :  { %1674 = vrot.lane.b32.xlu0 %v1613_v9, %s4491_s5  ;;  %1956 = vst.msk [vmem:[#allocation2 + $0x8] sm:$0xff] %vm8271_vm3, %v1931_v28  ;;  %4419 = vmatprep.subr.bf16.mxu1 %v4492_v7  ;;  %vm8274_vm3 = vcmp.lt.s32.totalorder %v4632_v2, 13  ;;  %v1761_v28 = vld [vmem:[%s8169_s0 + $0x62] sm:$0xff] }
 0x11c   :  { %v1315_v42 = vpop.permute.xlu1 %1314 }
 0x11d   :  { %v1309_v57 = vpop.permute.xlu0 %1308  ;;  %1382 = vst.msk [vmem:[#allocation2 + $0x80] sm:$0xff] %vm1373_vm12, %v1315_v42  ;;  %4394 = vmatpush1.bf16.msra.mxu0 %v4393_v32  ;;  %v1623_v42 = vsel %vm8273_vm14, %v1598_v17, 0.0  ;;  %vm8275_vm14 = vcmask 130048   ;;  %4421 = vmatpush1.bf16.msra.mxu1 %v4393_v32  ;;  %v1911_v32 = vld [vmem:[%s8169_s0 + $0x53] sm:$0xff] }
 0x11e   :  { %1379 = vst.msk [vmem:[#allocation2 + $0x50] sm:$0xff] %vm1373_vm12, %v1309_v57  ;;  %1684 = vrot.lane.b32.xlu1 %v1618_v44, %s4491_s5  ;;  %v1626_v44 = vsel %vm8272_vm11, %v1601_v60, 0.0  ;;  %4395 = vmatprep.subr.bf16.mxu0 %v4492_v7  ;;  %vm8276_vm11 = vcmp.lt.s32.totalorder %v4604_v53, 13 }
 0x11f   :  { %1678 = vrot.lane.b32.xlu0 %v1615_v33, %s4491_s5  ;;  %v1907_v33 = vld [vmem:[%s8169_s0 + $0x33] sm:$0xff]  ;;  %4422 = vmatprep.subr.bf16.mxu1 %v4492_v7 }
 0x120   :  { %v1319_v52 = vpop.permute.xlu1 %1318  ;;  %v1932_v57 = vsel %vm8274_vm3, %v1907_v33, 0.0  ;;  %vm8277_vm3 = vcmp.gt.s32.totalorder %v5166_v41, 0 }
 0x121   :  { %v1313_v34 = vpop.permute.xlu0 %1312  ;;  %1384 = vst.msk [vmem:[#allocation2 + $0xa0] sm:$0xff] %vm1373_vm12, %v1319_v52  ;;  %v1755_v52 = vld [vmem:[%s8169_s0 + $0x32] sm:$0xff]  ;;  %v1625_v37 = vsel %vm8277_vm3, %v1600_v1, 0.0  ;;  %vm8283_vm3 = vcmp.lt.s32.totalorder %v4632_v2, 13 }
 0x122   :  { %1381 = vst.msk [vmem:[#allocation2 + $0x70] sm:$0xff] %vm1373_vm12, %v1313_v34  ;;  %1688 = vrot.lane.b32.xlu1 %v1620_v47, %s4491_s5  ;;  %v4396_v47 = vpack.c.bf16 %v2048_v35, %v2047_v26  ;;  %v1982_v7 = vld [vmem:[#allocation2 + $0x8] sm:$0xff] }
 0x123   :  { %1682 = vrot.lane.b32.xlu0 %v1617_v54, %s4491_s5  ;;  %1957 = vst.msk [vmem:[#allocation2 + $0x18] sm:$0xff] %vm8275_vm14, %v1932_v57  ;;  %v6038_v54 = vld [vmem:[%s8169_s0 + $0x12b] sm:$0xff]  ;;  %vm8278_vm14 = vcmp.lt.s32.totalorder %v4616_v59, 13  ;;  %4070 = vmatprep.mubr.msk.f32.mxu0 %vm8279_vm6, %v1982_v7  ;;  %v6137_v35 = vld [vmem:[%s8169_s0 + $0x143] sm:$0xff] }
 0x124   :  { %v1323_v63 = vpop.permute.xlu1 %1322  ;;  %4397 = vmatpush1.bf16.msra.mxu0 %v4396_v47  ;;  %v3624_v11 = vsel %vm8276_vm11, %v6038_v54, 0.0  ;;  %v1933_v24 = vsel %vm8278_vm14, %v1908_v36, 0.0  ;;  %vm8281_vm11 = vmmov %vm8279_vm6  ;;  %4424 = vmatpush1.bf16.msra.mxu1 %v4396_v47  ;;  %v1912_v47 = vld [vmem:[%s8169_s0 + $0x5b] sm:$0xff] }
 0x125   :  { %v1317_v49 = vpop.permute.xlu0 %1316  ;;  %1386 = vst.msk [vmem:[#allocation2 + $0xc0] sm:$0xff] %vm1373_vm12, %v1323_v63  ;;  %v1754_v63 = vld [vmem:[%s8169_s0 + $0x2a] sm:$0xff]  ;;  %vm8284_vm14 = vmmov %vm8279_vm6 }
 0x126   :  { %1383 = vst.msk [vmem:[#allocation2 + $0x90] sm:$0xff] %vm1373_vm12, %v1317_v49  ;;  %1692 = vrot.lane.b32.xlu1 %v1622_v3, %s4491_s5  ;;  %v1757_v3 = vld [vmem:[%s8169_s0 + $0x42] sm:$0xff]  ;;  %v6077_v49 = vld [vmem:[%s8169_s0 + $0x133] sm:$0xff] }
 0x127   :  { %1686 = vrot.lane.b32.xlu0 %v1619_v10, %s4491_s5  ;;  %3649 = vst.msk [vmem:[#allocation2 + $0x8] sm:$0xff] %vm8280_vm8, %v3624_v11  ;;  %v1909_v10 = vld [vmem:[%s8169_s0 + $0x43] sm:$0xff]  ;;  %vm8282_vm8 = vcmp.lt.s32.totalorder %v4674_v27, 13  ;;  %v3625_v13 = vsel %vm8283_vm3, %v6077_v49, 0.0  ;;  %vm8287_vm3 = vcmp.lt.s32.totalorder %v4616_v59, 13 }
 0x128   :  { %v1327_v9 = vpop.permute.xlu1 %1326  ;;  %1958 = vst.msk [vmem:[#allocation2 + $0x28] sm:$0xff] %vm8281_vm11, %v1933_v24  ;;  %v1934_v45 = vsel %vm8282_vm8, %v1909_v10, 0.0  ;;  %vm8285_vm11 = vcmp.lt.s32.totalorder %v4662_v21, 13  ;;  %vm8286_vm8 = vmmov %vm8279_vm6  ;;  %v3626_v17 = vsel %vm8287_vm3, %v6107_v43, 0.0  ;;  %vm1550_vm3 = vcmask 786048   ;;  %v4120_v10 = vld [vmem:[%s8169_s0 + $0x10e] sm:$0xff] }
 0x129   :  { %v1321_v12 = vpop.permute.xlu0 %1320  ;;  %1388 = vst.msk [vmem:[#allocation2 + $0xe0] sm:$0xff] %vm1373_vm12, %v1327_v9  ;;  %v1935_v60 = vsel %vm8285_vm11, %v1910_v20, 0.0  ;;  %vm8289_vm11 = vcmp.lt.s32.totalorder %v4752_v5, 13 }
 0x12a   :  { %1385 = vst.msk [vmem:[#allocation2 + $0xb0] sm:$0xff] %vm1373_vm12, %v1321_v12  ;;  %1696 = vrot.lane.b32.xlu1 %v1624_v16, %s4491_s5  ;;  %v6082_v58 = vld [vmem:[#allocation2 + $0x18] sm:$0xff] }
 0x12b   :  { %1690 = vrot.lane.b32.xlu0 %v1621_v14, %s4491_s5  ;;  %1959 = vst.msk [vmem:[#allocation2 + $0x38] sm:$0xff] %vm8279_vm6, %v1934_v45  ;;  %v1759_v16 = vld [vmem:[%s8169_s0 + $0x52] sm:$0xff]  ;;  %v1756_v14 = vld [vmem:[%s8169_s0 + $0x3a] sm:$0xff]  ;;  %vm8221_vm6 = vcmask 650752  }
 0x12c   :  { %v1331_v62 = vpop.permute.xlu1 %1330  ;;  %3650 = vst.msk [vmem:[#allocation2 + $0x18] sm:$0xff] %vm8284_vm14, %v3625_v13  ;;  %vm8288_vm14 = vmmov %vm8286_vm8  ;;  %v4170_v13 = vld [vmem:[%s8169_s0 + $0x11b] sm:$0xff] }
 0x12d   :  { %v1325_v51 = vpop.permute.xlu0 %1324  ;;  %1390 = vst.msk [vmem:[#allocation2 + $0x100] sm:$0xff] %vm1373_vm12, %v1331_v62  ;;  %v1936_v62 = vsel %vm8289_vm11, %v1911_v32, 0.0  ;;  %vm8291_vm11 = vcmp.lt.s32.totalorder %v4674_v27, 13  ;;  %v6219_v32 = vld [vmem:[%s8169_s0 + $0x15b] sm:$0xff] }
 0x12e   :  { %1387 = vst.msk [vmem:[#allocation2 + $0xd0] sm:$0xff] %vm1373_vm12, %v1325_v51  ;;  %1700 = vrot.lane.b32.xlu1 %v1626_v44, %s4491_s5  ;;  %v1758_v44 = vld [vmem:[%s8169_s0 + $0x4a] sm:$0xff]  ;;  %v3627_v1 = vsel %vm8291_vm11, %v6137_v35, 0.0  ;;  %vm8294_vm11 = vcmp.lt.s32.totalorder %v4662_v21, 13 }
 0x12f   :  { %1694 = vrot.lane.b32.xlu0 %v1623_v42, %s4491_s5  ;;  %1960 = vst.msk [vmem:[#allocation2 + $0x48] sm:$0xff] %vm8286_vm8, %v1935_v60  ;;  %v6113_v12 = vld [vmem:[#allocation2 + $0x28] sm:$0xff]  ;;  %1961 = vst.msk [vmem:[#allocation2 + $0x58] sm:$0xff] %vm8286_vm8, %v1936_v62  ;;  %v4121_v62 = vld [vmem:[%s8169_s0 + $0x116] sm:$0xff] }
 0x130   :  { %v1335_v34 = vpop.permute.xlu1 %1334  ;;  %v4145_v42 = vld [vmem:[%s8169_s0 + $0x10f] sm:$0xff]  ;;  %3651 = vst.msk [vmem:[#allocation2 + $0x28] sm:$0xff] %vm8288_vm14, %v3626_v17  ;;  %vm8290_vm14 = vcmp.lt.s32.totalorder %v4604_v53, 13 }
 0x131   :  { %v1329_v4 = vpop.permute.xlu0 %1328  ;;  %1392 = vst.msk [vmem:[#allocation2 + $0x120] sm:$0xff] %vm1373_vm12, %v1335_v34  ;;  %v2624_v57 = vsel %vm8290_vm14, %v4145_v42, 0.0  ;;  %v6160_v34 = vld [vmem:[%s8169_s0 + $0x14b] sm:$0xff]  ;;  %vm8293_vm14 = vmmov %vm8286_vm8 }
 0x132   :  { %1389 = vst.msk [vmem:[#allocation2 + $0xf0] sm:$0xff] %vm1373_vm12, %v1329_v4  ;;  %1806 = vrot.lane.b32.xlu1 %v1755_v52, %s4493_s14  ;;  %v6142_v51 = vld [vmem:[#allocation2 + $0x38] sm:$0xff]  ;;  %v3628_v24 = vsel %vm8294_vm11, %v6160_v34, 0.0  ;;  %vm8298_vm11 = vcmp.lt.s32.totalorder %v4752_v5, 13 }
 0x133   :  { %1698 = vrot.lane.b32.xlu0 %v1625_v37, %s4491_s5  ;;  %v1760_v52 = vld [vmem:[%s8169_s0 + $0x5a] sm:$0xff]  ;;  %3652 = vst.msk [vmem:[#allocation2 + $0x38] sm:$0xff] %vm8286_vm8, %v3627_v1 }
 0x134   :  { %v1339_v50 = vpop.permute.xlu1 %1338  ;;  %v4195_v4 = vld [vmem:[%s8169_s0 + $0x11c] sm:$0xff] }
 0x135   :  { %v1333_v8 = vpop.permute.xlu0 %1332  ;;  %1394 = vst.msk [vmem:[#allocation2 + $0x140] sm:$0xff] %vm1373_vm12, %v1339_v50  ;;  %v6184_v50 = vld [vmem:[%s8169_s0 + $0x11d] sm:$0xff] }
 0x136   :  { %1391 = vst.msk [vmem:[#allocation2 + $0x110] sm:$0xff] %vm1373_vm12, %v1333_v8  ;;  %1810 = vrot.lane.b32.xlu1 %v1757_v3, %s4493_s14  ;;  %v6165_v7 = vld [vmem:[#allocation2 + $0x48] sm:$0xff]  ;;  %v6200_v20 = vld [vmem:[#allocation2 + $0x58] sm:$0xff] }
 0x137   :  { %1804 = vrot.lane.b32.xlu0 %v1754_v63, %s4493_s14  ;;  %v1913_v3 = vld [vmem:[%s8169_s0 + $0x63] sm:$0xff]  ;;  %v4146_v1 = vld [vmem:[%s8169_s0 + $0x117] sm:$0xff] }
 0x138   :  { %v1343_v9 = vpop.permute.xlu1 %1342 }
 0x139   :  { %v1337_v6 = vpop.permute.xlu0 %1336  ;;  %1396 = vst.msk [vmem:[#allocation2 + $0x160] sm:$0xff] %vm1373_vm12, %v1343_v9 }
 0x13a   :  { %1393 = vst.msk [vmem:[#allocation2 + $0x130] sm:$0xff] %vm1373_vm12, %v1337_v6  ;;  %1814 = vrot.lane.b32.xlu1 %v1759_v16, %s4493_s14  ;;  %v6195_v16 = vld [vmem:[%s8169_s0 + $0x153] sm:$0xff] }
 0x13b   :  { %1808 = vrot.lane.b32.xlu0 %v1756_v14, %s4493_s14  ;;  %v3629_v14 = vsel %vm8298_vm11, %v6195_v16, 0.0  ;;  %vm8302_vm11 = vcmp.lt.s32.totalorder %v4701_v39, 13 }
 0x13c   :  { %v1347_v33 = vpop.permute.xlu1 %1346 }
 0x13d   :  { %v1341_v26 = vpop.permute.xlu0 %1340  ;;  %1399 = vst.msk [vmem:[#allocation2 + $0x180] sm:$0xf] %vm8221_vm6, %v1347_v33  ;;  %vm8292_vm6 = vcmp.lt.s32.totalorder %v4701_v39, 13  ;;  %v3630_v33 = vsel %vm8302_vm11, %v6219_v32, 0.0 }
 0x13e   :  { %1395 = vst.msk [vmem:[#allocation2 + $0x150] sm:$0xff] %vm1373_vm12, %v1341_v26  ;;  %1818 = vrot.lane.b32.xlu1 %v1761_v28, %s4493_s14  ;;  %v1937_v36 = vsel %vm8292_vm6, %v1912_v47, 0.0  ;;  %vm8295_vm6 = vmmov %vm8286_vm8  ;;  %vm8296_vm8 = vcmp.lt.s32.totalorder %v4803_v38, 13  ;;  %v4245_v28 = vld [vmem:[%s8169_s0 + $0x129] sm:$0xff] }
 0x13f   :  { %1812 = vrot.lane.b32.xlu0 %v1758_v44, %s4493_s14  ;;  %1962 = vst.msk [vmem:[#allocation2 + $0x68] sm:$0xff] %vm8293_vm14, %v1937_v36  ;;  %v1938_v45 = vsel %vm8296_vm8, %v1913_v3, 0.0  ;;  %vm8297_vm14 = vmmov %vm8295_vm6  ;;  %v6242_v47 = vld [vmem:[%s8169_s0 + $0x163] sm:$0xff] }
 0x140   :  { %v1478_v11 = vpop.permute.xlu1 %1477  ;;  %3653 = vst.msk [vmem:[#allocation2 + $0x48] sm:$0xff] %vm8295_vm6, %v3628_v24  ;;  %vm8299_vm6 = vcmp.lt.s32.totalorder %v4604_v53, 13  ;;  %vm8300_vm8 = vmmov %vm8297_vm14  ;;  %v4270_v36 = vld [vmem:[%s8169_s0 + $0x12a] sm:$0xff] }
 0x141   :  { %v1345_v37 = vpop.permute.xlu0 %1344  ;;  %1552 = vst.msk [vmem:[#allocation2 + $0x10] sm:$0xff] %vm1550_vm3, %v1478_v11  ;;  %v3124_v9 = vsel %vm8299_vm6, %v6184_v50, 0.0  ;;  %vm8305_vm11 = vmmov %vm8300_vm8 }
 0x142   :  { %1397 = vst.msk [vmem:[#allocation2 + $0x170] sm:$0xff] %vm1373_vm12, %v1345_v37  ;;  %2674 = vrot.lane.b32.xlu1 %v2624_v57, %s4487_s4  ;;  %v3675_v37 = vld [vmem:[#allocation2 + $0x8] sm:$0xff] }
 0x143   :  { %1816 = vrot.lane.b32.xlu0 %v1760_v52, %s4493_s14  ;;  %1963 = vst.msk [vmem:[#allocation2 + $0x78] sm:$0xff] %vm8297_vm14, %v1938_v45  ;;  %vm8301_vm14 = vcmp.gt.s32.totalorder %v4604_v53, 0  ;;  %4321 = vmatprep.mubr.msk.f32.mxu1 %vm8300_vm8, %v3675_v37 }
 0x144   :  { %v1482_v63 = vpop.permute.xlu1 %1481  ;;  %3654 = vst.msk [vmem:[#allocation2 + $0x58] sm:$0xff] %vm8300_vm8, %v3629_v14  ;;  %v2799_v60 = vsel %vm8301_vm14, %v4170_v13, 0.0  ;;  %vm8303_vm6 = vmmov %vm8301_vm14  ;;  %vm8304_vm14 = vcmp.lt.s32.totalorder %v4803_v38, 13  ;;  %v4147_v13 = vld [vmem:[%s8169_s0 + $0x11f] sm:$0xff] }
 0x145   :  { %v1476_v8 = vpop.permute.xlu0 %1475  ;;  %1554 = vst.msk [vmem:[#allocation2 + $0x30] sm:$0xff] %vm1550_vm3, %v1482_v63  ;;  %v3299_v42 = vsel %vm8303_vm6, %v4245_v28, 0.0  ;;  %v3631_v11 = vsel %vm8304_vm14, %v6242_v47, 0.0  ;;  %vm8306_vm6 = vcmp.lt.s32.totalorder %v4632_v2, 13  ;;  %v4122_v63 = vld [vmem:[%s8169_s0 + $0x11e] sm:$0xff]  ;;  %vm8307_vm14 = vcmp.gt.s32.totalorder %v4632_v2, 0 }
 0x146   :  { %1551 = vst.msk [vmem:[#allocation2] sm:$0xff] %vm1550_vm3, %v1476_v8  ;;  %2999 = vrot.lane.b32.xlu1 %v4195_v4, %s4489_s17  ;;  %v6223_v44 = vld [vmem:[#allocation2 + $0x68] sm:$0xff]  ;;  %v2625_v24 = vsel %vm8306_vm6, %v4146_v1, 0.0  ;;  %vm8309_vm6 = vcmp.gt.s32.totalorder %v4616_v59, 0 }
 0x147   :  { %2499 = vrot.lane.b32.xlu0 %v4120_v10, %s4485_s16  ;;  %3655 = vst.msk [vmem:[#allocation2 + $0x68] sm:$0xff] %vm8300_vm8, %v3630_v33  ;;  %v4171_v10 = vld [vmem:[%s8169_s0 + $0x123] sm:$0xff]  ;;  %v2801_v33 = vsel %vm8309_vm6, %v6038_v54, 0.0  ;;  %vm8310_vm8 = vcmp.lt.s32.totalorder %v4632_v2, 13  ;;  %v4197_v54 = vld [vmem:[%s8169_s0 + $0x12c] sm:$0xff] }
 0x148   :  { %v1486_v6 = vpop.permute.xlu1 %1485  ;;  %v2800_v45 = vsel %vm8307_vm14, %v4171_v10, 0.0  ;;  %v4247_v10 = vld [vmem:[%s8169_s0 + $0x139] sm:$0xff] }
 0x149   :  { %v1480_v17 = vpop.permute.xlu0 %1479  ;;  %1556 = vst.msk [vmem:[#allocation2 + $0x50] sm:$0xff] %vm1550_vm3, %v1486_v6 }
 0x14a   :  { %1553 = vst.msk [vmem:[#allocation2 + $0x20] sm:$0xff] %vm1550_vm3, %v1480_v17  ;;  %3174 = vrot.lane.b32.xlu1 %v3124_v9, %s4490_s20  ;;  %v6246_v52 = vld [vmem:[#allocation2 + $0x78] sm:$0xff]  ;;  %v6287_v17 = vld [vmem:[%s8169_s0 + $0x125] sm:$0xff] }
 0x14b   :  { %2849 = vrot.lane.b32.xlu0 %v2799_v60, %s4488_s13  ;;  %3656 = vst.msk [vmem:[#allocation2 + $0x78] sm:$0xff] %vm8305_vm11, %v3631_v11  ;;  %vm8308_vm11 = vcmp.lt.s32.totalorder %v4616_v59, 13  ;;  %v4196_v60 = vld [vmem:[%s8169_s0 + $0x124] sm:$0xff] }
 0x14c   :  { %v1490_v26 = vpop.permute.xlu1 %1489  ;;  %v2626_v9 = vsel %vm8308_vm11, %v4147_v13, 0.0 }
 0x14d   :  { %v1484_v57 = vpop.permute.xlu0 %1483  ;;  %1558 = vst.msk [vmem:[#allocation2 + $0x70] sm:$0xff] %vm1550_vm3, %v1490_v26 }
 0x14e   :  { %1555 = vst.msk [vmem:[#allocation2 + $0x40] sm:$0xff] %vm1550_vm3, %v1484_v57  ;;  %3349 = vrot.lane.b32.xlu1 %v3299_v42, %s4491_s5  ;;  %v3125_v42 = vsel %vm8310_vm8, %v6287_v17, 0.0  ;;  %v4246_v57 = vld [vmem:[%s8169_s0 + $0x131] sm:$0xff]  ;;  %vm8311_vm8 = vcmp.lt.s32.totalorder %v4674_v27, 13 }
 0x14f   :  { %2501 = vrot.lane.b32.xlu0 %v4121_v62, %s4485_s16  ;;  %v3300_v1 = vsel %vm8307_vm14, %v4246_v57, 0.0  ;;  %vm1727_vm14 = vcmask 917248   ;;  %v4149_v57 = vld [vmem:[%s8169_s0 + $0x12f] sm:$0xff] }
 0x150   :  { %v1494_v4 = vpop.permute.xlu1 %1493 }
 0x151   :  { %v1488_v3 = vpop.permute.xlu0 %1487  ;;  %1560 = vst.msk [vmem:[#allocation2 + $0x90] sm:$0xff] %vm1550_vm3, %v1494_v4  ;;  %v4271_v4 = vld [vmem:[%s8169_s0 + $0x132] sm:$0xff] }
 0x152   :  { %1557 = vst.msk [vmem:[#allocation2 + $0x60] sm:$0xff] %vm1550_vm3, %v1488_v3  ;;  %3499 = vrot.lane.b32.xlu1 %v4270_v36, %s4493_s14  ;;  %v6313_v36 = vld [vmem:[%s8169_s0 + $0x12d] sm:$0xff] }
 0x153   :  { %2676 = vrot.lane.b32.xlu0 %v2625_v24, %s4487_s4  ;;  %v3126_v24 = vsel %vm8308_vm11, %v6313_v36, 0.0  ;;  %vm8312_vm11 = vcmp.gt.s32.totalorder %v4674_v27, 0 }
 0x154   :  { %v1498_v8 = vpop.permute.xlu1 %1497 }
 0x155   :  { %v1492_v14 = vpop.permute.xlu0 %1491  ;;  %1562 = vst.msk [vmem:[#allocation2 + $0xb0] sm:$0xff] %vm1550_vm3, %v1498_v8  ;;  %v4123_v8 = vld [vmem:[%s8169_s0 + $0x126] sm:$0xff] }
 0x156   :  { %1559 = vst.msk [vmem:[#allocation2 + $0x80] sm:$0xff] %vm1550_vm3, %v1492_v14  ;;  %2503 = vrot.lane.b32.xlu1 %v4122_v63, %s4485_s16 }
 0x157   :  { %2851 = vrot.lane.b32.xlu0 %v2800_v45, %s4488_s13  ;;  %v3301_v45 = vsel %vm8309_vm6, %v4247_v10, 0.0  ;;  %vm8222_vm6 = vcmask 781952  }
 0x158   :  { %v1502_v6 = vpop.permute.xlu1 %1501 }
 0x159   :  { %v1496_v28 = vpop.permute.xlu0 %1495  ;;  %1564 = vst.msk [vmem:[#allocation2 + $0xd0] sm:$0xff] %vm1550_vm3, %v1502_v6 }
 0x15a   :  { %1561 = vst.msk [vmem:[#allocation2 + $0xa0] sm:$0xff] %vm1550_vm3, %v1496_v28  ;;  %2678 = vrot.lane.b32.xlu1 %v2626_v9, %s4487_s4  ;;  %v4148_v9 = vld [vmem:[%s8169_s0 + $0x127] sm:$0xff] }
 0x15b   :  { %3001 = vrot.lane.b32.xlu0 %v4196_v60, %s4489_s17  ;;  %v4272_v60 = vld [vmem:[%s8169_s0 + $0x13a] sm:$0xff]  ;;  %v2627_v6 = vsel %vm8311_vm8, %v4148_v9, 0.0  ;;  %vm8313_vm8 = vcmp.lt.s32.totalorder %v4662_v21, 13 }
 0x15c   :  { %v1506_v62 = vpop.permute.xlu1 %1505 }
 0x15d   :  { %v1500_v26 = vpop.permute.xlu0 %1499  ;;  %1566 = vst.msk [vmem:[#allocation2 + $0xf0] sm:$0xff] %vm1550_vm3, %v1506_v62  ;;  %v2802_v62 = vsel %vm8312_vm11, %v6077_v49, 0.0  ;;  %v4198_v49 = vld [vmem:[%s8169_s0 + $0x134] sm:$0xff]  ;;  %vm8314_vm11 = vcmp.gt.s32.totalorder %v4662_v21, 0 }
 0x15e   :  { %1563 = vst.msk [vmem:[#allocation2 + $0xc0] sm:$0xff] %vm1550_vm3, %v1500_v26  ;;  %2853 = vrot.lane.b32.xlu1 %v2801_v33, %s4488_s13 }
 0x15f   :  { %3176 = vrot.lane.b32.xlu0 %v3125_v42, %s4490_s20  ;;  %v4124_v42 = vld [vmem:[%s8169_s0 + $0x12e] sm:$0xff] }
 0x160   :  { %v1510_v11 = vpop.permute.xlu1 %1509 }
 0x161   :  { %v1504_v37 = vpop.permute.xlu0 %1503  ;;  %1568 = vst.msk [vmem:[#allocation2 + $0x110] sm:$0xff] %vm1550_vm3, %v1510_v11 }
 0x162   :  { %1565 = vst.msk [vmem:[#allocation2 + $0xe0] sm:$0xff] %vm1550_vm3, %v1504_v37  ;;  %3003 = vrot.lane.b32.xlu1 %v4197_v54, %s4489_s17 }
 0x163   :  { %3351 = vrot.lane.b32.xlu0 %v3300_v1, %s4491_s5  ;;  %v2628_v1 = vsel %vm8313_vm8, %v4149_v57, 0.0  ;;  %vm8315_vm8 = vcmp.lt.s32.totalorder %v4674_v27, 13  ;;  %v4125_v57 = vld [vmem:[%s8169_s0 + $0x136] sm:$0xff] }
 0x164   :  { %v1514_v3 = vpop.permute.xlu1 %1513 }
 0x165   :  { %v1508_v63 = vpop.permute.xlu0 %1507  ;;  %1570 = vst.msk [vmem:[#allocation2 + $0x130] sm:$0xff] %vm1550_vm3, %v1514_v3 }
 0x166   :  { %1567 = vst.msk [vmem:[#allocation2 + $0x100] sm:$0xff] %vm1550_vm3, %v1508_v63  ;;  %3178 = vrot.lane.b32.xlu1 %v3126_v24, %s4490_s20  ;;  %v6375_v24 = vld [vmem:[%s8169_s0 + $0x135] sm:$0xff] }
 0x167   :  { %3501 = vrot.lane.b32.xlu0 %v4271_v4, %s4493_s14  ;;  %v2803_v4 = vsel %vm8314_vm11, %v6107_v43, 0.0  ;;  %v3127_v3 = vsel %vm8315_vm8, %v6375_v24, 0.0  ;;  %v4199_v43 = vld [vmem:[%s8169_s0 + $0x13c] sm:$0xff]  ;;  %vm8316_vm11 = vcmp.gt.s32.totalorder %v4674_v27, 0  ;;  %vm8317_vm8 = vcmp.lt.s32.totalorder %v4662_v21, 13 }
 0x168   :  { %v1518_v13 = vpop.permute.xlu1 %1517 }
 0x169   :  { %v1512_v14 = vpop.permute.xlu0 %1511  ;;  %1572 = vst.msk [vmem:[#allocation2 + $0x150] sm:$0xff] %vm1550_vm3, %v1518_v13 }
 0x16a   :  { %1569 = vst.msk [vmem:[#allocation2 + $0x120] sm:$0xff] %vm1550_vm3, %v1512_v14  ;;  %3353 = vrot.lane.b32.xlu1 %v3301_v45, %s4491_s5  ;;  %v4248_v45 = vld [vmem:[%s8169_s0 + $0x141] sm:$0xff] }
 0x16b   :  { %2505 = vrot.lane.b32.xlu0 %v4123_v8, %s4485_s16  ;;  %v3302_v8 = vsel %vm8316_vm11, %v4248_v45, 0.0  ;;  %v6401_v14 = vld [vmem:[%s8169_s0 + $0x13d] sm:$0xff]  ;;  %vm8318_vm11 = vcmp.gt.s32.totalorder %v4662_v21, 0 }
 0x16c   :  { %v1522_v28 = vpop.permute.xlu1 %1521 }
 0x16d   :  { %v1516_v33 = vpop.permute.xlu0 %1515  ;;  %1574 = vst.msk [vmem:[#allocation2 + $0x170] sm:$0xff] %vm1550_vm3, %v1522_v28 }
 0x16e   :  { %1571 = vst.msk [vmem:[#allocation2 + $0x140] sm:$0xff] %vm1550_vm3, %v1516_v33  ;;  %3503 = vrot.lane.b32.xlu1 %v4272_v60, %s4493_s14  ;;  %v3128_v60 = vsel %vm8317_vm8, %v6401_v14, 0.0  ;;  %v4249_v33 = vld [vmem:[%s8169_s0 + $0x149] sm:$0xff]  ;;  %vm8319_vm8 = vcmp.lt.s32.totalorder %v4766_v15, 13 }
 0x16f   :  { %2680 = vrot.lane.b32.xlu0 %v2627_v6, %s4487_s4  ;;  %v4273_v6 = vld [vmem:[%s8169_s0 + $0x142] sm:$0xff] }
 0x170   :  { %v1653_v26 = vpop.permute.xlu1 %1652 }
 0x171   :  { %v1520_v54 = vpop.permute.xlu0 %1519  ;;  %1728 = vst.msk [vmem:[#allocation2] sm:$0xff] %vm1727_vm14, %v1653_v26  ;;  %v1914_v26 = vld [vmem:[%s8169_s0 + $0x6b] sm:$0xff] }
 0x172   :  { %1573 = vst.msk [vmem:[#allocation2 + $0x160] sm:$0xff] %vm1550_vm3, %v1520_v54  ;;  %2507 = vrot.lane.b32.xlu1 %v4124_v42, %s4485_s16 }
 0x173   :  { %2855 = vrot.lane.b32.xlu0 %v2802_v62, %s4488_s13  ;;  %v3303_v62 = vsel %vm8318_vm11, %v4249_v33, 0.0  ;;  %vm8320_vm11 = vcmask 130048  }
 0x174   :  { %v1657_v11 = vpop.permute.xlu1 %1656 }
 0x175   :  { %v1524_v37 = vpop.permute.xlu0 %1523  ;;  %1730 = vst.msk [vmem:[#allocation2 + $0x20] sm:$0xff] %vm1727_vm14, %v1657_v11  ;;  %v4150_v11 = vld [vmem:[%s8169_s0 + $0x137] sm:$0xff] }
 0x176   :  { %1576 = vst.msk [vmem:[#allocation2 + $0x180] sm:$0xf] %vm8222_vm6, %v1524_v37  ;;  %2682 = vrot.lane.b32.xlu1 %v2628_v1, %s4487_s4  ;;  %v1939_v1 = vsel %vm8319_vm8, %v1914_v26, 0.0  ;;  %v4274_v37 = vld [vmem:[%s8169_s0 + $0x14a] sm:$0xff]  ;;  %vm8321_vm8 = vcmp.lt.s32.totalorder %v4752_v5, 13  ;;  %vm8325_vm6 = vcmask 130048  }
 0x177   :  { %3005 = vrot.lane.b32.xlu0 %v4198_v49, %s4489_s17  ;;  %1964 = vst.msk [vmem:[#allocation2 + $0x88] sm:$0xff] %vm8320_vm11, %v1939_v1  ;;  %vm8322_vm11 = vcmp.gt.s32.totalorder %v4752_v5, 0 }
 0x178   :  { %v1661_v10 = vpop.permute.xlu1 %1660  ;;  %v2804_v45 = vsel %vm8322_vm11, %v6137_v35, 0.0  ;;  %vm8324_vm11 = vcmp.lt.s32.totalorder %v4752_v5, 13 }
 0x179   :  { %v1655_v63 = vpop.permute.xlu0 %1654  ;;  %1732 = vst.msk [vmem:[#allocation2 + $0x40] sm:$0xff] %vm1727_vm14, %v1661_v10 }
 0x17a   :  { %1729 = vst.msk [vmem:[#allocation2 + $0x10] sm:$0xff] %vm1727_vm14, %v1655_v63  ;;  %2857 = vrot.lane.b32.xlu1 %v2803_v4, %s4488_s13  ;;  %v2629_v4 = vsel %vm8321_vm8, %v4150_v11, 0.0  ;;  %v4200_v63 = vld [vmem:[%s8169_s0 + $0x144] sm:$0xff]  ;;  %vm8323_vm8 = vcmp.lt.s32.totalorder %v4766_v15, 13 }
 0x17b   :  { %3180 = vrot.lane.b32.xlu0 %v3127_v3, %s4490_s20 }
 0x17c   :  { %v1665_v13 = vpop.permute.xlu1 %1664 }
 0x17d   :  { %v1659_v9 = vpop.permute.xlu0 %1658  ;;  %1734 = vst.msk [vmem:[#allocation2 + $0x60] sm:$0xff] %vm1727_vm14, %v1665_v13 }
 0x17e   :  { %1731 = vst.msk [vmem:[#allocation2 + $0x30] sm:$0xff] %vm1727_vm14, %v1659_v9  ;;  %3007 = vrot.lane.b32.xlu1 %v4199_v43, %s4489_s17  ;;  %v6462_v9 = vld [vmem:[%s8169_s0 + $0x16b] sm:$0xff] }
 0x17f   :  { %3355 = vrot.lane.b32.xlu0 %v3302_v8, %s4491_s5  ;;  %v6456_v8 = vld [vmem:[%s8169_s0 + $0x145] sm:$0xff]  ;;  %v3632_v35 = vsel %vm8323_vm8, %v6462_v9, 0.0  ;;  %vm8327_vm8 = vcmp.lt.s32.totalorder %v4840_v31, 13 }
 0x180   :  { %v1669_v28 = vpop.permute.xlu1 %1668 }
 0x181   :  { %v1663_v42 = vpop.permute.xlu0 %1662  ;;  %1736 = vst.msk [vmem:[#allocation2 + $0x80] sm:$0xff] %vm1727_vm14, %v1669_v28  ;;  %v1762_v28 = vld [vmem:[%s8169_s0 + $0x6a] sm:$0xff] }
 0x182   :  { %1733 = vst.msk [vmem:[#allocation2 + $0x50] sm:$0xff] %vm1727_vm14, %v1663_v42  ;;  %3182 = vrot.lane.b32.xlu1 %v3128_v60, %s4490_s20  ;;  %v6466_v60 = vld [vmem:[#allocation2 + $0x88] sm:$0xff]  ;;  %v4250_v42 = vld [vmem:[%s8169_s0 + $0x151] sm:$0xff] }
 0x183   :  { %3505 = vrot.lane.b32.xlu0 %v4273_v6, %s4493_s14  ;;  %v3129_v6 = vsel %vm8324_vm11, %v6456_v8, 0.0  ;;  %3657 = vst.msk [vmem:[#allocation2 + $0x88] sm:$0xff] %vm8325_vm6, %v3632_v35  ;;  %vm8326_vm6 = vcmp.gt.s32.totalorder %v4752_v5, 0  ;;  %vm8328_vm11 = vcmask 130048   ;;  %v6522_v35 = vld [vmem:[%s8169_s0 + $0x14d] sm:$0xff] }
 0x184   :  { %v1673_v54 = vpop.permute.xlu1 %1672  ;;  %v3304_v26 = vsel %vm8326_vm6, %v4250_v42, 0.0  ;;  %vm8329_vm6 = vcmp.lt.s32.totalorder %v4701_v39, 13 }
 0x185   :  { %v1667_v49 = vpop.permute.xlu0 %1666  ;;  %1738 = vst.msk [vmem:[#allocation2 + $0xa0] sm:$0xff] %vm1727_vm14, %v1673_v54  ;;  %v4126_v54 = vld [vmem:[%s8169_s0 + $0x13e] sm:$0xff]  ;;  %v3130_v42 = vsel %vm8329_vm6, %v6522_v35, 0.0 }
 0x186   :  { %1735 = vst.msk [vmem:[#allocation2 + $0x70] sm:$0xff] %vm1727_vm14, %v1667_v49  ;;  %3357 = vrot.lane.b32.xlu1 %v3303_v62, %s4491_s5 }
 0x187   :  { %2509 = vrot.lane.b32.xlu0 %v4125_v57, %s4485_s16  ;;  %v1915_v57 = vld [vmem:[%s8169_s0 + $0x73] sm:$0xff] }
 0x188   :  { %v1677_v3 = vpop.permute.xlu1 %1676  ;;  %v1940_v49 = vsel %vm8327_vm8, %v1915_v57, 0.0  ;;  %vm8224_vm8 = vcmask 913152   ;;  %v4251_v57 = vld [vmem:[%s8169_s0 + $0x159] sm:$0xff] }
 0x189   :  { %v1671_v10 = vpop.permute.xlu0 %1670  ;;  %1740 = vst.msk [vmem:[#allocation2 + $0xc0] sm:$0xff] %vm1727_vm14, %v1677_v3 }
 0x18a   :  { %1737 = vst.msk [vmem:[#allocation2 + $0x90] sm:$0xff] %vm1727_vm14, %v1671_v10  ;;  %3507 = vrot.lane.b32.xlu1 %v4274_v37, %s4493_s14  ;;  %v4151_v37 = vld [vmem:[%s8169_s0 + $0x13f] sm:$0xff] }
 0x18b   :  { %2684 = vrot.lane.b32.xlu0 %v2629_v4, %s4487_s4  ;;  %1965 = vst.msk [vmem:[#allocation2 + $0x98] sm:$0xff] %vm8328_vm11, %v1940_v49  ;;  %v4275_v4 = vld [vmem:[%s8169_s0 + $0x152] sm:$0xff]  ;;  %v2630_v3 = vsel %vm8329_vm6, %v4151_v37, 0.0  ;;  %vm8330_vm11 = vcmp.lt.s32.totalorder %v4840_v31, 13  ;;  %v1916_v49 = vld [vmem:[%s8169_s0 + $0x7b] sm:$0xff]  ;;  %vm8333_vm6 = vcmask 130048  }
 0x18c   :  { %v1681_v43 = vpop.permute.xlu1 %1680 }
 0x18d   :  { %v1675_v13 = vpop.permute.xlu0 %1674  ;;  %1742 = vst.msk [vmem:[#allocation2 + $0xe0] sm:$0xff] %vm1727_vm14, %v1681_v43  ;;  %v2805_v43 = vsel %vm521_vm15, %v6160_v34, 0.0 }
 0x18e   :  { %1739 = vst.msk [vmem:[#allocation2 + $0xb0] sm:$0xff] %vm1727_vm14, %v1675_v13  ;;  %3009 = vrot.lane.b32.xlu1 %v4200_v63, %s4489_s17 }
 0x18f   :  { %2859 = vrot.lane.b32.xlu0 %v2804_v45, %s4488_s13  ;;  %v4201_v45 = vld [vmem:[%s8169_s0 + $0x14c] sm:$0xff] }
 0x190   :  { %v1685_v33 = vpop.permute.xlu1 %1684 }
 0x191   :  { %v1679_v62 = vpop.permute.xlu0 %1678  ;;  %1744 = vst.msk [vmem:[#allocation2 + $0x100] sm:$0xff] %vm1727_vm14, %v1685_v33 }
 0x192   :  { %1741 = vst.msk [vmem:[#allocation2 + $0xd0] sm:$0xff] %vm1727_vm14, %v1679_v62  ;;  %3184 = vrot.lane.b32.xlu1 %v3129_v6, %s4490_s20  ;;  %v6532_v34 = vld [vmem:[#allocation2 + $0x98] sm:$0xff] }
 0x193   :  { %1820 = vrot.lane.b32.xlu0 %v1762_v28, %s4493_s14  ;;  %v6528_v28 = vld [vmem:[%s8169_s0 + $0x173] sm:$0xff] }
 0x194   :  { %v1689_v1 = vpop.permute.xlu1 %1688  ;;  %v3633_v33 = vsel %vm8330_vm11, %v6528_v28, 0.0  ;;  %v1763_v62 = vld [vmem:[%s8169_s0 + $0x72] sm:$0xff]  ;;  %vm1879_vm11 = vcmask 1048448  }
 0x195   :  { %v1683_v11 = vpop.permute.xlu0 %1682  ;;  %1746 = vst.msk [vmem:[#allocation2 + $0x120] sm:$0xff] %vm1727_vm14, %v1689_v1  ;;  %v3305_v1 = vsel %vm521_vm15, %v4251_v57, 0.0 }
 0x196   :  { %1743 = vst.msk [vmem:[#allocation2 + $0xf0] sm:$0xff] %vm1727_vm14, %v1683_v11  ;;  %3359 = vrot.lane.b32.xlu1 %v3304_v26, %s4491_s5  ;;  %v4127_v11 = vld [vmem:[%s8169_s0 + $0x146] sm:$0xff] }
 0x197   :  { %2511 = vrot.lane.b32.xlu0 %v4126_v54, %s4485_s16  ;;  %3658 = vst.msk [vmem:[#allocation2 + $0x98] sm:$0xff] %vm8331_vm2, %v3633_v33  ;;  %vm8332_vm2 = vcmp.lt.s32.totalorder %v4828_v55, 13 }
 0x198   :  { %v1693_v10 = vpop.permute.xlu1 %1692 }
 0x199   :  { %v1687_v63 = vpop.permute.xlu0 %1686  ;;  %1748 = vst.msk [vmem:[#allocation2 + $0x140] sm:$0xff] %vm1727_vm14, %v1693_v10  ;;  %v4152_v10 = vld [vmem:[%s8169_s0 + $0x147] sm:$0xff] }
 0x19a   :  { %1745 = vst.msk [vmem:[#allocation2 + $0x110] sm:$0xff] %vm1727_vm14, %v1687_v63  ;;  %3509 = vrot.lane.b32.xlu1 %v4275_v4, %s4493_s14  ;;  %v1941_v4 = vsel %vm8332_vm2, %v1916_v49, 0.0  ;;  %v4276_v63 = vld [vmem:[%s8169_s0 + $0x15a] sm:$0xff]  ;;  %vm8334_vm2 = vcmp.lt.s32.totalorder %v4803_v38, 13 }
 0x19b   :  { %2686 = vrot.lane.b32.xlu0 %v2630_v3, %s4487_s4  ;;  %1966 = vst.msk [vmem:[#allocation2 + $0xa8] sm:$0xff] %vm8333_vm6, %v1941_v4  ;;  %vm8335_vm6 = vcmp.gt.s32.totalorder %v4632_v2, 0  ;;  %v4095_v2 = vld [vmem:[%s8169_s0 + $0x10d] sm:$0xff] }
 0x19c   :  { %v1697_v13 = vpop.permute.xlu1 %1696 }
 0x19d   :  { %v1691_v6 = vpop.permute.xlu0 %1690  ;;  %1750 = vst.msk [vmem:[#allocation2 + $0x160] sm:$0xff] %vm1727_vm14, %v1697_v13 }
 0x19e   :  { %1747 = vst.msk [vmem:[#allocation2 + $0x130] sm:$0xff] %vm1727_vm14, %v1691_v6  ;;  %3011 = vrot.lane.b32.xlu1 %v4201_v45, %s4489_s17  ;;  %v4096_v45 = vld [vmem:[%s8169_s0 + $0x115] sm:$0xff] }
 0x19f   :  { %2861 = vrot.lane.b32.xlu0 %v2805_v43, %s4488_s13  ;;  %v2631_v43 = vsel %vm8334_vm2, %v4152_v10, 0.0  ;;  %v2400_v33 = vsel %vm8335_vm6, %v4096_v45, 0.0  ;;  %vm8336_vm2 = vcmp.gt.s32.totalorder %v4803_v38, 0  ;;  %vm8337_vm6 = vcmask 130048   ;;  %v4252_v10 = vld [vmem:[%s8169_s0 + $0x161] sm:$0xff] }
 0x1a0   :  { %v1701_v26 = vpop.permute.xlu1 %1700 }
 0x1a1   :  { %v1695_v54 = vpop.permute.xlu0 %1694  ;;  %1753 = vst.msk [vmem:[#allocation2 + $0x180] sm:$0xf] %vm8224_vm8, %v1701_v26  ;;  %vm8339_vm8 = vcmp.lt.s32.totalorder %v4828_v55, 13 }
 0x1a2   :  { %1749 = vst.msk [vmem:[#allocation2 + $0x150] sm:$0xff] %vm1727_vm14, %v1695_v54  ;;  %3186 = vrot.lane.b32.xlu1 %v3130_v42, %s4490_s20  ;;  %v4202_v42 = vld [vmem:[%s8169_s0 + $0x154] sm:$0xff] }
 0x1a3   :  { %1822 = vrot.lane.b32.xlu0 %v1763_v62, %s4493_s14  ;;  %v2806_v62 = vsel %vm8336_vm2, %v6195_v16, 0.0  ;;  %v6593_v54 = vld [vmem:[%s8169_s0 + $0x155] sm:$0xff]  ;;  %vm8338_vm2 = vcmp.gt.s32.totalorder %v4674_v27, 0 }
 0x1a4   :  { %v1807_v37 = vpop.permute.xlu1 %1806  ;;  %v6603_v16 = vld [vmem:[%s8169_s0 + $0x17b] sm:$0xff]  ;;  %v2402_v49 = vsel %vm8338_vm2, %v6287_v17, 0.0 }
 0x1a5   :  { %v1699_v3 = vpop.permute.xlu0 %1698  ;;  %1881 = vst.msk [vmem:[#allocation2 + $0x10] sm:$0xff] %vm1879_vm11, %v1807_v37  ;;  %v3634_v37 = vsel %vm8339_vm8, %v6603_v16, 0.0  ;;  %v1764_v27 = vld [vmem:[%s8169_s0 + $0x7a] sm:$0xff]  ;;  %vm8343_vm8 = vmmov %vm8342_vm10 }
 0x1a6   :  { %1751 = vst.msk [vmem:[#allocation2 + $0x170] sm:$0xff] %vm1727_vm14, %v1699_v3  ;;  %3361 = vrot.lane.b32.xlu1 %v3305_v1, %s4491_s5  ;;  %v2399_v3 = vsel %vm8341_vm4, %v4095_v2, 0.0  ;;  %vm8344_vm4 = vmmov %vm8343_vm8  ;;  %v4277_v2 = vld [vmem:[%s8169_s0 + $0x162] sm:$0xff] }
 0x1a7   :  { %2513 = vrot.lane.b32.xlu0 %v4127_v11, %s4485_s16  ;;  %v6610_v11 = vld [vmem:[#allocation2 + $0xa8] sm:$0xff]  ;;  %vm8346_vm2 = vmmov %vm8344_vm4 }
 0x1a8   :  { %v1811_v13 = vpop.permute.xlu1 %1810  ;;  %3659 = vst.msk [vmem:[#allocation2 + $0xa8] sm:$0xff] %vm8342_vm10, %v3634_v37  ;;  %vm8345_vm10 = vcmp.gt.s32.totalorder %v4752_v5, 0  ;;  %v4128_v5 = vld [vmem:[%s8169_s0 + $0x14e] sm:$0xff] }
 0x1a9   :  { %v1805_v6 = vpop.permute.xlu0 %1804  ;;  %1883 = vst.msk [vmem:[#allocation2 + $0x30] sm:$0xff] %vm1879_vm11, %v1811_v13  ;;  %v2404_v53 = vsel %vm8345_vm10, %v6375_v24, 0.0  ;;  %vm8350_vm10 = vmmov %vm8346_vm2 }
 0x1aa   :  { %1880 = vst.msk [vmem:[#allocation2] sm:$0xff] %vm1879_vm11, %v1805_v6  ;;  %3511 = vrot.lane.b32.xlu1 %v4276_v63, %s4493_s14 }
 0x1ab   :  { %2688 = vrot.lane.b32.xlu0 %v2631_v43, %s4487_s4 }
 0x1ac   :  { %v1815_v26 = vpop.permute.xlu1 %1814  ;;  %v1983_v57 = vld [vmem:[#allocation2 + $0x10] sm:$0xff] }
 0x1ad   :  { %v1809_v1 = vpop.permute.xlu0 %1808  ;;  %1885 = vst.msk [vmem:[#allocation2 + $0x50] sm:$0xff] %vm1879_vm11, %v1815_v26 }
 0x1ae   :  { %2425 = vst.msk [vmem:[#allocation2 + $0x10] sm:$0xff] %vm8337_vm6, %v2400_v33  ;;  %3013 = vrot.lane.b32.xlu1 %v4202_v42, %s4489_s17  ;;  %vm8340_vm6 = vcmp.lt.s32.totalorder %v4803_v38, 13  ;;  %v1917_v33 = vld [vmem:[%s8169_s0 + $0x83] sm:$0xff] }
 0x1af   :  { %1882 = vst.msk [vmem:[#allocation2 + $0x20] sm:$0xff] %vm1879_vm11, %v1809_v1  ;;  %2863 = vrot.lane.b32.xlu0 %v2806_v62, %s4488_s13  ;;  %v3131_v4 = vsel %vm8340_vm6, %v6593_v54, 0.0  ;;  %vm8347_vm6 = vcmp.gt.s32.totalorder %v4803_v38, 0 }
 0x1b0   :  { %v1819_v17 = vpop.permute.xlu1 %1818  ;;  %v1987_v63 = vld [vmem:[#allocation2 + $0x30] sm:$0xff]  ;;  %v3306_v13 = vsel %vm8347_vm6, %v4252_v10, 0.0  ;;  %vm8351_vm6 = vmmov %vm8346_vm2  ;;  %v1765_v10 = vld [vmem:[%s8169_s0 + $0x82] sm:$0xff] }
 0x1b1   :  { %v1813_v45 = vpop.permute.xlu0 %1812  ;;  %v1981_v43 = vld [vmem:[#allocation2] sm:$0xff]  ;;  %1887 = vst.msk [vmem:[#allocation2 + $0x70] sm:$0xff] %vm1879_vm11, %v1819_v17 }
 0x1b2   :  { %2427 = vst.msk [vmem:[#allocation2 + $0x30] sm:$0xff] %vm8343_vm8, %v2402_v49  ;;  %2196 = vmatmul.mubr.f32.vlgmr.msra.gmra.mrb[0].mxu0 %v1981_v43  ;;  %3188 = vrot.lane.b32.xlu1 %v3131_v4, %s4490_s20  ;;  %vm8348_vm8 = vcmp.gt.s32.totalorder %v4616_v59, 0  ;;  %v4153_v59 = vld [vmem:[%s8169_s0 + $0x14f] sm:$0xff]  ;;  %v6703_v17 = vld [vmem:[%s8169_s0 + $0x183] sm:$0xff] }
 0x1b3   :  { %1884 = vst.msk [vmem:[#allocation2 + $0x40] sm:$0xff] %vm1879_vm11, %v1813_v45  ;;  %1824 = vrot.lane.b32.xlu0 %v1764_v27, %s4493_s14  ;;  %4071 = vmatprep.mubr.msk.f32.mxu0 %vm8346_vm2, %v6082_v58  ;;  %v2401_v6 = vsel %vm8348_vm8, %v6184_v50, 0.0  ;;  %vm8352_vm8 = vcmp.gt.s32.totalorder %v4803_v38, 0  ;;  %v4253_v45 = vld [vmem:[%s8169_s0 + $0x169] sm:$0xff] }
 0x1b4   :  { %2424 = vst.msk [vmem:[#allocation2] sm:$0xff] %vm8344_vm4, %v2399_v3  ;;  %v2675_v24 = vpop.permute.xlu1 %2674  ;;  %v6650_v42 = vld [vmem:[#allocation2 + $0x50] sm:$0xff]  ;;  %vm8349_vm4 = vcmp.lt.s32.totalorder %v4901_v40, 13  ;;  %v2406_v50 = vsel %vm8352_vm8, %v6456_v8, 0.0  ;;  %vm8357_vm8 = vcmask 261248   ;;  %v6698_v3 = vld [vmem:[%s8169_s0 + $0x15d] sm:$0xff] }
 0x1b5   :  { %v1942_v58 = vsel %vm8349_vm4, %v1917_v33, 0.0  ;;  %v1817_v62 = vpop.permute.xlu0 %1816  ;;  %2429 = vst.msk [vmem:[#allocation2 + $0x50] sm:$0xff] %vm8350_vm10, %v2404_v53  ;;  %vm8353_vm4 = vmmov %vm8346_vm2  ;;  %vm8354_vm10 = vcmp.gt.s32.totalorder %v4662_v21, 0  ;;  %v4203_v21 = vld [vmem:[%s8169_s0 + $0x15c] sm:$0xff]  ;;  %v1918_v53 = vld [vmem:[%s8169_s0 + $0x8b] sm:$0xff] }
 0x1b6   :  { %v1985_v26 = vld [vmem:[#allocation2 + $0x20] sm:$0xff]  ;;  %1967 = vst.msk [vmem:[#allocation2 + $0xb8] sm:$0xff] %vm8346_vm2, %v1942_v58  ;;  %2201 = vmatmul.mubr.f32.gmra.mrb[2].mxu0 %v1983_v57  ;;  %3363 = vrot.lane.b32.xlu1 %v3306_v13, %s4491_s5  ;;  %v2403_v57 = vsel %vm8354_vm10, %v6313_v36, 0.0  ;;  %vm8355_vm2 = vcmp.lt.s32.totalorder %v4766_v15, 13  ;;  %vm8358_vm10 = vmmov %vm8353_vm4  ;;  %v2807_v36 = vsel %vm523_vm5, %v6219_v32, 0.0  ;;  %v4129_v13 = vld [vmem:[%s8169_s0 + $0x156] sm:$0xff] }
 0x1b7   :  { %1886 = vst.msk [vmem:[#allocation2 + $0x60] sm:$0xff] %vm1879_vm11, %v1817_v62  ;;  %2515 = vrot.lane.b32.xlu0 %v4128_v5, %s4485_s16  ;;  %4072 = vmatprep.mubr.msk.f32.mxu0 %vm8353_vm4, %v6113_v12  ;;  %v2632_v1 = vsel %vm8355_vm2, %v4153_v59, 0.0  ;;  %v2405_v12 = vsel %vm521_vm15, %v6401_v14, 0.0  ;;  %vm8359_vm15 = vmmov %vm8353_vm4  ;;  %vm8360_vm2 = vcmp.lt.s32.totalorder %v4901_v40, 13 }
 0x1b8   :  { %2426 = vst.msk [vmem:[#allocation2 + $0x20] sm:$0xff] %vm8351_vm6, %v2401_v6  ;;  %v3000_v49 = vpop.permute.xlu1 %2999  ;;  %v6676_v37 = vld [vmem:[#allocation2 + $0x70] sm:$0xff]  ;;  %vm8356_vm6 = vmmov %vm8353_vm4  ;;  %v3635_v32 = vsel %vm8360_vm2, %v6703_v17, 0.0  ;;  %vm8365_vm2 = vcmp.lt.s32.totalorder %v4880_v29, 13 }
 0x1b9   :  { %v2500_v38 = vpop.permute.xlu0 %2499  ;;  %2431 = vst.msk [vmem:[#allocation2 + $0x70] sm:$0xff] %vm8356_vm6, %v2406_v50  ;;  %vm8361_vm6 = vmmov %vm8353_vm4  ;;  %v1943_v33 = vsel %vm8365_vm2, %v1918_v53, 0.0  ;;  %v2809_v53 = vsel %vm525_vm0, %v6462_v9, 0.0 }
 0x1ba   :  { %v1989_v8 = vld [vmem:[#allocation2 + $0x40] sm:$0xff]  ;;  %2574 = vst.msk [vmem:[#allocation2] sm:$0xff] %vm8357_vm8, %v2500_v38  ;;  %2206 = vmatmul.mubr.f32.gmra.mrb[4].mxu0 %v1985_v26  ;;  %3513 = vrot.lane.b32.xlu1 %v4277_v2, %s4493_s14  ;;  %vm8362_vm8 = vcmp.lt.s32.totalorder %v4766_v15, 13 }
 0x1bb   :  { %2428 = vst.msk [vmem:[#allocation2 + $0x40] sm:$0xff] %vm8353_vm4, %v2403_v57  ;;  %2690 = vrot.lane.b32.xlu0 %v2632_v1, %s4487_s4  ;;  %4073 = vmatprep.mubr.msk.f32.mxu0 %vm8358_vm10, %v6142_v51  ;;  %v3132_v14 = vsel %vm8362_vm8, %v6698_v3, 0.0  ;;  %vm8363_vm10 = vcmask 261248   ;;  %vm8367_vm8 = vmmov %vm8353_vm4  ;;  %v6775_v2 = vld [vmem:[%s8169_s0 + $0x165] sm:$0xff]  ;;  %v3677_v57 = vld [vmem:[#allocation2 + $0x18] sm:$0xff] }
 0x1bc   :  { %2749 = vst.msk [vmem:[#allocation2] sm:$0xff] %vm1044_vm1, %v2675_v24  ;;  %v3175_v4 = vpop.permute.xlu1 %3174  ;;  %v4278_v24 = vld [vmem:[%s8169_s0 + $0x16a] sm:$0xff] }
 0x1bd   :  { %v2850_v27 = vpop.permute.xlu0 %2849  ;;  %v6708_v39 = vld [vmem:[#allocation2 + $0xb8] sm:$0xff] }
 0x1be   :  { %v1993_v51 = vld [vmem:[#allocation2 + $0x60] sm:$0xff]  ;;  %2924 = vst.msk [vmem:[#allocation2] sm:$0xff] %vm1221_vm7, %v2850_v27  ;;  %2211 = vmatmul.mubr.f32.gmra.mrb[6].mxu0 %v1987_v63  ;;  %3015 = vrot.lane.b32.xlu1 %v4203_v21, %s4489_s17  ;;  %v4254_v21 = vld [vmem:[%s8169_s0 + $0x171] sm:$0xff] }
 0x1bf   :  { %2430 = vst.msk [vmem:[#allocation2 + $0x60] sm:$0xff] %vm8359_vm15, %v2405_v12  ;;  %2865 = vrot.lane.b32.xlu0 %v2807_v36, %s4488_s13  ;;  %4074 = vmatprep.mubr.msk.f32.mxu0 %vm8361_vm6, %v6165_v7  ;;  %vm8364_vm15 = vmmov %vm8353_vm4  ;;  %v3307_v7 = vsel %vm523_vm5, %v4253_v45, 0.0  ;;  %v3308_v36 = vsel %vm524_vm9, %v4254_v21, 0.0  ;;  %v4280_v21 = vld [vmem:[%s8169_s0 + $0x17a] sm:$0xff] }
 0x1c0   :  { %3074 = vst.msk [vmem:[#allocation2] sm:$0xff] %vm1373_vm12, %v3000_v49  ;;  %v3350_v63 = vpop.permute.xlu1 %3349  ;;  %vm8366_vm6 = vmmov %vm8353_vm4 }
 0x1c1   :  { %3660 = vst.msk [vmem:[#allocation2 + $0xb8] sm:$0xff] %vm8353_vm4, %v3635_v32  ;;  %v2502_v43 = vpop.permute.xlu0 %2501  ;;  %vm8368_vm4 = vcmp.lt.s32.totalorder %v4840_v31, 13 }
 0x1c2   :  { %3249 = vst.msk [vmem:[#allocation2] sm:$0xff] %vm1550_vm3, %v3175_v4  ;;  %2216 = vmatmul.mubr.f32.gmra.mrb[8].mxu0 %v1989_v8  ;;  %3190 = vrot.lane.b32.xlu1 %v3132_v14, %s4490_s20  ;;  %v1919_v4 = vld [vmem:[%s8169_s0 + $0x93] sm:$0xff]  ;;  %v4155_v14 = vld [vmem:[%s8169_s0 + $0x15f] sm:$0xff] }
 0x1c3   :  { %3424 = vst.msk [vmem:[#allocation2] sm:$0xff] %vm1727_vm14, %v3350_v63  ;;  %1826 = vrot.lane.b32.xlu0 %v1765_v10, %s4493_s14  ;;  %4075 = vmatprep.mubr.msk.f32.mxu0 %vm8364_vm15, %v6200_v20  ;;  %v4154_v20 = vld [vmem:[%s8169_s0 + $0x157] sm:$0xff]  ;;  %vm8369_vm15 = vmmov %vm8366_vm6 }
 0x1c4   :  { %2575 = vst.msk [vmem:[#allocation2 + $0x10] sm:$0xff] %vm8363_vm10, %v2502_v43  ;;  %v3500_v6 = vpop.permute.xlu1 %3499  ;;  %v2633_v58 = vsel %vm8368_vm4, %v4154_v20, 0.0  ;;  %v4279_v10 = vld [vmem:[%s8169_s0 + $0x172] sm:$0xff] }
 0x1c5   :  { %v2677_v5 = vpop.permute.xlu0 %2676  ;;  %3574 = vst.msk [vmem:[#allocation2] sm:$0xff] %vm1879_vm11, %v3500_v6  ;;  %v6845_v6 = vld [vmem:[%s8169_s0 + $0x16d] sm:$0xff] }
 0x1c6   :  { %1968 = vst.msk [vmem:[#allocation2 + $0xc8] sm:$0xff] %vm8366_vm6, %v1943_v33  ;;  %2221 = vmatmul.mubr.f32.gmra.mrb[10].mxu0 %v6650_v42  ;;  %3365 = vrot.lane.b32.xlu1 %v3307_v7, %s4491_s5  ;;  %v2808_v42 = vsel %vm524_vm9, %v6242_v47, 0.0  ;;  %vm8370_vm6 = vmmov %vm8368_vm4  ;;  %v4205_v7 = vld [vmem:[%s8169_s0 + $0x16c] sm:$0xff] }
 0x1c7   :  { %2750 = vst.msk [vmem:[#allocation2 + $0x10] sm:$0xff] %vm1044_vm1, %v2677_v5  ;;  %2517 = vrot.lane.b32.xlu0 %v4129_v13, %s4485_s16  ;;  %4076 = vmatprep.mubr.msk.f32.mxu0 %vm8367_vm8, %v6223_v44  ;;  %v4204_v44 = vld [vmem:[%s8169_s0 + $0x164] sm:$0xff]  ;;  %v3133_v38 = vsel %vm8370_vm6, %v6775_v2, 0.0  ;;  %vm8371_vm4 = vmmov %vm8367_vm8  ;;  %vm8375_vm6 = vcmp.lt.s32.totalorder %v4828_v55, 13  ;;  %v6851_v5 = vld [vmem:[%s8169_s0 + $0x193] sm:$0xff] }
 0x1c8   :  { %v2504_v62 = vpop.permute.xlu1 %2503  ;;  %v2634_v63 = vsel %vm8375_vm6, %v4155_v14, 0.0 }
 0x1c9   :  { %v2852_v26 = vpop.permute.xlu0 %2851  ;;  %2576 = vst.msk [vmem:[#allocation2 + $0x20] sm:$0xff] %vm8363_vm10, %v2504_v62  ;;  %vm8372_vm10 = vmmov %vm8371_vm4 }
 0x1ca   :  { %2925 = vst.msk [vmem:[#allocation2 + $0x10] sm:$0xff] %vm1221_vm7, %v2852_v26  ;;  %2226 = vmatmul.mubr.f32.gmra.mrb[12].mxu0 %v1993_v51  ;;  %3515 = vrot.lane.b32.xlu1 %v4278_v24, %s4493_s14  ;;  %v4255_v26 = vld [vmem:[%s8169_s0 + $0x179] sm:$0xff] }
 0x1cb   :  { %2692 = vrot.lane.b32.xlu0 %v2633_v58, %s4487_s4  ;;  %4077 = vmatprep.mubr.msk.f32.mxu0 %vm8369_vm15, %v6246_v52  ;;  %v6781_v52 = vld [vmem:[%s8169_s0 + $0x18b] sm:$0xff]  ;;  %vm8373_vm15 = vcmp.lt.s32.totalorder %v4948_v46, 13 }
 0x1cc   :  { %v2679_v59 = vpop.permute.xlu1 %2678  ;;  %v3674_v50 = vld [vmem:[#allocation2] sm:$0xff]  ;;  %v3636_v49 = vsel %vm8365_vm2, %v6781_v52, 0.0  ;;  %v1944_v51 = vsel %vm8373_vm15, %v1919_v4, 0.0  ;;  %vm8374_vm2 = vmmov %vm8371_vm4  ;;  %v1767_v58 = vld [vmem:[%s8169_s0 + $0x92] sm:$0xff] }
 0x1cd   :  { %v3002_v1 = vpop.permute.xlu0 %3001  ;;  %2751 = vst.msk [vmem:[#allocation2 + $0x20] sm:$0xff] %vm1044_vm1, %v2679_v59  ;;  %3889 = vmatmul.mubr.f32.vlgmr.msra.gmra.mrb[0].mxu1 %v3674_v50  ;;  %v6786_v47 = vld [vmem:[#allocation2 + $0xc8] sm:$0xff]  ;;  %v3309_v50 = vsel %vm525_vm0, %v4255_v26, 0.0 }
 0x1ce   :  { %3075 = vst.msk [vmem:[#allocation2 + $0x10] sm:$0xff] %vm1373_vm12, %v3002_v1  ;;  %2231 = vmatmul.mubr.f32.gmra.mrb[14].mxu0 %v6676_v37  ;;  %3017 = vrot.lane.b32.xlu1 %v4204_v44, %s4489_s17  ;;  %v1766_v37 = vld [vmem:[%s8169_s0 + $0x8a] sm:$0xff] }
 0x1cf   :  { %2867 = vrot.lane.b32.xlu0 %v2808_v42, %s4488_s13  ;;  %4322 = vmatprep.mubr.msk.f32.mxu1 %vm8367_vm8, %v3677_v57  ;;  %3661 = vst.msk [vmem:[#allocation2 + $0xc8] sm:$0xff] %vm8371_vm4, %v3636_v49  ;;  %vm8376_vm8 = vcmask 261248   ;;  %vm8377_vm4 = vmmov %vm8373_vm15  ;;  %v3679_v44 = vld [vmem:[#allocation2 + $0x28] sm:$0xff]  ;;  %v1920_v57 = vld [vmem:[%s8169_s0 + $0x9b] sm:$0xff] }
 0x1d0   :  { %v2854_v8 = vpop.permute.xlu1 %2853  ;;  %4078 = vmatprep.mubr.msk.f32.mxu0 %vm8372_vm10, %v6466_v60  ;;  %v4130_v60 = vld [vmem:[%s8169_s0 + $0x15e] sm:$0xff]  ;;  %1969 = vst.msk [vmem:[#allocation2 + $0xd8] sm:$0xff] %vm8374_vm2, %v1944_v51  ;;  %v3637_v9 = vsel %vm8377_vm4, %v6851_v5, 0.0  ;;  %vm8378_vm10 = vmmov %vm8375_vm6  ;;  %v4131_v1 = vld [vmem:[%s8169_s0 + $0x166] sm:$0xff]  ;;  %vm8380_vm6 = vcmp.lt.s32.totalorder %v4928_v19, 13 }
 0x1d1   :  { %v3177_v12 = vpop.permute.xlu0 %3176  ;;  %2926 = vst.msk [vmem:[#allocation2 + $0x20] sm:$0xff] %vm1221_vm7, %v2854_v8  ;;  %v3134_v24 = vsel %vm8378_vm10, %v6845_v6, 0.0  ;;  %vm8379_vm15 = vmmov %vm8374_vm2  ;;  %v4156_v8 = vld [vmem:[%s8169_s0 + $0x167] sm:$0xff]  ;;  %vm8382_vm10 = vcmp.lt.s32.totalorder %v4901_v40, 13  ;;  %v4206_v51 = vld [vmem:[%s8169_s0 + $0x174] sm:$0xff] }
 0x1d2   :  { %3250 = vst.msk [vmem:[#allocation2 + $0x10] sm:$0xff] %vm1550_vm3, %v3177_v12  ;;  %3192 = vrot.lane.b32.xlu1 %v3133_v38, %s4490_s20  ;;  %v1945_v38 = vsel %vm8380_vm6, %v1920_v57, 0.0  ;;  %vm8381_vm4 = vmmov %vm8374_vm2  ;;  %v3681_v12 = vld [vmem:[#allocation2 + $0x38] sm:$0xff] }
 0x1d3   :  { %1828 = vrot.lane.b32.xlu0 %v1766_v37, %s4493_s14  ;;  %1970 = vst.msk [vmem:[#allocation2 + $0xe8] sm:$0xff] %vm8381_vm4, %v1945_v38  ;;  %v4207_v38 = vld [vmem:[%s8169_s0 + $0x17c] sm:$0xff] }
 0x1d4   :  { %v3004_v27 = vpop.permute.xlu1 %3003 }
 0x1d5   :  { %v3352_v32 = vpop.permute.xlu0 %3351  ;;  %3076 = vst.msk [vmem:[#allocation2 + $0x20] sm:$0xff] %vm1373_vm12, %v3004_v27 }
 0x1d6   :  { %3425 = vst.msk [vmem:[#allocation2 + $0x10] sm:$0xff] %vm1727_vm14, %v3352_v32  ;;  %3367 = vrot.lane.b32.xlu1 %v3308_v36, %s4491_s5  ;;  %v2635_v36 = vsel %vm8382_vm10, %v4156_v8, 0.0  ;;  %v2810_v32 = vsel %vm526_vm13, %v6528_v28, 0.0 }
 0x1d7   :  { %2519 = vrot.lane.b32.xlu0 %v4130_v60, %s4485_s16  ;;  %v6855_v20 = vld [vmem:[#allocation2 + $0xd8] sm:$0xff] }
 0x1d8   :  { %v3179_v45 = vpop.permute.xlu1 %3178  ;;  %3662 = vst.msk [vmem:[#allocation2 + $0xd8] sm:$0xff] %vm8379_vm15, %v3637_v9  ;;  %vm8383_vm15 = vmmov %vm8374_vm2 }
 0x1d9   :  { %v3502_v43 = vpop.permute.xlu0 %3501  ;;  %3251 = vst.msk [vmem:[#allocation2 + $0x20] sm:$0xff] %vm1550_vm3, %v3179_v45  ;;  %v6919_v45 = vld [vmem:[%s8169_s0 + $0x19b] sm:$0xff] }
 0x1da   :  { %3575 = vst.msk [vmem:[#allocation2 + $0x10] sm:$0xff] %vm1879_vm11, %v3502_v43  ;;  %3517 = vrot.lane.b32.xlu1 %v4279_v10, %s4493_s14  ;;  %v6913_v10 = vld [vmem:[%s8169_s0 + $0x175] sm:$0xff]  ;;  %v6923_v43 = vld [vmem:[#allocation2 + $0xe8] sm:$0xff] }
 0x1db   :  { %2694 = vrot.lane.b32.xlu0 %v2634_v63, %s4487_s4 }
 0x1dc   :  { %v3354_v13 = vpop.permute.xlu1 %3353 }
 0x1dd   :  { %v2506_v33 = vpop.permute.xlu0 %2505  ;;  %3426 = vst.msk [vmem:[#allocation2 + $0x20] sm:$0xff] %vm1727_vm14, %v3354_v13 }
 0x1de   :  { %2577 = vst.msk [vmem:[#allocation2 + $0x30] sm:$0xff] %vm8376_vm8, %v2506_v33  ;;  %3019 = vrot.lane.b32.xlu1 %v4205_v7, %s4489_s17  ;;  %v4256_v33 = vld [vmem:[%s8169_s0 + $0x181] sm:$0xff] }
 0x1df   :  { %2869 = vrot.lane.b32.xlu0 %v2809_v53, %s4488_s13  ;;  %v1768_v53 = vld [vmem:[%s8169_s0 + $0x9a] sm:$0xff] }
 0x1e0   :  { %v3504_v62 = vpop.permute.xlu1 %3503 }
 0x1e1   :  { %v2681_v42 = vpop.permute.xlu0 %2680  ;;  %v3676_v59 = vld [vmem:[#allocation2 + $0x10] sm:$0xff]  ;;  %3576 = vst.msk [vmem:[#allocation2 + $0x20] sm:$0xff] %vm1879_vm11, %v3504_v62 }
 0x1e2   :  { %2752 = vst.msk [vmem:[#allocation2 + $0x30] sm:$0xff] %vm1044_vm1, %v2681_v42  ;;  %3894 = vmatmul.mubr.f32.gmra.mrb[2].mxu1 %v3676_v59  ;;  %3194 = vrot.lane.b32.xlu1 %v3134_v24, %s4490_s20  ;;  %v3310_v24 = vsel %vm526_vm13, %v4256_v33, 0.0  ;;  %v4132_v62 = vld [vmem:[%s8169_s0 + $0x16e] sm:$0xff]  ;;  %v4133_v33 = vld [vmem:[%s8169_s0 + $0x176] sm:$0xff] }
 0x1e3   :  { %1830 = vrot.lane.b32.xlu0 %v1767_v58, %s4493_s14  ;;  %4323 = vmatprep.mubr.msk.f32.mxu1 %vm8374_vm2, %v3679_v44  ;;  %vm8384_vm2 = vmmov %vm8380_vm6  ;;  %v1921_v58 = vld [vmem:[%s8169_s0 + $0xa3] sm:$0xff]  ;;  %v4157_v59 = vld [vmem:[%s8169_s0 + $0x16f] sm:$0xff] }
 0x1e4   :  { %v2508_v49 = vpop.permute.xlu1 %2507  ;;  %v3638_v28 = vsel %vm8384_vm2, %v6919_v45, 0.0  ;;  %vm8385_vm6 = vmmov %vm8382_vm10  ;;  %vm8390_vm2 = vcmask 261248  }
 0x1e5   :  { %v2856_v37 = vpop.permute.xlu0 %2855  ;;  %2578 = vst.msk [vmem:[#allocation2 + $0x40] sm:$0xff] %vm8376_vm8, %v2508_v49  ;;  %v3135_v7 = vsel %vm8385_vm6, %v6913_v10, 0.0  ;;  %vm8386_vm8 = vmmov %vm8381_vm4  ;;  %vm8387_vm4 = vcmp.lt.s32.totalorder %v4994_v18, 13  ;;  %vm8391_vm6 = vcmp.gt.s32.totalorder %v4880_v29, 0 }
 0x1e6   :  { %2927 = vst.msk [vmem:[#allocation2 + $0x30] sm:$0xff] %vm1221_vm7, %v2856_v37  ;;  %3369 = vrot.lane.b32.xlu1 %v3309_v50, %s4491_s5  ;;  %v1946_v44 = vsel %vm8387_vm4, %v1921_v58, 0.0  ;;  %vm8388_vm10 = vmmov %vm8386_vm8  ;;  %v4281_v50 = vld [vmem:[%s8169_s0 + $0x182] sm:$0xff]  ;;  %v2811_v37 = vsel %vm8391_vm6, %v6603_v16, 0.0 }
 0x1e7   :  { %2521 = vrot.lane.b32.xlu0 %v4131_v1, %s4485_s16  ;;  %3663 = vst.msk [vmem:[#allocation2 + $0xe8] sm:$0xff] %vm8386_vm8, %v3638_v28  ;;  %vm8392_vm8 = vmmov %vm8387_vm4 }
 0x1e8   :  { %v2683_v4 = vpop.permute.xlu1 %2682  ;;  %v3678_v60 = vld [vmem:[#allocation2 + $0x20] sm:$0xff]  ;;  %1971 = vst.msk [vmem:[#allocation2 + $0xf8] sm:$0xff] %vm8388_vm10, %v1946_v44  ;;  %v4282_v44 = vld [vmem:[%s8169_s0 + $0x18a] sm:$0xff] }
 0x1e9   :  { %v3006_v27 = vpop.permute.xlu0 %3005  ;;  %2753 = vst.msk [vmem:[#allocation2 + $0x40] sm:$0xff] %vm1044_vm1, %v2683_v4  ;;  %3899 = vmatmul.mubr.f32.gmra.mrb[4].mxu1 %v3678_v60  ;;  %v6985_v60 = vld [vmem:[%s8169_s0 + $0x1a3] sm:$0xff] }
 0x1ea   :  { %3077 = vst.msk [vmem:[#allocation2 + $0x30] sm:$0xff] %vm1373_vm12, %v3006_v27  ;;  %3519 = vrot.lane.b32.xlu1 %v4280_v21, %s4493_s14  ;;  %4324 = vmatprep.mubr.msk.f32.mxu1 %vm8383_vm15, %v3681_v12  ;;  %vm8389_vm15 = vcmp.lt.s32.totalorder %v4880_v29, 13  ;;  %v6979_v21 = vld [vmem:[%s8169_s0 + $0x17d] sm:$0xff]  ;;  %v3683_v12 = vld [vmem:[#allocation2 + $0x48] sm:$0xff]  ;;  %v3639_v27 = vsel %vm8392_vm8, %v6985_v60, 0.0  ;;  %vm8397_vm8 = vmmov %vm8388_vm10 }
 0x1eb   :  { %2696 = vrot.lane.b32.xlu0 %v2635_v36, %s4487_s4  ;;  %v2636_v57 = vsel %vm8389_vm15, %v4157_v59, 0.0  ;;  %vm8393_vm4 = vmmov %vm8389_vm15 }
 0x1ec   :  { %v2858_v14 = vpop.permute.xlu1 %2857  ;;  %vm8394_vm15 = vmmov %vm8388_vm10 }
 0x1ed   :  { %v3181_v63 = vpop.permute.xlu0 %3180  ;;  %2928 = vst.msk [vmem:[#allocation2 + $0x40] sm:$0xff] %vm1221_vm7, %v2858_v14 }
 0x1ee   :  { %3252 = vst.msk [vmem:[#allocation2 + $0x30] sm:$0xff] %vm1550_vm3, %v3181_v63  ;;  %3021 = vrot.lane.b32.xlu1 %v4206_v51, %s4489_s17  ;;  %v3136_v51 = vsel %vm8393_vm4, %v6979_v21, 0.0  ;;  %v4257_v63 = vld [vmem:[%s8169_s0 + $0x189] sm:$0xff]  ;;  %vm8398_vm4 = vmmov %vm8397_vm8 }
 0x1ef   :  { %2871 = vrot.lane.b32.xlu0 %v2810_v32, %s4488_s13  ;;  %v6989_v16 = vld [vmem:[#allocation2 + $0xf8] sm:$0xff]  ;;  %v1769_v32 = vld [vmem:[%s8169_s0 + $0xa2] sm:$0xff] }
 0x1f0   :  { %v3008_v13 = vpop.permute.xlu1 %3007  ;;  %3664 = vst.msk [vmem:[#allocation2 + $0xf8] sm:$0xff] %vm8394_vm15, %v3639_v27  ;;  %vm8400_vm15 = vcmask 261248   ;;  %v7071_v27 = vld [vmem:[%s8169_s0 + $0x1ab] sm:$0xff] }
 0x1f1   :  { %v3356_v9 = vpop.permute.xlu0 %3355  ;;  %3078 = vst.msk [vmem:[#allocation2 + $0x40] sm:$0xff] %vm1373_vm12, %v3008_v13  ;;  %v1922_v13 = vld [vmem:[%s8169_s0 + $0xab] sm:$0xff] }
 0x1f2   :  { %3427 = vst.msk [vmem:[#allocation2 + $0x30] sm:$0xff] %vm1727_vm14, %v3356_v9  ;;  %3196 = vrot.lane.b32.xlu1 %v3135_v7, %s4490_s20 }
 0x1f3   :  { %1832 = vrot.lane.b32.xlu0 %v1768_v53, %s4493_s14  ;;  %v3685_v53 = vld [vmem:[#allocation2 + $0x58] sm:$0xff] }
 0x1f4   :  { %v3183_v26 = vpop.permute.xlu1 %3182 }
 0x1f5   :  { %v3506_v42 = vpop.permute.xlu0 %3505  ;;  %3253 = vst.msk [vmem:[#allocation2 + $0x40] sm:$0xff] %vm1550_vm3, %v3183_v26  ;;  %v4158_v26 = vld [vmem:[%s8169_s0 + $0x177] sm:$0xff] }
 0x1f6   :  { %3577 = vst.msk [vmem:[#allocation2 + $0x30] sm:$0xff] %vm1879_vm11, %v3506_v42  ;;  %3371 = vrot.lane.b32.xlu1 %v3310_v24, %s4491_s5 }
 0x1f7   :  { %2523 = vrot.lane.b32.xlu0 %v4132_v62, %s4485_s16 }
 0x1f8   :  { %v3358_v1 = vpop.permute.xlu1 %3357 }
 0x1f9   :  { %v2510_v49 = vpop.permute.xlu0 %2509  ;;  %3428 = vst.msk [vmem:[#allocation2 + $0x40] sm:$0xff] %vm1727_vm14, %v3358_v1  ;;  %v2407_v1 = vsel %vm523_vm5, %v6522_v35, 0.0  ;;  %vm8402_vm5 = vmmov %vm8398_vm4  ;;  %v1770_v35 = vld [vmem:[%s8169_s0 + $0xaa] sm:$0xff] }
 0x1fa   :  { %2579 = vst.msk [vmem:[#allocation2 + $0x50] sm:$0xff] %vm8390_vm2, %v2510_v49  ;;  %3521 = vrot.lane.b32.xlu1 %v4281_v50, %s4493_s14  ;;  %vm8395_vm2 = vmmov %vm8391_vm6  ;;  %vm8396_vm6 = vcmp.lt.s32.totalorder %v4962_v23, 13 }
 0x1fb   :  { %2698 = vrot.lane.b32.xlu0 %v2636_v57, %s4487_s4  ;;  %v3311_v7 = vsel %vm8395_vm2, %v4257_v63, 0.0  ;;  %v1947_v58 = vsel %vm8396_vm6, %v1922_v13, 0.0  ;;  %v4208_v57 = vld [vmem:[%s8169_s0 + $0x184] sm:$0xff]  ;;  %vm8401_vm2 = vcmp.gt.s32.totalorder %v4948_v46, 0  ;;  %v1923_v63 = vld [vmem:[%s8169_s0 + $0xb3] sm:$0xff] }
 0x1fc   :  { %v3508_v8 = vpop.permute.xlu1 %3507  ;;  %1972 = vst.msk [vmem:[#allocation2 + $0x108] sm:$0xff] %vm8397_vm8, %v1947_v58  ;;  %v2812_v49 = vsel %vm8401_vm2, %v6703_v17, 0.0  ;;  %vm8404_vm8 = vmmov %vm8398_vm4 }
 0x1fd   :  { %v2685_v36 = vpop.permute.xlu0 %2684  ;;  %v3680_v4 = vld [vmem:[#allocation2 + $0x30] sm:$0xff]  ;;  %3578 = vst.msk [vmem:[#allocation2 + $0x40] sm:$0xff] %vm1879_vm11, %v3508_v8 }
 0x1fe   :  { %2754 = vst.msk [vmem:[#allocation2 + $0x50] sm:$0xff] %vm1044_vm1, %v2685_v36  ;;  %3904 = vmatmul.mubr.f32.gmra.mrb[6].mxu1 %v3680_v4  ;;  %3023 = vrot.lane.b32.xlu1 %v4207_v38, %s4489_s17  ;;  %v4258_v36 = vld [vmem:[%s8169_s0 + $0x191] sm:$0xff] }
 0x1ff   :  { %2873 = vrot.lane.b32.xlu0 %v2811_v37, %s4488_s13  ;;  %4325 = vmatprep.mubr.msk.f32.mxu1 %vm8388_vm10, %v3683_v12  ;;  %vm8399_vm10 = vcmp.lt.s32.totalorder %v4948_v46, 13  ;;  %v7050_v37 = vld [vmem:[%s8169_s0 + $0x185] sm:$0xff] }
 0x200   :  { %v3010_v14 = vpop.permute.xlu1 %3009  ;;  %v2637_v42 = vsel %vm8399_vm10, %v4158_v26, 0.0  ;;  %vm8403_vm6 = vmmov %vm8399_vm10 }
 0x201   :  { %v2860_v28 = vpop.permute.xlu0 %2859  ;;  %v3137_v15 = vsel %vm8403_vm6, %v7050_v37, 0.0  ;;  %vm8406_vm10 = vmmov %vm8401_vm2  ;;  %vm8408_vm2 = vcmp.lt.s32.totalorder %v5017_v61, 13 }
 0x202   :  { %2929 = vst.msk [vmem:[#allocation2 + $0x50] sm:$0xff] %vm1221_vm7, %v2860_v28  ;;  %3198 = vrot.lane.b32.xlu1 %v3136_v51, %s4490_s20  ;;  %v4134_v28 = vld [vmem:[%s8169_s0 + $0x17e] sm:$0xff]  ;;  %v1948_v13 = vsel %vm8408_vm2, %v1923_v63, 0.0  ;;  %vm8409_vm6 = vmmov %vm8402_vm5 }
 0x203   :  { %1834 = vrot.lane.b32.xlu0 %v1769_v32, %s4493_s14  ;;  %3079 = vst.msk [vmem:[#allocation2 + $0x50] sm:$0xff] %vm1373_vm12, %v3010_v14  ;;  %v3312_v32 = vsel %vm8406_vm10, %v4258_v36, 0.0  ;;  %v3687_v14 = vld [vmem:[#allocation2 + $0x68] sm:$0xff]  ;;  %vm8412_vm10 = vcmp.gt.s32.totalorder %v4928_v19, 0  ;;  %vm8415_vm2 = vmmov %vm8402_vm5  ;;  %v1924_v36 = vld [vmem:[%s8169_s0 + $0xbb] sm:$0xff] }
 0x204   :  { %v3185_v9 = vpop.permute.xlu1 %3184  ;;  %v3682_v24 = vld [vmem:[#allocation2 + $0x40] sm:$0xff]  ;;  %1973 = vst.msk [vmem:[#allocation2 + $0x118] sm:$0xff] %vm8402_vm5, %v1948_v13 }
 0x205   :  { %v1821_v62 = vpop.permute.xlu0 %1820  ;;  %3254 = vst.msk [vmem:[#allocation2 + $0x50] sm:$0xff] %vm1550_vm3, %v3185_v9  ;;  %3909 = vmatmul.mubr.f32.gmra.mrb[8].mxu1 %v3682_v24  ;;  %v4159_v9 = vld [vmem:[%s8169_s0 + $0x17f] sm:$0xff]  ;;  %v4283_v24 = vld [vmem:[%s8169_s0 + $0x192] sm:$0xff] }
 0x206   :  { %1888 = vst.msk [vmem:[#allocation2 + $0x80] sm:$0xff] %vm1879_vm11, %v1821_v62  ;;  %3373 = vrot.lane.b32.xlu1 %v3311_v7, %s4491_s5  ;;  %4326 = vmatprep.mubr.msk.f32.mxu1 %vm8398_vm4, %v3685_v53  ;;  %vm8405_vm4 = vcmp.lt.s32.totalorder %v4962_v23, 13 }
 0x207   :  { %2525 = vrot.lane.b32.xlu0 %v4133_v33, %s4485_s16  ;;  %v3640_v51 = vsel %vm8405_vm4, %v7071_v27, 0.0  ;;  %vm8411_vm4 = vcmask 261248  }
 0x208   :  { %v3360_v59 = vpop.permute.xlu1 %3359 }
 0x209   :  { %v2512_v50 = vpop.permute.xlu0 %2511  ;;  %3429 = vst.msk [vmem:[#allocation2 + $0x50] sm:$0xff] %vm1727_vm14, %v3360_v59  ;;  %v2813_v59 = vsel %vm8412_vm10, %v6781_v52, 0.0 }
 0x20a   :  { %2580 = vst.msk [vmem:[#allocation2 + $0x60] sm:$0xff] %vm8400_vm15, %v2512_v50  ;;  %3523 = vrot.lane.b32.xlu1 %v4282_v44, %s4493_s14  ;;  %vm8407_vm15 = vmmov %vm8402_vm5  ;;  %v4209_v44 = vld [vmem:[%s8169_s0 + $0x18c] sm:$0xff] }
 0x20b   :  { %2700 = vrot.lane.b32.xlu0 %v2637_v42, %s4487_s4  ;;  %v2408_v42 = vsel %vm524_vm9, %v6593_v54, 0.0  ;;  %vm8413_vm9 = vmmov %vm8402_vm5  ;;  %v1771_v54 = vld [vmem:[%s8169_s0 + $0xb2] sm:$0xff] }
 0x20c   :  { %v3510_v38 = vpop.permute.xlu1 %3509 }
 0x20d   :  { %v2687_v8 = vpop.permute.xlu0 %2686  ;;  %v1997_v12 = vld [vmem:[#allocation2 + $0x80] sm:$0xff]  ;;  %3579 = vst.msk [vmem:[#allocation2 + $0x50] sm:$0xff] %vm1879_vm11, %v3510_v38 }
 0x20e   :  { %2755 = vst.msk [vmem:[#allocation2 + $0x60] sm:$0xff] %vm1044_vm1, %v2687_v8  ;;  %2236 = vmatmul.mubr.f32.gmra.mrb[16].mxu0 %v1997_v12  ;;  %3025 = vrot.lane.b32.xlu1 %v4208_v57, %s4489_s17  ;;  %v7123_v57 = vld [vmem:[%s8169_s0 + $0x18d] sm:$0xff]  ;;  %v4259_v38 = vld [vmem:[%s8169_s0 + $0x199] sm:$0xff] }
 0x20f   :  { %2432 = vst.msk [vmem:[#allocation2 + $0x80] sm:$0xff] %vm8402_vm5, %v2407_v1  ;;  %2875 = vrot.lane.b32.xlu0 %v2812_v49, %s4488_s13  ;;  %4079 = vmatprep.mubr.msk.f32.mxu0 %vm8404_vm8, %v6532_v34  ;;  %v7075_v34 = vld [vmem:[#allocation2 + $0x108] sm:$0xff]  ;;  %vm8410_vm8 = vcmp.lt.s32.totalorder %v4928_v19, 13  ;;  %v7144_v12 = vld [vmem:[%s8169_s0 + $0x1b3] sm:$0xff]  ;;  %vm8416_vm5 = vcmp.lt.s32.totalorder %v5017_v61, 13 }
 0x210   :  { %v3012_v17 = vpop.permute.xlu1 %3011  ;;  %3665 = vst.msk [vmem:[#allocation2 + $0x108] sm:$0xff] %vm8407_vm15, %v3640_v51  ;;  %v2638_v58 = vsel %vm8410_vm8, %v4159_v9, 0.0  ;;  %vm8414_vm15 = vmmov %vm8410_vm8  ;;  %v4210_v9 = vld [vmem:[%s8169_s0 + $0x194] sm:$0xff] }
 0x211   :  { %v2862_v4 = vpop.permute.xlu0 %2861  ;;  %v3138_v31 = vsel %vm8414_vm15, %v7123_v57, 0.0  ;;  %vm8418_vm8 = vmmov %vm8415_vm2  ;;  %vm8422_vm15 = vcmp.lt.s32.totalorder %v4994_v18, 13 }
 0x212   :  { %2930 = vst.msk [vmem:[#allocation2 + $0x60] sm:$0xff] %vm1221_vm7, %v2862_v4  ;;  %3200 = vrot.lane.b32.xlu1 %v3137_v15, %s4490_s20  ;;  %v3641_v15 = vsel %vm8416_vm5, %v7144_v12, 0.0  ;;  %v4135_v4 = vld [vmem:[%s8169_s0 + $0x186] sm:$0xff]  ;;  %vm8424_vm5 = vcmp.gt.s32.totalorder %v4994_v18, 0 }
 0x213   :  { %1836 = vrot.lane.b32.xlu0 %v1770_v35, %s4493_s14  ;;  %3080 = vst.msk [vmem:[#allocation2 + $0x60] sm:$0xff] %vm1373_vm12, %v3012_v17  ;;  %v3689_v17 = vld [vmem:[#allocation2 + $0x78] sm:$0xff] }
 0x214   :  { %v3187_v7 = vpop.permute.xlu1 %3186  ;;  %v3684_v53 = vld [vmem:[#allocation2 + $0x50] sm:$0xff] }
 0x215   :  { %v1823_v33 = vpop.permute.xlu0 %1822  ;;  %3255 = vst.msk [vmem:[#allocation2 + $0x60] sm:$0xff] %vm1550_vm3, %v3187_v7  ;;  %3914 = vmatmul.mubr.f32.gmra.mrb[10].mxu1 %v3684_v53  ;;  %v4284_v7 = vld [vmem:[%s8169_s0 + $0x19a] sm:$0xff] }
 0x216   :  { %1889 = vst.msk [vmem:[#allocation2 + $0x90] sm:$0xff] %vm1879_vm11, %v1823_v33  ;;  %3375 = vrot.lane.b32.xlu1 %v3312_v32, %s4491_s5  ;;  %4327 = vmatprep.mubr.msk.f32.mxu1 %vm8409_vm6, %v3687_v14  ;;  %vm8417_vm6 = vmmov %vm8412_vm10 }
 0x217   :  { %2527 = vrot.lane.b32.xlu0 %v4134_v28, %s4485_s16  ;;  %v3313_v35 = vsel %vm8417_vm6, %v4259_v38, 0.0  ;;  %v4160_v28 = vld [vmem:[%s8169_s0 + $0x187] sm:$0xff]  ;;  %vm8420_vm10 = vmmov %vm8415_vm2 }
 0x218   :  { %v3362_v62 = vpop.permute.xlu1 %3361  ;;  %v2639_v53 = vsel %vm8422_vm15, %v4160_v28, 0.0  ;;  %v4136_v38 = vld [vmem:[%s8169_s0 + $0x18e] sm:$0xff]  ;;  %v2410_v28 = vsel %vm526_vm13, %v6775_v2, 0.0 }
 0x219   :  { %v2514_v26 = vpop.permute.xlu0 %2513  ;;  %3430 = vst.msk [vmem:[#allocation2 + $0x60] sm:$0xff] %vm1727_vm14, %v3362_v62 }
 0x21a   :  { %2581 = vst.msk [vmem:[#allocation2 + $0x70] sm:$0xff] %vm8411_vm4, %v2514_v26  ;;  %3525 = vrot.lane.b32.xlu1 %v4283_v24, %s4493_s14  ;;  %vm8419_vm4 = vcmp.lt.s32.totalorder %v5005_v56, 13  ;;  %v2409_v24 = vsel %vm525_vm0, %v6698_v3, 0.0  ;;  %v7196_v26 = vld [vmem:[%s8169_s0 + $0x195] sm:$0xff]  ;;  %vm8425_vm0 = vmmov %vm8418_vm8 }
 0x21b   :  { %2702 = vrot.lane.b32.xlu0 %v2638_v58, %s4487_s4  ;;  %v1949_v14 = vsel %vm8419_vm4, %v1924_v36, 0.0  ;;  %v2814_v58 = vsel %vm8424_vm5, %v6851_v5, 0.0  ;;  %vm8426_vm6 = vmmov %vm8419_vm4  ;;  %v4161_v36 = vld [vmem:[%s8169_s0 + $0x18f] sm:$0xff] }
 0x21c   :  { %v3512_v50 = vpop.permute.xlu1 %3511  ;;  %1974 = vst.msk [vmem:[#allocation2 + $0x128] sm:$0xff] %vm8420_vm10, %v1949_v14  ;;  %vm8428_vm4 = vmmov %vm8425_vm0 }
 0x21d   :  { %v2689_v1 = vpop.permute.xlu0 %2688  ;;  %v1999_v49 = vld [vmem:[#allocation2 + $0x90] sm:$0xff]  ;;  %3580 = vst.msk [vmem:[#allocation2 + $0x60] sm:$0xff] %vm1879_vm11, %v3512_v50  ;;  %vm8429_vm10 = vmmov %vm8425_vm0  ;;  %v1772_v50 = vld [vmem:[%s8169_s0 + $0xba] sm:$0xff] }
 0x21e   :  { %2756 = vst.msk [vmem:[#allocation2 + $0x70] sm:$0xff] %vm1044_vm1, %v2689_v1  ;;  %2241 = vmatmul.mubr.f32.gmra.mrb[18].mxu0 %v1999_v49  ;;  %3027 = vrot.lane.b32.xlu1 %v4209_v44, %s4489_s17  ;;  %v4260_v49 = vld [vmem:[%s8169_s0 + $0x1a1] sm:$0xff] }
 0x21f   :  { %2433 = vst.msk [vmem:[#allocation2 + $0x90] sm:$0xff] %vm8413_vm9, %v2408_v42  ;;  %2877 = vrot.lane.b32.xlu0 %v2813_v59, %s4488_s13  ;;  %4080 = vmatprep.mubr.msk.f32.mxu0 %vm8415_vm2, %v6610_v11  ;;  %v7148_v11 = vld [vmem:[#allocation2 + $0x118] sm:$0xff]  ;;  %vm8421_vm9 = vmmov %vm8415_vm2  ;;  %vm8423_vm2 = vcmask 261248  }
 0x220   :  { %v3014_v52 = vpop.permute.xlu1 %3013  ;;  %3666 = vst.msk [vmem:[#allocation2 + $0x118] sm:$0xff] %vm8418_vm8, %v3641_v15  ;;  %v7202_v59 = vld [vmem:[%s8169_s0 + $0x1bb] sm:$0xff]  ;;  %vm8427_vm8 = vmmov %vm8422_vm15  ;;  %vm8431_vm15 = vcmp.lt.s32.totalorder %v5066_v48, 13 }
 0x221   :  { %v2864_v8 = vpop.permute.xlu0 %2863  ;;  %v3642_v3 = vsel %vm8426_vm6, %v7202_v59, 0.0  ;;  %v3139_v5 = vsel %vm8427_vm8, %v7196_v26, 0.0  ;;  %vm8435_vm6 = vcmask 261248   ;;  %vm8436_vm8 = vcmp.gt.s32.totalorder %v4962_v23, 0 }
 0x222   :  { %2931 = vst.msk [vmem:[#allocation2 + $0x70] sm:$0xff] %vm1221_vm7, %v2864_v8  ;;  %3202 = vrot.lane.b32.xlu1 %v3138_v31, %s4490_s20 }
 0x223   :  { %1838 = vrot.lane.b32.xlu0 %v1771_v54, %s4493_s14  ;;  %3081 = vst.msk [vmem:[#allocation2 + $0x70] sm:$0xff] %vm1373_vm12, %v3014_v52  ;;  %v7207_v55 = vld [vmem:[#allocation2 + $0x128] sm:$0xff] }
 0x224   :  { %v3189_v51 = vpop.permute.xlu1 %3188  ;;  %v3686_v32 = vld [vmem:[#allocation2 + $0x60] sm:$0xff]  ;;  %3667 = vst.msk [vmem:[#allocation2 + $0x128] sm:$0xff] %vm8429_vm10, %v3642_v3  ;;  %v3691_v54 = vld [vmem:[#allocation2 + $0x88] sm:$0xff]  ;;  %v3693_v3 = vld [vmem:[#allocation2 + $0x98] sm:$0xff] }
 0x225   :  { %v1825_v63 = vpop.permute.xlu0 %1824  ;;  %3256 = vst.msk [vmem:[#allocation2 + $0x70] sm:$0xff] %vm1550_vm3, %v3189_v51  ;;  %3919 = vmatmul.mubr.f32.gmra.mrb[12].mxu1 %v3686_v32  ;;  %v1925_v52 = vld [vmem:[%s8169_s0 + $0xc3] sm:$0xff] }
 0x226   :  { %1890 = vst.msk [vmem:[#allocation2 + $0xa0] sm:$0xff] %vm1879_vm11, %v1825_v63  ;;  %3377 = vrot.lane.b32.xlu1 %v3313_v35, %s4491_s5  ;;  %4328 = vmatprep.mubr.msk.f32.mxu1 %vm8421_vm9, %v3689_v17  ;;  %vm8430_vm9 = vmmov %vm8424_vm5  ;;  %v1950_v35 = vsel %vm8431_vm15, %v1925_v52, 0.0  ;;  %v4211_v63 = vld [vmem:[%s8169_s0 + $0x19c] sm:$0xff]  ;;  %v4286_v52 = vld [vmem:[%s8169_s0 + $0x1aa] sm:$0xff] }
 0x227   :  { %2529 = vrot.lane.b32.xlu0 %v4135_v4, %s4485_s16  ;;  %vm8433_vm5 = vmmov %vm8425_vm0  ;;  %v4285_v4 = vld [vmem:[%s8169_s0 + $0x1a2] sm:$0xff] }
 0x228   :  { %v3364_v13 = vpop.permute.xlu1 %3363 }
 0x229   :  { %v2516_v33 = vpop.permute.xlu0 %2515  ;;  %3431 = vst.msk [vmem:[#allocation2 + $0x70] sm:$0xff] %vm1727_vm14, %v3364_v13  ;;  %v7269_v13 = vld [vmem:[%s8169_s0 + $0x19d] sm:$0xff] }
 0x22a   :  { %2582 = vst.msk [vmem:[#allocation2 + $0x80] sm:$0xff] %vm8423_vm2, %v2516_v33  ;;  %3527 = vrot.lane.b32.xlu1 %v4284_v7, %s4493_s14  ;;  %vm8432_vm2 = vmmov %vm8425_vm0  ;;  %v2815_v7 = vsel %vm8436_vm8, %v6919_v45, 0.0 }
 0x22b   :  { %2704 = vrot.lane.b32.xlu0 %v2639_v53, %s4487_s4  ;;  %1975 = vst.msk [vmem:[#allocation2 + $0x138] sm:$0xff] %vm8432_vm2, %v1950_v35  ;;  %vm8437_vm13 = vmmov %vm8432_vm2  ;;  %v4212_v35 = vld [vmem:[%s8169_s0 + $0x1a4] sm:$0xff] }
 0x22c   :  { %v3514_v62 = vpop.permute.xlu1 %3513 }
 0x22d   :  { %v2691_v44 = vpop.permute.xlu0 %2690  ;;  %v2001_v42 = vld [vmem:[#allocation2 + $0xa0] sm:$0xff]  ;;  %3581 = vst.msk [vmem:[#allocation2 + $0x70] sm:$0xff] %vm1879_vm11, %v3514_v62 }
 0x22e   :  { %2757 = vst.msk [vmem:[#allocation2 + $0x80] sm:$0xff] %vm1044_vm1, %v2691_v44  ;;  %2246 = vmatmul.mubr.f32.gmra.mrb[20].mxu0 %v2001_v42  ;;  %3029 = vrot.lane.b32.xlu1 %v4210_v9, %s4489_s17  ;;  %v4261_v44 = vld [vmem:[%s8169_s0 + $0x1a9] sm:$0xff] }
 0x22f   :  { %2434 = vst.msk [vmem:[#allocation2 + $0xa0] sm:$0xff] %vm8425_vm0, %v2409_v24  ;;  %2879 = vrot.lane.b32.xlu0 %v2814_v58, %s4488_s13  ;;  %4081 = vmatprep.mubr.msk.f32.mxu0 %vm8428_vm4, %v6708_v39  ;;  %v3314_v39 = vsel %vm8430_vm9, %v4260_v49, 0.0  ;;  %vm8434_vm0 = vcmp.lt.s32.totalorder %v4962_v23, 13  ;;  %v7275_v24 = vld [vmem:[%s8169_s0 + $0x1c3] sm:$0xff]  ;;  %vm8438_vm4 = vmmov %vm8431_vm15 }
 0x230   :  { %v3016_v1 = vpop.permute.xlu1 %3015  ;;  %v2640_v51 = vsel %vm8434_vm0, %v4161_v36, 0.0  ;;  %v3643_v2 = vsel %vm8438_vm4, %v7275_v24, 0.0  ;;  %vm8439_vm10 = vmmov %vm8434_vm0  ;;  %v1773_v58 = vld [vmem:[%s8169_s0 + $0xc2] sm:$0xff]  ;;  %vm8448_vm4 = vcmp.gt.s32.totalorder %v4880_v29, 0 }
 0x231   :  { %v2866_v31 = vpop.permute.xlu0 %2865  ;;  %v3140_v45 = vsel %vm8439_vm10, %v7269_v13, 0.0  ;;  %vm8440_vm9 = vmmov %vm8432_vm2  ;;  %vm8449_vm10 = vcmp.gt.s32.totalorder %v5017_v61, 0 }
 0x232   :  { %2932 = vst.msk [vmem:[#allocation2 + $0x80] sm:$0xff] %vm1221_vm7, %v2866_v31  ;;  %3204 = vrot.lane.b32.xlu1 %v3139_v5, %s4490_s20  ;;  %v7280_v40 = vld [vmem:[#allocation2 + $0x138] sm:$0xff]  ;;  %vm8441_vm15 = vmmov %vm8432_vm2  ;;  %v1926_v5 = vld [vmem:[%s8169_s0 + $0xcb] sm:$0xff]  ;;  %v2816_v36 = vsel %vm8449_vm10, %v6985_v60, 0.0 }
 0x233   :  { %1840 = vrot.lane.b32.xlu0 %v1772_v50, %s4493_s14  ;;  %3082 = vst.msk [vmem:[#allocation2 + $0x80] sm:$0xff] %vm1373_vm12, %v3016_v1  ;;  %vm8442_vm2 = vmmov %vm8436_vm8  ;;  %v4137_v50 = vld [vmem:[%s8169_s0 + $0x196] sm:$0xff]  ;;  %vm8446_vm8 = vcmp.lt.s32.totalorder %v5017_v61, 13 }
 0x234   :  { %v3191_v8 = vpop.permute.xlu1 %3190  ;;  %v3688_v15 = vld [vmem:[#allocation2 + $0x70] sm:$0xff]  ;;  %3668 = vst.msk [vmem:[#allocation2 + $0x138] sm:$0xff] %vm8441_vm15, %v3643_v2  ;;  %vm8444_vm0 = vmmov %vm8440_vm9 }
 0x235   :  { %v1827_v17 = vpop.permute.xlu0 %1826  ;;  %3257 = vst.msk [vmem:[#allocation2 + $0x80] sm:$0xff] %vm1550_vm3, %v3191_v8  ;;  %3924 = vmatmul.mubr.f32.gmra.mrb[14].mxu1 %v3688_v15  ;;  %v1927_v2 = vld [vmem:[%s8169_s0 + $0xd3] sm:$0xff] }
 0x236   :  { %1891 = vst.msk [vmem:[#allocation2 + $0xb0] sm:$0xff] %vm1879_vm11, %v1827_v17  ;;  %3379 = vrot.lane.b32.xlu1 %v3314_v39, %s4491_s5  ;;  %4329 = vmatprep.mubr.msk.f32.mxu1 %vm8433_vm5, %v3691_v54  ;;  %vm8443_vm5 = vcmp.lt.s32.totalorder %v5049_v30, 13  ;;  %v4162_v54 = vld [vmem:[%s8169_s0 + $0x197] sm:$0xff]  ;;  %v2411_v17 = vsel %vm8448_vm4, %v6845_v6, 0.0  ;;  %vm8457_vm4 = vmmov %vm8444_vm0 }
 0x237   :  { %2531 = vrot.lane.b32.xlu0 %v4136_v38, %s4485_s16  ;;  %v1951_v31 = vsel %vm8443_vm5, %v1926_v5, 0.0  ;;  %v2641_v38 = vsel %vm8446_vm8, %v4162_v54, 0.0  ;;  %vm8451_vm15 = vmmov %vm8443_vm5 }
 0x238   :  { %v3366_v32 = vpop.permute.xlu1 %3365  ;;  %1976 = vst.msk [vmem:[#allocation2 + $0x148] sm:$0xff] %vm8444_vm0, %v1951_v31  ;;  %vm8453_vm5 = vmmov %vm8444_vm0 }
 0x239   :  { %v2518_v14 = vpop.permute.xlu0 %2517  ;;  %3432 = vst.msk [vmem:[#allocation2 + $0x80] sm:$0xff] %vm1727_vm14, %v3366_v32 }
 0x23a   :  { %2583 = vst.msk [vmem:[#allocation2 + $0x90] sm:$0xff] %vm8435_vm6, %v2518_v14  ;;  %3529 = vrot.lane.b32.xlu1 %v4285_v4, %s4493_s14  ;;  %vm8445_vm6 = vmmov %vm8444_vm0 }
 0x23b   :  { %2706 = vrot.lane.b32.xlu0 %v2640_v51, %s4487_s4  ;;  %v7342_v51 = vld [vmem:[%s8169_s0 + $0x1a5] sm:$0xff] }
 0x23c   :  { %v3516_v53 = vpop.permute.xlu1 %3515 }
 0x23d   :  { %v2693_v33 = vpop.permute.xlu0 %2692  ;;  %v2003_v9 = vld [vmem:[#allocation2 + $0xb0] sm:$0xff]  ;;  %3582 = vst.msk [vmem:[#allocation2 + $0x80] sm:$0xff] %vm1879_vm11, %v3516_v53 }
 0x23e   :  { %2758 = vst.msk [vmem:[#allocation2 + $0x90] sm:$0xff] %vm1044_vm1, %v2693_v33  ;;  %2251 = vmatmul.mubr.f32.gmra.mrb[22].mxu0 %v2003_v9  ;;  %3031 = vrot.lane.b32.xlu1 %v4211_v63, %s4489_s17  ;;  %v7348_v63 = vld [vmem:[%s8169_s0 + $0x1cb] sm:$0xff] }
 0x23f   :  { %2435 = vst.msk [vmem:[#allocation2 + $0xb0] sm:$0xff] %vm8437_vm13, %v2410_v28  ;;  %2881 = vrot.lane.b32.xlu0 %v2815_v7, %s4488_s13  ;;  %4082 = vmatprep.mubr.msk.f32.mxu0 %vm8440_vm9, %v6786_v47  ;;  %v3315_v47 = vsel %vm8442_vm2, %v4261_v44, 0.0  ;;  %vm8447_vm13 = vcmask 261248   ;;  %vm8450_vm9 = vmmov %vm8444_vm0  ;;  %v7353_v29 = vld [vmem:[#allocation2 + $0x148] sm:$0xff]  ;;  %v3644_v6 = vsel %vm8451_vm15, %v7348_v63, 0.0  ;;  %v4262_v53 = vld [vmem:[%s8169_s0 + $0x1b1] sm:$0xff] }
 0x240   :  { %v3018_v62 = vpop.permute.xlu1 %3017  ;;  %vm8452_vm2 = vmmov %vm8446_vm8  ;;  %3669 = vst.msk [vmem:[#allocation2 + $0x148] sm:$0xff] %vm8444_vm0, %v3644_v6  ;;  %v1774_v28 = vld [vmem:[%s8169_s0 + $0xca] sm:$0xff]  ;;  %vm8455_vm8 = vcmp.lt.s32.totalorder %v5098_v0, 13  ;;  %vm8460_vm15 = vcmp.gt.s32.totalorder %v4948_v46, 0 }
 0x241   :  { %v2868_v42 = vpop.permute.xlu0 %2867  ;;  %v3141_v60 = vsel %vm8452_vm2, %v7342_v51, 0.0  ;;  %v3695_v9 = vld [vmem:[#allocation2 + $0xa8] sm:$0xff]  ;;  %v1952_v44 = vsel %vm8455_vm8, %v1927_v2, 0.0  ;;  %v2412_v31 = vsel %vm8460_vm15, %v6913_v10, 0.0  ;;  %vm8461_vm2 = vcmp.gt.s32.totalorder %v5005_v56, 0 }
 0x242   :  { %2933 = vst.msk [vmem:[#allocation2 + $0x90] sm:$0xff] %vm1221_vm7, %v2868_v42  ;;  %3206 = vrot.lane.b32.xlu1 %v3140_v45, %s4490_s20  ;;  %v4138_v45 = vld [vmem:[%s8169_s0 + $0x19e] sm:$0xff]  ;;  %v4139_v6 = vld [vmem:[%s8169_s0 + $0x1a6] sm:$0xff] }
 0x243   :  { %1842 = vrot.lane.b32.xlu0 %v1773_v58, %s4493_s14  ;;  %3083 = vst.msk [vmem:[#allocation2 + $0x90] sm:$0xff] %vm1373_vm12, %v3018_v62 }
 0x244   :  { %v3193_v1 = vpop.permute.xlu1 %3192  ;;  %v3690_v49 = vld [vmem:[#allocation2 + $0x80] sm:$0xff] }
 0x245   :  { %v1829_v39 = vpop.permute.xlu0 %1828  ;;  %3258 = vst.msk [vmem:[#allocation2 + $0x90] sm:$0xff] %vm1550_vm3, %v3193_v1  ;;  %3929 = vmatmul.mubr.f32.gmra.mrb[16].mxu1 %v3690_v49  ;;  %v4213_v49 = vld [vmem:[%s8169_s0 + $0x1ac] sm:$0xff] }
 0x246   :  { %1892 = vst.msk [vmem:[#allocation2 + $0xc0] sm:$0xff] %vm1879_vm11, %v1829_v39  ;;  %3381 = vrot.lane.b32.xlu1 %v3315_v47, %s4491_s5  ;;  %4330 = vmatprep.mubr.msk.f32.mxu1 %vm8445_vm6, %v3693_v3  ;;  %vm8454_vm6 = vmmov %vm8449_vm10  ;;  %v4163_v47 = vld [vmem:[%s8169_s0 + $0x19f] sm:$0xff]  ;;  %v4287_v3 = vld [vmem:[%s8169_s0 + $0x1b2] sm:$0xff]  ;;  %vm8458_vm10 = vcmp.lt.s32.totalorder %v5005_v56, 13  ;;  %v2817_v39 = vsel %vm8461_vm2, %v7071_v27, 0.0 }
 0x247   :  { %2533 = vrot.lane.b32.xlu0 %v4137_v50, %s4485_s16  ;;  %v2642_v5 = vsel %vm8458_vm10, %v4163_v47, 0.0  ;;  %v7488_v47 = vld [vmem:[%s8169_s0 + $0x1b5] sm:$0xff] }
 0x248   :  { %v3368_v8 = vpop.permute.xlu1 %3367 }
 0x249   :  { %v2520_v15 = vpop.permute.xlu0 %2519  ;;  %3433 = vst.msk [vmem:[#allocation2 + $0x90] sm:$0xff] %vm1727_vm14, %v3368_v8 }
 0x24a   :  { %2584 = vst.msk [vmem:[#allocation2 + $0xa0] sm:$0xff] %vm8447_vm13, %v2520_v15  ;;  %3531 = vrot.lane.b32.xlu1 %v4286_v52, %s4493_s14  ;;  %vm8456_vm13 = vmmov %vm8444_vm0  ;;  %v7415_v52 = vld [vmem:[%s8169_s0 + $0x1ad] sm:$0xff] }
 0x24b   :  { %2708 = vrot.lane.b32.xlu0 %v2641_v38, %s4487_s4  ;;  %1977 = vst.msk [vmem:[#allocation2 + $0x158] sm:$0xff] %vm8456_vm13, %v1952_v44  ;;  %v7421_v15 = vld [vmem:[%s8169_s0 + $0x1d3] sm:$0xff]  ;;  %vm8466_vm13 = vmmov %vm8457_vm4 }
 0x24c   :  { %v3518_v4 = vpop.permute.xlu1 %3517 }
 0x24d   :  { %v2695_v32 = vpop.permute.xlu0 %2694  ;;  %v2005_v14 = vld [vmem:[#allocation2 + $0xc0] sm:$0xff]  ;;  %3583 = vst.msk [vmem:[#allocation2 + $0x90] sm:$0xff] %vm1879_vm11, %v3518_v4 }
 0x24e   :  { %2759 = vst.msk [vmem:[#allocation2 + $0xa0] sm:$0xff] %vm1044_vm1, %v2695_v32  ;;  %2256 = vmatmul.mubr.f32.gmra.mrb[24].mxu0 %v2005_v14  ;;  %3033 = vrot.lane.b32.xlu1 %v4212_v35, %s4489_s17  ;;  %v1775_v35 = vld [vmem:[%s8169_s0 + $0xd2] sm:$0xff]  ;;  %v1928_v14 = vld [vmem:[%s8169_s0 + $0xdb] sm:$0xff] }
 0x24f   :  { %2436 = vst.msk [vmem:[#allocation2 + $0xc0] sm:$0xff] %vm8450_vm9, %v2411_v17  ;;  %2883 = vrot.lane.b32.xlu0 %v2816_v36, %s4488_s13  ;;  %4083 = vmatprep.mubr.msk.f32.mxu0 %vm8453_vm5, %v6855_v20  ;;  %v3316_v20 = vsel %vm8454_vm6, %v4262_v53, 0.0  ;;  %vm8459_vm9 = vcmask 261248   ;;  %vm8462_vm5 = vmmov %vm8444_vm0  ;;  %v4263_v36 = vld [vmem:[%s8169_s0 + $0x1b9] sm:$0xff] }
 0x250   :  { %v3020_v7 = vpop.permute.xlu1 %3019  ;;  %vm8463_vm0 = vmmov %vm8455_vm8  ;;  %v3697_v32 = vld [vmem:[#allocation2 + $0xb8] sm:$0xff] }
 0x251   :  { %v2870_v33 = vpop.permute.xlu0 %2869  ;;  %v3645_v10 = vsel %vm8463_vm0, %v7421_v15, 0.0  ;;  %vm8464_vm6 = vmmov %vm8458_vm10  ;;  %vm8468_vm10 = vcmp.lt.s32.totalorder %v5080_v22, 13  ;;  %vm8473_vm0 = vcmp.gt.s32.totalorder %v4928_v19, 0  ;;  %v4317_v19 = vld [vmem:[%s8169_s0 + $0x1db] sm:$0xff] }
 0x252   :  { %2934 = vst.msk [vmem:[#allocation2 + $0xa0] sm:$0xff] %vm1221_vm7, %v2870_v33  ;;  %3208 = vrot.lane.b32.xlu1 %v3141_v60, %s4490_s20  ;;  %v7426_v46 = vld [vmem:[#allocation2 + $0x158] sm:$0xff]  ;;  %v3142_v27 = vsel %vm8464_vm6, %v7415_v52, 0.0  ;;  %vm8465_vm8 = vmmov %vm8457_vm4  ;;  %v4164_v33 = vld [vmem:[%s8169_s0 + $0x1a7] sm:$0xff]  ;;  %vm8474_vm6 = vcmp.gt.s32.totalorder %v5066_v48, 0 }
 0x253   :  { %1844 = vrot.lane.b32.xlu0 %v1774_v28, %s4493_s14  ;;  %3084 = vst.msk [vmem:[#allocation2 + $0xa0] sm:$0xff] %vm1373_vm12, %v3020_v7  ;;  %v1953_v7 = vsel %vm8468_vm10, %v1928_v14, 0.0  ;;  %vm8470_vm15 = vmmov %vm8462_vm5  ;;  %v2818_v44 = vsel %vm8474_vm6, %v7144_v12, 0.0 }
 0x254   :  { %v3195_v58 = vpop.permute.xlu1 %3194  ;;  %v3692_v62 = vld [vmem:[#allocation2 + $0x90] sm:$0xff]  ;;  %3670 = vst.msk [vmem:[#allocation2 + $0x158] sm:$0xff] %vm8466_vm13, %v3645_v10 }
 0x255   :  { %v1831_v42 = vpop.permute.xlu0 %1830  ;;  %3259 = vst.msk [vmem:[#allocation2 + $0xa0] sm:$0xff] %vm1550_vm3, %v3195_v58  ;;  %3934 = vmatmul.mubr.f32.gmra.mrb[18].mxu1 %v3692_v62  ;;  %v4214_v58 = vld [vmem:[%s8169_s0 + $0x1b4] sm:$0xff]  ;;  %v2413_v62 = vsel %vm8473_vm0, %v6979_v21, 0.0 }
 0x256   :  { %1893 = vst.msk [vmem:[#allocation2 + $0xd0] sm:$0xff] %vm1879_vm11, %v1831_v42  ;;  %3383 = vrot.lane.b32.xlu1 %v3316_v20, %s4491_s5  ;;  %4331 = vmatprep.mubr.msk.f32.mxu1 %vm8457_vm4, %v3695_v9  ;;  %vm8467_vm4 = vmmov %vm8461_vm2  ;;  %v4288_v20 = vld [vmem:[%s8169_s0 + $0x1ba] sm:$0xff]  ;;  %vm8471_vm2 = vcmp.lt.s32.totalorder %v5066_v48, 13 }
 0x257   :  { %2535 = vrot.lane.b32.xlu0 %v4138_v45, %s4485_s16  ;;  %v2643_v9 = vsel %vm8471_vm2, %v4164_v33, 0.0  ;;  %vm8475_vm13 = vmmov %vm8471_vm2  ;;  %vm8479_vm2 = vcmp.lt.s32.totalorder %v5166_v41, 13 }
 0x258   :  { %v3370_v50 = vpop.permute.xlu1 %3369  ;;  %v3143_v21 = vsel %vm8475_vm13, %v7488_v47, 0.0  ;;  %vm8484_vm13 = vcmp.gt.s32.totalorder %v4994_v18, 0  ;;  %v4318_v18 = vld [vmem:[%s8169_s0 + $0x1e3] sm:$0xff] }
 0x259   :  { %v2522_v1 = vpop.permute.xlu0 %2521  ;;  %3434 = vst.msk [vmem:[#allocation2 + $0xa0] sm:$0xff] %vm1727_vm14, %v3370_v50  ;;  %v3646_v50 = vsel %vm8468_vm10, %v4317_v19, 0.0 }
 0x25a   :  { %2585 = vst.msk [vmem:[#allocation2 + $0xb0] sm:$0xff] %vm8459_vm9, %v2522_v1  ;;  %3533 = vrot.lane.b32.xlu1 %v4287_v3, %s4493_s14  ;;  %vm8469_vm9 = vmmov %vm8462_vm5  ;;  %v1776_v1 = vld [vmem:[%s8169_s0 + $0xda] sm:$0xff] }
 0x25b   :  { %2710 = vrot.lane.b32.xlu0 %v2642_v5, %s4487_s4  ;;  %1978 = vst.msk [vmem:[#allocation2 + $0x168] sm:$0xff] %vm8469_vm9, %v1953_v7 }
 0x25c   :  { %v3520_v54 = vpop.permute.xlu1 %3519 }
 0x25d   :  { %v2697_v38 = vpop.permute.xlu0 %2696  ;;  %v2007_v8 = vld [vmem:[#allocation2 + $0xd0] sm:$0xff]  ;;  %3584 = vst.msk [vmem:[#allocation2 + $0xa0] sm:$0xff] %vm1879_vm11, %v3520_v54  ;;  %v3699_v54 = vld [vmem:[#allocation2 + $0xc8] sm:$0xff] }
 0x25e   :  { %2760 = vst.msk [vmem:[#allocation2 + $0xb0] sm:$0xff] %vm1044_vm1, %v2697_v38  ;;  %2261 = vmatmul.mubr.f32.gmra.mrb[26].mxu0 %v2007_v8  ;;  %3035 = vrot.lane.b32.xlu1 %v4213_v49, %s4489_s17  ;;  %v1929_v38 = vld [vmem:[%s8169_s0 + $0xe3] sm:$0xff]  ;;  %v4140_v8 = vld [vmem:[%s8169_s0 + $0x1ae] sm:$0xff] }
 0x25f   :  { %2437 = vst.msk [vmem:[#allocation2 + $0xd0] sm:$0xff] %vm8462_vm5, %v2412_v31  ;;  %2885 = vrot.lane.b32.xlu0 %v2817_v39, %s4488_s13  ;;  %4084 = vmatprep.mubr.msk.f32.mxu0 %vm8465_vm8, %v6923_v43  ;;  %v3317_v43 = vsel %vm8467_vm4, %v4263_v36, 0.0  ;;  %vm8472_vm5 = vcmask 261248   ;;  %vm8476_vm4 = vmmov %vm8465_vm8  ;;  %v4264_v31 = vld [vmem:[%s8169_s0 + $0x1c1] sm:$0xff]  ;;  %v4165_v36 = vld [vmem:[%s8169_s0 + $0x1af] sm:$0xff] }
 0x260   :  { %v3022_v17 = vpop.permute.xlu1 %3021  ;;  %vm8477_vm9 = vmmov %vm8476_vm4 }
 0x261   :  { %v2872_v4 = vpop.permute.xlu0 %2871  ;;  %vm8481_vm0 = vmmov %vm8476_vm4 }
 0x262   :  { %2935 = vst.msk [vmem:[#allocation2 + $0xb0] sm:$0xff] %vm1221_vm7, %v2872_v4  ;;  %3210 = vrot.lane.b32.xlu1 %v3142_v27, %s4490_s20  ;;  %v7503_v12 = vld [vmem:[#allocation2 + $0x168] sm:$0xff]  ;;  %vm8486_vm10 = vmmov %vm8481_vm0 }
 0x263   :  { %1846 = vrot.lane.b32.xlu0 %v1775_v35, %s4493_s14  ;;  %3085 = vst.msk [vmem:[#allocation2 + $0xb0] sm:$0xff] %vm1373_vm12, %v3022_v17  ;;  %v1954_v35 = vsel %vm8479_vm2, %v1929_v38, 0.0  ;;  %v4289_v4 = vld [vmem:[%s8169_s0 + $0x1c2] sm:$0xff] }
 0x264   :  { %v3197_v60 = vpop.permute.xlu1 %3196  ;;  %v3694_v28 = vld [vmem:[#allocation2 + $0xa0] sm:$0xff]  ;;  %3671 = vst.msk [vmem:[#allocation2 + $0x168] sm:$0xff] %vm8477_vm9, %v3646_v50 }
 0x265   :  { %v1833_v53 = vpop.permute.xlu0 %1832  ;;  %3260 = vst.msk [vmem:[#allocation2 + $0xb0] sm:$0xff] %vm1550_vm3, %v3197_v60  ;;  %3939 = vmatmul.mubr.f32.gmra.mrb[20].mxu1 %v3694_v28  ;;  %v2414_v60 = vsel %vm8484_vm13, %v7050_v37, 0.0 }
 0x266   :  { %1894 = vst.msk [vmem:[#allocation2 + $0xe0] sm:$0xff] %vm1879_vm11, %v1833_v53  ;;  %3385 = vrot.lane.b32.xlu1 %v3317_v43, %s4491_s5  ;;  %4332 = vmatprep.mubr.msk.f32.mxu1 %vm8470_vm15, %v3697_v32  ;;  %vm8478_vm15 = vmmov %vm8474_vm6  ;;  %vm8482_vm6 = vcmp.lt.s32.totalorder %v5049_v30, 13  ;;  %v7558_v53 = vld [vmem:[%s8169_s0 + $0x1bd] sm:$0xff] }
 0x267   :  { %2537 = vrot.lane.b32.xlu0 %v4139_v6, %s4485_s16  ;;  %v2644_v43 = vsel %vm8482_vm6, %v4165_v36, 0.0  ;;  %v4215_v6 = vld [vmem:[%s8169_s0 + $0x1bc] sm:$0xff]  ;;  %vm8487_vm9 = vmmov %vm8482_vm6  ;;  %vm8491_vm6 = vcmp.lt.s32.totalorder %v5116_v25, 13 }
 0x268   :  { %v3372_v2 = vpop.permute.xlu1 %3371  ;;  %v3144_v37 = vsel %vm8487_vm9, %v7558_v53, 0.0  ;;  %vm8495_vm9 = vcmask 261248  }
 0x269   :  { %v2524_v45 = vpop.permute.xlu0 %2523  ;;  %3435 = vst.msk [vmem:[#allocation2 + $0xb0] sm:$0xff] %vm1727_vm14, %v3372_v2  ;;  %v1777_v2 = vld [vmem:[%s8169_s0 + $0xe2] sm:$0xff] }
 0x26a   :  { %2586 = vst.msk [vmem:[#allocation2 + $0xc0] sm:$0xff] %vm8472_vm5, %v2524_v45  ;;  %3535 = vrot.lane.b32.xlu1 %v4288_v20, %s4493_s14  ;;  %vm8480_vm5 = vmmov %vm8476_vm4 }
 0x26b   :  { %2712 = vrot.lane.b32.xlu0 %v2643_v9, %s4487_s4  ;;  %1979 = vst.msk [vmem:[#allocation2 + $0x178] sm:$0xff] %vm8480_vm5, %v1954_v35  ;;  %v3647_v9 = vsel %vm8479_vm2, %v4318_v18, 0.0  ;;  %vm8489_vm5 = vmmov %vm8481_vm0  ;;  %vm8497_vm2 = vcmp.gt.s32.totalorder %v5098_v0, 0 }
 0x26c   :  { %v3522_v42 = vpop.permute.xlu1 %3521  ;;  %vm8493_vm13 = vmmov %vm8489_vm5 }
 0x26d   :  { %v2699_v3 = vpop.permute.xlu0 %2698  ;;  %v2009_v5 = vld [vmem:[#allocation2 + $0xe0] sm:$0xff]  ;;  %3585 = vst.msk [vmem:[#allocation2 + $0xb0] sm:$0xff] %vm1879_vm11, %v3522_v42  ;;  %v3701_v42 = vld [vmem:[#allocation2 + $0xd8] sm:$0xff] }
 0x26e   :  { %2761 = vst.msk [vmem:[#allocation2 + $0xc0] sm:$0xff] %vm1044_vm1, %v2699_v3  ;;  %2266 = vmatmul.mubr.f32.gmra.mrb[28].mxu0 %v2009_v5  ;;  %3037 = vrot.lane.b32.xlu1 %v4214_v58, %s4489_s17  ;;  %v4265_v58 = vld [vmem:[%s8169_s0 + $0x1c9] sm:$0xff]  ;;  %v4141_v5 = vld [vmem:[%s8169_s0 + $0x1b6] sm:$0xff] }
 0x26f   :  { %2438 = vst.msk [vmem:[#allocation2 + $0xe0] sm:$0xff] %vm8465_vm8, %v2413_v62  ;;  %2887 = vrot.lane.b32.xlu0 %v2818_v44, %s4488_s13  ;;  %4085 = vmatprep.mubr.msk.f32.mxu0 %vm8476_vm4, %v6989_v16  ;;  %v3318_v16 = vsel %vm8478_vm15, %v4264_v31, 0.0  ;;  %vm8483_vm8 = vcmask 261248   ;;  %vm8485_vm4 = vcmp.gt.s32.totalorder %v5049_v30, 0  ;;  %vm8488_vm15 = vmmov %vm8481_vm0  ;;  %v1930_v3 = vld [vmem:[%s8169_s0 + $0xeb] sm:$0xf] }
 0x270   :  { %v3024_v49 = vpop.permute.xlu1 %3023  ;;  %v2819_v28 = vsel %vm8485_vm4, %v7202_v59, 0.0  ;;  %v1955_v50 = vsel %vm8491_vm6, %v1930_v3, 0.0  ;;  %v4166_v31 = vld [vmem:[%s8169_s0 + $0x1b7] sm:$0xff]  ;;  %vm8499_vm6 = vmmov %vm8489_vm5 }
 0x271   :  { %v2874_v39 = vpop.permute.xlu0 %2873 }
 0x272   :  { %2936 = vst.msk [vmem:[#allocation2 + $0xc0] sm:$0xff] %vm1221_vm7, %v2874_v39  ;;  %3212 = vrot.lane.b32.xlu1 %v3143_v21, %s4490_s20  ;;  %v7573_v59 = vld [vmem:[#allocation2 + $0x178] sm:$0xff] }
 0x273   :  { %1848 = vrot.lane.b32.xlu0 %v1776_v1, %s4493_s14  ;;  %3086 = vst.msk [vmem:[#allocation2 + $0xc0] sm:$0xff] %vm1373_vm12, %v3024_v49 }
 0x274   :  { %v3199_v10 = vpop.permute.xlu1 %3198  ;;  %v3696_v27 = vld [vmem:[#allocation2 + $0xb0] sm:$0xff]  ;;  %3672 = vst.msk [vmem:[#allocation2 + $0x178] sm:$0xff] %vm8489_vm5, %v3647_v9 }
 0x275   :  { %v1835_v17 = vpop.permute.xlu0 %1834  ;;  %3261 = vst.msk [vmem:[#allocation2 + $0xc0] sm:$0xff] %vm1550_vm3, %v3199_v10  ;;  %3944 = vmatmul.mubr.f32.gmra.mrb[22].mxu1 %v3696_v27 }
 0x276   :  { %1895 = vst.msk [vmem:[#allocation2 + $0xf0] sm:$0xff] %vm1879_vm11, %v1835_v17  ;;  %3387 = vrot.lane.b32.xlu1 %v3318_v16, %s4491_s5  ;;  %4333 = vmatprep.mubr.msk.f32.mxu1 %vm8481_vm0, %v3699_v54  ;;  %vm8490_vm0 = vmmov %vm8485_vm4  ;;  %vm2346_vm4 = vcmask 261120   ;;  %v4290_v54 = vld [vmem:[%s8169_s0 + $0x1ca] sm:$0xff] }
 0x277   :  { %2539 = vrot.lane.b32.xlu0 %v4140_v8, %s4485_s16  ;;  %v3319_v44 = vsel %vm8490_vm0, %v4265_v58, 0.0  ;;  %v4266_v58 = vld [vmem:[%s8169_s0 + $0x1d1] sm:$0xff] }
 0x278   :  { %v3374_v32 = vpop.permute.xlu1 %3373 }
 0x279   :  { %v2526_v14 = vpop.permute.xlu0 %2525  ;;  %3436 = vst.msk [vmem:[#allocation2 + $0xc0] sm:$0xff] %vm1727_vm14, %v3374_v32 }
 0x27a   :  { %2587 = vst.msk [vmem:[#allocation2 + $0xd0] sm:$0xff] %vm8483_vm8, %v2526_v14  ;;  %3537 = vrot.lane.b32.xlu1 %v4289_v4, %s4493_s14  ;;  %vm8492_vm8 = vcmask 125952   ;;  %v4216_v4 = vld [vmem:[%s8169_s0 + $0x1c4] sm:$0xff]  ;;  %v2820_v14 = vsel %vm8497_vm2, %v7275_v24, 0.0 }
 0x27b   :  { %2714 = vrot.lane.b32.xlu0 %v2644_v43, %s4487_s4  ;;  %1980 = vst.msk [vmem:[#allocation2 + $0x188] sm:$0xf] %vm8492_vm8, %v1955_v50  ;;  %v4319_v24 = vld [vmem:[%s8169_s0 + $0x1eb] sm:$0xf]  ;;  %vm8500_vm8 = vcmp.lt.s32.totalorder %v5116_v25, 13 }
 0x27c   :  { %v3524_v7 = vpop.permute.xlu1 %3523 }
 0x27d   :  { %v2701_v33 = vpop.permute.xlu0 %2700  ;;  %v2011_v20 = vld [vmem:[#allocation2 + $0xf0] sm:$0xff]  ;;  %3586 = vst.msk [vmem:[#allocation2 + $0xc0] sm:$0xff] %vm1879_vm11, %v3524_v7 }
 0x27e   :  { %2762 = vst.msk [vmem:[#allocation2 + $0xd0] sm:$0xff] %vm1044_vm1, %v2701_v33  ;;  %2271 = vmatmul.mubr.f32.gmra.mrb[30].mxu0 %v2011_v20  ;;  %3039 = vrot.lane.b32.xlu1 %v4215_v6, %s4489_s17 }
 0x27f   :  { %2439 = vst.msk [vmem:[#allocation2 + $0xf0] sm:$0xff] %vm8486_vm10, %v2414_v60  ;;  %2889 = vrot.lane.b32.xlu0 %v2819_v28, %s4488_s13  ;;  %4086 = vmatprep.mubr.msk.f32.mxu0 %vm8488_vm15, %v7075_v34  ;;  %v7591_v34 = vld [vmem:[%s8171_s2] ss:$0 sm:$0xff]  ;;  %vm8494_vm10 = vcmp.lt.s32.totalorder %v5098_v0, 13  ;;  %vm8496_vm15 = vcmp.gt.s32.totalorder %v4962_v23, 0  ;;  %v7639_v60 = vld [vmem:[%s8169_s0 + $0x1c5] sm:$0xff] }
 0x280   :  { %v3026_v45 = vpop.permute.xlu1 %3025  ;;  %v2645_v8 = vsel %vm8494_vm10, %v4166_v31, 0.0  ;;  %v2415_v43 = vsel %vm8496_vm15, %v7123_v57, 0.0  ;;  %vm8498_vm0 = vmmov %vm8494_vm10  ;;  %vm8504_vm15 = vcmp.lt.s32.totalorder %v5080_v22, 13 }
 0x281   :  { %v2876_v62 = vpop.permute.xlu0 %2875  ;;  %v3145_v20 = vsel %vm8498_vm0, %v7639_v60, 0.0  ;;  %vm8502_vm10 = vmmov %vm8497_vm2  ;;  %vm8505_vm2 = vcmask 261248   ;;  %vm8507_vm0 = vcmp.gt.s32.totalorder %v5080_v22, 0 }
 0x282   :  { %2937 = vst.msk [vmem:[#allocation2 + $0xd0] sm:$0xff] %vm1221_vm7, %v2876_v62  ;;  %3214 = vrot.lane.b32.xlu1 %v3144_v37, %s4490_s20  ;;  %v7659_v18 = vld [vmem:[#allocation2 + $0x188] sm:$0xf]  ;;  %v3648_v37 = vsel %vm8500_vm8, %v4319_v24, 0.0  ;;  %v3320_v3 = vsel %vm8502_vm10, %v4266_v58, 0.0  ;;  %vm8508_vm8 = vcmp.lt.s32.totalorder %v5166_v41, 13 }
 0x283   :  { %1850 = vrot.lane.b32.xlu0 %v1777_v2, %s4493_s14  ;;  %3087 = vst.msk [vmem:[#allocation2 + $0xd0] sm:$0xff] %vm1373_vm12, %v3026_v45  ;;  %v1778_v2 = vld [vmem:[%s8169_s0 + $0xea] sm:$0xf]  ;;  %vm8510_vm10 = vcmp.gt.s32.totalorder %v5166_v41, 0 }
 0x284   :  { %v3201_v19 = vpop.permute.xlu1 %3200  ;;  %v3698_v21 = vld [vmem:[#allocation2 + $0xc0] sm:$0xff] }
 0x285   :  { %v1837_v1 = vpop.permute.xlu0 %1836  ;;  %v2197_v49 = vpop.f32.mrb[0].mxu0  ;;  %3262 = vst.msk [vmem:[#allocation2 + $0xd0] sm:$0xff] %vm1550_vm3, %v3201_v19  ;;  %3949 = vmatmul.mubr.f32.gmra.mrb[24].mxu1 %v3698_v21  ;;  %v4142_v21 = vld [vmem:[%s8169_s0 + $0x1be] sm:$0xff] }
 0x286   :  { %1896 = vst.msk [vmem:[#allocation2 + $0x100] sm:$0xff] %vm1879_vm11, %v1837_v1  ;;  %v2198_v39 = vadd.f32 %v7591_v34, %v2197_v49  ;;  %v2199_v16 = vpop.f32.mrb[1].mxu0  ;;  %3389 = vrot.lane.b32.xlu1 %v3319_v44, %s4491_s5  ;;  %4334 = vmatprep.mubr.msk.f32.mxu1 %vm8493_vm13, %v3701_v42  ;;  %vm8501_vm13 = vcmask 125952  }
 0x287   :  { %2541 = vrot.lane.b32.xlu0 %v4141_v5, %s4485_s16  ;;  %3673 = vst.msk [vmem:[#allocation2 + $0x188] sm:$0xf] %vm8501_vm13, %v3648_v37  ;;  %v3703_v5 = vld [vmem:[#allocation2 + $0xe8] sm:$0xff]  ;;  %vm8509_vm13 = vmmov %vm8499_vm6 }
 0x288   :  { %v2321_v38 = vmax.f32 %v2198_v39, 0.0  ;;  %v3376_v10 = vpop.permute.xlu1 %3375  ;;  %v4167_v39 = vld [vmem:[%s8169_s0 + $0x1bf] sm:$0xff] }
 0x289   :  { %v2528_v27 = vpop.permute.xlu0 %2527  ;;  %v2202_v35 = vpop.f32.mrb[2].mxu0  ;;  %3437 = vst.msk [vmem:[#allocation2 + $0xd0] sm:$0xff] %vm1727_vm14, %v3376_v10  ;;  %v2646_v10 = vsel %vm8504_vm15, %v4167_v39, 0.0 }
 0x28a   :  { %2347 = vst.msk [vmem:[%s8172_s3] sm:$0xff] %vm2346_vm4, %v2321_v38  ;;  %v2203_v17 = vadd.f32 %v7591_v34, %v2202_v35  ;;  %v2204_v36 = vpop.f32.mrb[3].mxu0  ;;  %3539 = vrot.lane.b32.xlu1 %v4290_v54, %s4493_s14  ;;  %v4291_v38 = vld [vmem:[%s8169_s0 + $0x1d2] sm:$0xff] }
 0x28b   :  { %2588 = vst.msk [vmem:[#allocation2 + $0xe0] sm:$0xff] %vm8495_vm9, %v2528_v27  ;;  %2716 = vrot.lane.b32.xlu0 %v2645_v8, %s4487_s4  ;;  %vm8503_vm9 = vmmov %vm8489_vm5 }
 0x28c   :  { %v2322_v32 = vmax.f32 %v2203_v17, 0.0  ;;  %v3526_v6 = vpop.permute.xlu1 %3525 }
 0x28d   :  { %v2703_v28 = vpop.permute.xlu0 %2702  ;;  %v2207_v7 = vpop.f32.mrb[4].mxu0  ;;  %v2013_v33 = vld [vmem:[#allocation2 + $0x100] sm:$0xff]  ;;  %3587 = vst.msk [vmem:[#allocation2 + $0xd0] sm:$0xff] %vm1879_vm11, %v3526_v6  ;;  %v2821_v6 = vsel %vm8507_vm0, %v7348_v63, 0.0 }
 0x28e   :  { %2348 = vst.msk [vmem:[%s8172_s3 + $0x8] sm:$0xff] %vm2346_vm4, %v2322_v32  ;;  %v2208_v23 = vadd.f32 %v7591_v34, %v2207_v7  ;;  %v2209_v57 = vpop.f32.mrb[5].mxu0  ;;  %2276 = vmatmul.mubr.f32.gmra.mrb[32].mxu0 %v2013_v33  ;;  %3041 = vrot.lane.b32.xlu1 %v4216_v4, %s4489_s17  ;;  %v4168_v7 = vld [vmem:[%s8169_s0 + $0x1c7] sm:$0xff] }
 0x28f   :  { %2763 = vst.msk [vmem:[#allocation2 + $0xe0] sm:$0xff] %vm1044_vm1, %v2703_v28  ;;  %2891 = vrot.lane.b32.xlu0 %v2820_v14, %s4488_s13  ;;  %4087 = vmatprep.mubr.msk.f32.mxu0 %vm8499_vm6, %v7148_v11  ;;  %v2647_v63 = vsel %vm8508_vm8, %v4168_v7, 0.0 }
 0x290   :  { %2440 = vst.msk [vmem:[#allocation2 + $0x100] sm:$0xff] %vm8489_vm5, %v2415_v43  ;;  %v2323_v9 = vmax.f32 %v2208_v23, 0.0  ;;  %v3028_v45 = vpop.permute.xlu1 %3027  ;;  %v4143_v43 = vld [vmem:[%s8169_s0 + $0x1c6] sm:$0xff]  ;;  %vm8506_vm5 = vcmp.gt.s32.totalorder %v5017_v61, 0 }
 0x291   :  { %v2878_v62 = vpop.permute.xlu0 %2877  ;;  %v2212_v44 = vpop.f32.mrb[6].mxu0  ;;  %v2416_v32 = vsel %vm8506_vm5, %v7196_v26, 0.0  ;;  %vm8514_vm5 = vcmask 261248  }
 0x292   :  { %2349 = vst.msk [vmem:[%s8172_s3 + $0x10] sm:$0xff] %vm2346_vm4, %v2323_v9  ;;  %v2213_v11 = vadd.f32 %v7591_v34, %v2212_v44  ;;  %v2214_v42 = vpop.f32.mrb[7].mxu0  ;;  %3216 = vrot.lane.b32.xlu1 %v3145_v20, %s4490_s20  ;;  %v4217_v20 = vld [vmem:[%s8169_s0 + $0x1cc] sm:$0xff] }
 0x293   :  { %2938 = vst.msk [vmem:[#allocation2 + $0xe0] sm:$0xff] %vm1221_vm7, %v2878_v62  ;;  %1852 = vrot.lane.b32.xlu0 %v1778_v2, %s4493_s14  ;;  %v4242_v62 = vld [vmem:[%s8169_s0 + $0x1cd] sm:$0xff] }
 0x294   :  { %3088 = vst.msk [vmem:[#allocation2 + $0xe0] sm:$0xff] %vm1373_vm12, %v3028_v45  ;;  %v2324_v19 = vmax.f32 %v2213_v11, 0.0  ;;  %v3203_v50 = vpop.permute.xlu1 %3202  ;;  %v3700_v1 = vld [vmem:[#allocation2 + $0xd0] sm:$0xff] }
 0x295   :  { %v1839_v49 = vpop.permute.xlu0 %1838  ;;  %v2217_v31 = vpop.f32.mrb[8].mxu0  ;;  %3263 = vst.msk [vmem:[#allocation2 + $0xe0] sm:$0xff] %vm1550_vm3, %v3203_v50  ;;  %3954 = vmatmul.mubr.f32.gmra.mrb[26].mxu1 %v3700_v1 }
 0x296   :  { %2350 = vst.msk [vmem:[%s8172_s3 + $0x18] sm:$0xff] %vm2346_vm4, %v2324_v19  ;;  %v2218_v16 = vadd.f32 %v7591_v34, %v2217_v31  ;;  %v2219_v54 = vpop.f32.mrb[9].mxu0  ;;  %3391 = vrot.lane.b32.xlu1 %v3320_v3, %s4491_s5  ;;  %4335 = vmatprep.mubr.msk.f32.mxu1 %vm8503_vm9, %v3703_v5  ;;  %v2822_v3 = vsel %vm8510_vm10, %v7421_v15, 0.0  ;;  %v3705_v5 = vld [vmem:[#allocation2 + $0xf8] sm:$0xff]  ;;  %vm8511_vm9 = vmmov %vm8504_vm15 }
 0x297   :  { %1897 = vst.msk [vmem:[#allocation2 + $0x110] sm:$0xff] %vm1879_vm11, %v1839_v49  ;;  %2543 = vrot.lane.b32.xlu0 %v4142_v21, %s4485_s16  ;;  %v3146_v21 = vsel %vm8511_vm9, %v4242_v62, 0.0  ;;  %v4267_v15 = vld [vmem:[%s8169_s0 + $0x1d9] sm:$0xff]  ;;  %vm8512_vm15 = vmmov %vm8499_vm6  ;;  %vm8520_vm9 = vcmp.lt.s32.totalorder %v5116_v25, 13 }
 0x298   :  { %v2325_v8 = vmax.f32 %v2218_v16, 0.0  ;;  %v3378_v27 = vpop.permute.xlu1 %3377  ;;  %v4218_v31 = vld [vmem:[%s8169_s0 + $0x1d4] sm:$0xff] }
 0x299   :  { %v2530_v35 = vpop.permute.xlu0 %2529  ;;  %v2222_v17 = vpop.f32.mrb[10].mxu0  ;;  %3438 = vst.msk [vmem:[#allocation2 + $0xe0] sm:$0xff] %vm1727_vm14, %v3378_v27  ;;  %v4243_v54 = vld [vmem:[%s8169_s0 + $0x1d5] sm:$0xff] }
 0x29a   :  { %2351 = vst.msk [vmem:[%s8172_s3 + $0x20] sm:$0xff] %vm2346_vm4, %v2325_v8  ;;  %v2223_v36 = vadd.f32 %v7591_v34, %v2222_v17  ;;  %v2224_v4 = vpop.f32.mrb[11].mxu0  ;;  %3541 = vrot.lane.b32.xlu1 %v4291_v38, %s4493_s14  ;;  %v4292_v27 = vld [vmem:[%s8169_s0 + $0x1da] sm:$0xff] }
 0x29b   :  { %2589 = vst.msk [vmem:[#allocation2 + $0xf0] sm:$0xff] %vm8505_vm2, %v2530_v35  ;;  %2718 = vrot.lane.b32.xlu0 %v2646_v10, %s4487_s4  ;;  %vm8513_vm2 = vmmov %vm8507_vm0  ;;  %v4268_v17 = vld [vmem:[%s8169_s0 + $0x1e1] sm:$0xff] }
 0x29c   :  { %v2326_v14 = vmax.f32 %v2223_v36, 0.0  ;;  %v3528_v28 = vpop.permute.xlu1 %3527  ;;  %v3321_v39 = vsel %vm8513_vm2, %v4267_v15, 0.0  ;;  %vm8515_vm0 = vmmov %vm8508_vm8 }
 0x29d   :  { %v2705_v33 = vpop.permute.xlu0 %2704  ;;  %v2227_v23 = vpop.f32.mrb[12].mxu0  ;;  %3588 = vst.msk [vmem:[#allocation2 + $0xe0] sm:$0xff] %vm1879_vm11, %v3528_v28  ;;  %v3147_v8 = vsel %vm8515_vm0, %v4243_v54, 0.0  ;;  %vm8517_vm8 = vmmov %vm8509_vm13  ;;  %vm8524_vm0 = vcmask 261248  }
 0x29e   :  { %v2015_v57 = vld [vmem:[#allocation2 + $0x110] sm:$0xff]  ;;  %2352 = vst.msk [vmem:[%s8172_s3 + $0x28] sm:$0xff] %vm2346_vm4, %v2326_v14  ;;  %v2228_v61 = vadd.f32 %v7591_v34, %v2227_v23  ;;  %v2229_v26 = vpop.f32.mrb[13].mxu0  ;;  %2545 = vrot.lane.b32.xlu1 %v4143_v43, %s4485_s16  ;;  %v4244_v23 = vld [vmem:[%s8169_s0 + $0x1dd] sm:$0xf]  ;;  %vm8522_vm2 = vmmov %vm8520_vm9 }
 0x29f   :  { %2764 = vst.msk [vmem:[#allocation2 + $0xf0] sm:$0xff] %vm1044_vm1, %v2705_v33  ;;  %2281 = vmatmul.mubr.f32.gmra.mrb[34].mxu0 %v2015_v57  ;;  %2893 = vrot.lane.b32.xlu0 %v2821_v6, %s4488_s13  ;;  %v4169_v14 = vld [vmem:[%s8169_s0 + $0x1cf] sm:$0xf]  ;;  %v4194_v26 = vld [vmem:[%s8169_s0 + $0x1db] sm:$0xf] }
 0x2a0   :  { %2441 = vst.msk [vmem:[#allocation2 + $0x110] sm:$0xff] %vm8499_vm6, %v2416_v32  ;;  %4088 = vmatprep.mubr.msk.f32.mxu0 %vm8509_vm13, %v7207_v55  ;;  %v2327_v24 = vmax.f32 %v2228_v61, 0.0  ;;  %v3030_v37 = vpop.permute.xlu1 %3029  ;;  %v3890_v9 = vpop.f32.mrb[0].mxu1  ;;  %vm8516_vm6 = vcmp.gt.s32.totalorder %v5005_v56, 0  ;;  %vm8518_vm13 = vmmov %vm8510_vm10  ;;  %v3707_v6 = vld [vmem:[#allocation2 + $0x108] sm:$0xff]  ;;  %v2648_v28 = vsel %vm8520_vm9, %v4169_v14, 0.0 }
 0x2a1   :  { %v2880_v2 = vpop.permute.xlu0 %2879  ;;  %v2232_v45 = vpop.f32.mrb[14].mxu0  ;;  %v3891_v58 = vadd.f32 %v7591_v34, %v3890_v9  ;;  %v2417_v10 = vsel %vm8516_vm6, %v7269_v13, 0.0  ;;  %v3322_v56 = vsel %vm8518_vm13, %v4268_v17, 0.0  ;;  %vm8519_vm10 = vmmov %vm8517_vm8  ;;  %v4144_v13 = vld [vmem:[%s8169_s0 + $0x1ce] sm:$0xf]  ;;  %vm8525_vm6 = vcmp.gt.s32.totalorder %v5066_v48, 0 }
 0x2a2   :  { %2353 = vst.msk [vmem:[%s8172_s3 + $0x30] sm:$0xff] %vm2346_vm4, %v2327_v24  ;;  %v2233_v55 = vadd.f32 %v7591_v34, %v2232_v45  ;;  %v2234_v44 = vpop.f32.mrb[15].mxu0  ;;  %v3892_v11 = vpop.f32.mrb[1].mxu1  ;;  %2720 = vrot.lane.b32.xlu1 %v2647_v63, %s4487_s4  ;;  %v2418_v62 = vsel %vm8525_vm6, %v7342_v51, 0.0  ;;  %vm8526_vm13 = vmmov %vm8517_vm8 }
 0x2a3   :  { %2939 = vst.msk [vmem:[#allocation2 + $0xf0] sm:$0xff] %vm1221_vm7, %v2880_v2  ;;  %3043 = vrot.lane.b32.xlu0 %v4217_v20, %s4489_s17  ;;  %v4014_v42 = vmax.f32 %v3891_v58, 0.0  ;;  %v3148_v20 = vsel %vm8522_vm2, %v4244_v23, 0.0  ;;  %v4294_v58 = vld [vmem:[%s8169_s0 + $0x1ea] sm:$0xf]  ;;  %vm8528_vm9 = vmmov %vm8517_vm8  ;;  %vm8530_vm2 = vcmp.gt.s32.totalorder %v5049_v30, 0 }
 0x2a4   :  { %3089 = vst.msk [vmem:[#allocation2 + $0xf0] sm:$0xff] %vm1373_vm12, %v3030_v37  ;;  %v2328_v19 = vmax.f32 %v2233_v55, 0.0  ;;  %v3205_v50 = vpop.permute.xlu1 %3204  ;;  %v3702_v1 = vld [vmem:[#allocation2 + $0xe0] sm:$0xff]  ;;  %v4219_v55 = vld [vmem:[%s8169_s0 + $0x1dc] sm:$0xf]  ;;  %v2419_v54 = vsel %vm8530_vm2, %v7415_v52, 0.0 }
 0x2a5   :  { %v1841_v49 = vpop.permute.xlu0 %1840  ;;  %4346 = vst.msk [vmem:[%s8172_s3 + $0xc8] sm:$0xff] %vm2346_vm4, %v4014_v42  ;;  %3959 = vmatmul.mubr.f32.gmra.mrb[28].mxu1 %v3702_v1 }
 0x2a6   :  { %3264 = vst.msk [vmem:[#allocation2 + $0xf0] sm:$0xff] %vm1550_vm3, %v3205_v50  ;;  %2895 = vrot.lane.b32.xlu1 %v2822_v3, %s4488_s13  ;;  %4336 = vmatprep.mubr.msk.f32.mxu1 %vm8512_vm15, %v3705_v5  ;;  %vm8521_vm15 = vmmov %vm8517_vm8 }
 0x2a7   :  { %2354 = vst.msk [vmem:[%s8172_s3 + $0x38] sm:$0xff] %vm2346_vm4, %v2328_v19  ;;  %3218 = vrot.lane.b32.xlu0 %v3146_v21, %s4490_s20  ;;  %v4269_v21 = vld [vmem:[%s8169_s0 + $0x1e9] sm:$0xf] }
 0x2a8   :  { %1898 = vst.msk [vmem:[#allocation2 + $0x120] sm:$0xff] %vm1879_vm11, %v1841_v49  ;;  %v3380_v16 = vpop.permute.xlu1 %3379  ;;  %v3709_v49 = vld [vmem:[#allocation2 + $0x118] sm:$0xff] }
 0x2a9   :  { %v2532_v38 = vpop.permute.xlu0 %2531  ;;  %3439 = vst.msk [vmem:[#allocation2 + $0xf0] sm:$0xff] %vm1727_vm14, %v3380_v16 }
 0x2aa   :  { %2590 = vst.msk [vmem:[#allocation2 + $0x100] sm:$0xff] %vm8514_vm5, %v2532_v38  ;;  %3045 = vrot.lane.b32.xlu1 %v4218_v31, %s4489_s17  ;;  %vm8523_vm5 = vcmp.gt.s32.totalorder %v5116_v25, 0 }
 0x2ab   :  { %3393 = vrot.lane.b32.xlu0 %v3321_v39, %s4491_s5  ;;  %v2823_v9 = vsel %vm8523_vm5, %v4194_v26, 0.0 }
 0x2ac   :  { %v3530_v35 = vpop.permute.xlu1 %3529 }
 0x2ad   :  { %v2707_v36 = vpop.permute.xlu0 %2706  ;;  %3589 = vst.msk [vmem:[#allocation2 + $0xf0] sm:$0xff] %vm1879_vm11, %v3530_v35 }
 0x2ae   :  { %2765 = vst.msk [vmem:[#allocation2 + $0x100] sm:$0xff] %vm1044_vm1, %v2707_v36  ;;  %3220 = vrot.lane.b32.xlu1 %v3147_v8, %s4490_s20  ;;  %v3711_v36 = vld [vmem:[#allocation2 + $0x128] sm:$0xff] }
 0x2af   :  { %v2017_v4 = vld [vmem:[#allocation2 + $0x120] sm:$0xff]  ;;  %3543 = vrot.lane.b32.xlu0 %v4292_v27, %s4493_s14 }
 0x2b0   :  { %2286 = vmatmul.mubr.f32.gmra.mrb[36].mxu0 %v2017_v4  ;;  %2442 = vst.msk [vmem:[#allocation2 + $0x120] sm:$0xff] %vm8517_vm8, %v2417_v10  ;;  %v3032_v43 = vpop.permute.xlu1 %3031 }
 0x2b1   :  { %4089 = vmatprep.mubr.msk.f32.mxu0 %vm8519_vm10, %v7280_v40  ;;  %v2882_v32 = vpop.permute.xlu0 %2881  ;;  %v4293_v40 = vld [vmem:[%s8169_s0 + $0x1e2] sm:$0xff]  ;;  %vm8527_vm10 = vmmov %vm8523_vm5 }
 0x2b2   :  { %2940 = vst.msk [vmem:[#allocation2 + $0x100] sm:$0xff] %vm1221_vm7, %v2882_v32  ;;  %3395 = vrot.lane.b32.xlu1 %v3322_v56, %s4491_s5  ;;  %v3323_v51 = vsel %vm8527_vm10, %v4269_v21, 0.0  ;;  %vm8531_vm5 = vmmov %vm8517_vm8 }
 0x2b3   :  { %2547 = vrot.lane.b32.xlu0 %v4144_v13, %s4485_s16  ;;  %3090 = vst.msk [vmem:[#allocation2 + $0x100] sm:$0xff] %vm1373_vm12, %v3032_v43 }
 0x2b4   :  { %v3207_v7 = vpop.permute.xlu1 %3206  ;;  %v3704_v33 = vld [vmem:[#allocation2 + $0xf0] sm:$0xff] }
 0x2b5   :  { %v1843_v57 = vpop.permute.xlu0 %1842  ;;  %v3895_v61 = vpop.f32.mrb[2].mxu1  ;;  %3265 = vst.msk [vmem:[#allocation2 + $0x100] sm:$0xff] %vm1550_vm3, %v3207_v7  ;;  %3964 = vmatmul.mubr.f32.gmra.mrb[30].mxu1 %v3704_v33 }
 0x2b6   :  { %1899 = vst.msk [vmem:[#allocation2 + $0x130] sm:$0xff] %vm1879_vm11, %v1843_v57  ;;  %v3896_v63 = vadd.f32 %v7591_v34, %v3895_v61  ;;  %v3897_v24 = vpop.f32.mrb[3].mxu1  ;;  %3545 = vrot.lane.b32.xlu1 %v4293_v40, %s4493_s14  ;;  %4337 = vmatprep.mubr.msk.f32.mxu1 %vm8521_vm15, %v3707_v6  ;;  %vm8529_vm15 = vmmov %vm8524_vm0 }
 0x2b7   :  { %2722 = vrot.lane.b32.xlu0 %v2648_v28, %s4487_s4  ;;  %v3713_v24 = vld [vmem:[#allocation2 + $0x138] sm:$0xff] }
 0x2b8   :  { %v4015_v37 = vmax.f32 %v3896_v63, 0.0  ;;  %v3382_v2 = vpop.permute.xlu1 %3381 }
 0x2b9   :  { %v2534_v45 = vpop.permute.xlu0 %2533  ;;  %3440 = vst.msk [vmem:[#allocation2 + $0x100] sm:$0xff] %vm1727_vm14, %v3382_v2 }
 0x2ba   :  { %4347 = vst.msk [vmem:[%s8172_s3 + $0xd0] sm:$0xff] %vm2346_vm4, %v4015_v37  ;;  %3222 = vrot.lane.b32.xlu1 %v3148_v20, %s4490_s20 }
 0x2bb   :  { %2591 = vst.msk [vmem:[#allocation2 + $0x110] sm:$0xff] %vm8524_vm0, %v2534_v45  ;;  %2897 = vrot.lane.b32.xlu0 %v2823_v9, %s4488_s13  ;;  %vm8532_vm0 = vmmov %vm8531_vm5 }
 0x2bc   :  { %v3532_v44 = vpop.permute.xlu1 %3531  ;;  %v3900_v11 = vpop.f32.mrb[4].mxu1  ;;  %vm8533_vm6 = vmmov %vm8532_vm0 }
 0x2bd   :  { %v2709_v42 = vpop.permute.xlu0 %2708  ;;  %v2019_v3 = vld [vmem:[#allocation2 + $0x130] sm:$0xff]  ;;  %3590 = vst.msk [vmem:[#allocation2 + $0x100] sm:$0xff] %vm1879_vm11, %v3532_v44  ;;  %v3901_v5 = vadd.f32 %v7591_v34, %v3900_v11  ;;  %v3902_v19 = vpop.f32.mrb[5].mxu1  ;;  %vm8536_vm10 = vmmov %vm8532_vm0 }
 0x2be   :  { %2766 = vst.msk [vmem:[#allocation2 + $0x110] sm:$0xff] %vm1044_vm1, %v2709_v42  ;;  %2291 = vmatmul.mubr.f32.gmra.mrb[38].mxu0 %v2019_v3  ;;  %3547 = vrot.lane.b32.xlu1 %v4294_v58, %s4493_s14 }
 0x2bf   :  { %2443 = vst.msk [vmem:[#allocation2 + $0x130] sm:$0xff] %vm8517_vm8, %v2418_v62  ;;  %3047 = vrot.lane.b32.xlu0 %v4219_v55, %s4489_s17  ;;  %v4016_v48 = vmax.f32 %v3901_v5, 0.0  ;;  %4090 = vmatprep.mubr.msk.f32.mxu0 %vm8526_vm13, %v7353_v29  ;;  %vm8534_vm8 = vmmov %vm8529_vm15  ;;  %vm8535_vm13 = vcmp.gt.s32.totalorder %v5098_v0, 0 }
 0x2c0   :  { %v3034_v50 = vpop.permute.xlu1 %3033  ;;  %v2420_v7 = vsel %vm8535_vm13, %v7488_v47, 0.0  ;;  %vm8539_vm2 = vmmov %vm8534_vm8 }
 0x2c1   :  { %v2884_v1 = vpop.permute.xlu0 %2883  ;;  %4348 = vst.msk [vmem:[%s8172_s3 + $0xd8] sm:$0xff] %vm2346_vm4, %v4016_v48  ;;  %vm8543_vm13 = vmmov %vm8539_vm2 }
 0x2c2   :  { %2941 = vst.msk [vmem:[#allocation2 + $0x110] sm:$0xff] %vm1221_vm7, %v2884_v1 }
 0x2c3   :  { %3397 = vrot.lane.b32.xlu0 %v3323_v51, %s4491_s5  ;;  %3091 = vst.msk [vmem:[#allocation2 + $0x110] sm:$0xff] %vm1373_vm12, %v3034_v50  ;;  %v3715_v51 = vld [vmem:[#allocation2 + $0x148] sm:$0xff] }
 0x2c4   :  { %v3209_v15 = vpop.permute.xlu1 %3208  ;;  %v3706_v31 = vld [vmem:[#allocation2 + $0x100] sm:$0xff] }
 0x2c5   :  { %v1845_v29 = vpop.permute.xlu0 %1844  ;;  %3266 = vst.msk [vmem:[#allocation2 + $0x110] sm:$0xff] %vm1550_vm3, %v3209_v15  ;;  %3969 = vmatmul.mubr.f32.gmra.mrb[32].mxu1 %v3706_v31 }
 0x2c6   :  { %1900 = vst.msk [vmem:[#allocation2 + $0x140] sm:$0xff] %vm1879_vm11, %v1845_v29  ;;  %4338 = vmatprep.mubr.msk.f32.mxu1 %vm8528_vm9, %v3709_v49  ;;  %vm8537_vm9 = vmmov %vm8532_vm0 }
 0x2c8   :  { %v3384_v39 = vpop.permute.xlu1 %3383 }
 0x2c9   :  { %v2536_v16 = vpop.permute.xlu0 %2535  ;;  %3441 = vst.msk [vmem:[#allocation2 + $0x110] sm:$0xff] %vm1727_vm14, %v3384_v39 }
 0x2ca   :  { %2592 = vst.msk [vmem:[#allocation2 + $0x120] sm:$0xff] %vm8529_vm15, %v2536_v16  ;;  %vm8538_vm15 = vmmov %vm8532_vm0 }
 0x2cc   :  { %v3534_v38 = vpop.permute.xlu1 %3533 }
 0x2cd   :  { %v2711_v8 = vpop.permute.xlu0 %2710  ;;  %v2021_v10 = vld [vmem:[#allocation2 + $0x140] sm:$0xff]  ;;  %3591 = vst.msk [vmem:[#allocation2 + $0x110] sm:$0xff] %vm1879_vm11, %v3534_v38 }
 0x2ce   :  { %2767 = vst.msk [vmem:[#allocation2 + $0x120] sm:$0xff] %vm1044_vm1, %v2711_v8  ;;  %2296 = vmatmul.mubr.f32.gmra.mrb[40].mxu0 %v2021_v10 }
 0x2cf   :  { %2444 = vst.msk [vmem:[#allocation2 + $0x140] sm:$0xff] %vm8531_vm5, %v2419_v54  ;;  %4091 = vmatprep.mubr.msk.f32.mxu0 %vm8532_vm0, %v7426_v46  ;;  %vm8540_vm5 = vcmp.gt.s32.totalorder %v5080_v22, 0 }
 0x2d0   :  { %v3036_v27 = vpop.permute.xlu1 %3035  ;;  %v2421_v11 = vsel %vm8540_vm5, %v7558_v53, 0.0  ;;  %vm8547_vm5 = vmmov %vm8532_vm0 }
 0x2d1   :  { %v2886_v35 = vpop.permute.xlu0 %2885  ;;  %v3905_v17 = vpop.f32.mrb[6].mxu1 }
 0x2d2   :  { %2942 = vst.msk [vmem:[#allocation2 + $0x120] sm:$0xff] %vm1221_vm7, %v2886_v35  ;;  %v3906_v30 = vadd.f32 %v7591_v34, %v3905_v17  ;;  %v3907_v52 = vpop.f32.mrb[7].mxu1 }
 0x2d3   :  { %3092 = vst.msk [vmem:[#allocation2 + $0x120] sm:$0xff] %vm1373_vm12, %v3036_v27  ;;  %v3717_v52 = vld [vmem:[#allocation2 + $0x158] sm:$0xff] }
 0x2d4   :  { %v4017_v4 = vmax.f32 %v3906_v30, 0.0  ;;  %v3211_v56 = vpop.permute.xlu1 %3210  ;;  %v3708_v13 = vld [vmem:[#allocation2 + $0x110] sm:$0xff] }
 0x2d5   :  { %v1847_v43 = vpop.permute.xlu0 %1846  ;;  %3267 = vst.msk [vmem:[#allocation2 + $0x120] sm:$0xff] %vm1550_vm3, %v3211_v56  ;;  %3974 = vmatmul.mubr.f32.gmra.mrb[34].mxu1 %v3708_v13 }
 0x2d6   :  { %4349 = vst.msk [vmem:[%s8172_s3 + $0xe0] sm:$0xff] %vm2346_vm4, %v4017_v4  ;;  %4339 = vmatprep.mubr.msk.f32.mxu1 %vm8533_vm6, %v3711_v36  ;;  %vm8541_vm6 = vmmov %vm8532_vm0 }
 0x2d7   :  { %1901 = vst.msk [vmem:[#allocation2 + $0x150] sm:$0xff] %vm1879_vm11, %v1847_v43 }
 0x2d8   :  { %v3386_v46 = vpop.permute.xlu1 %3385  ;;  %v3910_v32 = vpop.f32.mrb[8].mxu1 }
 0x2d9   :  { %v2538_v14 = vpop.permute.xlu0 %2537  ;;  %3442 = vst.msk [vmem:[#allocation2 + $0x120] sm:$0xff] %vm1727_vm14, %v3386_v46  ;;  %v3911_v40 = vadd.f32 %v7591_v34, %v3910_v32  ;;  %v3912_v6 = vpop.f32.mrb[9].mxu1 }
 0x2da   :  { %2593 = vst.msk [vmem:[#allocation2 + $0x130] sm:$0xff] %vm8534_vm8, %v2538_v14  ;;  %vm8542_vm8 = vmmov %vm8532_vm0 }
 0x2db   :  { %v4018_v28 = vmax.f32 %v3911_v40, 0.0 }
 0x2dc   :  { %v3536_v33 = vpop.permute.xlu1 %3535 }
 0x2dd   :  { %v2713_v23 = vpop.permute.xlu0 %2712  ;;  %4350 = vst.msk [vmem:[%s8172_s3 + $0xe8] sm:$0xff] %vm2346_vm4, %v4018_v28 }
 0x2de   :  { %v2023_v57 = vld [vmem:[#allocation2 + $0x150] sm:$0xff]  ;;  %3592 = vst.msk [vmem:[#allocation2 + $0x120] sm:$0xff] %vm1879_vm11, %v3536_v33 }
 0x2df   :  { %2768 = vst.msk [vmem:[#allocation2 + $0x130] sm:$0xff] %vm1044_vm1, %v2713_v23  ;;  %2301 = vmatmul.mubr.f32.gmra.mrb[42].mxu0 %v2023_v57 }
 0x2e0   :  { %2445 = vst.msk [vmem:[#allocation2 + $0x150] sm:$0xff] %vm8536_vm10, %v2420_v7  ;;  %4092 = vmatprep.mubr.msk.f32.mxu0 %vm8537_vm9, %v7503_v12  ;;  %v3038_v0 = vpop.permute.xlu1 %3037  ;;  %vm8544_vm10 = vcmp.gt.s32.totalorder %v5166_v41, 0  ;;  %vm8545_vm9 = vmmov %vm8532_vm0 }
 0x2e1   :  { %v2888_v47 = vpop.permute.xlu0 %2887  ;;  %v2237_v61 = vpop.f32.mrb[16].mxu0  ;;  %v2422_v38 = vsel %vm8544_vm10, %v7639_v60, 0.0  ;;  %vm8552_vm10 = vmmov %vm8547_vm5 }
 0x2e2   :  { %2943 = vst.msk [vmem:[#allocation2 + $0x130] sm:$0xff] %vm1221_vm7, %v2888_v47  ;;  %v2238_v26 = vadd.f32 %v7591_v34, %v2237_v61  ;;  %v2239_v63 = vpop.f32.mrb[17].mxu0 }
 0x2e3   :  { %3093 = vst.msk [vmem:[#allocation2 + $0x130] sm:$0xff] %vm1373_vm12, %v3038_v0 }
 0x2e4   :  { %v2329_v20 = vmax.f32 %v2238_v26, 0.0  ;;  %v3213_v37 = vpop.permute.xlu1 %3212  ;;  %v3719_v26 = vld [vmem:[#allocation2 + $0x168] sm:$0xff] }
 0x2e5   :  { %v3710_v9 = vld [vmem:[#allocation2 + $0x120] sm:$0xff]  ;;  %v1849_v2 = vpop.permute.xlu0 %1848  ;;  %3268 = vst.msk [vmem:[#allocation2 + $0x130] sm:$0xff] %vm1550_vm3, %v3213_v37 }
 0x2e6   :  { %3979 = vmatmul.mubr.f32.gmra.mrb[36].mxu1 %v3710_v9  ;;  %2355 = vst.msk [vmem:[%s8172_s3 + $0x40] sm:$0xff] %vm2346_vm4, %v2329_v20 }
 0x2e7   :  { %1902 = vst.msk [vmem:[#allocation2 + $0x160] sm:$0xff] %vm1879_vm11, %v1849_v2  ;;  %4340 = vmatprep.mubr.msk.f32.mxu1 %vm8538_vm15, %v3713_v24  ;;  %vm8546_vm15 = vmmov %vm8532_vm0 }
 0x2e8   :  { %v3388_v12 = vpop.permute.xlu1 %3387  ;;  %v3915_v45 = vpop.f32.mrb[10].mxu1 }
 0x2e9   :  { %v2540_v58 = vpop.permute.xlu0 %2539  ;;  %3443 = vst.msk [vmem:[#allocation2 + $0x130] sm:$0xff] %vm1727_vm14, %v3388_v12  ;;  %v3916_v62 = vadd.f32 %v7591_v34, %v3915_v45  ;;  %v3917_v55 = vpop.f32.mrb[11].mxu1 }
 0x2ea   :  { %2594 = vst.msk [vmem:[#allocation2 + $0x140] sm:$0xff] %vm8539_vm2, %v2540_v58  ;;  %vm1904_vm2 = vcmask 1044352  }
 0x2eb   :  { %v4019_v44 = vmax.f32 %v3916_v62, 0.0 }
 0x2ec   :  { %v3538_v42 = vpop.permute.xlu1 %3537 }
 0x2ed   :  { %v2715_v3 = vpop.permute.xlu0 %2714  ;;  %4351 = vst.msk [vmem:[%s8172_s3 + $0xf0] sm:$0xff] %vm2346_vm4, %v4019_v44 }
 0x2ee   :  { %v2025_v5 = vld [vmem:[#allocation2 + $0x160] sm:$0xff]  ;;  %3593 = vst.msk [vmem:[#allocation2 + $0x130] sm:$0xff] %vm1879_vm11, %v3538_v42 }
 0x2ef   :  { %2769 = vst.msk [vmem:[#allocation2 + $0x140] sm:$0xff] %vm1044_vm1, %v2715_v3  ;;  %2306 = vmatmul.mubr.f32.gmra.mrb[44].mxu0 %v2025_v5 }
 0x2f0   :  { %2446 = vst.msk [vmem:[#allocation2 + $0x160] sm:$0xff] %vm8532_vm0, %v2421_v11  ;;  %4093 = vmatprep.mubr.msk.f32.mxu0 %vm8541_vm6, %v7573_v59  ;;  %v3040_v22 = vpop.permute.xlu1 %3039  ;;  %vm8548_vm0 = vmmov %vm8543_vm13  ;;  %vm8549_vm6 = vcmp.gt.s32.totalorder %v5116_v25, 0 }
 0x2f1   :  { %v2890_v53 = vpop.permute.xlu0 %2889  ;;  %v2242_v19 = vpop.f32.mrb[18].mxu0 }
 0x2f2   :  { %2944 = vst.msk [vmem:[#allocation2 + $0x140] sm:$0xff] %vm1221_vm7, %v2890_v53  ;;  %v2243_v21 = vadd.f32 %v7591_v34, %v2242_v19  ;;  %v2244_v48 = vpop.f32.mrb[19].mxu0 }
 0x2f3   :  { %3094 = vst.msk [vmem:[#allocation2 + $0x140] sm:$0xff] %vm1373_vm12, %v3040_v22 }
 0x2f4   :  { %v2330_v50 = vmax.f32 %v2243_v21, 0.0  ;;  %v3215_v1 = vpop.permute.xlu1 %3214 }
 0x2f5   :  { %v3712_v49 = vld [vmem:[#allocation2 + $0x130] sm:$0xff]  ;;  %v1851_v15 = vpop.permute.xlu0 %1850  ;;  %3269 = vst.msk [vmem:[#allocation2 + $0x140] sm:$0xff] %vm1550_vm3, %v3215_v1 }
 0x2f6   :  { %3984 = vmatmul.mubr.f32.gmra.mrb[38].mxu1 %v3712_v49  ;;  %2356 = vst.msk [vmem:[%s8172_s3 + $0x48] sm:$0xff] %vm2346_vm4, %v2330_v50  ;;  %v3721_v50 = vld [vmem:[#allocation2 + $0x178] sm:$0xff] }
 0x2f7   :  { %1903 = vst.msk [vmem:[#allocation2 + $0x170] sm:$0xff] %vm1879_vm11, %v1851_v15  ;;  %4341 = vmatprep.mubr.msk.f32.mxu1 %vm8542_vm8, %v3715_v51  ;;  %vm8550_vm8 = vcmask 125952  }
 0x2f8   :  { %v3390_v59 = vpop.permute.xlu1 %3389  ;;  %v3920_v31 = vpop.f32.mrb[12].mxu1 }
 0x2f9   :  { %v2542_v29 = vpop.permute.xlu0 %2541  ;;  %3444 = vst.msk [vmem:[#allocation2 + $0x140] sm:$0xff] %vm1727_vm14, %v3390_v59  ;;  %v3921_v39 = vadd.f32 %v7591_v34, %v3920_v31  ;;  %v3922_v16 = vpop.f32.mrb[13].mxu1 }
 0x2fa   :  { %2595 = vst.msk [vmem:[#allocation2 + $0x150] sm:$0xff] %vm8543_vm13, %v2542_v29  ;;  %vm8551_vm13 = vmmov %vm8548_vm0  ;;  %v3723_v16 = vld [vmem:[#allocation2 + $0x188] sm:$0xf] }
 0x2fb   :  { %v4020_v54 = vmax.f32 %v3921_v39, 0.0 }
 0x2fc   :  { %v3540_v8 = vpop.permute.xlu1 %3539 }
 0x2fd   :  { %v2717_v10 = vpop.permute.xlu0 %2716  ;;  %4352 = vst.msk [vmem:[%s8172_s3 + $0xf8] sm:$0xff] %vm2346_vm4, %v4020_v54 }
 0x2fe   :  { %v2027_v27 = vld [vmem:[#allocation2 + $0x170] sm:$0xff]  ;;  %3594 = vst.msk [vmem:[#allocation2 + $0x140] sm:$0xff] %vm1879_vm11, %v3540_v8 }
 0x2ff   :  { %2770 = vst.msk [vmem:[#allocation2 + $0x150] sm:$0xff] %vm1044_vm1, %v2717_v10  ;;  %2311 = vmatmul.mubr.f32.gmra.mrb[46].mxu0 %v2027_v27 }
 0x300   :  { %2447 = vst.msk [vmem:[#allocation2 + $0x170] sm:$0xff] %vm8545_vm9, %v2422_v38  ;;  %4094 = vmatprep.mubr.msk.f32.mxu0 %vm8546_vm15, %v7659_v18  ;;  %v3042_v41 = vpop.permute.xlu1 %3041  ;;  %v4119_v18 = vld [vmem:[%s8169_s0 + $0x1cd] sm:$0xf]  ;;  %vm8559_vm9 = vcmask 781952   ;;  %vm8560_vm15 = vcmask 913152  }
 0x301   :  { %v2892_v60 = vpop.permute.xlu0 %2891  ;;  %v2247_v35 = vpop.f32.mrb[20].mxu0  ;;  %v2423_v6 = vsel %vm8549_vm6, %v4119_v18, 0.0 }
 0x302   :  { %2945 = vst.msk [vmem:[#allocation2 + $0x150] sm:$0xff] %vm1221_vm7, %v2892_v60  ;;  %v2248_v17 = vadd.f32 %v7591_v34, %v2247_v35  ;;  %v2249_v30 = vpop.f32.mrb[21].mxu0 }
 0x303   :  { %3095 = vst.msk [vmem:[#allocation2 + $0x150] sm:$0xff] %vm1373_vm12, %v3042_v41 }
 0x304   :  { %v2331_v36 = vmax.f32 %v2248_v17, 0.0  ;;  %v3217_v4 = vpop.permute.xlu1 %3216 }
 0x305   :  { %v3714_v56 = vld [vmem:[#allocation2 + $0x140] sm:$0xff]  ;;  %v1853_v13 = vpop.permute.xlu0 %1852  ;;  %3270 = vst.msk [vmem:[#allocation2 + $0x150] sm:$0xff] %vm1550_vm3, %v3217_v4 }
 0x306   :  { %3989 = vmatmul.mubr.f32.gmra.mrb[40].mxu1 %v3714_v56  ;;  %2357 = vst.msk [vmem:[%s8172_s3 + $0x50] sm:$0xff] %vm2346_vm4, %v2331_v36 }
 0x307   :  { %1905 = vst.msk [vmem:[#allocation2 + $0x180] sm:$0xf] %vm1904_vm2, %v1853_v13  ;;  %4342 = vmatprep.mubr.msk.f32.mxu1 %vm8547_vm5, %v3717_v52 }
 0x308   :  { %v3392_v43 = vpop.permute.xlu1 %3391  ;;  %v3925_v46 = vpop.f32.mrb[14].mxu1 }
 0x309   :  { %v2544_v32 = vpop.permute.xlu0 %2543  ;;  %3445 = vst.msk [vmem:[#allocation2 + $0x150] sm:$0xff] %vm1727_vm14, %v3392_v43  ;;  %v3926_v14 = vadd.f32 %v7591_v34, %v3925_v46  ;;  %v3927_v40 = vpop.f32.mrb[15].mxu1 }
 0x30a   :  { %2596 = vst.msk [vmem:[#allocation2 + $0x160] sm:$0xff] %vm8548_vm0, %v2544_v32 }
 0x30b   :  { %v4021_v28 = vmax.f32 %v3926_v14, 0.0 }
 0x30c   :  { %v3542_v7 = vpop.permute.xlu1 %3541 }
 0x30d   :  { %v2719_v23 = vpop.permute.xlu0 %2718  ;;  %4353 = vst.msk [vmem:[%s8172_s3 + $0x100] sm:$0xff] %vm2346_vm4, %v4021_v28 }
 0x30e   :  { %v2029_v33 = vld [vmem:[#allocation2 + $0x180] sm:$0xf]  ;;  %3595 = vst.msk [vmem:[#allocation2 + $0x150] sm:$0xff] %vm1879_vm11, %v3542_v7 }
 0x30f   :  { %2448 = vst.msk [vmem:[#allocation2 + $0x180] sm:$0xf] %vm8550_vm8, %v2423_v6  ;;  %2316 = vmatmul.mubr.f32.gmra.mrb[48].mxu0 %v2029_v33 }
 0x310   :  { %2771 = vst.msk [vmem:[#allocation2 + $0x160] sm:$0xff] %vm1044_vm1, %v2719_v23  ;;  %v2546_v57 = vpop.permute.xlu1 %2545 }
 0x311   :  { %v2894_v0 = vpop.permute.xlu0 %2893  ;;  %v2252_v25 = vpop.f32.mrb[22].mxu0  ;;  %2597 = vst.msk [vmem:[#allocation2 + $0x170] sm:$0xff] %vm8551_vm13, %v2546_v57 }
 0x312   :  { %2946 = vst.msk [vmem:[#allocation2 + $0x160] sm:$0xff] %vm1221_vm7, %v2894_v0  ;;  %v2253_v47 = vadd.f32 %v7591_v34, %v2252_v25  ;;  %v2254_v61 = vpop.f32.mrb[23].mxu0 }
 0x314   :  { %v2332_v63 = vmax.f32 %v2253_v47, 0.0  ;;  %v2721_v24 = vpop.permute.xlu1 %2720 }
 0x315   :  { %v3716_v20 = vld [vmem:[#allocation2 + $0x150] sm:$0xff]  ;;  %v3044_v37 = vpop.permute.xlu0 %3043  ;;  %2772 = vst.msk [vmem:[#allocation2 + $0x170] sm:$0xff] %vm1044_vm1, %v2721_v24  ;;  %vm8553_vm1 = vcmask 257152  }
 0x316   :  { %3994 = vmatmul.mubr.f32.gmra.mrb[42].mxu1 %v3716_v20  ;;  %2358 = vst.msk [vmem:[%s8172_s3 + $0x58] sm:$0xff] %vm2346_vm4, %v2332_v63 }
 0x317   :  { %3096 = vst.msk [vmem:[#allocation2 + $0x160] sm:$0xff] %vm1373_vm12, %v3044_v37  ;;  %4343 = vmatprep.mubr.msk.f32.mxu1 %vm8552_vm10, %v3719_v26 }
 0x318   :  { %v2896_v9 = vpop.permute.xlu1 %2895  ;;  %v3930_v2 = vpop.f32.mrb[16].mxu1 }
 0x319   :  { %v3219_v12 = vpop.permute.xlu0 %3218  ;;  %2947 = vst.msk [vmem:[#allocation2 + $0x170] sm:$0xff] %vm1221_vm7, %v2896_v9  ;;  %v3931_v45 = vadd.f32 %v7591_v34, %v3930_v2  ;;  %v3932_v58 = vpop.f32.mrb[17].mxu1  ;;  %vm8554_vm7 = vcmask 388352  }
 0x31a   :  { %3271 = vst.msk [vmem:[#allocation2 + $0x160] sm:$0xff] %vm1550_vm3, %v3219_v12  ;;  %v8072_v12 = vld [vmem:[%s8171_s2] ss:$0 sm:$0xff] }
 0x31b   :  { %v4022_v62 = vmax.f32 %v3931_v45, 0.0 }
 0x31c   :  { %v3046_v55 = vpop.permute.xlu1 %3045 }
 0x31d   :  { %v3394_v44 = vpop.permute.xlu0 %3393  ;;  %4354 = vst.msk [vmem:[%s8172_s3 + $0x108] sm:$0xff] %vm2346_vm4, %v4022_v62 }
 0x31e   :  { %3097 = vst.msk [vmem:[#allocation2 + $0x170] sm:$0xff] %vm1373_vm12, %v3046_v55  ;;  %vm8555_vm12 = vmmov %vm8547_vm5 }
 0x31f   :  { %3446 = vst.msk [vmem:[#allocation2 + $0x160] sm:$0xff] %vm1727_vm14, %v3394_v44 }
 0x320   :  { %v3221_v11 = vpop.permute.xlu1 %3220 }
 0x321   :  { %v3544_v42 = vpop.permute.xlu0 %3543  ;;  %v2257_v3 = vpop.f32.mrb[24].mxu0  ;;  %3272 = vst.msk [vmem:[#allocation2 + $0x170] sm:$0xff] %vm1550_vm3, %v3221_v11  ;;  %vm8556_vm3 = vcmask 519552  }
 0x322   :  { %3596 = vst.msk [vmem:[#allocation2 + $0x160] sm:$0xff] %vm1879_vm11, %v3544_v42  ;;  %v2258_v5 = vadd.f32 %v7591_v34, %v2257_v3  ;;  %v2259_v22 = vpop.f32.mrb[25].mxu0 }
 0x324   :  { %v2333_v53 = vmax.f32 %v2258_v5, 0.0  ;;  %v3396_v19 = vpop.permute.xlu1 %3395 }
 0x325   :  { %v2548_v21 = vpop.permute.xlu0 %2547  ;;  %3447 = vst.msk [vmem:[#allocation2 + $0x170] sm:$0xff] %vm1727_vm14, %v3396_v19  ;;  %vm8557_vm14 = vcmask 650752  }
 0x326   :  { %2359 = vst.msk [vmem:[%s8172_s3 + $0x60] sm:$0xff] %vm2346_vm4, %v2333_v53 }
 0x327   :  { %2598 = vst.msk [vmem:[#allocation2 + $0x180] sm:$0xf] %vm8553_vm1, %v2548_v21 }
 0x328   :  { %v3546_v48 = vpop.permute.xlu1 %3545  ;;  %v3935_v51 = vpop.f32.mrb[18].mxu1 }
 0x329   :  { %v2723_v1 = vpop.permute.xlu0 %2722  ;;  %v3718_v49 = vld [vmem:[#allocation2 + $0x160] sm:$0xff]  ;;  %3597 = vst.msk [vmem:[#allocation2 + $0x170] sm:$0xff] %vm1879_vm11, %v3546_v48  ;;  %v3936_v15 = vadd.f32 %v7591_v34, %v3935_v51  ;;  %v3937_v59 = vpop.f32.mrb[19].mxu1  ;;  %vm8558_vm11 = vmmov %vm8547_vm5 }
 0x32a   :  { %2773 = vst.msk [vmem:[#allocation2 + $0x180] sm:$0xf] %vm8554_vm7, %v2723_v1  ;;  %3999 = vmatmul.mubr.f32.gmra.mrb[44].mxu1 %v3718_v49 }
 0x32b   :  { %v4023_v31 = vmax.f32 %v3936_v15, 0.0  ;;  %4344 = vmatprep.mubr.msk.f32.mxu1 %vm8555_vm12, %v3721_v50 }
 0x32c   :  { %v3223_v39 = vpop.permute.xlu1 %3222 }
 0x32d   :  { %v2898_v29 = vpop.permute.xlu0 %2897  ;;  %4355 = vst.msk [vmem:[%s8172_s3 + $0x110] sm:$0xff] %vm2346_vm4, %v4023_v31 }
 0x32e   :  { %2948 = vst.msk [vmem:[#allocation2 + $0x180] sm:$0xf] %vm8556_vm3, %v2898_v29 }
 0x330   :  { %v3720_v54 = vld [vmem:[#allocation2 + $0x170] sm:$0xff]  ;;  %v3548_v60 = vpop.permute.xlu1 %3547 }
 0x331   :  { %v3048_v38 = vpop.permute.xlu0 %3047  ;;  %v2262_v8 = vpop.f32.mrb[26].mxu0  ;;  %4004 = vmatmul.mubr.f32.gmra.mrb[46].mxu1 %v3720_v54 }
 0x332   :  { %3098 = vst.msk [vmem:[#allocation2 + $0x180] sm:$0xf] %vm8557_vm14, %v3048_v38  ;;  %v2263_v10 = vadd.f32 %v7591_v34, %v2262_v8  ;;  %v2264_v27 = vpop.f32.mrb[27].mxu0  ;;  %4345 = vmatprep.mubr.msk.f32.mxu1 %vm8558_vm11, %v3723_v16 }
 0x333   :  { %3273 = vst.msk [vmem:[#allocation2 + $0x180] sm:$0xf] %vm8559_vm9, %v3223_v39 }
 0x334   :  { %v2334_v41 = vmax.f32 %v2263_v10, 0.0 }
 0x335   :  { %v3398_v35 = vpop.permute.xlu0 %3397 }
 0x336   :  { %2360 = vst.msk [vmem:[%s8172_s3 + $0x68] sm:$0xff] %vm2346_vm4, %v2334_v41 }
 0x337   :  { %3448 = vst.msk [vmem:[#allocation2 + $0x180] sm:$0xf] %vm8560_vm15, %v3398_v35 }
 0x338   :  { %3598 = vst.msk [vmem:[#allocation2 + $0x180] sm:$0xf] %vm1904_vm2, %v3548_v60  ;;  %v3940_v17 = vpop.f32.mrb[20].mxu1  ;;  %vm2371_vm2 = vcmask 257024  }
 0x339   :  { %v3941_v30 = vadd.f32 %v7591_v34, %v3940_v17  ;;  %v3942_v52 = vpop.f32.mrb[21].mxu1 }
 0x33b   :  { %v4024_v36 = vmax.f32 %v3941_v30, 0.0 }
 0x33d   :  { %4356 = vst.msk [vmem:[%s8172_s3 + $0x118] sm:$0xff] %vm2346_vm4, %v4024_v36 }
 0x33f   :  { %v3722_v4 = vld [vmem:[#allocation2 + $0x180] sm:$0xf] }
 0x340   :  { %4009 = vmatmul.mubr.f32.gmra.mrb[48].mxu1 %v3722_v4 }
 0x341   :  { %v2267_v56 = vpop.f32.mrb[28].mxu0 }
 0x342   :  { %v2268_v13 = vadd.f32 %v7591_v34, %v2267_v56  ;;  %v2269_v18 = vpop.f32.mrb[29].mxu0 }
 0x344   :  { %v2335_v43 = vmax.f32 %v2268_v13, 0.0 }
 0x346   :  { %2361 = vst.msk [vmem:[%s8172_s3 + $0x70] sm:$0xff] %vm2346_vm4, %v2335_v43 }
 0x348   :  { %v3945_v46 = vpop.f32.mrb[22].mxu1 }
 0x349   :  { %v3946_v32 = vadd.f32 %v7591_v34, %v3945_v46  ;;  %v3947_v14 = vpop.f32.mrb[23].mxu1 }
 0x34b   :  { %v4025_v40 = vmax.f32 %v3946_v32, 0.0 }
 0x34d   :  { %4357 = vst.msk [vmem:[%s8172_s3 + $0x120] sm:$0xff] %vm2346_vm4, %v4025_v40 }
 0x351   :  { %v2272_v6 = vpop.f32.mrb[30].mxu0 }
 0x352   :  { %v2273_v28 = vadd.f32 %v7591_v34, %v2272_v6  ;;  %v2274_v7 = vpop.f32.mrb[31].mxu0 }
 0x354   :  { %v2336_v33 = vmax.f32 %v2273_v28, 0.0 }
 0x356   :  { %2362 = vst.msk [vmem:[%s8172_s3 + $0x78] sm:$0xff] %vm2346_vm4, %v2336_v33 }
 0x358   :  { %v3950_v23 = vpop.f32.mrb[24].mxu1 }
 0x359   :  { %v3951_v57 = vadd.f32 %v7591_v34, %v3950_v23  ;;  %v3952_v0 = vpop.f32.mrb[25].mxu1 }
 0x35b   :  { %v4026_v25 = vmax.f32 %v3951_v57, 0.0 }
 0x35d   :  { %4358 = vst.msk [vmem:[%s8172_s3 + $0x128] sm:$0xff] %vm2346_vm4, %v4026_v25 }
 0x361   :  { %v2277_v47 = vpop.f32.mrb[32].mxu0 }
 0x362   :  { %v2278_v61 = vadd.f32 %v7591_v34, %v2277_v47  ;;  %v2279_v26 = vpop.f32.mrb[33].mxu0 }
 0x364   :  { %v2337_v63 = vmax.f32 %v2278_v61, 0.0 }
 0x366   :  { %2363 = vst.msk [vmem:[%s8172_s3 + $0x80] sm:$0xff] %vm2346_vm4, %v2337_v63 }
 0x368   :  { %v3955_v24 = vpop.f32.mrb[26].mxu1 }
 0x369   :  { %v3956_v20 = vadd.f32 %v7591_v34, %v3955_v24  ;;  %v3957_v37 = vpop.f32.mrb[27].mxu1 }
 0x36b   :  { %v4027_v9 = vmax.f32 %v3956_v20, 0.0 }
 0x36d   :  { %4359 = vst.msk [vmem:[%s8172_s3 + $0x130] sm:$0xff] %vm2346_vm4, %v4027_v9 }
 0x372   :  { %v2282_v2 = vpop.f32.mrb[34].mxu0 }
 0x373   :  { %v2283_v45 = vadd.f32 %v8072_v12, %v2282_v2  ;;  %v2284_v58 = vpop.f32.mrb[35].mxu0 }
 0x375   :  { %v2338_v62 = vmax.f32 %v2283_v45, 0.0 }
 0x377   :  { %2364 = vst.msk [vmem:[%s8172_s3 + $0x88] sm:$0xff] %vm2346_vm4, %v2338_v62 }
 0x378   :  { %v3960_v34 = vpop.f32.mrb[28].mxu1 }
 0x379   :  { %v3961_v55 = vadd.f32 %v8072_v12, %v3960_v34  ;;  %v3962_v44 = vpop.f32.mrb[29].mxu1 }
 0x37b   :  { %v4028_v11 = vmax.f32 %v3961_v55, 0.0 }
 0x37d   :  { %4360 = vst.msk [vmem:[%s8172_s3 + $0x138] sm:$0xff] %vm2346_vm4, %v4028_v11 }
 0x383   :  { %v2287_v42 = vpop.f32.mrb[36].mxu0 }
 0x384   :  { %v2288_v3 = vadd.f32 %v8072_v12, %v2287_v42  ;;  %v2289_v5 = vpop.f32.mrb[37].mxu0 }
 0x386   :  { %v2339_v22 = vmax.f32 %v2288_v3, 0.0 }
 0x388   :  { %2365 = vst.msk [vmem:[%s8172_s3 + $0x90] sm:$0xff] %vm2346_vm4, %v2339_v22  ;;  %v3965_v53 = vpop.f32.mrb[30].mxu1 }
 0x389   :  { %v3966_v19 = vadd.f32 %v8072_v12, %v3965_v53  ;;  %v3967_v21 = vpop.f32.mrb[31].mxu1 }
 0x38b   :  { %v4029_v48 = vmax.f32 %v3966_v19, 0.0 }
 0x38d   :  { %4361 = vst.msk [vmem:[%s8172_s3 + $0x140] sm:$0xff] %vm2346_vm4, %v4029_v48 }
 0x391   :  { %v2292_v51 = vpop.f32.mrb[38].mxu0 }
 0x392   :  { %v2293_v50 = vadd.f32 %v8072_v12, %v2292_v51  ;;  %v2294_v1 = vpop.f32.mrb[39].mxu0 }
 0x394   :  { %v2340_v49 = vmax.f32 %v2293_v50, 0.0 }
 0x396   :  { %2366 = vst.msk [vmem:[%s8172_s3 + $0x98] sm:$0xff] %vm2346_vm4, %v2340_v49 }
 0x398   :  { %v3970_v15 = vpop.f32.mrb[32].mxu1 }
 0x399   :  { %v3971_v59 = vadd.f32 %v8072_v12, %v3970_v15  ;;  %v3972_v31 = vpop.f32.mrb[33].mxu1 }
 0x39b   :  { %v4030_v29 = vmax.f32 %v3971_v59, 0.0 }
 0x39d   :  { %4362 = vst.msk [vmem:[%s8172_s3 + $0x148] sm:$0xff] %vm2346_vm4, %v4030_v29 }
 0x3a1   :  { %v2297_v39 = vpop.f32.mrb[40].mxu0 }
 0x3a2   :  { %v2298_v16 = vadd.f32 %v8072_v12, %v2297_v39  ;;  %v2299_v54 = vpop.f32.mrb[41].mxu0 }
 0x3a4   :  { %v2341_v38 = vmax.f32 %v2298_v16, 0.0 }
 0x3a6   :  { %2367 = vst.msk [vmem:[%s8172_s3 + $0xa0] sm:$0xff] %vm2346_vm4, %v2341_v38 }
 0x3a8   :  { %v3975_v8 = vpop.f32.mrb[34].mxu1 }
 0x3a9   :  { %v3976_v10 = vadd.f32 %v8072_v12, %v3975_v8  ;;  %v3977_v27 = vpop.f32.mrb[35].mxu1 }
 0x3ab   :  { %v4031_v41 = vmax.f32 %v3976_v10, 0.0 }
 0x3ad   :  { %4363 = vst.msk [vmem:[%s8172_s3 + $0x150] sm:$0xff] %vm2346_vm4, %v4031_v41 }
 0x3b2   :  { %v2302_v60 = vpop.f32.mrb[42].mxu0 }
 0x3b3   :  { %v2303_v35 = vadd.f32 %v8072_v12, %v2302_v60  ;;  %v2304_v17 = vpop.f32.mrb[43].mxu0 }
 0x3b5   :  { %v2342_v30 = vmax.f32 %v2303_v35, 0.0 }
 0x3b7   :  { %2368 = vst.msk [vmem:[%s8172_s3 + $0xa8] sm:$0xff] %vm2346_vm4, %v2342_v30 }
 0x3b9   :  { %v3980_v52 = vpop.f32.mrb[36].mxu1 }
 0x3ba   :  { %v3981_v36 = vadd.f32 %v8072_v12, %v3980_v52  ;;  %v3982_v4 = vpop.f32.mrb[37].mxu1 }
 0x3bc   :  { %v4032_v56 = vmax.f32 %v3981_v36, 0.0 }
 0x3be   :  { %4364 = vst.msk [vmem:[%s8172_s3 + $0x158] sm:$0xff] %vm2346_vm4, %v4032_v56 }
 0x3c2   :  { %v2307_v13 = vpop.f32.mrb[44].mxu0 }
 0x3c3   :  { %v2308_v18 = vadd.f32 %v8072_v12, %v2307_v13  ;;  %v2309_v43 = vpop.f32.mrb[45].mxu0 }
 0x3c5   :  { %v2343_v46 = vmax.f32 %v2308_v18, 0.0 }
 0x3c7   :  { %2369 = vst.msk [vmem:[%s8172_s3 + $0xb0] sm:$0xff] %vm2346_vm4, %v2343_v46 }
 0x3c9   :  { %v3985_v32 = vpop.f32.mrb[38].mxu1 }
 0x3ca   :  { %v3986_v14 = vadd.f32 %v8072_v12, %v3985_v32  ;;  %v3987_v40 = vpop.f32.mrb[39].mxu1 }
 0x3cc   :  { %v4033_v6 = vmax.f32 %v3986_v14, 0.0 }
 0x3ce   :  { %4365 = vst.msk [vmem:[%s8172_s3 + $0x160] sm:$0xff] %vm2346_vm4, %v4033_v6 }
 0x3d2   :  { %v2312_v28 = vpop.f32.mrb[46].mxu0 }
 0x3d3   :  { %v2313_v7 = vadd.f32 %v8072_v12, %v2312_v28  ;;  %v2314_v33 = vpop.f32.mrb[47].mxu0 }
 0x3d5   :  { %v2344_v23 = vmax.f32 %v2313_v7, 0.0 }
 0x3d7   :  { %2370 = vst.msk [vmem:[%s8172_s3 + $0xb8] sm:$0xff] %vm2346_vm4, %v2344_v23 }
 0x3d9   :  { %v3990_v57 = vpop.f32.mrb[40].mxu1 }
 0x3da   :  { %v3991_v0 = vadd.f32 %v8072_v12, %v3990_v57  ;;  %v3992_v25 = vpop.f32.mrb[41].mxu1 }
 0x3dc   :  { %v4034_v47 = vmax.f32 %v3991_v0, 0.0 }
 0x3de   :  { %4366 = vst.msk [vmem:[%s8172_s3 + $0x168] sm:$0xff] %vm2346_vm4, %v4034_v47 }
 0x3e2   :  { %v2317_v61 = vpop.f32.mrb[48].mxu0 }
 0x3e3   :  { %v2318_v26 = vadd.f32 %v8072_v12, %v2317_v61  ;;  %v2319_v63 = vpop.f32.mrb[49].mxu0 }
 0x3e5   :  { %v2345_v24 = vmax.f32 %v2318_v26, 0.0 }
 0x3e7   :  { %2372 = vst.msk [vmem:[%s8172_s3 + $0xc0] sm:$0xf] %vm2371_vm2, %v2345_v24 }
 0x3e9   :  { %v3995_v20 = vpop.f32.mrb[42].mxu1 }
 0x3ea   :  { %v3996_v37 = vadd.f32 %v8072_v12, %v3995_v20  ;;  %v3997_v9 = vpop.f32.mrb[43].mxu1 }
 0x3ec   :  { %v4035_v2 = vmax.f32 %v3996_v37, 0.0 }
 0x3ee   :  { %4367 = vst.msk [vmem:[%s8172_s3 + $0x170] sm:$0xff] %vm2346_vm4, %v4035_v2 }
 0x3fd   :  { %v4000_v45 = vpop.f32.mrb[44].mxu1 }
 0x3fe   :  { %v4001_v58 = vadd.f32 %v8072_v12, %v4000_v45  ;;  %v4002_v62 = vpop.f32.mrb[45].mxu1 }
 0x400   :  { %v4036_v34 = vmax.f32 %v4001_v58, 0.0 }
 0x402   :  { %4368 = vst.msk [vmem:[%s8172_s3 + $0x178] sm:$0xff] %vm2346_vm4, %v4036_v34 }
 0x404   :  { %v4005_v55 = vpop.f32.mrb[46].mxu1 }
 0x405   :  { %v4006_v44 = vadd.f32 %v8072_v12, %v4005_v55  ;;  %v4007_v11 = vpop.f32.mrb[47].mxu1 }
 0x407   :  { %v4037_v42 = vmax.f32 %v4006_v44, 0.0 }
 0x409   :  { %4369 = vst.msk [vmem:[%s8172_s3 + $0x180] sm:$0xff] %vm2346_vm4, %v4037_v42 }
 0x413   :  { %v4010_v3 = vpop.f32.mrb[48].mxu1 }
 0x414   :  { %v4011_v5 = vadd.f32 %v8072_v12, %v4010_v3  ;;  %v4012_v22 = vpop.f32.mrb[49].mxu1 }
 0x416   :  { %v4038_v53 = vmax.f32 %v4011_v5, 0.0 }
 0x418   :  { %4370 = vst.msk [vmem:[%s8172_s3 + $0x188] sm:$0xf] %vm2371_vm2, %v4038_v53 }

</bundles_post_ra>
